<compile_context>
chip_gen: v5e
topology: v5e:2x2
jax: 0.10.0
libtpu: 0.0.40
codegen_flags: <defaults>
</compile_context>

<pallas_src>
import jax
import jax.numpy as jnp
from jax.experimental import pallas as pl
from jax.experimental.pallas import tpu as pltpu


# ----------------------------------------------------------------------------
# Fused kernel: [zero-pad + concat] -> conv3x3 -> affine -> ReLU
#               -> [zero-pad in VMEM] -> conv3x3 -> affine -> ReLU
# One grid step per image; all intermediates stay in VMEM.
# ----------------------------------------------------------------------------
def _up_double_conv_kernel(x2_ref, x1_ref, w1_ref, s1_ref, b1_ref,
                           w2_ref, s2_ref, b2_ref, o_ref,
                           pad1_ref, pad2_ref):
    # x2_ref : (H, W, C2)           skip-connection tile (bf16)
    # x1_ref : (H, W, C1)           upsampled decoder tile (bf16)
    # w1_ref : (9, C2+C1, Cm)       conv1 weights, one (Cin, Cm) slab per tap (bf16)
    # w2_ref : (9, Cm, Cout)        conv2 weights (bf16)
    # s*_ref, b*_ref : (1, C)       folded conv-bias + eval-BN scale/bias (f32)
    # o_ref  : (Cout, H*W)          lane-dense bf16 output slab
    # pad1_ref : (H+2, W+2, C2+C1)  VMEM scratch -- concat + zero halo (bf16)
    # pad2_ref : (H+2, W+2, Cm)     VMEM scratch -- mid act + zero halo (bf16)
    H, W, C2 = x2_ref.shape
    C1 = x1_ref.shape[-1]
    Cin1 = C2 + C1
    Cm = w1_ref.shape[-1]

    def zero_halo(ref, cin):
        # The interior is fully overwritten every grid step, so only the
        # 1-pixel halo border needs zeroing: O(H+W) stores instead of a full
        # O(H*W) tile zero per step (vst-slot relief, esp. on v5e).
        ref[0:1, :, :] = jnp.zeros((1, W + 2, cin), ref.dtype)
        ref[H + 1:H + 2, :, :] = jnp.zeros((1, W + 2, cin), ref.dtype)
        ref[:, 0:1, :] = jnp.zeros((H + 2, 1, cin), ref.dtype)
        ref[:, W + 1:W + 2, :] = jnp.zeros((H + 2, 1, cin), ref.dtype)

    def conv3x3(src_ref, w_ref, cin):
        cout = w_ref.shape[-1]
        if cin < 128:
            # Small-Cin (toy) path: fuse all 9 taps into one K = 9*cin MXU pass.
            cols = [src_ref[ky:ky + H, kx:kx + W, :].reshape(H * W, cin)
                    for ky in range(3) for kx in range(3)]
            return jnp.dot(jnp.concatenate(cols, axis=-1),
                           w_ref[...].reshape(9 * cin, cout),
                           preferred_element_type=jnp.float32)
        # Production path (Cin >= 128): 9 per-tap accumulating matmuls.
        # No (H*W, 9*cin) im2col temporary (~9x the activation footprint) and
        # no lane-axis concatenate; same total MXU work, f32 accumulation.
        acc = jnp.zeros((H * W, cout), jnp.float32)
        for ky in range(3):
            for kx in range(3):
                acc = acc + jnp.dot(
                    src_ref[ky:ky + H, kx:kx + W, :].reshape(H * W, cin),
                    w_ref[ky * 3 + kx],
                    preferred_element_type=jnp.float32)
        return acc

    # Fused zero-padding + channel concat (== torch.cat([x2, x1], dim=1)).
    zero_halo(pad1_ref, Cin1)
    pad1_ref[1:H + 1, 1:W + 1, :C2] = x2_ref[...]
    pad1_ref[1:H + 1, 1:W + 1, C2:] = x1_ref[...]

    # conv1 + folded bias/BN + ReLU (f32 epilogue).
    h = conv3x3(pad1_ref, w1_ref, Cin1)
    h = jnp.maximum(h * s1_ref[0] + b1_ref[0], 0.0)                 # (H*W, Cm)

    # Mid activation never leaves VMEM; re-pad for conv2's 1-pixel halo.
    zero_halo(pad2_ref, Cm)
    pad2_ref[1:H + 1, 1:W + 1, :] = h.reshape(H, W, Cm).astype(pad2_ref.dtype)

    # conv2 + folded bias/BN + ReLU.
    y = conv3x3(pad2_ref, w2_ref, Cm)
    y = jnp.maximum(y * s2_ref[0] + b2_ref[0], 0.0)                 # (H*W, Cout)

    # Cast to bf16 BEFORE the transpose (halves XLU/vreg traffic), then store
    # lane-dense (Cout, H*W) -> last dim >= 128 and a free reshape to NCHW in
    # the wrapper.
    o_ref[...] = y.astype(o_ref.dtype).T


def up_double_conv(x2, x1, w1, s1, b1, w2, s2, b2):
    """x2: (N,H,W,C2) bf16 skip; x1: (N,H,W,C1) bf16 upsampled decoder.

    Returns (N, Cout, H*W) bfloat16 -- reshape to (N, Cout, H, W) for NCHW."""
    N, H, W, C2 = x2.shape
    C1 = x1.shape[-1]
    Cm = w1.shape[-1]
    Cout = w2.shape[-1]
    return pl.pallas_call(
        _up_double_conv_kernel,
        out_shape=jax.ShapeDtypeStruct((N, Cout, H * W), jnp.bfloat16),
        grid=(N,),
        in_specs=[
            pl.BlockSpec((pl.Squeezed(), H, W, C2), lambda n: (n, 0, 0, 0)),
            pl.BlockSpec((pl.Squeezed(), H, W, C1), lambda n: (n, 0, 0, 0)),
            pl.BlockSpec((9, C2 + C1, Cm), lambda n: (0, 0, 0)),
            pl.BlockSpec((1, Cm), lambda n: (0, 0)),
            pl.BlockSpec((1, Cm), lambda n: (0, 0)),
            pl.BlockSpec((9, Cm, Cout), lambda n: (0, 0, 0)),
            pl.BlockSpec((1, Cout), lambda n: (0, 0)),
            pl.BlockSpec((1, Cout), lambda n: (0, 0)),
        ],
        out_specs=pl.BlockSpec((pl.Squeezed(), Cout, H * W),
                               lambda n: (n, 0, 0)),
        scratch_shapes=[
            pltpu.VMEM((H + 2, W + 2, C2 + C1), jnp.bfloat16),
            pltpu.VMEM((H + 2, W + 2, Cm), jnp.bfloat16),
        ],
        compiler_params=pltpu.CompilerParams(
            dimension_semantics=("parallel",),
            # Explicit scoped-VMEM budget: ~48 MiB leaves headroom on v7x's
            # 64 MiB physical VMEM and raises the 16/32 MiB defaults on
            # v5e/v6e for large whole-image blocks.
            vmem_limit_bytes=48 * 1024 * 1024),
    )(x2, x1, w1, s1, b1, w2, s2, b2)


# ----------------------------------------------------------------------------
# Glue: bilinear upsample x2 (align_corners=True), matching torch.nn.Upsample.
# ----------------------------------------------------------------------------
def bilinear_upsample_x2(x):
    """x: (N, H, W, C) -> (N, 2H, 2W, C), align_corners=True."""
    N, H, W, C = x.shape
    Ho, Wo = 2 * H, 2 * W

    def coords(out_size, in_size):
        if in_size == 1:
            z = jnp.zeros((out_size,), jnp.float32)
            zi = jnp.zeros((out_size,), jnp.int32)
            return z, zi, zi
        src = jnp.arange(out_size, dtype=jnp.float32) * (in_size - 1) / (out_size - 1)
        i0 = jnp.floor(src).astype(jnp.int32)
        i1 = jnp.minimum(i0 + 1, in_size - 1)
        return src - i0.astype(jnp.float32), i0, i1

    ty, y0, y1 = coords(Ho, H)
    tx, x0, x1 = coords(Wo, W)

    rows0 = x[:, y0]                      # (N, Ho, W, C)
    rows1 = x[:, y1]
    txb = tx[None, None, :, None]
    top = rows0[:, :, x0] * (1.0 - txb) + rows0[:, :, x1] * txb
    bot = rows1[:, :, x0] * (1.0 - txb) + rows1[:, :, x1] * txb
    tyb = ty[None, :, None, None]
    return top * (1.0 - tyb) + bot * tyb


def _pad_to(x1, x2):
    diff_y = x2.shape[1] - x1.shape[1]
    diff_x = x2.shape[2] - x1.shape[2]
    return jnp.pad(x1, ((0, 0),
                        (diff_y // 2, diff_y - diff_y // 2),
                        (diff_x // 2, diff_x - diff_x // 2),
                        (0, 0)))


def _prepare_inputs(x1_nchw, x2_nchw):
    # NCHW -> NHWC and the bf16 cast happen BEFORE the upsample glue so the
    # (N, 2H, 2W, C1) intermediate streams through HBM at half width.
    x1 = jnp.transpose(x1_nchw, (0, 2, 3, 1)).astype(jnp.bfloat16)
    x2 = jnp.transpose(x2_nchw, (0, 2, 3, 1)).astype(jnp.bfloat16)
    x1 = _pad_to(bilinear_upsample_x2(x1), x2).astype(jnp.bfloat16)
    return x1, x2


# ----------------------------------------------------------------------------
# Parameters (deterministic init, eval-mode BN folded) and the full Up.forward.
# ----------------------------------------------------------------------------
def init_up_params(key, in_channels, out_channels):
    mid_channels = in_channels // 2
    eps = 1e-5

    def conv_layer(k, cin, cout):
        kw, kb, kg, kbt = jax.random.split(k, 4)
        w = jax.random.normal(kw, (3, 3, cin, cout), jnp.float32) * 0.1  # HWIO
        b = jax.random.normal(kb, (cout,), jnp.float32) * 0.1
        gamma = 1.0 + 0.1 * jax.random.normal(kg, (cout,), jnp.float32)
        beta = 0.1 * jax.random.normal(kbt, (cout,), jnp.float32)
        run_mean = jnp.zeros((cout,), jnp.float32)
        run_var = jnp.ones((cout,), jnp.float32)
        # Fold conv bias + eval-mode BN into per-channel scale/bias.
        scale = gamma / jnp.sqrt(run_var + eps)
        bias = (b - run_mean) * scale + beta
        return {"w": w, "scale": scale, "bias": bias}

    k1, k2 = jax.random.split(key)
    return {
        "conv1": conv_layer(k1, in_channels, mid_channels),
        "conv2": conv_layer(k2, mid_channels, out_channels),
    }


def _fold_layer(layer):
    kh, kw, cin, cout = layer["w"].shape
    # NOTE: at production sizes Cm/Cout should be multiples of 128 (v5e MXU)
    # and ideally 256 (v6e/v7x) to keep the systolic array fully utilized.
    w9 = layer["w"].reshape(kh * kw, cin, cout).astype(jnp.bfloat16)  # per-tap
    s = layer["scale"].reshape(1, -1).astype(jnp.float32)
    b = layer["bias"].reshape(1, -1).astype(jnp.float32)
    return w9, s, b


@jax.jit
def up_forward(x1_nchw, x2_nchw, params):
    """x1_nchw: decoder feature (to upsample); x2_nchw: encoder skip. NCHW in/out."""
    x1, x2 = _prepare_inputs(x1_nchw, x2_nchw)
    N, H, W, _ = x2.shape
    Cout = params["conv2"]["w"].shape[-1]

    w1, s1, b1 = _fold_layer(params["conv1"])
    w2, s2, b2 = _fold_layer(params["conv2"])

    out = up_double_conv(x2, x1, w1, s1, b1, w2, s2, b2)   # (N, Cout, H*W) bf16
    return out.reshape(N, Cout, H, W).astype(jnp.float32)  # NCHW, module dtype


# ----------------------------------------------------------------------------
# Pure-JAX reference (same bf16 operands, f32 accumulation) for a sanity check.
# ----------------------------------------------------------------------------
def _ref_conv_block(x, layer):
    y = jax.lax.conv_general_dilated(
        x.astype(jnp.bfloat16), layer["w"].astype(jnp.bfloat16),
        window_strides=(1, 1), padding=((1, 1), (1, 1)),
        dimension_numbers=("NHWC", "HWIO", "NHWC"),
        preferred_element_type=jnp.float32)
    y = y * layer["scale"][None, None, None, :] + layer["bias"][None, None, None, :]
    return jnp.maximum(y, 0.0)


@jax.jit
def up_forward_ref(x1_nchw, x2_nchw, params):
    x1, x2 = _prepare_inputs(x1_nchw, x2_nchw)
    x = jnp.concatenate([x2, x1], axis=-1)                # torch.cat([x2, x1], dim=1)
    h = _ref_conv_block(x, params["conv1"])
    y = _ref_conv_block(h, params["conv2"])
    return jnp.transpose(y, (0, 3, 1, 2))


if __name__ == "__main__":
    key = jax.random.PRNGKey(0)

    def run_case(case_key, in_channels, out_channels, n, h):
        k_p, k_x1, k_x2 = jax.random.split(case_key, 3)
        c_half = in_channels // 2
        # Up(in_channels, out_channels): x1 (in/2 ch, h/2 x h/2) is upsampled to
        # h x h and concatenated with skip x2 (in/2 ch, h x h) -> in_channels
        # into DoubleConv(in, out, in//2).
        x1 = jax.random.normal(k_x1, (n, c_half, h // 2, h // 2), jnp.float32)  # NCHW
        x2 = jax.random.normal(k_x2, (n, c_half, h, h), jnp.float32)            # NCHW
        params = init_up_params(k_p, in_channels, out_channels)

        out = up_forward(x1, x2, params)
        jax.block_until_ready(out)
        assert out.shape == (n, out_channels, h, h), out.shape
        assert bool(jnp.all(jnp.isfinite(out)))

        ref = up_forward_ref(x1, x2, params)
        jax.block_until_ready(ref)
        assert bool(jnp.allclose(out, ref, atol=5e-2, rtol=5e-2)), (
            float(jnp.max(jnp.abs(out - ref))))

    k_toy, k_big = jax.random.split(key)
    # Toy config (small Cin -> fused-K conv path).
    run_case(k_toy, in_channels=8, out_channels=4, n=2, h=16)
    # MXU-width channels (Cin >= 128) exercising the per-tap accumulation path.
    run_case(k_big, in_channels=256, out_channels=128, n=1, h=16)

    print("KERNEL_OK")
</pallas_src>

<mosaic_0001>
module attributes {stable_mosaic.version = 11 : i64} {
  func.func @_up_double_conv_kernel(%arg0: i32, %arg1: memref<1x16x16x4xbf16, #tpu.memory_space<vmem>>, %arg2: memref<1x16x16x4xbf16, #tpu.memory_space<vmem>>, %arg3: memref<9x8x4xbf16, #tpu.memory_space<vmem>>, %arg4: memref<1x4xf32, #tpu.memory_space<vmem>>, %arg5: memref<1x4xf32, #tpu.memory_space<vmem>>, %arg6: memref<9x4x4xbf16, #tpu.memory_space<vmem>>, %arg7: memref<1x4xf32, #tpu.memory_space<vmem>>, %arg8: memref<1x4xf32, #tpu.memory_space<vmem>>, %arg9: memref<1x4x256xbf16, #tpu.memory_space<vmem>>, %arg10: memref<18x18x8xbf16, #tpu.memory_space<vmem>>, %arg11: memref<18x18x4xbf16, #tpu.memory_space<vmem>>) attributes {dimension_semantics = [#tpu.dimension_semantics<parallel>], iteration_bounds = array<i64: 2>, scalar_prefetch = 0 : i64, scratch_operands = 2 : i64, tpu.core_type = #tpu.core_type<tc>, window_params = [{transform_indices = @transform_0, window_bounds = array<i64: 1, 16, 16, 4>}, {transform_indices = @transform_1, window_bounds = array<i64: 1, 16, 16, 4>}, {pipeline_mode = #tpu.pipeline_mode<synchronous>, transform_indices = @transform_2, window_bounds = array<i64: 9, 8, 4>}, {pipeline_mode = #tpu.pipeline_mode<synchronous>, transform_indices = @transform_3, window_bounds = array<i64: 1, 4>}, {pipeline_mode = #tpu.pipeline_mode<synchronous>, transform_indices = @transform_4, window_bounds = array<i64: 1, 4>}, {pipeline_mode = #tpu.pipeline_mode<synchronous>, transform_indices = @transform_5, window_bounds = array<i64: 9, 4, 4>}, {pipeline_mode = #tpu.pipeline_mode<synchronous>, transform_indices = @transform_6, window_bounds = array<i64: 1, 4>}, {pipeline_mode = #tpu.pipeline_mode<synchronous>, transform_indices = @transform_7, window_bounds = array<i64: 1, 4>}, {transform_indices = @transform_8, window_bounds = array<i64: 1, 4, 256>}]} {
    %cst = arith.constant 0.000000e+00 : bf16
    %0 = vector.broadcast %cst : bf16 to vector<1x18x8xbf16>
    %c0 = arith.constant 0 : index
    %c0_0 = arith.constant 0 : index
    %c0_1 = arith.constant 0 : index
    %1 = vector.load %arg10[%c0, %c0_0, %c0_1] : memref<18x18x8xbf16, #tpu.memory_space<vmem>>, vector<1x18x8xbf16>
    tpu.vector_store %arg10[%c0, %c0_0, %c0_1], %0 {strides = array<i32>} : memref<18x18x8xbf16, #tpu.memory_space<vmem>>, vector<1x18x8xbf16>,
    %cst_2 = arith.constant 0.000000e+00 : bf16
    %2 = vector.broadcast %cst_2 : bf16 to vector<1x18x8xbf16>
    %c17 = arith.constant 17 : index
    %c0_3 = arith.constant 0 : index
    %c0_4 = arith.constant 0 : index
    %3 = vector.load %arg10[%c17, %c0_3, %c0_4] : memref<18x18x8xbf16, #tpu.memory_space<vmem>>, vector<1x18x8xbf16>
    tpu.vector_store %arg10[%c17, %c0_3, %c0_4], %2 {strides = array<i32>} : memref<18x18x8xbf16, #tpu.memory_space<vmem>>, vector<1x18x8xbf16>,
    %cst_5 = arith.constant 0.000000e+00 : bf16
    %4 = vector.broadcast %cst_5 : bf16 to vector<18x1x8xbf16>
    %c0_6 = arith.constant 0 : index
    %c0_7 = arith.constant 0 : index
    %c0_8 = arith.constant 0 : index
    %5 = vector.load %arg10[%c0_6, %c0_7, %c0_8] : memref<18x18x8xbf16, #tpu.memory_space<vmem>>, vector<18x1x8xbf16>
    tpu.vector_store %arg10[%c0_6, %c0_7, %c0_8], %4 {strides = array<i32>} : memref<18x18x8xbf16, #tpu.memory_space<vmem>>, vector<18x1x8xbf16>,
    %cst_9 = arith.constant 0.000000e+00 : bf16
    %6 = vector.broadcast %cst_9 : bf16 to vector<18x1x8xbf16>
    %c0_10 = arith.constant 0 : index
    %c17_11 = arith.constant 17 : index
    %c0_12 = arith.constant 0 : index
    %7 = vector.load %arg10[%c0_10, %c17_11, %c0_12] : memref<18x18x8xbf16, #tpu.memory_space<vmem>>, vector<18x1x8xbf16>
    tpu.vector_store %arg10[%c0_10, %c17_11, %c0_12], %6 {strides = array<i32>} : memref<18x18x8xbf16, #tpu.memory_space<vmem>>, vector<18x1x8xbf16>,
    %c0_13 = arith.constant 0 : index
    %c0_14 = arith.constant 0 : index
    %c0_15 = arith.constant 0 : index
    %c0_16 = arith.constant 0 : index
    %8 = vector.load %arg1[%c0_13, %c0_14, %c0_15, %c0_16] : memref<1x16x16x4xbf16, #tpu.memory_space<vmem>>, vector<1x16x16x4xbf16>
    %9 = vector.shape_cast %8 : vector<1x16x16x4xbf16> to vector<16x16x4xbf16>
    %c1 = arith.constant 1 : index
    %c1_17 = arith.constant 1 : index
    %c0_18 = arith.constant 0 : index
    %10 = vector.load %arg10[%c1, %c1_17, %c0_18] : memref<18x18x8xbf16, #tpu.memory_space<vmem>>, vector<16x16x4xbf16>
    tpu.vector_store %arg10[%c1, %c1_17, %c0_18], %9 {strides = array<i32>} : memref<18x18x8xbf16, #tpu.memory_space<vmem>>, vector<16x16x4xbf16>,
    %c0_19 = arith.constant 0 : index
    %c0_20 = arith.constant 0 : index
    %c0_21 = arith.constant 0 : index
    %c0_22 = arith.constant 0 : index
    %11 = vector.load %arg2[%c0_19, %c0_20, %c0_21, %c0_22] : memref<1x16x16x4xbf16, #tpu.memory_space<vmem>>, vector<1x16x16x4xbf16>
    %12 = vector.shape_cast %11 : vector<1x16x16x4xbf16> to vector<16x16x4xbf16>
    %c1_23 = arith.constant 1 : index
    %c1_24 = arith.constant 1 : index
    %c4 = arith.constant 4 : index
    %13 = vector.load %arg10[%c1_23, %c1_24, %c4] : memref<18x18x8xbf16, #tpu.memory_space<vmem>>, vector<16x16x4xbf16>
    tpu.vector_store %arg10[%c1_23, %c1_24, %c4], %12 {strides = array<i32>} : memref<18x18x8xbf16, #tpu.memory_space<vmem>>, vector<16x16x4xbf16>,
    %c0_25 = arith.constant 0 : index
    %c0_26 = arith.constant 0 : index
    %c0_27 = arith.constant 0 : index
    %14 = vector.load %arg10[%c0_25, %c0_26, %c0_27] : memref<18x18x8xbf16, #tpu.memory_space<vmem>>, vector<16x16x8xbf16>
    %15 = vector.shape_cast %14 : vector<16x16x8xbf16> to vector<256x8xbf16>
    %c0_28 = arith.constant 0 : index
    %c1_29 = arith.constant 1 : index
    %c0_30 = arith.constant 0 : index
    %16 = vector.load %arg10[%c0_28, %c1_29, %c0_30] : memref<18x18x8xbf16, #tpu.memory_space<vmem>>, vector<16x16x8xbf16>
    %17 = vector.shape_cast %16 : vector<16x16x8xbf16> to vector<256x8xbf16>
    %c0_31 = arith.constant 0 : index
    %c2 = arith.constant 2 : index
    %c0_32 = arith.constant 0 : index
    %18 = vector.load %arg10[%c0_31, %c2, %c0_32] : memref<18x18x8xbf16, #tpu.memory_space<vmem>>, vector<16x16x8xbf16>
    %19 = vector.shape_cast %18 : vector<16x16x8xbf16> to vector<256x8xbf16>
    %c1_33 = arith.constant 1 : index
    %c0_34 = arith.constant 0 : index
    %c0_35 = arith.constant 0 : index
    %20 = vector.load %arg10[%c1_33, %c0_34, %c0_35] : memref<18x18x8xbf16, #tpu.memory_space<vmem>>, vector<16x16x8xbf16>
    %21 = vector.shape_cast %20 : vector<16x16x8xbf16> to vector<256x8xbf16>
    %c1_36 = arith.constant 1 : index
    %c1_37 = arith.constant 1 : index
    %c0_38 = arith.constant 0 : index
    %22 = vector.load %arg10[%c1_36, %c1_37, %c0_38] : memref<18x18x8xbf16, #tpu.memory_space<vmem>>, vector<16x16x8xbf16>
    %23 = vector.shape_cast %22 : vector<16x16x8xbf16> to vector<256x8xbf16>
    %c1_39 = arith.constant 1 : index
    %c2_40 = arith.constant 2 : index
    %c0_41 = arith.constant 0 : index
    %24 = vector.load %arg10[%c1_39, %c2_40, %c0_41] : memref<18x18x8xbf16, #tpu.memory_space<vmem>>, vector<16x16x8xbf16>
    %25 = vector.shape_cast %24 : vector<16x16x8xbf16> to vector<256x8xbf16>
    %c2_42 = arith.constant 2 : index
    %c0_43 = arith.constant 0 : index
    %c0_44 = arith.constant 0 : index
    %26 = vector.load %arg10[%c2_42, %c0_43, %c0_44] : memref<18x18x8xbf16, #tpu.memory_space<vmem>>, vector<16x16x8xbf16>
    %27 = vector.shape_cast %26 : vector<16x16x8xbf16> to vector<256x8xbf16>
    %c2_45 = arith.constant 2 : index
    %c1_46 = arith.constant 1 : index
    %c0_47 = arith.constant 0 : index
    %28 = vector.load %arg10[%c2_45, %c1_46, %c0_47] : memref<18x18x8xbf16, #tpu.memory_space<vmem>>, vector<16x16x8xbf16>
    %29 = vector.shape_cast %28 : vector<16x16x8xbf16> to vector<256x8xbf16>
    %c2_48 = arith.constant 2 : index
    %c2_49 = arith.constant 2 : index
    %c0_50 = arith.constant 0 : index
    %30 = vector.load %arg10[%c2_48, %c2_49, %c0_50] : memref<18x18x8xbf16, #tpu.memory_space<vmem>>, vector<16x16x8xbf16>
    %31 = vector.shape_cast %30 : vector<16x16x8xbf16> to vector<256x8xbf16>
    %32 = tpu.concatenate %15, %17, %19, %21, %23, %25, %27, %29, %31 in 1 : vector<256x8xbf16>, vector<256x8xbf16>, vector<256x8xbf16>, vector<256x8xbf16>, vector<256x8xbf16>, vector<256x8xbf16>, vector<256x8xbf16>, vector<256x8xbf16>, vector<256x8xbf16> -> vector<256x72xbf16>
    %c0_51 = arith.constant 0 : index
    %c0_52 = arith.constant 0 : index
    %c0_53 = arith.constant 0 : index
    %33 = vector.load %arg3[%c0_51, %c0_52, %c0_53] : memref<9x8x4xbf16, #tpu.memory_space<vmem>>, vector<9x8x4xbf16>
    %34 = vector.shape_cast %33 : vector<9x8x4xbf16> to vector<72x4xbf16>
    %cst_54 = arith.constant dense<0.000000e+00> : vector<256x4xf32>
    %35 = tpu.matmul %32, %34, %cst_54 {dimension_numbers = #tpu.dot_dimension_numbers<[1], [0], [0], [1], [0, 0, 1, 1], [], []>} : vector<256x72xbf16>, vector<72x4xbf16>, vector<256x4xf32> -> vector<256x4xf32>
    %c0_55 = arith.constant 0 : index
    %c0_56 = arith.constant 0 : index
    %36 = vector.load %arg4[%c0_55, %c0_56] : memref<1x4xf32, #tpu.memory_space<vmem>>, vector<1x4xf32>
    %37 = vector.shape_cast %36 : vector<1x4xf32> to vector<4xf32>
    %38 = vector.shape_cast %37 : vector<4xf32> to vector<1x4xf32>
    %39 = vector.broadcast %38 : vector<1x4xf32> to vector<256x4xf32>
    %40 = arith.mulf %35, %39 : vector<256x4xf32>
    %c0_57 = arith.constant 0 : index
    %c0_58 = arith.constant 0 : index
    %41 = vector.load %arg5[%c0_57, %c0_58] : memref<1x4xf32, #tpu.memory_space<vmem>>, vector<1x4xf32>
    %42 = vector.shape_cast %41 : vector<1x4xf32> to vector<4xf32>
    %43 = vector.shape_cast %42 : vector<4xf32> to vector<1x4xf32>
    %44 = vector.broadcast %43 : vector<1x4xf32> to vector<256x4xf32>
    %45 = arith.addf %40, %44 : vector<256x4xf32>
    %cst_59 = arith.constant 0.000000e+00 : f32
    %46 = vector.broadcast %cst_59 : f32 to vector<256x4xf32>
    %47 = arith.maximumf %45, %46 : vector<256x4xf32>
    %cst_60 = arith.constant 0.000000e+00 : bf16
    %48 = vector.broadcast %cst_60 : bf16 to vector<1x18x4xbf16>
    %c0_61 = arith.constant 0 : index
    %c0_62 = arith.constant 0 : index
    %c0_63 = arith.constant 0 : index
    %49 = vector.load %arg11[%c0_61, %c0_62, %c0_63] : memref<18x18x4xbf16, #tpu.memory_space<vmem>>, vector<1x18x4xbf16>
    tpu.vector_store %arg11[%c0_61, %c0_62, %c0_63], %48 {strides = array<i32>} : memref<18x18x4xbf16, #tpu.memory_space<vmem>>, vector<1x18x4xbf16>,
    %cst_64 = arith.constant 0.000000e+00 : bf16
    %50 = vector.broadcast %cst_64 : bf16 to vector<1x18x4xbf16>
    %c17_65 = arith.constant 17 : index
    %c0_66 = arith.constant 0 : index
    %c0_67 = arith.constant 0 : index
    %51 = vector.load %arg11[%c17_65, %c0_66, %c0_67] : memref<18x18x4xbf16, #tpu.memory_space<vmem>>, vector<1x18x4xbf16>
    tpu.vector_store %arg11[%c17_65, %c0_66, %c0_67], %50 {strides = array<i32>} : memref<18x18x4xbf16, #tpu.memory_space<vmem>>, vector<1x18x4xbf16>,
    %cst_68 = arith.constant 0.000000e+00 : bf16
    %52 = vector.broadcast %cst_68 : bf16 to vector<18x1x4xbf16>
    %c0_69 = arith.constant 0 : index
    %c0_70 = arith.constant 0 : index
    %c0_71 = arith.constant 0 : index
    %53 = vector.load %arg11[%c0_69, %c0_70, %c0_71] : memref<18x18x4xbf16, #tpu.memory_space<vmem>>, vector<18x1x4xbf16>
    tpu.vector_store %arg11[%c0_69, %c0_70, %c0_71], %52 {strides = array<i32>} : memref<18x18x4xbf16, #tpu.memory_space<vmem>>, vector<18x1x4xbf16>,
    %cst_72 = arith.constant 0.000000e+00 : bf16
    %54 = vector.broadcast %cst_72 : bf16 to vector<18x1x4xbf16>
    %c0_73 = arith.constant 0 : index
    %c17_74 = arith.constant 17 : index
    %c0_75 = arith.constant 0 : index
    %55 = vector.load %arg11[%c0_73, %c17_74, %c0_75] : memref<18x18x4xbf16, #tpu.memory_space<vmem>>, vector<18x1x4xbf16>
    tpu.vector_store %arg11[%c0_73, %c17_74, %c0_75], %54 {strides = array<i32>} : memref<18x18x4xbf16, #tpu.memory_space<vmem>>, vector<18x1x4xbf16>,
    %56 = vector.shape_cast %47 : vector<256x4xf32> to vector<16x16x4xf32>
    %57 = arith.truncf %56 : vector<16x16x4xf32> to vector<16x16x4xbf16>
    %c1_76 = arith.constant 1 : index
    %c1_77 = arith.constant 1 : index
    %c0_78 = arith.constant 0 : index
    %58 = vector.load %arg11[%c1_76, %c1_77, %c0_78] : memref<18x18x4xbf16, #tpu.memory_space<vmem>>, vector<16x16x4xbf16>
    tpu.vector_store %arg11[%c1_76, %c1_77, %c0_78], %57 {strides = array<i32>} : memref<18x18x4xbf16, #tpu.memory_space<vmem>>, vector<16x16x4xbf16>,
    %c0_79 = arith.constant 0 : index
    %c0_80 = arith.constant 0 : index
    %c0_81 = arith.constant 0 : index
    %59 = vector.load %arg11[%c0_79, %c0_80, %c0_81] : memref<18x18x4xbf16, #tpu.memory_space<vmem>>, vector<16x16x4xbf16>
    %60 = vector.shape_cast %59 : vector<16x16x4xbf16> to vector<256x4xbf16>
    %c0_82 = arith.constant 0 : index
    %c1_83 = arith.constant 1 : index
    %c0_84 = arith.constant 0 : index
    %61 = vector.load %arg11[%c0_82, %c1_83, %c0_84] : memref<18x18x4xbf16, #tpu.memory_space<vmem>>, vector<16x16x4xbf16>
    %62 = vector.shape_cast %61 : vector<16x16x4xbf16> to vector<256x4xbf16>
    %c0_85 = arith.constant 0 : index
    %c2_86 = arith.constant 2 : index
    %c0_87 = arith.constant 0 : index
    %63 = vector.load %arg11[%c0_85, %c2_86, %c0_87] : memref<18x18x4xbf16, #tpu.memory_space<vmem>>, vector<16x16x4xbf16>
    %64 = vector.shape_cast %63 : vector<16x16x4xbf16> to vector<256x4xbf16>
    %c1_88 = arith.constant 1 : index
    %c0_89 = arith.constant 0 : index
    %c0_90 = arith.constant 0 : index
    %65 = vector.load %arg11[%c1_88, %c0_89, %c0_90] : memref<18x18x4xbf16, #tpu.memory_space<vmem>>, vector<16x16x4xbf16>
    %66 = vector.shape_cast %65 : vector<16x16x4xbf16> to vector<256x4xbf16>
    %c1_91 = arith.constant 1 : index
    %c1_92 = arith.constant 1 : index
    %c0_93 = arith.constant 0 : index
    %67 = vector.load %arg11[%c1_91, %c1_92, %c0_93] : memref<18x18x4xbf16, #tpu.memory_space<vmem>>, vector<16x16x4xbf16>
    %68 = vector.shape_cast %67 : vector<16x16x4xbf16> to vector<256x4xbf16>
    %c1_94 = arith.constant 1 : index
    %c2_95 = arith.constant 2 : index
    %c0_96 = arith.constant 0 : index
    %69 = vector.load %arg11[%c1_94, %c2_95, %c0_96] : memref<18x18x4xbf16, #tpu.memory_space<vmem>>, vector<16x16x4xbf16>
    %70 = vector.shape_cast %69 : vector<16x16x4xbf16> to vector<256x4xbf16>
    %c2_97 = arith.constant 2 : index
    %c0_98 = arith.constant 0 : index
    %c0_99 = arith.constant 0 : index
    %71 = vector.load %arg11[%c2_97, %c0_98, %c0_99] : memref<18x18x4xbf16, #tpu.memory_space<vmem>>, vector<16x16x4xbf16>
    %72 = vector.shape_cast %71 : vector<16x16x4xbf16> to vector<256x4xbf16>
    %c2_100 = arith.constant 2 : index
    %c1_101 = arith.constant 1 : index
    %c0_102 = arith.constant 0 : index
    %73 = vector.load %arg11[%c2_100, %c1_101, %c0_102] : memref<18x18x4xbf16, #tpu.memory_space<vmem>>, vector<16x16x4xbf16>
    %74 = vector.shape_cast %73 : vector<16x16x4xbf16> to vector<256x4xbf16>
    %c2_103 = arith.constant 2 : index
    %c2_104 = arith.constant 2 : index
    %c0_105 = arith.constant 0 : index
    %75 = vector.load %arg11[%c2_103, %c2_104, %c0_105] : memref<18x18x4xbf16, #tpu.memory_space<vmem>>, vector<16x16x4xbf16>
    %76 = vector.shape_cast %75 : vector<16x16x4xbf16> to vector<256x4xbf16>
    %77 = tpu.concatenate %60, %62, %64, %66, %68, %70, %72, %74, %76 in 1 : vector<256x4xbf16>, vector<256x4xbf16>, vector<256x4xbf16>, vector<256x4xbf16>, vector<256x4xbf16>, vector<256x4xbf16>, vector<256x4xbf16>, vector<256x4xbf16>, vector<256x4xbf16> -> vector<256x36xbf16>
    %c0_106 = arith.constant 0 : index
    %c0_107 = arith.constant 0 : index
    %c0_108 = arith.constant 0 : index
    %78 = vector.load %arg6[%c0_106, %c0_107, %c0_108] : memref<9x4x4xbf16, #tpu.memory_space<vmem>>, vector<9x4x4xbf16>
    %79 = vector.shape_cast %78 : vector<9x4x4xbf16> to vector<36x4xbf16>
    %cst_109 = arith.constant dense<0.000000e+00> : vector<256x4xf32>
    %80 = tpu.matmul %77, %79, %cst_109 {dimension_numbers = #tpu.dot_dimension_numbers<[1], [0], [0], [1], [0, 0, 1, 1], [], []>} : vector<256x36xbf16>, vector<36x4xbf16>, vector<256x4xf32> -> vector<256x4xf32>
    %c0_110 = arith.constant 0 : index
    %c0_111 = arith.constant 0 : index
    %81 = vector.load %arg7[%c0_110, %c0_111] : memref<1x4xf32, #tpu.memory_space<vmem>>, vector<1x4xf32>
    %82 = vector.shape_cast %81 : vector<1x4xf32> to vector<4xf32>
    %83 = vector.shape_cast %82 : vector<4xf32> to vector<1x4xf32>
    %84 = vector.broadcast %83 : vector<1x4xf32> to vector<256x4xf32>
    %85 = arith.mulf %80, %84 : vector<256x4xf32>
    %c0_112 = arith.constant 0 : index
    %c0_113 = arith.constant 0 : index
    %86 = vector.load %arg8[%c0_112, %c0_113] : memref<1x4xf32, #tpu.memory_space<vmem>>, vector<1x4xf32>
    %87 = vector.shape_cast %86 : vector<1x4xf32> to vector<4xf32>
    %88 = vector.shape_cast %87 : vector<4xf32> to vector<1x4xf32>
    %89 = vector.broadcast %88 : vector<1x4xf32> to vector<256x4xf32>
    %90 = arith.addf %85, %89 : vector<256x4xf32>
    %cst_114 = arith.constant 0.000000e+00 : f32
    %91 = vector.broadcast %cst_114 : f32 to vector<256x4xf32>
    %92 = arith.maximumf %90, %91 : vector<256x4xf32>
    %93 = arith.truncf %92 : vector<256x4xf32> to vector<256x4xbf16>
    %94 = tpu.transpose %93, [1, 0] : vector<256x4xbf16> -> vector<4x256xbf16>
    %c0_115 = arith.constant 0 : index
    %c0_116 = arith.constant 0 : index
    %c0_117 = arith.constant 0 : index
    %95 = vector.load %arg9[%c0_115, %c0_116, %c0_117] : memref<1x4x256xbf16, #tpu.memory_space<vmem>>, vector<1x4x256xbf16>
    %96 = vector.shape_cast %95 : vector<1x4x256xbf16> to vector<4x256xbf16>
    %97 = vector.shape_cast %94 : vector<4x256xbf16> to vector<1x4x256xbf16>
    tpu.vector_store %arg9[%c0_115, %c0_116, %c0_117], %97 {strides = array<i32>} : memref<1x4x256xbf16, #tpu.memory_space<vmem>>, vector<1x4x256xbf16>,
    return
  }
  func.func @transform_0(%arg0: i32) -> (i32, i32, i32, i32) {
    %c0_i32 = arith.constant 0 : i32
    %c0_i32_0 = arith.constant 0 : i32
    %c0_i32_1 = arith.constant 0 : i32
    %c0_i32_2 = arith.constant 0 : i32
    return %arg0, %c0_i32, %c0_i32_0, %c0_i32_1 : i32, i32, i32, i32
  }
  func.func @transform_1(%arg0: i32) -> (i32, i32, i32, i32) {
    %c0_i32 = arith.constant 0 : i32
    %c0_i32_0 = arith.constant 0 : i32
    %c0_i32_1 = arith.constant 0 : i32
    %c0_i32_2 = arith.constant 0 : i32
    return %arg0, %c0_i32, %c0_i32_0, %c0_i32_1 : i32, i32, i32, i32
  }
  func.func @transform_2(%arg0: i32) -> (i32, i32, i32) {
    %c0_i32 = arith.constant 0 : i32
    %c0_i32_0 = arith.constant 0 : i32
    %c0_i32_1 = arith.constant 0 : i32
    %c0_i32_2 = arith.constant 0 : i32
    return %c0_i32, %c0_i32_0, %c0_i32_1 : i32, i32, i32
  }
  func.func @transform_3(%arg0: i32) -> (i32, i32) {
    %c0_i32 = arith.constant 0 : i32
    %c0_i32_0 = arith.constant 0 : i32
    %c0_i32_1 = arith.constant 0 : i32
    return %c0_i32, %c0_i32_0 : i32, i32
  }
  func.func @transform_4(%arg0: i32) -> (i32, i32) {
    %c0_i32 = arith.constant 0 : i32
    %c0_i32_0 = arith.constant 0 : i32
    %c0_i32_1 = arith.constant 0 : i32
    return %c0_i32, %c0_i32_0 : i32, i32
  }
  func.func @transform_5(%arg0: i32) -> (i32, i32, i32) {
    %c0_i32 = arith.constant 0 : i32
    %c0_i32_0 = arith.constant 0 : i32
    %c0_i32_1 = arith.constant 0 : i32
    %c0_i32_2 = arith.constant 0 : i32
    return %c0_i32, %c0_i32_0, %c0_i32_1 : i32, i32, i32
  }
  func.func @transform_6(%arg0: i32) -> (i32, i32) {
    %c0_i32 = arith.constant 0 : i32
    %c0_i32_0 = arith.constant 0 : i32
    %c0_i32_1 = arith.constant 0 : i32
    return %c0_i32, %c0_i32_0 : i32, i32
  }
  func.func @transform_7(%arg0: i32) -> (i32, i32) {
    %c0_i32 = arith.constant 0 : i32
    %c0_i32_0 = arith.constant 0 : i32
    %c0_i32_1 = arith.constant 0 : i32
    return %c0_i32, %c0_i32_0 : i32, i32
  }
  func.func @transform_8(%arg0: i32) -> (i32, i32, i32) {
    %c0_i32 = arith.constant 0 : i32
    %c0_i32_0 = arith.constant 0 : i32
    %c0_i32_1 = arith.constant 0 : i32
    return %arg0, %c0_i32, %c0_i32_0 : i32, i32, i32
  }
}

</mosaic_0001>

<bundles_post_ra>
// kernel: up_forward.1
= control target key start
LH: loop header
LB: loop body
LE: loop exit
PB: predicated region body
PF: predicated region fallthrough
CT: control target
= control target key end

     0   :  { %s9185_s27 = smov 0   ;;  %s13177_s0 = inlined_call_operand.vmem [shape: bf16[2,16,16,4], index: 0, kind: input, shape index: {}]   ;;  %s13178_s1 = inlined_call_operand.vmem [shape: bf16[2,16,16,4], index: 1, kind: input, shape index: {}]   ;;  %s13179_s2 = inlined_call_operand.vmem [shape: bf16[9,8,4], index: 2, kind: input, shape index: {}]   ;;  %s13180_s3 = inlined_call_operand.vmem [shape: f32[1,4], index: 3, kind: input, shape index: {}]   ;;  %s13181_s4 = inlined_call_operand.vmem [shape: f32[1,4], index: 4, kind: input, shape index: {}]   ;;  %s13182_s5 = inlined_call_operand.vmem [shape: bf16[9,4,4], index: 5, kind: input, shape index: {}]   ;;  %s13183_s6 = inlined_call_operand.vmem [shape: f32[1,4], index: 6, kind: input, shape index: {}]   ;;  %s13184_s7 = inlined_call_operand.vmem [shape: f32[1,4], index: 7, kind: input, shape index: {}]   ;;  %s13185_s8 = inlined_call_operand.vmem [shape: bf16[2,4,256], index: 8, kind: output, shape index: {}]  }
   0x1 LB: > { %s8408_s28 = sadd.s32 4294967295, %s9125_s27   ;;  %p8412_p0 = scmp.ge.s32.totalorder %s9125_s27, 1  ;;  %s9125_s27 = sphi %s9185_s27, %s18_s27  }
   0x2   : > { %p272_p1 = scmp.lt.s32.totalorder %s9125_s27, 3 }
   0x4   : > { %p273_p2 = pnand %p8412_p0, %p272_p1 }
   0x6   : > { %276 = sbr.rel (%p273_p2) target bundleno = 1621 (0x655), region = 52 }
   0xb   : > { %p311_p3 = scmp.lt.s32.totalorder %s8408_s28, 1  ;;  %vm337_vm0 = vsmask.f32 256  ;;  %vm481_vm1 = vsmask.f32 4368  ;;  %s9127_s11 = smov 4  }
   0xc   : > { %vm9212_vm2 = vmor %vm337_vm0, %vm481_vm1  ;;  %v13203_v24 = vmov 0  ;;  %vm330_vm3 = vcmask 57344   ;;  %vm393_vm4 = vsmask.f32 7938  ;;  %vm811_vm7 = vcmask 24576   ;;  %s9129_s15 = smov 8  }
   0xd   : > { %s13411_s28 = smov (!%p311_p3, %s8408_s28), 1  ;;  %v13204_v24 = vsel %vm9212_vm2, 4294967295, %v13203_v24  ;;  %vm9281_vm5 = vmand %vm330_vm3, %vm337_vm0  ;;  %vm13200_vm9 = vcmask 27648   ;;  %vm327_vm11 = vcmask 60416   ;;  %vm1376_vm12 = vcmask 57376   ;;  %s9130_s16 = smov 16  }
   0xe   : > { %s8949_s29 = sshll.u32 %s13411_s28, 7  ;;  %13205 = vst [vmem:[#allocation4_spill] sm:$0xff] %v13204_v24  ;;  %vm9295_vm6 = vmand %vm330_vm3, %vm393_vm4  ;;  %vm1369_vm14 = vcmask 60448   ;;  %vm1534_vm15 = vsmask.f32 3328  ;;  %s9131_s17 = smov 24  }
   0xf   : > { %s9201_s10 = scalar_lea.vmem %s13178_s1, %s8949_s29  ;;  %s9290_s14 = scalar_lea.vmem %s13177_s0, %s8949_s29  ;;  %vm9325_vm8 = vmand %vm811_vm7, %vm337_vm0 }
  0x10   : > { %v922_v0 = vld [vmem:[%s9201_s10 + $0x4] sm:$0xf]  ;;  %v921_v1 = vld [vmem:[%s9201_s10] sm:$0xf]  ;;  %v923_v2 = vld [vmem:[%s9201_s10 + $0x8] sm:$0xf] }
  0x11   : > { %v962_v3 = vshrl.u32 %v922_v0, 16  ;;  %v954_v4 = vshrl.u32 %v921_v1, 16  ;;  %v957_v5 = vshll.u32 %v921_v1, 16  ;;  %v971_v8 = vshrl.u32 %v923_v2, 16  ;;  %v924_v9 = vld [vmem:[%s9201_s10 + $0xc] sm:$0xf]  ;;  %vm9347_vm10 = vmand %vm13200_vm9, %vm393_vm4 }
  0x12   : > { %v965_v10 = vshll.u32 %v922_v0, 16  ;;  %v925_v11 = vld [vmem:[%s9201_s10 + $0x10] sm:$0xf]  ;;  %v979_v12 = vshrl.u32 %v924_v9, 16  ;;  %v926_v15 = vld [vmem:[%s9201_s10 + $0x14] sm:$0xf]  ;;  %vm9443_vm13 = vmand %vm1376_vm12, %vm337_vm0 }
  0x13   : > { %v964_v6 = vrot.slane %v962_v3, 7  ;;  %v956_v7 = vrot.slane %v954_v4, 7  ;;  %v973_v16 = vrot.slane %v971_v8, 7  ;;  %v974_v17 = vshll.u32 %v923_v2, 16  ;;  %v927_v33 = vld [vmem:[%s9201_s10 + $0x18] sm:$0xf]  ;;  %vm9530_vm1 = vmand %vm1369_vm14, %vm393_vm4 }
  0x14   : > { %v988_v18 = vshrl.u32 %v925_v11, 16  ;;  %v981_v19 = vrot.slane %v979_v12, 7  ;;  %v996_v22 = vshrl.u32 %v926_v15, 16  ;;  %v982_v23 = vshll.u32 %v924_v9, 16  ;;  %v928_v34 = vld [vmem:[%s9201_s10 + $0x1c] sm:$0xf] }
  0x15   : > { %v969_v13 = vrot.slane %v964_v6, 4  ;;  %v959_v14 = vor.u32 %v957_v5, %v956_v7  ;;  %v967_v20 = vor.u32 %v965_v10, %v964_v6  ;;  %v960_v21 = vrot.slane %v956_v7, 4  ;;  %v929_v46 = vld [vmem:[%s9201_s10 + $0x20] sm:$0xf]  ;;  %v930_v47 = vld [vmem:[%s9201_s10 + $0x24] sm:$0xf] }
  0x16   : > { %v986_v25 = vrot.slane %v981_v19, 4  ;;  %v976_v26 = vor.u32 %v974_v17, %v973_v16  ;;  %v990_v27 = vrot.slane %v988_v18, 7  ;;  %v999_v28 = vshll.u32 %v926_v15, 16  ;;  %v931_v59 = vld [vmem:[%s9201_s10 + $0x28] sm:$0xf]  ;;  %s9132_s18 = smov 32  }
  0x17   : > { %1229 = vrot.lane.b32.xlu1 %v969_v13, %s9127_s11  ;;  %1225 = vrot.lane.b32.xlu0 %v959_v14, %s9127_s11  ;;  %v968_v29 = vsel %vm9212_vm2, %v960_v21, %v967_v20  ;;  %v998_v30 = vrot.slane %v996_v22, 7  ;;  %v984_v31 = vor.u32 %v982_v23, %v981_v19  ;;  %v977_v32 = vrot.slane %v973_v16, 4  ;;  %v932_v60 = vld [vmem:[%s9201_s10 + $0x2c] sm:$0xf]  ;;  %v933_v8 = vld [vmem:[%s9201_s10 + $0x30] sm:$0xf] }
  0x18   : > { %1235 = vrot.lane.b32.xlu2 %v986_v25, %s9127_s11  ;;  %v994_v35 = vrot.slane %v990_v27, 4  ;;  %v991_v36 = vshll.u32 %v925_v11, 16  ;;  %v1005_v38 = vshrl.u32 %v927_v33, 16  ;;  %v1013_v39 = vshrl.u32 %v928_v34, 16  ;;  %v934_v9 = vld [vmem:[%s9201_s10 + $0x34] sm:$0xf] }
  0x19   : > { %v1001_v37 = vor.u32 %v999_v28, %v998_v30  ;;  %v985_v40 = vsel %vm9212_vm2, %v977_v32, %v984_v31  ;;  %v1016_v45 = vshll.u32 %v928_v34, 16  ;;  %v1008_v48 = vshll.u32 %v927_v33, 16  ;;  %v935_v21 = vld [vmem:[%s9201_s10 + $0x38] sm:$0xf]  ;;  %v936_v22 = vld [vmem:[%s9201_s10 + $0x3c] sm:$0xf] }
  0x1a   : > { %v993_v41 = vor.u32 %v991_v36, %v990_v27  ;;  %v1007_v43 = vrot.slane %v1005_v38, 7  ;;  %v1015_v44 = vrot.slane %v1013_v39, 7  ;;  %v1003_v49 = vrot.slane %v998_v30, 4  ;;  %v938_v36 = vld [vmem:[%s9201_s10 + $0x44] sm:$0xf]  ;;  %s9133_s19 = smov 40  }
  0x1b   : > { %v1002_v42 = vsel %vm9212_vm2, %v994_v35, %v1001_v37  ;;  %v1022_v52 = vshrl.u32 %v929_v46, 16  ;;  %v1030_v53 = vshrl.u32 %v930_v47, 16  ;;  %v1033_v58 = vshll.u32 %v930_v47, 16  ;;  %v937_v35 = vld [vmem:[%s9201_s10 + $0x40] sm:$0xf]  ;;  %s9134_s20 = smov 48  }
  0x1c   : > { %v1011_v50 = vrot.slane %v1007_v43, 4  ;;  %v1018_v51 = vor.u32 %v1016_v45, %v1015_v44  ;;  %v1010_v54 = vor.u32 %v1008_v48, %v1007_v43  ;;  %v1025_v61 = vshll.u32 %v929_v46, 16  ;;  %v939_v48 = vld [vmem:[%s9201_s10 + $0x48] sm:$0xf]  ;;  %s9135_s21 = smov 56   ;;  %s9136_s22 = smov 64  }
  0x1d   : > { %v1024_v56 = vrot.slane %v1022_v52, 7  ;;  %v1032_v57 = vrot.slane %v1030_v53, 7  ;;  %v1020_v62 = vrot.slane %v1015_v44, 4  ;;  %v1039_v1 = vshrl.u32 %v931_v59, 16  ;;  %s9137_s26 = smov 12  }
  0x1e   : > { %v1019_v55 = vsel %vm9212_vm2, %v1011_v50, %v1018_v51  ;;  %v1047_v2 = vshrl.u32 %v932_v60, 16  ;;  %v1050_v7 = vshll.u32 %v932_v60, 16  ;;  %v1042_v10 = vshll.u32 %v931_v59, 16 }
  0x1f   : > { %1231 = vrot.lane.b32.xlu1 %v976_v26, %s9127_s11  ;;  %1227 = vrot.lane.b32.xlu0 %v968_v29, %s9127_s11  ;;  %v1028_v63 = vrot.slane %v1024_v56, 4  ;;  %v1035_v0 = vor.u32 %v1033_v58, %v1032_v57  ;;  %v1027_v3 = vor.u32 %v1025_v61, %v1024_v56  ;;  %v1041_v5 = vrot.slane %v1039_v1, 7  ;;  %v9273_v61 = vld [vmem:[%s9201_s10 + $0x50] sm:$0xf] }
  0x20   : > { %1233 = vrot.lane.b32.xlu2 %v985_v40, %s9127_s11  ;;  %v1049_v6 = vrot.slane %v1047_v2, 7  ;;  %v1037_v11 = vrot.slane %v1032_v57, 4  ;;  %v1056_v14 = vshrl.u32 %v933_v8, 16  ;;  %v1064_v15 = vshrl.u32 %v934_v9, 16 }
  0x21   : > { %v1036_v4 = vsel %vm9212_vm2, %v1028_v63, %v1035_v0  ;;  %v1045_v12 = vrot.slane %v1041_v5, 4  ;;  %v1044_v16 = vor.u32 %v1042_v10, %v1041_v5  ;;  %v1067_v20 = vshll.u32 %v934_v9, 16  ;;  %v342_v9 = vld [vmem:[#allocation2 + $0xc] sm:$0x1] }
  0x22   : > { %v1052_v13 = vor.u32 %v1050_v7, %v1049_v6  ;;  %v1058_v18 = vrot.slane %v1056_v14, 7  ;;  %v1066_v19 = vrot.slane %v1064_v15, 7  ;;  %v1059_v23 = vshll.u32 %v933_v8, 16  ;;  %v398_v7 = vld [vmem:[#allocation2 + $0x14] sm:$0x1] }
  0x23   : > { %v1054_v25 = vrot.slane %v1049_v6, 4  ;;  %v1073_v28 = vshrl.u32 %v935_v21, 16  ;;  %v1081_v29 = vshrl.u32 %v936_v22, 16  ;;  %v1084_v34 = vshll.u32 %v936_v22, 16  ;;  %v401_v15 = vld [vmem:[#allocation2 + $0x20] sm:$0x1] }
  0x24   : > { %v1053_v17 = vsel %vm9212_vm2, %v1045_v12, %v1052_v13  ;;  %v1062_v26 = vrot.slane %v1058_v18, 4  ;;  %v1069_v27 = vor.u32 %v1067_v20, %v1066_v19  ;;  %v1061_v30 = vor.u32 %v1059_v23, %v1058_v18  ;;  %v9312_v18 = vld [vmem:[%s9201_s10 + $0x58] sm:$0xf]  ;;  %v449_v22 = vld [vmem:[%s9290_s14] sm:$0xf] }
  0x25   : > { %v1075_v32 = vrot.slane %v1073_v28, 7  ;;  %v1083_v33 = vrot.slane %v1081_v29, 7  ;;  %v1076_v37 = vshll.u32 %v935_v21, 16  ;;  %v1071_v38 = vrot.slane %v1066_v19, 4  ;;  %v944_v21 = vld [vmem:[%s9201_s10 + $0x5c] sm:$0xf] }
  0x26   : > { %v1070_v31 = vsel %vm9212_vm2, %v1062_v26, %v1069_v27  ;;  %v1101_v47 = vshll.u32 %v938_v36, 16  ;;  %v1093_v50 = vshll.u32 %v937_v35, 16  ;;  %v1110_v63 = vshll.u32 %v939_v48, 16 }
  0x27   : > { %1239 = vrot.lane.b32.xlu1 %v1002_v42, %s9127_s11  ;;  %1237 = vrot.lane.b32.xlu0 %v993_v41, %s9127_s11  ;;  %v1079_v39 = vrot.slane %v1075_v32, 4  ;;  %v1086_v40 = vor.u32 %v1084_v34, %v1083_v33  ;;  %v1090_v41 = vshrl.u32 %v937_v35, 16  ;;  %v1098_v42 = vshrl.u32 %v938_v36, 16  ;;  %v9335_v35 = vld [vmem:[%s9201_s10 + $0x60] sm:$0xf] }
  0x28   : > { %1241 = vrot.lane.b32.xlu2 %v1003_v49, %s9127_s11  ;;  %v1078_v43 = vor.u32 %v1076_v37, %v1075_v32  ;;  %v940_v49 = vld [vmem:[%s9201_s10 + $0x4c] sm:$0xf]  ;;  %v1088_v51 = vrot.slane %v1083_v33, 4  ;;  %v1124_v0 = vshrl.u32 %v9273_v61, 16  ;;  %v13209_v6 = vmov 0 }
  0x29   : > { %v1087_v44 = vsel %vm9212_vm2, %v1079_v39, %v1086_v40  ;;  %v1092_v45 = vrot.slane %v1090_v41, 7  ;;  %v1100_v46 = vrot.slane %v1098_v42, 7  ;;  %v1118_v57 = vshll.u32 %v940_v49, 16  ;;  %v345_v37 = vld [vmem:[#allocation2 + $0x18] sm:$0x1] }
  0x2a   : > { %v13210_v6 = vsel %vm9295_vm6, 4294967295, %v13209_v6  ;;  %v399_v8 = vsel %vm9295_vm6, 0, %v398_v7  ;;  %v1126_v13 = vrot.slane %v1124_v0, 7  ;;  %v402_v19 = vsel %vm9295_vm6, 0, %v401_v15 }
  0x2b   : > { %v1096_v52 = vrot.slane %v1092_v45, 4  ;;  %v1103_v53 = vor.u32 %v1101_v47, %v1100_v46  ;;  %v1095_v56 = vor.u32 %v1093_v50, %v1092_v45  ;;  %v1105_v2 = vrot.slane %v1100_v46, 4  ;;  %13211 = vst [vmem:[#allocation6_spill] sm:$0xff] %v13210_v6 }
  0x2c   : > { %400 = vst [vmem:[#allocation2 + $0x14] sm:$0x1] %v399_v8  ;;  %v1127_v23 = vshll.u32 %v9273_v61, 16  ;;  %v484_v27 = vshrl.u32 %v449_v22, 16  ;;  %v13212_v28 = vmov 0  ;;  %v1130_v29 = vrot.slane %v1126_v13, 4 }
  0x2d   : > { %v1104_v58 = vsel %vm9212_vm2, %v1096_v52, %v1103_v53  ;;  %403 = vst [vmem:[#allocation2 + $0x20] sm:$0x1] %v402_v19  ;;  %v13213_v28 = vsel %vm9325_vm8, 4294967295, %v13212_v28  ;;  %v1149_v34 = vshrl.u32 %v944_v21, 16  ;;  %v487_v41 = vshll.u32 %v449_v22, 16 }
  0x2e   : > { %13214 = vst [vmem:[#allocation7_spill] sm:$0xff] %v13213_v28  ;;  %v9338_v40 = vrot.slane %v484_v27, 7  ;;  %v1152_v42 = vshll.u32 %v944_v21, 16  ;;  %v13215_v45 = vmov 0  ;;  %v346_v46 = vsel %vm9281_vm5, 0, %v345_v37 }
  0x2f   : > { %1245 = vrot.lane.b32.xlu1 %v1019_v55, %s9127_s11  ;;  %1243 = vrot.lane.b32.xlu0 %v1010_v54, %s9127_s11  ;;  %v1107_v54 = vshrl.u32 %v939_v48, 16  ;;  %v1115_v55 = vshrl.u32 %v940_v49, 16  ;;  %v13216_v45 = vsel %vm9347_vm10, 4294967295, %v13215_v45  ;;  %v1129_v47 = vor.u32 %v1127_v23, %v1126_v13  ;;  %347 = vst [vmem:[#allocation2 + $0x18] sm:$0x1] %v346_v46 }
  0x30   : > { %1247 = vrot.lane.b32.xlu2 %v1020_v62, %s9127_s11  ;;  %v942_v62 = vld [vmem:[%s9201_s10 + $0x54] sm:$0xf]  ;;  %13217 = vst [vmem:[#allocation8_spill] sm:$0xff] %v13216_v45  ;;  %v9357_v53 = vrot.slane %v1149_v34, 7  ;;  %v1144_v0 = vshll.u32 %v9312_v18, 16  ;;  %vm1986_vm12 = vcmask 1046532  }
  0x31   : > { %v1109_v59 = vrot.slane %v1107_v54, 7  ;;  %v9270_v60 = vrot.slane %v1115_v55, 7  ;;  %v1132_v1 = vshrl.u32 %v942_v62, 16  ;;  %v1135_v10 = vshll.u32 %v942_v62, 16  ;;  %v404_v13 = vld [vmem:[#allocation2 + $0x2c] sm:$0x1] }
  0x32   : > { %v1158_v54 = vshrl.u32 %v9335_v35, 16  ;;  %v453_v22 = vld [vmem:[%s9290_s14 + $0x10] sm:$0xf]  ;;  %vm1535_vm0 = vsmask.f32 7440 }
  0x33   : > { %v1120_v5 = vor.u32 %v1118_v57, %v9270_v60  ;;  %v1112_v12 = vor.u32 %v1110_v63, %v1109_v59  ;;  %v9303_v14 = vrot.slane %v1132_v1, 7  ;;  %v813_v39 = vld [vmem:[#allocation2 + $0x14] sm:$0x1]  ;;  %v518_v27 = vshrl.u32 %v453_v22, 16 }
  0x34   : > { %v820_v55 = vld [vmem:[#allocation2 + $0x20] sm:$0x1] }
  0x35   : > { %v1137_v33 = vor.u32 %v1135_v10, %v9303_v14  ;;  %v1139_v1 = vrot.slane %v9303_v14, 4  ;;  %v9375_v10 = vld [vmem:[%s9201_s10 + $0x68] sm:$0xf]  ;;  %v9402_v37 = vrot.slane %v518_v27, 7  ;;  %v9464_v27 = vld [vmem:[%s9201_s10 + $0x7c] sm:$0xf] }
  0x37   : > { %1251 = vrot.lane.b32.xlu1 %v1036_v4, %s9127_s11  ;;  %1249 = vrot.lane.b32.xlu0 %v1027_v3, %s9127_s11  ;;  %v13206_v3 = vmov 0  ;;  %v1113_v4 = vrot.slane %v1109_v59, 4  ;;  %v1138_v52 = vsel %vm9212_vm2, %v1130_v29, %v1137_v33  ;;  %v454_v33 = vld [vmem:[%s9290_s14 + $0x14] sm:$0xf] }
  0x38   : > { %1253 = vrot.lane.b32.xlu2 %v1037_v11, %s9127_s11  ;;  %v13207_v3 = vsel %vm9281_vm5, 4294967295, %v13206_v3  ;;  %v343_v11 = vsel %vm9281_vm5, 0, %v342_v9  ;;  %v348_v9 = vld [vmem:[#allocation2 + $0x24] sm:$0x1] }
  0x39   : > { %13208 = vst [vmem:[#allocation5_spill] sm:$0xff] %v13207_v3  ;;  %v349_v15 = vsel %vm9281_vm5, 0, %v348_v9 }
  0x3a   : > { %344 = vst [vmem:[#allocation2 + $0xc] sm:$0x1] %v343_v11 }
  0x3b   : > { %350 = vst [vmem:[#allocation2 + $0x24] sm:$0x1] %v349_v15  ;;  %v524_v15 = vrot.slane %v9402_v37, 4 }
  0x3f   : > { %1257 = vrot.lane.b32.xlu1 %v1053_v17, %s9127_s11  ;;  %1255 = vrot.lane.b32.xlu0 %v1044_v16, %s9127_s11  ;;  %v9307_v16 = vld [vmem:[%s9290_s14 + $0x4] sm:$0xf]  ;;  %v1121_v17 = vsel %vm9212_vm2, %v1113_v4, %v1120_v5  ;;  %v1154_v4 = vor.u32 %v1152_v42, %v9357_v53  ;;  %v9371_v5 = vrot.slane %v1158_v54, 7  ;;  %v9128_v42 = vmov 0  }
  0x40   : > { %1259 = vrot.lane.b32.xlu2 %v1054_v25, %s9127_s11  ;;  %v492_v20 = vshrl.u32 %v9307_v16, 16  ;;  %v452_v25 = vld [vmem:[%s9290_s14 + $0xc] sm:$0xf]  ;;  %328 = vst.msk [vmem:[#allocation2] sm:$0xf] %vm327_vm11, %v9128_v42 }
  0x41   : > { %v509_v32 = vshrl.u32 %v452_v25, 16  ;;  %v806_v50 = vld [vmem:[#allocation2 + $0xc] sm:$0xf]  ;;  %v512_v62 = vshll.u32 %v452_v25, 16  ;;  %v816_v25 = vld [vmem:[#allocation2 + $0x18] sm:$0xf] }
  0x42   : > { %v9321_v26 = vrot.slane %v492_v20, 7  ;;  %v1161_v20 = vshll.u32 %v9335_v35, 16  ;;  %v1164_v29 = vrot.slane %v9371_v5, 4  ;;  %329 = vst.msk [vmem:[#allocation2 + $0x4] sm:$0xf] %vm327_vm11, %v9128_v42 }
  0x43   : > { %331 = vst.msk [vmem:[#allocation2 + $0x8] sm:$0x1] %vm330_vm3, %v9128_v42 }
  0x44   : > { %v499_v36 = vrot.slane %v9321_v26, 4  ;;  %333 = vst.msk [vmem:[#allocation2 + $0xcc] sm:$0xf] %vm327_vm11, %v9128_v42 }
  0x45   : > { %334 = vst.msk [vmem:[#allocation2 + $0xd0] sm:$0xf] %vm327_vm11, %v9128_v42  ;;  %vm1985_vm11 = vcmask 1042432  }
  0x46   : > { %335 = vst.msk [vmem:[#allocation2 + $0xd4] sm:$0x1] %vm330_vm3, %v9128_v42  ;;  %vm9568_vm3 = vmor %vm1534_vm15, %vm1535_vm0  ;;  %vm4168_vm0 = vcmask 261120  }
  0x47   : > { %1263 = vrot.lane.b32.xlu1 %v1070_v31, %s9127_s11  ;;  %1261 = vrot.lane.b32.xlu0 %v1061_v30, %s9127_s11  ;;  %v1141_v30 = vshrl.u32 %v9312_v18, 16  ;;  %v1122_v31 = vrot.slane %v9270_v60, 4  ;;  %v405_v18 = vsel %vm9295_vm6, 0, %v404_v13  ;;  %4599 = vst.msk [vmem:[#allocation3] sm:$0xf] %vm13200_vm9, %v9128_v42  ;;  %vm9981_vm15 = vmor %vm1985_vm11, %vm1986_vm12  ;;  %vm13201_vm11 = vcmask 326656  }
  0x48   : > { %1265 = vrot.lane.b32.xlu2 %v1071_v38, %s9127_s11  ;;  %v511_v38 = vrot.slane %v509_v32, 7  ;;  %406 = vst [vmem:[#allocation2 + $0x2c] sm:$0x1] %v405_v18  ;;  %v495_v32 = vshll.u32 %v9307_v16, 16  ;;  %vm4267_vm12 = vcmask 457728  }
  0x49   : > { %v1143_v48 = vrot.slane %v1141_v30, 7  ;;  %v1175_v30 = vshrl.u32 %v9375_v10, 16  ;;  %4600 = vst.msk [vmem:[#allocation3 + $0x4] sm:$0xf] %vm13200_vm9, %v9128_v42 }
  0x4a   : > { %v516_v49 = vrot.slane %v511_v38, 4  ;;  %v514_v8 = vor.u32 %v512_v62, %v511_v38  ;;  %v1156_v38 = vrot.slane %v9357_v53, 4  ;;  %v497_v16 = vor.u32 %v495_v32, %v9321_v26  ;;  %4602 = vst.msk [vmem:[#allocation3 + $0x8] sm:$0x1] %vm811_vm7, %v9128_v42 }
  0x4b   : > { %v1147_v63 = vrot.slane %v1143_v48, 4  ;;  %v1146_v19 = vor.u32 %v1144_v0, %v1143_v48  ;;  %4604 = vst.msk [vmem:[#allocation3 + $0xcc] sm:$0xf] %vm13200_vm9, %v9128_v42 }
  0x4c   : > { %v821_v57 = vsel %vm9325_vm8, %v516_v49, %v820_v55  ;;  %v1163_v55 = vor.u32 %v1161_v20, %v9371_v5  ;;  %4605 = vst.msk [vmem:[#allocation3 + $0xd0] sm:$0xf] %vm13200_vm9, %v9128_v42 }
  0x4d   : > { %822 = vst [vmem:[#allocation2 + $0x20] sm:$0x1] %v821_v57  ;;  %v1155_v23 = vsel %vm9212_vm2, %v1147_v63, %v1154_v4  ;;  %v456_v63 = vld [vmem:[%s9290_s14 + $0x1c] sm:$0xf] }
  0x4e   : > { %4606 = vst.msk [vmem:[#allocation3 + $0xd4] sm:$0x1] %vm811_vm7, %v9128_v42 }
  0x4f   : > { %1269 = vrot.lane.b32.xlu1 %v1087_v44, %s9127_s11  ;;  %1267 = vrot.lane.b32.xlu0 %v1078_v43, %s9127_s11  ;;  %v9341_v43 = vld [vmem:[%s9201_s10 + $0x64] sm:$0xf]  ;;  %v814_v44 = vsel %vm9325_vm8, %v499_v36, %v813_v39  ;;  %v526_v36 = vshrl.u32 %v454_v33, 16  ;;  %v490_v39 = vrot.slane %v9338_v40, 4 }
  0x50   : > { %1271 = vrot.lane.b32.xlu2 %v1088_v51, %s9127_s11  ;;  %815 = vst [vmem:[#allocation2 + $0x14] sm:$0x1] %v814_v44  ;;  %v489_v51 = vor.u32 %v487_v41, %v9338_v40  ;;  %v1166_v60 = vshrl.u32 %v9341_v43, 16  ;;  %v1169_v7 = vshll.u32 %v9341_v43, 16  ;;  %v521_v41 = vshll.u32 %v453_v22, 16 }
  0x51   : > { %v9413_v44 = vld [vmem:[%s9201_s10 + $0x70] sm:$0xf]  ;;  %v528_v46 = vrot.slane %v526_v36, 7  ;;  %v9418_v40 = vld [vmem:[%s9201_s10 + $0x74] sm:$0xf]  ;;  %v498_v26 = vsel %vm9212_vm2, %v490_v39, %v497_v16  ;;  %v1217_v39 = vshrl.u32 %v9464_v27, 16 }
  0x52   : > { %v9379_v14 = vrot.slane %v1166_v60, 7  ;;  %v523_v49 = vor.u32 %v521_v41, %v9402_v37  ;;  %810 = vst.msk [vmem:[#allocation2 + $0x10] sm:$0xf] %vm13200_vm9, %v498_v26  ;;  %v1192_v5 = vshrl.u32 %v9413_v44, 16  ;;  %v1195_v37 = vshll.u32 %v9413_v44, 16 }
  0x53   : > { %v533_v53 = vrot.slane %v528_v46, 4 }
  0x54   : > { %v1171_v43 = vor.u32 %v1169_v7, %v9379_v14  ;;  %v1385_v48 = vld [vmem:[#allocation2 + $0x20] sm:$0x1]  ;;  %v529_v7 = vshll.u32 %v454_v33, 16  ;;  %v1173_v13 = vrot.slane %v9379_v14, 4  ;;  %v1203_v33 = vshll.u32 %v9418_v40, 16 }
  0x56   : > { %v1172_v60 = vsel %vm9212_vm2, %v1164_v29, %v1171_v43  ;;  %v546_v43 = vshll.u32 %v456_v63, 16 }
  0x57   : > { %1275 = vrot.lane.b32.xlu1 %v1104_v58, %s9127_s11  ;;  %1273 = vrot.lane.b32.xlu0 %v1095_v56, %s9127_s11  ;;  %v451_v56 = vld [vmem:[%s9290_s14 + $0x8] sm:$0xf]  ;;  %v807_v58 = vsel %vm9347_vm10, %v489_v51, %v806_v50  ;;  %v823_v50 = vld [vmem:[#allocation2 + $0x24] sm:$0xf]  ;;  %v407_v51 = vld [vmem:[#allocation2 + $0x38] sm:$0x1] }
  0x58   : > { %1277 = vrot.lane.b32.xlu2 %v1105_v2, %s9127_s11  ;;  %v501_v59 = vshrl.u32 %v451_v56, 16  ;;  %v504_v61 = vshll.u32 %v451_v56, 16  ;;  %808 = vst [vmem:[#allocation2 + $0xc] sm:$0xf] %v807_v58  ;;  %v408_v54 = vsel %vm9295_vm6, 0, %v407_v51  ;;  %v1177_v56 = vrot.slane %v1175_v30, 7 }
  0x59   : > { %v824_v57 = vsel %vm9347_vm10, %v523_v49, %v823_v50  ;;  %409 = vst [vmem:[#allocation2 + $0x38] sm:$0x1] %v408_v54  ;;  %v455_v58 = vld [vmem:[%s9290_s14 + $0x18] sm:$0xf]  ;;  %v410_v30 = vld [vmem:[#allocation2 + $0x44] sm:$0x1] }
  0x5a   : > { %v503_v2 = vrot.slane %v501_v59, 7  ;;  %825 = vst [vmem:[#allocation2 + $0x24] sm:$0xf] %v824_v57  ;;  %v535_v0 = vshrl.u32 %v455_v58, 16 }
  0x5c   : > { %v506_v11 = vor.u32 %v504_v61, %v503_v2 }
  0x5f   : > { %1281 = vrot.lane.b32.xlu1 %v1121_v17, %s9127_s11  ;;  %1279 = vrot.lane.b32.xlu0 %v1112_v12, %s9127_s11  ;;  %v507_v12 = vrot.slane %v503_v2, 4  ;;  %v9382_v17 = vld [vmem:[%s9201_s10 + $0x6c] sm:$0xf] }
  0x60   : > { %1283 = vrot.lane.b32.xlu2 %v1122_v31, %s9127_s11  ;;  %v817_v31 = vsel %vm9347_vm10, %v506_v11, %v816_v25  ;;  %v1183_v34 = vshrl.u32 %v9382_v17, 16  ;;  %v1186_v35 = vshll.u32 %v9382_v17, 16  ;;  %v1200_v11 = vshrl.u32 %v9418_v40, 16  ;;  %v9461_v25 = vld [vmem:[%s9201_s10 + $0x78] sm:$0xf] }
  0x61   : > { %v515_v21 = vsel %vm9212_vm2, %v507_v12, %v514_v8  ;;  %818 = vst [vmem:[#allocation2 + $0x18] sm:$0xf] %v817_v31  ;;  %v543_v8 = vshrl.u32 %v456_v63, 16  ;;  %v537_v12 = vrot.slane %v535_v0, 7  ;;  %v531_v17 = vor.u32 %v529_v7, %v528_v46  ;;  %v834_v14 = vld [vmem:[#allocation2 + $0x38] sm:$0x1] }
  0x62   : > { %819 = vst.msk [vmem:[#allocation2 + $0x1c] sm:$0xf] %vm13200_vm9, %v515_v21  ;;  %v9435_v61 = vrot.slane %v1183_v34, 7  ;;  %v1194_v21 = vrot.slane %v1192_v5, 7  ;;  %v9467_v32 = vrot.slane %v1200_v11, 7 }
  0x63   : > { %v545_v18 = vrot.slane %v543_v8, 7  ;;  %v532_v22 = vsel %vm9212_vm2, %v524_v15, %v531_v17  ;;  %v9485_v40 = vld [vmem:[%s9290_s14 + $0x24] sm:$0xf]  ;;  %v541_v50 = vrot.slane %v537_v12, 4 }
  0x64   : > { %v1188_v20 = vor.u32 %v1186_v35, %v9435_v61  ;;  %826 = vst.msk [vmem:[#allocation2 + $0x28] sm:$0xf] %vm13200_vm9, %v532_v22  ;;  %v339_v35 = vld [vmem:[#allocation2] sm:$0x1]  ;;  %v1198_v16 = vrot.slane %v1194_v21, 4  ;;  %v1205_v49 = vor.u32 %v1203_v33, %v9467_v32  ;;  %v1207_v54 = vrot.slane %v9467_v32, 4 }
  0x65   : > { %v340_v26 = vsel %vm9281_vm5, 0, %v339_v35  ;;  %v548_v51 = vor.u32 %v546_v43, %v545_v18 }
  0x66   : > { %341 = vst [vmem:[#allocation2] sm:$0x1] %v340_v26  ;;  %v1206_v8 = vsel %vm9212_vm2, %v1198_v16, %v1205_v49 }
  0x67   : > { %1287 = vrot.lane.b32.xlu1 %v1138_v52, %s9127_s11  ;;  %1285 = vrot.lane.b32.xlu0 %v1129_v47, %s9127_s11  ;;  %v351_v47 = vld [vmem:[#allocation2 + $0x30] sm:$0x1]  ;;  %v827_v52 = vld [vmem:[#allocation2 + $0x2c] sm:$0x1] }
  0x68   : > { %1289 = vrot.lane.b32.xlu2 %v1139_v1, %s9127_s11  ;;  %v352_v59 = vsel %vm9281_vm5, 0, %v351_v47  ;;  %v828_v62 = vsel %vm9325_vm8, %v533_v53, %v827_v52  ;;  %v1178_v1 = vshll.u32 %v9375_v10, 16  ;;  %v538_v10 = vshll.u32 %v455_v58, 16  ;;  %v395_v53 = vld [vmem:[#allocation2 + $0x8] sm:$0x1] }
  0x69   : > { %829 = vst [vmem:[#allocation2 + $0x2c] sm:$0x1] %v828_v62  ;;  %v411_v47 = vsel %vm9295_vm6, 0, %v410_v30  ;;  %v560_v52 = vshrl.u32 %v9485_v40, 16  ;;  %v396_v57 = vsel %vm9295_vm6, 0, %v395_v53  ;;  %v1220_v58 = vshll.u32 %v9464_v27, 16 }
  0x6a   : > { %353 = vst [vmem:[#allocation2 + $0x30] sm:$0x1] %v352_v59  ;;  %v540_v29 = vor.u32 %v538_v10, %v537_v12  ;;  %v1180_v31 = vor.u32 %v1178_v1, %v1177_v56  ;;  %v549_v59 = vsel %vm9212_vm2, %v541_v50, %v548_v51  ;;  %v1197_v1 = vor.u32 %v1195_v37, %v1194_v21  ;;  %v9516_v12 = vld [vmem:[%s9290_s14 + $0x20] sm:$0xf]  ;;  %v1378_v10 = vld [vmem:[#allocation2 + $0x14] sm:$0x1] }
  0x6b   : > { %412 = vst [vmem:[#allocation2 + $0x44] sm:$0x1] %v411_v47  ;;  %v563_v47 = vshll.u32 %v9485_v40, 16  ;;  %v1381_v40 = vld [vmem:[#allocation2 + $0x18] sm:$0xf] }
  0x6c   : > { %833 = vst.msk [vmem:[#allocation2 + $0x34] sm:$0xf] %vm13200_vm9, %v549_v59 }
  0x6d   : > { %397 = vst [vmem:[#allocation2 + $0x8] sm:$0x1] %v396_v57  ;;  %v1486_v30 = vld [vmem:[#allocation2] sm:$0xf] }
  0x6f   : > { %1293 = vrot.lane.b32.xlu1 %v1155_v23, %s9127_s11  ;;  %1291 = vrot.lane.b32.xlu0 %v1146_v19, %s9127_s11  ;;  %v1181_v19 = vrot.slane %v1177_v56, 4  ;;  %v550_v23 = vrot.slane %v545_v18, 4  ;;  %v9496_v56 = vrot.slane %v1217_v39, 7  ;;  %v1541_v39 = vshll.u32 %v1486_v30, 16 }
  0x70   : > { %1295 = vrot.lane.b32.xlu2 %v1156_v38, %s9127_s11  ;;  %v1209_v38 = vshrl.u32 %v9461_v25, 16  ;;  %v1392_v62 = vld [vmem:[#allocation2 + $0x2c] sm:$0x1] }
  0x71   : > { %v835_v34 = vsel %vm9325_vm8, %v550_v23, %v834_v14  ;;  %v1189_v36 = vsel %vm9212_vm2, %v1181_v19, %v1188_v20  ;;  %v830_v46 = vld [vmem:[#allocation2 + $0x30] sm:$0xf]  ;;  %v552_v20 = vshrl.u32 %v9516_v12, 16  ;;  %v1224_v22 = vrot.slane %v9496_v56, 4 }
  0x72   : > { %v1236_v4 = vpop.permute.xlu2 %1235  ;;  %836 = vst [vmem:[#allocation2 + $0x38] sm:$0x1] %v835_v34  ;;  %v831_v44 = vsel %vm9347_vm10, %v540_v29, %v830_v46  ;;  %v841_v23 = vld [vmem:[#allocation2 + $0x44] sm:$0x1]  ;;  %v1222_v14 = vor.u32 %v1220_v58, %v9496_v56 }
  0x73   : > { %v1386_v9 = vsel %vm9443_vm13, %v1236_v4, %v1385_v48  ;;  %v1190_v48 = vrot.slane %v9435_v61, 4  ;;  %832 = vst [vmem:[#allocation2 + $0x30] sm:$0xf] %v831_v44  ;;  %v1487_v61 = vld [vmem:[#allocation2 + $0x4] sm:$0xf]  ;;  %v1212_v4 = vshll.u32 %v9461_v25, 16 }
  0x74   : > { %1387 = vst [vmem:[#allocation2 + $0x20] sm:$0x1] %v1386_v9  ;;  %v1547_v63 = vshll.u32 %v1487_v61, 16  ;;  %v1551_v0 = vshrl.u32 %v1487_v61, 16  ;;  %v1518_v43 = vld [vmem:[#allocation2 + $0x8] sm:$0x1] }
  0x75   : > { %v9548_v46 = vrot.slane %v552_v20, 7  ;;  %v1543_v44 = vrot.slane %v1541_v39, 5  ;;  %v1557_v49 = vshll.u32 %v1518_v43, 16  ;;  %v459_v20 = vld [vmem:[%s9290_s14 + $0x28] sm:$0xf] }
  0x76   : > { %v9511_v9 = vrot.slane %v1547_v63, 5  ;;  %v1553_v11 = vrot.slane %v1551_v0, 4  ;;  %v460_v63 = vld [vmem:[%s9290_s14 + $0x2c] sm:$0xf]  ;;  %v569_v42 = vshrl.u32 %v459_v20, 16 }
  0x77   : > { %1299 = vrot.lane.b32.xlu1 %v1172_v60, %s9127_s11  ;;  %1297 = vrot.lane.b32.xlu0 %v1163_v55, %s9127_s11  ;;  %v9494_v55 = vrot.slane %v1209_v38, 7  ;;  %v9503_v60 = vrot.slane %v560_v52, 7  ;;  %v1538_v38 = vshrl.u32 %v1486_v30, 16  ;;  %v1559_v58 = vrot.slane %v1557_v49, 5  ;;  %v13011_v61 = vld [vmem:[%s13183_s6] ss:$0 sm:$0xff] }
  0x78   : > { %1301 = vrot.lane.b32.xlu2 %v1173_v13, %s9127_s11  ;;  %v1371_v13 = vld [vmem:[#allocation2 + $0xc] sm:$0xf]  ;;  %v1554_v25 = vor.u32 %v1553_v11, %v9511_v9  ;;  %v558_v32 = vrot.slane %v9548_v46, 4  ;;  %v580_v11 = vshll.u32 %v460_v63, 16 }
  0x79   : > { %v567_v5 = vrot.slane %v9503_v60, 4  ;;  %v1215_v19 = vrot.slane %v9494_v55, 4  ;;  %v1214_v37 = vor.u32 %v1212_v4, %v9494_v55  ;;  %v577_v4 = vshrl.u32 %v460_v63, 16 }
  0x7a   : > { %v1234_v41 = vpop.permute.xlu2 %1233  ;;  %v1555_v26 = vrot.slane %v1554_v25, 4 }
  0x7b   : > { %1384 = vst.msk [vmem:[#allocation2 + $0x1c] sm:$0xf] %vm1369_vm14, %v1234_v41  ;;  %v1520_v7 = vld [vmem:[#allocation2 + $0x20] sm:$0x1]  ;;  %v842_v29 = vsel %vm9325_vm8, %v567_v5, %v841_v23  ;;  %v1223_v50 = vsel %vm9212_vm2, %v1215_v19, %v1222_v14  ;;  %v9592_v19 = vrot.slane %v577_v4, 7 }
  0x7c   : > { %v1605_v27 = vshll.u32 %v1520_v7, 16  ;;  %843 = vst [vmem:[#allocation2 + $0x44] sm:$0x1] %v842_v29  ;;  %v1560_v0 = vsel %vm9568_vm3, %v1555_v26, %v1559_v58 }
  0x7d   : > { %v3382_v5 = vunpack.c.l.b16 %v1560_v0  ;;  %v582_v29 = vor.u32 %v580_v11, %v9592_v19  ;;  %v584_v49 = vrot.slane %v9592_v19, 4 }
  0x7e   : > { %v9558_v53 = vrot.slane %v1605_v27, 5 }
  0x7f   : > { %1305 = vrot.lane.b32.xlu1 %v1189_v36, %s9127_s11  ;;  %1303 = vrot.lane.b32.xlu0 %v1180_v31, %s9127_s11  ;;  %v1399_v36 = vld [vmem:[#allocation2 + $0x38] sm:$0x1] }
  0x80   : > { %1307 = vrot.lane.b32.xlu2 %v1190_v48, %s9127_s11  ;;  %v1540_v48 = vrot.slane %v1538_v38, 4 }
  0x82   : > { %v1242_v15 = vpop.permute.xlu2 %1241  ;;  %v1491_v17 = vld [vmem:[#allocation2 + $0x1c] sm:$0xf]  ;;  %v1544_v57 = vor.u32 %v1543_v44, %v1540_v48 }
  0x83   : > { %v1393_v18 = vsel %vm9443_vm13, %v1242_v15, %v1392_v62  ;;  %v1595_v31 = vshll.u32 %v1491_v17, 16  ;;  %v1599_v33 = vshrl.u32 %v1491_v17, 16  ;;  %v354_v62 = vld [vmem:[#allocation2 + $0x3c] sm:$0x1]  ;;  %v1406_v27 = vld [vmem:[#allocation2 + $0x44] sm:$0x1] }
  0x84   : > { %1394 = vst [vmem:[#allocation2 + $0x2c] sm:$0x1] %v1393_v18  ;;  %v355_v18 = vsel %vm9281_vm5, 0, %v354_v62  ;;  %v416_v44 = vld [vmem:[#allocation2 + $0x5c] sm:$0x1] }
  0x85   : > { %v9556_v51 = vrot.slane %v1595_v31, 5  ;;  %v1601_v52 = vrot.slane %v1599_v33, 4  ;;  %356 = vst [vmem:[#allocation2 + $0x3c] sm:$0x1] %v355_v18  ;;  %v417_v0 = vsel %vm9295_vm6, 0, %v416_v44 }
  0x86   : > { %418 = vst [vmem:[#allocation2 + $0x5c] sm:$0x1] %v417_v0 }
  0x87   : > { %1311 = vrot.lane.b32.xlu1 %v1206_v8, %s9127_s11  ;;  %1309 = vrot.lane.b32.xlu0 %v1197_v1, %s9127_s11  ;;  %v413_v1 = vld [vmem:[#allocation2 + $0x50] sm:$0x1]  ;;  %v1602_v7 = vor.u32 %v1601_v52, %v9556_v51  ;;  %v555_v8 = vshll.u32 %v9516_v12, 16 }
  0x88   : > { %1313 = vrot.lane.b32.xlu2 %v1207_v54, %s9127_s11  ;;  %v565_v54 = vor.u32 %v563_v47, %v9503_v60  ;;  %v1545_v60 = vrot.slane %v1544_v57, 4  ;;  %v572_v47 = vshll.u32 %v459_v20, 16 }
  0x89   : > { %v1230_v34 = vpop.permute.xlu1 %1229  ;;  %v1226_v35 = vpop.permute.xlu0 %1225  ;;  %v1603_v38 = vrot.slane %v1602_v7, 4 }
  0x8a   : > { %v1379_v16 = vsel %vm9443_vm13, %v1230_v34, %v1378_v10  ;;  %v1372_v41 = vsel %vm9530_vm1, %v1226_v35, %v1371_v13  ;;  %v1248_v55 = vpop.permute.xlu2 %1247  ;;  %v1550_v15 = vsel %vm9568_vm3, %v1545_v60, %v9511_v9  ;;  %v566_v17 = vsel %vm9212_vm2, %v558_v32, %v565_v54  ;;  %v1388_v35 = vld [vmem:[#allocation2 + $0x24] sm:$0xf] }
  0x8b   : > { %1380 = vst [vmem:[#allocation2 + $0x14] sm:$0x1] %v1379_v16  ;;  %v1400_v59 = vsel %vm9443_vm13, %v1248_v55, %v1399_v36  ;;  %v3381_v25 = vunpack.c.l.b16 %v1550_v15  ;;  %v414_v9 = vsel %vm9295_vm6, 0, %v413_v1  ;;  %v571_v34 = vrot.slane %v569_v42, 7  ;;  %v9605_v39 = vld [vmem:[#allocation2 + $0x2c] sm:$0x1] }
  0x8c   : > { %1373 = vst [vmem:[#allocation2 + $0xc] sm:$0xf] %v1372_v41  ;;  %v357_v16 = vld [vmem:[#allocation2 + $0x48] sm:$0x1]  ;;  %v557_v54 = vor.u32 %v555_v8, %v9548_v46  ;;  %v1608_v46 = vsel %vm9568_vm3, %v1603_v38, %v9558_v53  ;;  %v837_v15 = vld [vmem:[#allocation2 + $0x3c] sm:$0xf] }
  0x8d   : > { %1401 = vst [vmem:[#allocation2 + $0x38] sm:$0x1] %v1400_v59  ;;  %v3413_v33 = vpack.c.b16 %v3382_v5, %v3381_v25  ;;  %v575_v43 = vrot.slane %v571_v34, 4  ;;  %v358_v48 = vsel %vm9281_vm5, 0, %v357_v16  ;;  %v574_v5 = vor.u32 %v572_v47, %v571_v34 }
  0x8e   : > { %840 = vst.msk [vmem:[#allocation2 + $0x40] sm:$0xf] %vm13200_vm9, %v566_v17  ;;  %v838_v17 = vsel %vm9347_vm10, %v557_v54, %v837_v15  ;;  %v3386_v42 = vunpack.c.l.b16 %v1608_v46 }
  0x8f   : > { %1317 = vrot.lane.b32.xlu1 %v1223_v50, %s9127_s11  ;;  %1315 = vrot.lane.b32.xlu0 %v1214_v37, %s9127_s11  ;;  %415 = vst [vmem:[#allocation2 + $0x50] sm:$0x1] %v414_v9  ;;  %v1629_v50 = vshll.u32 %v9605_v39, 16  ;;  %v583_v52 = vsel %vm9212_vm2, %v575_v43, %v582_v29 }
  0x90   : > { %1319 = vrot.lane.b32.xlu2 %v1224_v22, %s9127_s11  ;;  %359 = vst [vmem:[#allocation2 + $0x48] sm:$0x1] %v358_v48 }
  0x91   : > { %v1232_v10 = vpop.permute.xlu1 %1231  ;;  %v1228_v13 = vpop.permute.xlu0 %1227  ;;  %847 = vst.msk [vmem:[#allocation2 + $0x4c] sm:$0xf] %vm13200_vm9, %v583_v52 }
  0x92   : > { %v1382_v12 = vsel %vm9530_vm1, %v1232_v10, %v1381_v40  ;;  %1375 = vst.msk [vmem:[#allocation2 + $0x10] sm:$0xf] %vm1369_vm14, %v1228_v13  ;;  %v1519_v23 = vld [vmem:[#allocation2 + $0x14] sm:$0x1]  ;;  %v1254_v36 = vpop.permute.xlu2 %1253  ;;  %v462_v40 = vld [vmem:[%s9290_s14 + $0x34] sm:$0xf] }
  0x93   : > { %1383 = vst [vmem:[#allocation2 + $0x18] sm:$0xf] %v1382_v12  ;;  %v1488_v14 = vld [vmem:[#allocation2 + $0xc] sm:$0xf]  ;;  %v1581_v37 = vshll.u32 %v1519_v23, 16  ;;  %v1407_v56 = vsel %vm9443_vm13, %v1254_v36, %v1406_v27  ;;  %v594_v59 = vshrl.u32 %v462_v40, 16 }
  0x94   : > { %v1562_v30 = vshrl.u32 %v1488_v14, 16  ;;  %v1565_v31 = vshll.u32 %v1488_v14, 16  ;;  %1408 = vst [vmem:[#allocation2 + $0x44] sm:$0x1] %v1407_v56  ;;  %v597_v20 = vshll.u32 %v462_v40, 16 }
  0x95   : > { %v1583_v32 = vrot.slane %v1581_v37, 5  ;;  %v596_v7 = vrot.slane %v594_v59, 7  ;;  %v1395_v12 = vld [vmem:[#allocation2 + $0x30] sm:$0xf]  ;;  %839 = vst [vmem:[#allocation2 + $0x3c] sm:$0xf] %v838_v17 }
  0x96   : > { %v1564_v22 = vrot.slane %v1562_v30, 4  ;;  %v1567_v41 = vrot.slane %v1565_v31, 5  ;;  %v848_v18 = vld [vmem:[#allocation2 + $0x50] sm:$0x1]  ;;  %v1522_v29 = vld [vmem:[#allocation2 + $0x38] sm:$0x1] }
  0x97   : > { %3429 = vrot.lane.b32.xlu0 %v3413_v33, %s9129_s15  ;;  %v601_v19 = vrot.slane %v596_v7, 4  ;;  %v849_v27 = vsel %vm9325_vm8, %v584_v49, %v848_v18  ;;  %v844_v14 = vld [vmem:[#allocation2 + $0x48] sm:$0xf]  ;;  %v360_v36 = vld [vmem:[#allocation2 + $0x54] sm:$0x1]  ;;  %v599_v43 = vor.u32 %v597_v20, %v596_v7 }
  0x98   : > { %v1568_v26 = vor.u32 %v1567_v41, %v1564_v22  ;;  %v9634_v30 = vld [vmem:[%s9290_s14 + $0x30] sm:$0xf]  ;;  %850 = vst [vmem:[#allocation2 + $0x50] sm:$0x1] %v849_v27  ;;  %v845_v34 = vsel %vm9347_vm10, %v574_v5, %v844_v14  ;;  %v1653_v22 = vshll.u32 %v1522_v29, 16 }
  0x99   : > { %v1240_v55 = vpop.permute.xlu1 %1239  ;;  %v1238_v57 = vpop.permute.xlu0 %1237  ;;  %v1489_v58 = vld [vmem:[#allocation2 + $0x10] sm:$0xf]  ;;  %846 = vst [vmem:[#allocation2 + $0x48] sm:$0xf] %v845_v34  ;;  %v589_v41 = vshll.u32 %v9634_v30, 16 }
  0x9a   : > { %1391 = vst.msk [vmem:[#allocation2 + $0x28] sm:$0xf] %vm1369_vm14, %v1240_v55  ;;  %v1389_v62 = vsel %vm9530_vm1, %v1238_v57, %v1388_v35  ;;  %v1571_v63 = vshll.u32 %v1489_v58, 16  ;;  %v1575_v60 = vshrl.u32 %v1489_v58, 16  ;;  %v1569_v1 = vrot.slane %v1568_v26, 4  ;;  %v1260_v54 = vpop.permute.xlu2 %1259 }
  0x9b   : > { %1390 = vst [vmem:[#allocation2 + $0x24] sm:$0xf] %v1389_v62  ;;  %v1490_v4 = vld [vmem:[#allocation2 + $0x18] sm:$0xf]  ;;  %v586_v35 = vshrl.u32 %v9634_v30, 16 }
  0x9c   : > { %v1573_v8 = vrot.slane %v1571_v63, 5  ;;  %v1577_v11 = vrot.slane %v1575_v60, 4  ;;  %v1586_v10 = vshrl.u32 %v1490_v4, 16  ;;  %v1589_v13 = vshll.u32 %v1490_v4, 16  ;;  %v855_v62 = vld [vmem:[#allocation2 + $0x5c] sm:$0x1] }
  0x9d   : > { %v588_v63 = vrot.slane %v586_v35, 7  ;;  %v856_v7 = vsel %vm9325_vm8, %v601_v19, %v855_v62  ;;  %v1631_v19 = vrot.slane %v1629_v50, 5 }
  0x9e   : > { %v1574_v23 = vsel %vm9568_vm3, %v1569_v1, %v1573_v8  ;;  %v1578_v53 = vor.u32 %v1577_v11, %v1573_v8  ;;  %v1588_v25 = vrot.slane %v1586_v10, 4  ;;  %v1591_v9 = vrot.slane %v1589_v13, 5  ;;  %v1402_v1 = vld [vmem:[#allocation2 + $0x3c] sm:$0xf]  ;;  %v9653_v11 = vld [vmem:[%s9290_s14 + $0x3c] sm:$0xf] }
  0x9f   : > { %v3383_v16 = vunpack.c.l.b16 %v1574_v23  ;;  %v592_v8 = vrot.slane %v588_v63, 4  ;;  %v1413_v13 = vld [vmem:[#allocation2 + $0x50] sm:$0x1]  ;;  %857 = vst [vmem:[#allocation2 + $0x5c] sm:$0x1] %v856_v7  ;;  %v611_v18 = vshrl.u32 %v9653_v11, 16 }
  0xa0   : > { %v1579_v31 = vrot.slane %v1578_v53, 4  ;;  %v1592_v33 = vor.u32 %v1591_v9, %v1588_v25  ;;  %v1414_v20 = vsel %vm9443_vm13, %v1260_v54, %v1413_v13  ;;  %v9663_v23 = vrot.slane %v1653_v22, 5  ;;  %v363_v13 = vld [vmem:[#allocation2 + $0x60] sm:$0x1] }
  0xa1   : > { %v1246_v37 = vpop.permute.xlu1 %1245  ;;  %v1244_v38 = vpop.permute.xlu0 %1243  ;;  %v1493_v56 = vld [vmem:[#allocation2 + $0x28] sm:$0xf]  ;;  %1415 = vst [vmem:[#allocation2 + $0x50] sm:$0x1] %v1414_v20  ;;  %v600_v27 = vsel %vm9212_vm2, %v592_v8, %v599_v43  ;;  %v9668_v14 = vrot.slane %v611_v18, 7 }
  0xa2   : > { %1398 = vst.msk [vmem:[#allocation2 + $0x34] sm:$0xf] %vm1369_vm14, %v1246_v37  ;;  %v1396_v47 = vsel %vm9530_vm1, %v1244_v38, %v1395_v12  ;;  %v1584_v48 = vsel %vm9568_vm3, %v1579_v31, %v1583_v32  ;;  %v1593_v44 = vrot.slane %v1592_v33, 4  ;;  %v1492_v26 = vld [vmem:[#allocation2 + $0x24] sm:$0xf]  ;;  %v1619_v49 = vshll.u32 %v1493_v56, 16 }
  0xa3   : > { %1397 = vst [vmem:[#allocation2 + $0x30] sm:$0xf] %v1396_v47  ;;  %v3384_v52 = vunpack.c.l.b16 %v1584_v48  ;;  %v1610_v40 = vshrl.u32 %v1492_v26, 16  ;;  %v1613_v55 = vshll.u32 %v1492_v26, 16  ;;  %v1623_v57 = vshrl.u32 %v1493_v56, 16 }
  0xa4   : > { %v1598_v58 = vsel %vm9568_vm3, %v1593_v44, %v9556_v51  ;;  %v1621_v59 = vrot.slane %v1619_v49, 5  ;;  %v361_v32 = vsel %vm9281_vm5, 0, %v360_v36  ;;  %v419_v51 = vld [vmem:[#allocation2 + $0x68] sm:$0x1]  ;;  %v591_v31 = vor.u32 %v589_v41, %v588_v63  ;;  %v1523_v37 = vld [vmem:[#allocation2 + $0x44] sm:$0x1]  ;;  %v1266_v49 = vpop.permute.xlu2 %1265 }
  0xa5   : > { %v3414_v60 = vpack.c.b16 %v3384_v52, %v3383_v16  ;;  %v3385_v0 = vunpack.c.l.b16 %v1598_v58  ;;  %v1612_v4 = vrot.slane %v1610_v40, 4  ;;  %v1615_v46 = vrot.slane %v1613_v55, 5  ;;  %362 = vst [vmem:[#allocation2 + $0x54] sm:$0x1] %v361_v32  ;;  %v9680_v26 = vld [vmem:[%s9290_s14 + $0x38] sm:$0xf] }
  0xa6   : > { %v1625_v5 = vrot.slane %v1623_v57, 4  ;;  %v420_v17 = vsel %vm9295_vm6, 0, %v419_v51  ;;  %854 = vst.msk [vmem:[#allocation2 + $0x58] sm:$0xf] %vm13200_vm9, %v600_v27  ;;  %v618_v43 = vrot.slane %v9668_v14, 4  ;;  %v1677_v55 = vshll.u32 %v1523_v37, 16 }
  0xa7   : > { %3431 = vrot.lane.b32.xlu1 %v3414_v60, %s9129_s15  ;;  %v3415_v10 = vpack.c.b16 %v3386_v42, %v3385_v0  ;;  %v1616_v15 = vor.u32 %v1615_v46, %v1612_v4  ;;  %421 = vst [vmem:[#allocation2 + $0x68] sm:$0x1] %v420_v17  ;;  %v1420_v52 = vld [vmem:[#allocation2 + $0x5c] sm:$0x1]  ;;  %v603_v57 = vshrl.u32 %v9680_v26, 16  ;;  %v606_v58 = vshll.u32 %v9680_v26, 16 }
  0xa8   : > { %v1626_v12 = vor.u32 %v1625_v5, %v1621_v59  ;;  %v1421_v62 = vsel %vm9443_vm13, %v1266_v49, %v1420_v52  ;;  %v614_v46 = vshll.u32 %v9653_v11, 16 }
  0xa9   : > { %3433 = vrot.lane.b32.xlu2 %v3415_v10, %s9129_s15  ;;  %v1252_v53 = vpop.permute.xlu1 %1251  ;;  %v1250_v25 = vpop.permute.xlu0 %1249  ;;  %v1617_v9 = vrot.slane %v1616_v15, 4  ;;  %v1495_v42 = vld [vmem:[#allocation2 + $0x34] sm:$0xf]  ;;  %1422 = vst [vmem:[#allocation2 + $0x5c] sm:$0x1] %v1421_v62  ;;  %v605_v4 = vrot.slane %v603_v57, 7 }
  0xaa   : > { %1405 = vst.msk [vmem:[#allocation2 + $0x40] sm:$0xf] %vm1369_vm14, %v1252_v53  ;;  %v1403_v39 = vsel %vm9530_vm1, %v1250_v25, %v1402_v1  ;;  %v1627_v50 = vrot.slane %v1626_v12, 4  ;;  %v1494_v29 = vld [vmem:[#allocation2 + $0x30] sm:$0xf]  ;;  %v1643_v30 = vshll.u32 %v1495_v42, 16 }
  0xab   : > { %1404 = vst [vmem:[#allocation2 + $0x3c] sm:$0xf] %v1403_v39  ;;  %v1622_v33 = vsel %vm9568_vm3, %v1617_v9, %v1621_v59  ;;  %v1634_v34 = vshrl.u32 %v1494_v29, 16  ;;  %v1637_v35 = vshll.u32 %v1494_v29, 16  ;;  %v1647_v36 = vshrl.u32 %v1495_v42, 16 }
  0xac   : > { %v1632_v38 = vsel %vm9568_vm3, %v1627_v50, %v1631_v19  ;;  %v3387_v16 = vunpack.c.l.b16 %v1622_v33  ;;  %v1645_v56 = vrot.slane %v1643_v30, 5  ;;  %v851_v22 = vld [vmem:[#allocation2 + $0x54] sm:$0xf]  ;;  %v1409_v59 = vld [vmem:[#allocation2 + $0x48] sm:$0xf]  ;;  %v9690_v1 = vrot.slane %v1677_v55, 5 }
  0xad   : > { %v3388_v41 = vunpack.c.l.b16 %v1632_v38  ;;  %v1636_v47 = vrot.slane %v1634_v34, 4  ;;  %v1639_v48 = vrot.slane %v1637_v35, 5  ;;  %v1649_v44 = vrot.slane %v1647_v36, 4  ;;  %v422_v25 = vld [vmem:[#allocation2 + $0x74] sm:$0x1] }
  0xae   : > { %v852_v40 = vsel %vm9347_vm10, %v591_v31, %v851_v22  ;;  %v862_v60 = vld [vmem:[#allocation2 + $0x68] sm:$0x1]  ;;  %v9703_v50 = vld [vmem:[%s9290_s14 + $0x44] sm:$0xf]  ;;  %v609_v31 = vrot.slane %v605_v4, 4  ;;  %v616_v33 = vor.u32 %v614_v46, %v9668_v14  ;;  %v423_v37 = vsel %vm9295_vm6, 0, %v422_v25 }
  0xaf   : > { %v3416_v54 = vpack.c.b16 %v3388_v41, %v3387_v16  ;;  %v1640_v63 = vor.u32 %v1639_v48, %v1636_v47  ;;  %v1650_v32 = vor.u32 %v1649_v44, %v1645_v56  ;;  %853 = vst [vmem:[#allocation2 + $0x54] sm:$0xf] %v852_v40  ;;  %v863_v0 = vsel %vm9325_vm8, %v618_v43, %v862_v60  ;;  %v9707_v34 = vld [vmem:[%s9290_s14 + $0x40] sm:$0xf]  ;;  %v1524_v38 = vld [vmem:[#allocation2 + $0x50] sm:$0x1]  ;;  %v1272_v41 = vpop.permute.xlu2 %1271 }
  0xb0   : > { %864 = vst [vmem:[#allocation2 + $0x68] sm:$0x1] %v863_v0  ;;  %v617_v22 = vsel %vm9212_vm2, %v609_v31, %v616_v33  ;;  %v628_v43 = vshrl.u32 %v9703_v50, 16  ;;  %v1701_v14 = vshll.u32 %v1524_v38, 16  ;;  %v620_v44 = vshrl.u32 %v9707_v34, 16 }
  0xb1   : > { %3435 = vrot.lane.b32.xlu0 %v3416_v54, %s9129_s15  ;;  %v1258_v5 = vpop.permute.xlu1 %1257  ;;  %v1256_v7 = vpop.permute.xlu0 %1255  ;;  %v1641_v8 = vrot.slane %v1640_v63, 4  ;;  %v1651_v51 = vrot.slane %v1650_v32, 4  ;;  %v1497_v10 = vld [vmem:[#allocation2 + $0x40] sm:$0xf]  ;;  %861 = vst.msk [vmem:[#allocation2 + $0x64] sm:$0xf] %vm13200_vm9, %v617_v22  ;;  %v608_v57 = vor.u32 %v606_v58, %v605_v4 }
  0xb2   : > { %1412 = vst.msk [vmem:[#allocation2 + $0x4c] sm:$0xf] %vm1369_vm14, %v1258_v5  ;;  %v1410_v15 = vsel %vm9530_vm1, %v1256_v7, %v1409_v59  ;;  %v1496_v17 = vld [vmem:[#allocation2 + $0x3c] sm:$0xf]  ;;  %v1667_v18 = vshll.u32 %v1497_v10, 16  ;;  %v1671_v20 = vshrl.u32 %v1497_v10, 16 }
  0xb3   : > { %1411 = vst [vmem:[#allocation2 + $0x48] sm:$0xf] %v1410_v15  ;;  %v1646_v11 = vsel %vm9568_vm3, %v1641_v8, %v1645_v56  ;;  %v1656_v12 = vsel %vm9568_vm3, %v1651_v51, %v9663_v23  ;;  %v1658_v19 = vshrl.u32 %v1496_v17, 16  ;;  %v1661_v53 = vshll.u32 %v1496_v17, 16  ;;  %v366_v5 = vld [vmem:[#allocation2 + $0x6c] sm:$0x1] }
  0xb4   : > { %v3389_v9 = vunpack.c.l.b16 %v1646_v11  ;;  %v3390_v42 = vunpack.c.l.b16 %v1656_v12  ;;  %v1669_v27 = vrot.slane %v1667_v18, 5  ;;  %v1673_v39 = vrot.slane %v1671_v20, 4  ;;  %424 = vst [vmem:[#allocation2 + $0x74] sm:$0x1] %v423_v37  ;;  %v425_v18 = vld [vmem:[#allocation2 + $0x80] sm:$0x1] }
  0xb5   : > { %v1660_v29 = vrot.slane %v1658_v19, 4  ;;  %v1663_v30 = vrot.slane %v1661_v53, 5  ;;  %v364_v23 = vsel %vm9281_vm5, 0, %v363_v13  ;;  %v630_v54 = vrot.slane %v628_v43, 7  ;;  %v468_v25 = vld [vmem:[%s9290_s14 + $0x4c] sm:$0xf] }
  0xb6   : > { %v3417_v35 = vpack.c.b16 %v3390_v42, %v3389_v9  ;;  %v1674_v36 = vor.u32 %v1673_v39, %v1669_v27  ;;  %v1416_v16 = vld [vmem:[#allocation2 + $0x54] sm:$0xf]  ;;  %365 = vst [vmem:[#allocation2 + $0x60] sm:$0x1] %v364_v23  ;;  %v1703_v15 = vrot.slane %v1701_v14, 5  ;;  %v623_v17 = vshll.u32 %v9707_v34, 16 }
  0xb7   : > { %v1664_v56 = vor.u32 %v1663_v30, %v1660_v29  ;;  %v1427_v47 = vld [vmem:[#allocation2 + $0x68] sm:$0x1]  ;;  %v635_v4 = vrot.slane %v630_v54, 4  ;;  %v631_v53 = vshll.u32 %v9703_v50, 16  ;;  %v1525_v39 = vld [vmem:[#allocation2 + $0x5c] sm:$0x1] }
  0xb8   : > { %3437 = vrot.lane.b32.xlu1 %v3417_v35, %s9129_s15  ;;  %v1675_v48 = vrot.slane %v1674_v36, 4  ;;  %v1428_v40 = vsel %vm9443_vm13, %v1272_v41, %v1427_v47  ;;  %v426_v50 = vsel %vm9295_vm6, 0, %v425_v18  ;;  %v645_v37 = vshrl.u32 %v468_v25, 16 }
  0xb9   : > { %v1264_v49 = vpop.permute.xlu1 %1263  ;;  %v1262_v52 = vpop.permute.xlu0 %1261  ;;  %v1665_v55 = vrot.slane %v1664_v56, 4  ;;  %v1499_v59 = vld [vmem:[#allocation2 + $0x4c] sm:$0xf]  ;;  %1429 = vst [vmem:[#allocation2 + $0x68] sm:$0x1] %v1428_v40  ;;  %v633_v33 = vor.u32 %v631_v53, %v630_v54 }
  0xba   : > { %1419 = vst.msk [vmem:[#allocation2 + $0x58] sm:$0xf] %vm1369_vm14, %v1264_v49  ;;  %v1417_v62 = vsel %vm9530_vm1, %v1262_v52, %v1416_v16  ;;  %v1680_v63 = vsel %vm9568_vm3, %v1675_v48, %v9690_v1  ;;  %v1498_v32 = vld [vmem:[#allocation2 + $0x48] sm:$0xf]  ;;  %v1691_v60 = vshll.u32 %v1499_v59, 16  ;;  %v1695_v0 = vshrl.u32 %v1499_v59, 16 }
  0xbb   : > { %1418 = vst [vmem:[#allocation2 + $0x54] sm:$0xf] %v1417_v62  ;;  %v1670_v26 = vsel %vm9568_vm3, %v1665_v55, %v1669_v27  ;;  %v3392_v58 = vunpack.c.l.b16 %v1680_v63  ;;  %v1682_v46 = vshrl.u32 %v1498_v32, 16  ;;  %v1685_v8 = vshll.u32 %v1498_v32, 16  ;;  %v869_v29 = vld [vmem:[#allocation2 + $0x74] sm:$0x1] }
  0xbc   : > { %v3391_v7 = vunpack.c.l.b16 %v1670_v26  ;;  %v1693_v51 = vrot.slane %v1691_v60, 5  ;;  %v1697_v10 = vrot.slane %v1695_v0, 4  ;;  %v622_v1 = vrot.slane %v620_v44, 7  ;;  %v467_v56 = vld [vmem:[%s9290_s14 + $0x48] sm:$0xf] }
  0xbd   : > { %v1684_v13 = vrot.slane %v1682_v46, 4  ;;  %v858_v11 = vld [vmem:[#allocation2 + $0x60] sm:$0xf]  ;;  %v1687_v12 = vrot.slane %v1685_v8, 5  ;;  %v367_v27 = vsel %vm9281_vm5, 0, %v366_v5  ;;  %v870_v36 = vsel %vm9325_vm8, %v635_v4, %v869_v29 }
  0xbe   : > { %v3418_v20 = vpack.c.b16 %v3392_v58, %v3391_v7  ;;  %v1698_v19 = vor.u32 %v1697_v10, %v1693_v51  ;;  %v859_v9 = vsel %vm9347_vm10, %v608_v57, %v858_v11  ;;  %v626_v42 = vrot.slane %v622_v1, 4  ;;  %368 = vst [vmem:[#allocation2 + $0x6c] sm:$0x1] %v367_v27  ;;  %v369_v48 = vld [vmem:[#allocation2 + $0x78] sm:$0x1] }
  0xbf   : > { %860 = vst [vmem:[#allocation2 + $0x60] sm:$0xf] %v859_v9  ;;  %v1688_v30 = vor.u32 %v1687_v12, %v1684_v13  ;;  %v625_v23 = vor.u32 %v623_v17, %v622_v1  ;;  %v1725_v16 = vshll.u32 %v1525_v39, 16  ;;  %v9749_v44 = vld [vmem:[#allocation2 + $0x8c] sm:$0x1]  ;;  %v647_v52 = vrot.slane %v645_v37, 7  ;;  %v1278_v1 = vpop.permute.xlu2 %1277 }
  0xc0   : > { %3439 = vrot.lane.b32.xlu2 %v3418_v20, %s9129_s15  ;;  %v1699_v31 = vrot.slane %v1698_v19, 4  ;;  %v634_v14 = vsel %vm9212_vm2, %v626_v42, %v633_v33  ;;  %871 = vst [vmem:[#allocation2 + $0x74] sm:$0x1] %v870_v36  ;;  %v637_v58 = vshrl.u32 %v467_v56, 16  ;;  %v640_v4 = vshll.u32 %v467_v56, 16 }
  0xc1   : > { %v1270_v34 = vpop.permute.xlu1 %1269  ;;  %v1268_v35 = vpop.permute.xlu0 %1267  ;;  %v1501_v38 = vld [vmem:[#allocation2 + $0x58] sm:$0xf]  ;;  %v1689_v22 = vrot.slane %v1688_v30, 4  ;;  %868 = vst.msk [vmem:[#allocation2 + $0x70] sm:$0xf] %vm13200_vm9, %v634_v14  ;;  %v1727_v62 = vrot.slane %v1725_v16, 5 }
  0xc2   : > { %1426 = vst.msk [vmem:[#allocation2 + $0x64] sm:$0xf] %vm1369_vm14, %v1270_v34  ;;  %v1704_v43 = vsel %vm9568_vm3, %v1699_v31, %v1703_v15  ;;  %v1500_v41 = vld [vmem:[#allocation2 + $0x54] sm:$0xf]  ;;  %v1715_v47 = vshll.u32 %v1501_v38, 16  ;;  %v1719_v59 = vshrl.u32 %v1501_v38, 16 }
  0xc3   : > { %v3394_v49 = vunpack.c.l.b16 %v1704_v43  ;;  %v1706_v40 = vshrl.u32 %v1500_v41, 16  ;;  %v1709_v55 = vshll.u32 %v1500_v41, 16  ;;  %v1694_v57 = vsel %vm9568_vm3, %v1689_v22, %v1693_v51  ;;  %427 = vst [vmem:[#allocation2 + $0x80] sm:$0x1] %v426_v50  ;;  %v9755_v5 = vld [vmem:[%s9290_s14 + $0x54] sm:$0xf] }
  0xc4   : > { %v1717_v54 = vrot.slane %v1715_v47, 5  ;;  %v3393_v63 = vunpack.c.l.b16 %v1694_v57  ;;  %v652_v32 = vrot.slane %v647_v52, 4  ;;  %v1721_v26 = vrot.slane %v1719_v59, 4  ;;  %v1526_v34 = vld [vmem:[#allocation2 + $0x68] sm:$0x1] }
  0xc5   : > { %v1708_v60 = vrot.slane %v1706_v40, 4  ;;  %v1711_v0 = vrot.slane %v1709_v55, 5  ;;  %v648_v46 = vshll.u32 %v468_v25, 16  ;;  %v370_v51 = vsel %vm9281_vm5, 0, %v369_v48  ;;  %v865_v17 = vld [vmem:[#allocation2 + $0x6c] sm:$0xf] }
  0xc6   : > { %v1423_v7 = vld [vmem:[#allocation2 + $0x60] sm:$0xf]  ;;  %v3419_v8 = vpack.c.b16 %v3394_v49, %v3393_v63  ;;  %v429_v13 = vsel %vm9295_vm6, 0, %v9749_v44  ;;  %v1722_v18 = vor.u32 %v1721_v26, %v1717_v54  ;;  %v639_v20 = vrot.slane %v637_v58, 7  ;;  %371 = vst [vmem:[#allocation2 + $0x78] sm:$0x1] %v370_v51 }
  0xc7   : > { %v1712_v10 = vor.u32 %v1711_v0, %v1708_v60  ;;  %v1424_v15 = vsel %vm9530_vm1, %v1268_v35, %v1423_v7  ;;  %v650_v11 = vor.u32 %v648_v46, %v647_v52  ;;  %v866_v19 = vsel %vm9347_vm10, %v625_v23, %v865_v17  ;;  %v1434_v42 = vld [vmem:[#allocation2 + $0x74] sm:$0x1]  ;;  %v469_v36 = vld [vmem:[%s9290_s14 + $0x50] sm:$0xf]  ;;  %v372_v47 = vld [vmem:[#allocation2 + $0x84] sm:$0x1]  ;;  %v1284_v7 = vpop.permute.xlu2 %1283 }
  0xc8   : > { %1425 = vst [vmem:[#allocation2 + $0x60] sm:$0xf] %v1424_v15  ;;  %3441 = vrot.lane.b32.xlu0 %v3419_v8, %s9129_s15  ;;  %v662_v25 = vshrl.u32 %v9755_v5, 16  ;;  %v1723_v39 = vrot.slane %v1722_v18, 4  ;;  %v642_v29 = vor.u32 %v640_v4, %v639_v20  ;;  %v643_v30 = vrot.slane %v639_v20, 4 }
  0xc9   : > { %v1276_v12 = vpop.permute.xlu1 %1275  ;;  %v1713_v53 = vrot.slane %v1712_v10, 4  ;;  %v1503_v9 = vld [vmem:[#allocation2 + $0x64] sm:$0xf]  ;;  %v1274_v27 = vpop.permute.xlu0 %1273  ;;  %v1435_v31 = vsel %vm9443_vm13, %v1278_v1, %v1434_v42  ;;  %867 = vst [vmem:[#allocation2 + $0x6c] sm:$0xf] %v866_v19  ;;  %v1749_v44 = vshll.u32 %v1526_v34, 16 }
  0xca   : > { %1433 = vst.msk [vmem:[#allocation2 + $0x70] sm:$0xf] %vm1369_vm14, %v1276_v12  ;;  %v9773_v50 = vrot.slane %v662_v25, 7  ;;  %v1739_v35 = vshll.u32 %v1503_v9, 16  ;;  %v876_v23 = vld [vmem:[#allocation2 + $0x80] sm:$0x1]  ;;  %v1728_v37 = vsel %vm9568_vm3, %v1723_v39, %v1727_v62  ;;  %v651_v16 = vsel %vm9212_vm2, %v643_v30, %v650_v11 }
  0xcb   : > { %v1718_v33 = vsel %vm9568_vm3, %v1713_v53, %v1717_v54  ;;  %1436 = vst [vmem:[#allocation2 + $0x74] sm:$0x1] %v1435_v31  ;;  %v1743_v56 = vshrl.u32 %v1503_v9, 16  ;;  %v877_v22 = vsel %vm9325_vm8, %v652_v32, %v876_v23  ;;  %v3396_v43 = vunpack.c.l.b16 %v1728_v37  ;;  %v431_v46 = vld [vmem:[#allocation2 + $0x98] sm:$0x1] }
  0xcc   : > { %v3395_v38 = vunpack.c.l.b16 %v1718_v33  ;;  %875 = vst.msk [vmem:[#allocation2 + $0x7c] sm:$0xf] %vm13200_vm9, %v651_v16  ;;  %v669_v14 = vrot.slane %v9773_v50, 4  ;;  %v9784_v41 = vrot.slane %v1739_v35, 5  ;;  %v654_v49 = vshrl.u32 %v469_v36, 16 }
  0xcd   : > { %878 = vst [vmem:[#allocation2 + $0x80] sm:$0x1] %v877_v22  ;;  %v1745_v48 = vrot.slane %v1743_v56, 4  ;;  %v657_v52 = vshll.u32 %v469_v36, 16  ;;  %v872_v55 = vld [vmem:[#allocation2 + $0x78] sm:$0xf] }
  0xce   : > { %v3420_v40 = vpack.c.b16 %v3396_v43, %v3395_v38  ;;  %430 = vst [vmem:[#allocation2 + $0x8c] sm:$0x1] %v429_v13  ;;  %v665_v57 = vshll.u32 %v9755_v5, 16  ;;  %v373_v54 = vsel %vm9281_vm5, 0, %v372_v47  ;;  %v873_v59 = vsel %vm9347_vm10, %v642_v29, %v872_v55  ;;  %v472_v17 = vld [vmem:[%s9290_s14 + $0x5c] sm:$0xf] }
  0xcf   : > { %v1502_v62 = vld [vmem:[#allocation2 + $0x60] sm:$0xf]  ;;  %v1746_v63 = vor.u32 %v1745_v48, %v9784_v41  ;;  %v1751_v32 = vrot.slane %v1749_v44, 5  ;;  %v656_v60 = vrot.slane %v654_v49, 7  ;;  %374 = vst [vmem:[#allocation2 + $0x84] sm:$0x1] %v373_v54 }
  0xd0   : > { %3443 = vrot.lane.b32.xlu1 %v3420_v40, %s9129_s15  ;;  %874 = vst [vmem:[#allocation2 + $0x78] sm:$0xf] %v873_v59  ;;  %v1730_v26 = vshrl.u32 %v1502_v62, 16  ;;  %v1733_v58 = vshll.u32 %v1502_v62, 16  ;;  %v667_v4 = vor.u32 %v665_v57, %v9773_v50  ;;  %v1430_v5 = vld [vmem:[#allocation2 + $0x6c] sm:$0xf]  ;;  %v1290_v59 = vpop.permute.xlu2 %1289 }
  0xd1   : > { %v1282_v0 = vpop.permute.xlu1 %1281  ;;  %v1747_v8 = vrot.slane %v1746_v63, 4  ;;  %v660_v10 = vrot.slane %v656_v60, 4  ;;  %v1431_v51 = vsel %vm9530_vm1, %v1274_v27, %v1430_v5  ;;  %v432_v1 = vsel %vm9295_vm6, 0, %v431_v46  ;;  %v1280_v18 = vpop.permute.xlu0 %1279  ;;  %v9802_v19 = vld [vmem:[#allocation2 + $0x70] sm:$0xf] }
  0xd2   : > { %1440 = vst.msk [vmem:[#allocation2 + $0x7c] sm:$0xf] %vm1369_vm14, %v1282_v0  ;;  %v1732_v13 = vrot.slane %v1730_v26, 4  ;;  %v1735_v15 = vrot.slane %v1733_v58, 5  ;;  %v659_v20 = vor.u32 %v657_v52, %v656_v60  ;;  %v679_v12 = vshrl.u32 %v472_v17, 16 }
  0xd3   : > { %1432 = vst [vmem:[#allocation2 + $0x6c] sm:$0xf] %v1431_v51  ;;  %v668_v11 = vsel %vm9212_vm2, %v660_v10, %v667_v4  ;;  %v1752_v9 = vsel %vm9568_vm3, %v1747_v8, %v1751_v32  ;;  %v682_v42 = vshll.u32 %v472_v17, 16  ;;  %v9809_v30 = vld [vmem:[#allocation2 + $0x74] sm:$0x1]  ;;  %v1763_v31 = vshll.u32 %v9802_v19, 16 }
  0xd4   : > { %v1441_v53 = vld [vmem:[#allocation2 + $0x80] sm:$0x1]  ;;  %v1736_v25 = vor.u32 %v1735_v15, %v1732_v13  ;;  %882 = vst.msk [vmem:[#allocation2 + $0x88] sm:$0xf] %vm13200_vm9, %v668_v11  ;;  %v681_v29 = vrot.slane %v679_v12, 7  ;;  %v1767_v35 = vshrl.u32 %v9802_v19, 16  ;;  %v3398_v23 = vunpack.c.l.b16 %v1752_v9 }
  0xd5   : > { %v1442_v27 = vsel %vm9443_vm13, %v1284_v7, %v1441_v53  ;;  %v883_v39 = vld [vmem:[#allocation2 + $0x8c] sm:$0x1]  ;;  %433 = vst [vmem:[#allocation2 + $0x98] sm:$0x1] %v432_v1  ;;  %v9817_v16 = vrot.slane %v1763_v31, 5  ;;  %v1773_v47 = vshll.u32 %v9809_v30, 16 }
  0xd6   : > { %1443 = vst [vmem:[#allocation2 + $0x80] sm:$0x1] %v1442_v27  ;;  %v884_v33 = vsel %vm9325_vm8, %v669_v14, %v883_v39  ;;  %v1737_v50 = vrot.slane %v1736_v25, 4  ;;  %v879_v34 = vld [vmem:[#allocation2 + $0x84] sm:$0xf]  ;;  %v686_v38 = vrot.slane %v681_v29, 4  ;;  %v684_v58 = vor.u32 %v682_v42, %v681_v29 }
  0xd7   : > { %v1437_v36 = vld [vmem:[#allocation2 + $0x78] sm:$0xf]  ;;  %885 = vst [vmem:[#allocation2 + $0x8c] sm:$0x1] %v884_v33  ;;  %v880_v37 = vsel %vm9347_vm10, %v659_v20, %v879_v34  ;;  %v1769_v14 = vrot.slane %v1767_v35, 4  ;;  %v1775_v54 = vrot.slane %v1773_v47, 5 }
  0xd8   : > { %v1438_v56 = vsel %vm9530_vm1, %v1280_v18, %v1437_v36  ;;  %v1742_v22 = vsel %vm9568_vm3, %v1737_v50, %v9784_v41  ;;  %881 = vst [vmem:[#allocation2 + $0x84] sm:$0xf] %v880_v37  ;;  %v471_v48 = vld [vmem:[%s9290_s14 + $0x58] sm:$0xf]  ;;  %v434_v4 = vld [vmem:[#allocation2 + $0xa4] sm:$0x1] }
  0xd9   : > { %v1288_v43 = vpop.permute.xlu1 %1287  ;;  %1439 = vst [vmem:[#allocation2 + $0x78] sm:$0xf] %v1438_v56  ;;  %v3397_v44 = vunpack.c.l.b16 %v1742_v22  ;;  %v671_v49 = vshrl.u32 %v471_v48, 16  ;;  %v674_v52 = vshll.u32 %v471_v48, 16  ;;  %v375_v40 = vld [vmem:[#allocation2 + $0x90] sm:$0x1]  ;;  %v1770_v57 = vor.u32 %v1769_v14, %v9817_v16  ;;  %v1286_v46 = vpop.permute.xlu0 %1285 }
  0xda   : > { %1447 = vst.msk [vmem:[#allocation2 + $0x88] sm:$0xf] %vm1369_vm14, %v1288_v43  ;;  %v1504_v55 = vld [vmem:[#allocation2 + $0x6c] sm:$0xf]  ;;  %v376_v41 = vsel %vm9281_vm5, 0, %v375_v40  ;;  %v435_v17 = vsel %vm9295_vm6, 0, %v434_v4 }
  0xdb   : > { %v3421_v62 = vpack.c.b16 %v3398_v23, %v3397_v44  ;;  %v1754_v63 = vshrl.u32 %v1504_v55, 16  ;;  %v1757_v32 = vshll.u32 %v1504_v55, 16  ;;  %v673_v60 = vrot.slane %v671_v49, 7  ;;  %377 = vst [vmem:[#allocation2 + $0x90] sm:$0x1] %v376_v41  ;;  %v1296_v49 = vpop.permute.xlu2 %1295 }
  0xdc   : > { %v890_v0 = vld [vmem:[#allocation2 + $0x98] sm:$0x1]  ;;  %v1771_v26 = vrot.slane %v1770_v57, 4  ;;  %v474_v10 = vld [vmem:[%s9290_s14 + $0x64] sm:$0xf] }
  0xdd   : > { %3445 = vrot.lane.b32.xlu2 %v3421_v62, %s9129_s15  ;;  %v891_v5 = vsel %vm9325_vm8, %v686_v38, %v890_v0  ;;  %v1756_v7 = vrot.slane %v1754_v63, 4  ;;  %v1759_v8 = vrot.slane %v1757_v32, 5  ;;  %v9834_v51 = vld [vmem:[#allocation2 + $0x7c] sm:$0xf]  ;;  %v676_v15 = vor.u32 %v674_v52, %v673_v60  ;;  %436 = vst [vmem:[#allocation2 + $0xa4] sm:$0x1] %v435_v17 }
  0xde   : > { %v1448_v13 = vld [vmem:[#allocation2 + $0x8c] sm:$0x1]  ;;  %892 = vst [vmem:[#allocation2 + $0x98] sm:$0x1] %v891_v5  ;;  %v677_v1 = vrot.slane %v673_v60, 4  ;;  %v1776_v12 = vsel %vm9568_vm3, %v1771_v26, %v1775_v54  ;;  %v696_v53 = vshrl.u32 %v474_v10, 16 }
  0xdf   : > { %v1449_v18 = vsel %vm9443_vm13, %v1290_v59, %v1448_v13  ;;  %v1444_v20 = vld [vmem:[#allocation2 + $0x84] sm:$0xf]  ;;  %v1760_v11 = vor.u32 %v1759_v8, %v1756_v7  ;;  %v3400_v50 = vunpack.c.l.b16 %v1776_v12  ;;  %v9847_v35 = vld [vmem:[#allocation2 + $0x80] sm:$0x1]  ;;  %v1787_v36 = vshll.u32 %v9834_v51, 16 }
  0xe0   : > { %1450 = vst [vmem:[#allocation2 + $0x8c] sm:$0x1] %v1449_v18  ;;  %v1445_v25 = vsel %vm9530_vm1, %v1286_v46, %v1444_v20  ;;  %v685_v42 = vsel %vm9212_vm2, %v677_v1, %v684_v58  ;;  %v1506_v27 = vld [vmem:[#allocation2 + $0x78] sm:$0xf]  ;;  %v698_v29 = vrot.slane %v696_v53, 7  ;;  %v1791_v23 = vshrl.u32 %v9834_v51, 16 }
  0xe1   : > { %v1294_v9 = vpop.permute.xlu1 %1293  ;;  %1446 = vst [vmem:[#allocation2 + $0x84] sm:$0xf] %v1445_v25  ;;  %v1761_v39 = vrot.slane %v1760_v11, 4  ;;  %v1778_v31 = vshrl.u32 %v1506_v27, 16  ;;  %v1781_v33 = vshll.u32 %v1506_v27, 16  ;;  %v1789_v48 = vrot.slane %v1787_v36, 5  ;;  %v1292_v13 = vpop.permute.xlu0 %1291 }
  0xe2   : > { %889 = vst.msk [vmem:[#allocation2 + $0x94] sm:$0xf] %vm13200_vm9, %v685_v42  ;;  %v886_v34 = vld [vmem:[#allocation2 + $0x90] sm:$0xf]  ;;  %v703_v56 = vrot.slane %v698_v29, 4  ;;  %v1793_v44 = vrot.slane %v1791_v23, 4 }
  0xe3   : > { %v1766_v37 = vsel %vm9568_vm3, %v1761_v39, %v9817_v16  ;;  %1454 = vst.msk [vmem:[#allocation2 + $0x94] sm:$0xf] %vm1369_vm14, %v1294_v9  ;;  %v887_v38 = vsel %vm9347_vm10, %v676_v15, %v886_v34  ;;  %v1780_v22 = vrot.slane %v1778_v31, 4  ;;  %v473_v43 = vld [vmem:[%s9290_s14 + $0x60] sm:$0xf]  ;;  %v1783_v47 = vrot.slane %v1781_v33, 5 }
  0xe4   : > { %v3399_v14 = vunpack.c.l.b16 %v1766_v37  ;;  %888 = vst [vmem:[#allocation2 + $0x90] sm:$0xf] %v887_v38  ;;  %v1797_v40 = vshll.u32 %v9847_v35, 16  ;;  %v688_v55 = vshrl.u32 %v473_v43, 16  ;;  %v691_v16 = vshll.u32 %v473_v43, 16 }
  0xe5   : > { %v1455_v52 = vld [vmem:[#allocation2 + $0x98] sm:$0x1]  ;;  %v699_v57 = vshll.u32 %v474_v10, 16  ;;  %v897_v59 = vld [vmem:[#allocation2 + $0xa4] sm:$0x1]  ;;  %v1784_v62 = vor.u32 %v1783_v47, %v1780_v22  ;;  %v1794_v63 = vor.u32 %v1793_v44, %v1789_v48 }
  0xe6   : > { %v1456_v54 = vsel %vm9443_vm13, %v1296_v49, %v1455_v52  ;;  %v3422_v41 = vpack.c.b16 %v3400_v50, %v3399_v14  ;;  %v378_v32 = vld [vmem:[#allocation2 + $0x9c] sm:$0x1]  ;;  %v437_v60 = vld [vmem:[#allocation2 + $0xb0] sm:$0x1]  ;;  %v898_v0 = vsel %vm9325_vm8, %v703_v56, %v897_v59  ;;  %v1799_v26 = vrot.slane %v1797_v40, 5 }
  0xe7   : > { %1457 = vst [vmem:[#allocation2 + $0x98] sm:$0x1] %v1456_v54  ;;  %v690_v58 = vrot.slane %v688_v55, 7  ;;  %v701_v4 = vor.u32 %v699_v57, %v698_v29  ;;  %v476_v46 = vld [vmem:[%s9290_s14 + $0x6c] sm:$0xf]  ;;  %v1785_v5 = vrot.slane %v1784_v62, 4 }
  0xe8   : > { %3447 = vrot.lane.b32.xlu0 %v3422_v41, %s9129_s15  ;;  %899 = vst [vmem:[#allocation2 + $0xa4] sm:$0x1] %v898_v0  ;;  %v1795_v7 = vrot.slane %v1794_v63, 4  ;;  %v379_v8 = vsel %vm9281_vm5, 0, %v378_v32  ;;  %v438_v10 = vsel %vm9295_vm6, 0, %v437_v60  ;;  %v713_v17 = vshrl.u32 %v476_v46, 16 }
  0xe9   : > { %v1300_v15 = vpop.permute.xlu1 %1299  ;;  %v694_v1 = vrot.slane %v690_v58, 4  ;;  %380 = vst [vmem:[#allocation2 + $0x9c] sm:$0x1] %v379_v8  ;;  %v1508_v18 = vld [vmem:[#allocation2 + $0x84] sm:$0xf]  ;;  %v1790_v20 = vsel %vm9568_vm3, %v1785_v5, %v1789_v48  ;;  %v693_v12 = vor.u32 %v691_v16, %v690_v58  ;;  %v1302_v48 = vpop.permute.xlu2 %1301  ;;  %v716_v40 = vshll.u32 %v476_v46, 16 }
  0xea   : > { %v1800_v11 = vsel %vm9568_vm3, %v1795_v7, %v1799_v26  ;;  %439 = vst [vmem:[#allocation2 + $0xb0] sm:$0x1] %v438_v10  ;;  %v9873_v53 = vld [vmem:[#allocation2 + $0x88] sm:$0xf]  ;;  %v9875_v25 = vld [vmem:[#allocation2 + $0x8c] sm:$0x1]  ;;  %v3401_v42 = vunpack.c.l.b16 %v1790_v20 }
  0xeb   : > { %v1451_v9 = vld [vmem:[#allocation2 + $0x90] sm:$0xf]  ;;  %v3402_v27 = vunpack.c.l.b16 %v1800_v11  ;;  %v702_v39 = vsel %vm9212_vm2, %v694_v1, %v701_v4  ;;  %v715_v29 = vrot.slane %v713_v17, 7  ;;  %v9880_v31 = vld [vmem:[%s9290_s14 + $0x68] sm:$0xf]  ;;  %v1802_v50 = vshrl.u32 %v1508_v18, 16 }
  0xec   : > { %v1452_v33 = vsel %vm9530_vm1, %v1292_v13, %v1451_v9  ;;  %896 = vst.msk [vmem:[#allocation2 + $0xa0] sm:$0xf] %vm13200_vm9, %v702_v39  ;;  %v1805_v34 = vshll.u32 %v1508_v18, 16  ;;  %v1811_v36 = vshll.u32 %v9873_v53, 16  ;;  %v1815_v38 = vshrl.u32 %v9873_v53, 16 }
  0xed   : > { %1453 = vst [vmem:[#allocation2 + $0x90] sm:$0xf] %v1452_v33  ;;  %v3423_v23 = vpack.c.b16 %v3402_v27, %v3401_v42  ;;  %v720_v37 = vrot.slane %v715_v29, 4  ;;  %v1821_v56 = vshll.u32 %v9875_v25, 16  ;;  %v1804_v22 = vrot.slane %v1802_v50, 4 }
  0xee   : > { %1461 = vst.msk [vmem:[#allocation2 + $0xa0] sm:$0xf] %vm1369_vm14, %v1300_v15  ;;  %v1807_v43 = vrot.slane %v1805_v34, 5  ;;  %v1813_v14 = vrot.slane %v1811_v36, 5  ;;  %v705_v47 = vshrl.u32 %v9880_v31, 16  ;;  %v1817_v49 = vrot.slane %v1815_v38, 4 }
  0xef   : > { %v1462_v44 = vld [vmem:[#allocation2 + $0xa4] sm:$0x1]  ;;  %3449 = vrot.lane.b32.xlu1 %v3423_v23, %s9129_s15  ;;  %v1823_v52 = vrot.slane %v1821_v56, 5  ;;  %v708_v41 = vshll.u32 %v9880_v31, 16  ;;  %v381_v59 = vld [vmem:[#allocation2 + $0xa8] sm:$0x1]  ;;  %v718_v60 = vor.u32 %v716_v40, %v715_v29  ;;  %v1298_v31 = vpop.permute.xlu0 %1297 }
  0xf0   : > { %v1463_v55 = vsel %vm9443_vm13, %v1302_v48, %v1462_v44  ;;  %v893_v16 = vld [vmem:[#allocation2 + $0x9c] sm:$0xf]  ;;  %v1808_v57 = vor.u32 %v1807_v43, %v1804_v22  ;;  %v707_v54 = vrot.slane %v705_v47, 7  ;;  %v1818_v32 = vor.u32 %v1817_v49, %v1813_v14  ;;  %v478_v10 = vld [vmem:[%s9290_s14 + $0x74] sm:$0xf] }
  0xf1   : > { %1464 = vst [vmem:[#allocation2 + $0xa4] sm:$0x1] %v1463_v55  ;;  %v894_v62 = vsel %vm9347_vm10, %v693_v12, %v893_v16  ;;  %v904_v63 = vld [vmem:[#allocation2 + $0xb0] sm:$0x1]  ;;  %v382_v0 = vsel %vm9281_vm5, 0, %v381_v59  ;;  %v1306_v7 = vpop.permute.xlu1 %1305  ;;  %v730_v1 = vshrl.u32 %v478_v10, 16  ;;  %v1308_v49 = vpop.permute.xlu2 %1307 }
  0xf2   : > { %895 = vst [vmem:[#allocation2 + $0x9c] sm:$0xf] %v894_v62  ;;  %v905_v26 = vsel %vm9325_vm8, %v720_v37, %v904_v63  ;;  %v1809_v58 = vrot.slane %v1808_v57, 4  ;;  %v711_v4 = vrot.slane %v707_v54, 4  ;;  %v440_v46 = vld [vmem:[#allocation2 + $0xbc] sm:$0x1]  ;;  %v710_v23 = vor.u32 %v708_v41, %v707_v54 }
  0xf3   : > { %906 = vst [vmem:[#allocation2 + $0xb0] sm:$0x1] %v905_v26  ;;  %v1819_v5 = vrot.slane %v1818_v32, 4  ;;  %v441_v8 = vsel %vm9295_vm6, 0, %v440_v46  ;;  %v733_v18 = vshll.u32 %v478_v10, 16  ;;  %v732_v27 = vrot.slane %v730_v1, 7 }
  0xf4   : > { %v1814_v13 = vsel %vm9568_vm3, %v1809_v58, %v1813_v14  ;;  %v719_v15 = vsel %vm9212_vm2, %v711_v4, %v718_v60  ;;  %383 = vst [vmem:[#allocation2 + $0xa8] sm:$0x1] %v382_v0  ;;  %v1510_v17 = vld [vmem:[#allocation2 + $0x90] sm:$0xf]  ;;  %v9910_v12 = vld [vmem:[#allocation2 + $0x94] sm:$0xf] }
  0xf5   : > { %v1824_v20 = vsel %vm9568_vm3, %v1819_v5, %v1823_v52  ;;  %v3403_v11 = vunpack.c.l.b16 %v1814_v13  ;;  %903 = vst.msk [vmem:[#allocation2 + $0xac] sm:$0xf] %vm13200_vm9, %v719_v15  ;;  %v9912_v9 = vld [vmem:[#allocation2 + $0x98] sm:$0x1]  ;;  %v1826_v39 = vshrl.u32 %v1510_v17, 16  ;;  %v1829_v29 = vshll.u32 %v1510_v17, 16 }
  0xf6   : > { %v3404_v42 = vunpack.c.l.b16 %v1824_v20  ;;  %1468 = vst.msk [vmem:[#allocation2 + $0xac] sm:$0xf] %vm1369_vm14, %v1306_v7  ;;  %v1835_v33 = vshll.u32 %v9910_v12, 16  ;;  %v1839_v50 = vshrl.u32 %v9910_v12, 16  ;;  %v1845_v34 = vshll.u32 %v9912_v9, 16 }
  0xf7   : > { %442 = vst [vmem:[#allocation2 + $0xbc] sm:$0x1] %v441_v8  ;;  %v1828_v37 = vrot.slane %v1826_v39, 4  ;;  %v1831_v38 = vrot.slane %v1829_v29, 5  ;;  %v477_v56 = vld [vmem:[%s9290_s14 + $0x70] sm:$0xf]  ;;  %v735_v16 = vor.u32 %v733_v18, %v732_v27 }
  0xf8   : > { %v3424_v36 = vpack.c.b16 %v3404_v42, %v3403_v11  ;;  %v737_v43 = vrot.slane %v732_v27, 4  ;;  %v1837_v14 = vrot.slane %v1835_v33, 5  ;;  %v1841_v47 = vrot.slane %v1839_v50, 4  ;;  %v384_v57 = vld [vmem:[#allocation2 + $0xb4] sm:$0x1]  ;;  %v1304_v33 = vpop.permute.xlu0 %1303 }
  0xf9   : > { %v1458_v22 = vld [vmem:[#allocation2 + $0x9c] sm:$0xf]  ;;  %v722_v48 = vshrl.u32 %v477_v56, 16  ;;  %v1832_v40 = vor.u32 %v1831_v38, %v1828_v37  ;;  %v1847_v55 = vrot.slane %v1845_v34, 5  ;;  %v385_v63 = vsel %vm9281_vm5, 0, %v384_v57  ;;  %v1312_v1 = vpop.permute.xlu1 %1311 }
  0xfa   : > { %v1459_v44 = vsel %vm9530_vm1, %v1298_v31, %v1458_v22  ;;  %v1469_v52 = vld [vmem:[#allocation2 + $0xb0] sm:$0x1]  ;;  %3451 = vrot.lane.b32.xlu2 %v3424_v36, %s9129_s15  ;;  %v1842_v59 = vor.u32 %v1841_v47, %v1837_v14  ;;  %v443_v0 = vld [vmem:[#allocation2 + $0xc8] sm:$0x1]  ;;  %v725_v58 = vshll.u32 %v477_v56, 16 }
  0xfb   : > { %1460 = vst [vmem:[#allocation2 + $0x9c] sm:$0xf] %v1459_v44  ;;  %v1470_v54 = vsel %vm9443_vm13, %v1308_v49, %v1469_v52  ;;  %v900_v41 = vld [vmem:[#allocation2 + $0xa8] sm:$0xf]  ;;  %v724_v62 = vrot.slane %v722_v48, 7  ;;  %v1833_v60 = vrot.slane %v1832_v40, 4 }
  0xfc   : > { %1471 = vst [vmem:[#allocation2 + $0xb0] sm:$0x1] %v1470_v54  ;;  %v901_v32 = vsel %vm9347_vm10, %v710_v23, %v900_v41  ;;  %v1843_v26 = vrot.slane %v1842_v59, 4  ;;  %v444_v46 = vsel %vm9295_vm6, 0, %v443_v0  ;;  %v9933_v8 = vld [vmem:[%s9290_s14 + $0x7c] sm:$0xf] }
  0xfd   : > { %902 = vst [vmem:[#allocation2 + $0xa8] sm:$0xf] %v901_v32  ;;  %v728_v4 = vrot.slane %v724_v62, 4  ;;  %v1838_v7 = vsel %vm9568_vm3, %v1833_v60, %v1837_v14  ;;  %v9941_v18 = vld [vmem:[#allocation2 + $0xa0] sm:$0xf]  ;;  %v747_v42 = vshrl.u32 %v9933_v8, 16  ;;  %v727_v34 = vor.u32 %v725_v58, %v724_v62 }
  0xfe   : > { %v911_v5 = vld [vmem:[#allocation2 + $0xbc] sm:$0x1]  ;;  %386 = vst [vmem:[#allocation2 + $0xb4] sm:$0x1] %v385_v63  ;;  %v1848_v13 = vsel %vm9568_vm3, %v1843_v26, %v1847_v55  ;;  %v3405_v15 = vunpack.c.l.b16 %v1838_v7  ;;  %v9943_v20 = vld [vmem:[#allocation2 + $0xa4] sm:$0x1]  ;;  %v1314_v55 = vpop.permute.xlu2 %1313 }
  0xff   : > { %v912_v10 = vsel %vm9325_vm8, %v737_v43, %v911_v5  ;;  %v736_v17 = vsel %vm9212_vm2, %v728_v4, %v735_v16  ;;  %445 = vst [vmem:[#allocation2 + $0xc8] sm:$0x1] %v444_v46  ;;  %v3406_v11 = vunpack.c.l.b16 %v1848_v13  ;;  %v1859_v27 = vshll.u32 %v9941_v18, 16  ;;  %v9950_v31 = vld [vmem:[#allocation2 + $0xac] sm:$0xf] }
 0x100   : > { %913 = vst [vmem:[#allocation2 + $0xbc] sm:$0x1] %v912_v10  ;;  %v1863_v39 = vshrl.u32 %v9941_v18, 16  ;;  %v1869_v29 = vshll.u32 %v9943_v20, 16  ;;  %v9953_v36 = vrot.slane %v747_v42, 7  ;;  %v1883_v49 = vshll.u32 %v9950_v31, 16 }
 0x101   : > { %910 = vst.msk [vmem:[#allocation2 + $0xb8] sm:$0xf] %vm13200_vm9, %v736_v17  ;;  %v3425_v50 = vpack.c.b16 %v3406_v11, %v3405_v15  ;;  %v1861_v37 = vrot.slane %v1859_v27, 5  ;;  %v9095_v43 = vld [vmem:[#allocation2 + $0x4] sm:$0xf]  ;;  %v1887_v52 = vshrl.u32 %v9950_v31, 16 }
 0x102   : > { %1475 = vst.msk [vmem:[#allocation2 + $0xb8] sm:$0xf] %vm1369_vm14, %v1312_v1  ;;  %v1512_v23 = vld [vmem:[#allocation2 + $0x9c] sm:$0xf]  ;;  %v1865_v22 = vrot.slane %v1863_v39, 4  ;;  %v1990_v14 = vrot.slane %v9095_v43, 5 }
 0x103   : > { %v1850_v38 = vshrl.u32 %v1512_v23, 16  ;;  %v1853_v56 = vshll.u32 %v1512_v23, 16  ;;  %3453 = vrot.lane.b32.xlu0 %v3425_v50, %s9129_s15  ;;  %v754_v48 = vrot.slane %v9953_v36, 4  ;;  %v1871_v44 = vrot.slane %v1869_v29, 5  ;;  %v9961_v59 = vld [vmem:[#allocation2 + $0xb0] sm:$0x1] }
 0x104   : > { %v1465_v47 = vld [vmem:[#allocation2 + $0xa8] sm:$0xf]  ;;  %v1866_v41 = vor.u32 %v1865_v22, %v1861_v37  ;;  %v1921_v62 = vld [vmem:[#allocation2] sm:$0xe]  ;;  %v9965_v60 = vrot.slane %v1883_v49, 5  ;;  %v1889_v0 = vrot.slane %v1887_v52, 4 }
 0x105   : > { %v1466_v40 = vsel %vm9530_vm1, %v1304_v33, %v1465_v47  ;;  %v907_v16 = vld [vmem:[#allocation2 + $0xb4] sm:$0xf]  ;;  %v1852_v57 = vrot.slane %v1850_v38, 4  ;;  %v1855_v54 = vrot.slane %v1853_v56, 5  ;;  %v1893_v7 = vshll.u32 %v9961_v59, 16 }
 0x106   : > { %1467 = vst [vmem:[#allocation2 + $0xa8] sm:$0xf] %v1466_v40  ;;  %v908_v63 = vsel %vm9347_vm10, %v727_v34, %v907_v16  ;;  %v918_v32 = vld [vmem:[#allocation2 + $0xc8] sm:$0x1]  ;;  %v1867_v46 = vrot.slane %v1866_v41, 4  ;;  %v8419_v10 = vrot.slane %v1921_v62, 9  ;;  %v1890_v17 = vor.u32 %v1889_v0, %v9965_v60  ;;  %v1310_v34 = vpop.permute.xlu0 %1309 }
 0x107   : > { %v1476_v26 = vld [vmem:[#allocation2 + $0xbc] sm:$0x1]  ;;  %909 = vst [vmem:[#allocation2 + $0xb4] sm:$0xf] %v908_v63  ;;  %v919_v58 = vsel %vm9325_vm8, %v754_v48, %v918_v32  ;;  %v1856_v4 = vor.u32 %v1855_v54, %v1852_v57  ;;  %v1992_v13 = vrot.slane %v1990_v14, 4  ;;  %v1895_v38 = vrot.slane %v1893_v7, 5  ;;  %v1320_v54 = vpop.permute.xlu2 %1319 }
 0x108   : > { %v1477_v5 = vsel %vm9443_vm13, %v1314_v55, %v1476_v26  ;;  %920 = vst [vmem:[#allocation2 + $0xc8] sm:$0x1] %v919_v58  ;;  %v1872_v1 = vsel %vm9568_vm3, %v1867_v46, %v1871_v44  ;;  %v9096_v11 = vld [vmem:[#allocation2 + $0x8] sm:$0x1]  ;;  %v1991_v56 = vsel %vm9981_vm15, %v8419_v10, %v1990_v14  ;;  %v1891_v47 = vrot.slane %v1890_v17, 4 }
 0x109   : > { %1478 = vst [vmem:[#allocation2 + $0xbc] sm:$0x1] %v1477_v5  ;;  %v1857_v15 = vrot.slane %v1856_v4, 4  ;;  %v1993_v42 = vrot.slane %v9096_v11, 5  ;;  %v9975_v27 = vld [vmem:[#allocation2 + $0xb8] sm:$0xf]  ;;  %v3408_v39 = vunpack.c.l.b16 %v1872_v1  ;;  %v3461_v62 = vunpack.c.l.b16 %v1991_v56 }
 0x10a   : > { %v1907_v50 = vshll.u32 %v9975_v27, 16  ;;  %v1911_v22 = vshrl.u32 %v9975_v27, 16  ;;  %v1924_v44 = vld [vmem:[#allocation2 + $0x24] sm:$0xe]  ;;  %v1922_v57 = vld [vmem:[#allocation2 + $0xc] sm:$0xe]  ;;  %v1896_v7 = vsel %vm9568_vm3, %v1891_v47, %v1895_v38 }
 0x10b   : > { %v1862_v29 = vsel %vm9568_vm3, %v1857_v15, %v1861_v37  ;;  %v1994_v37 = vsel %vm9981_vm15, %v1992_v13, %v1993_v42  ;;  %v9097_v63 = vld [vmem:[#allocation2 + $0x10] sm:$0xf]  ;;  %v9098_v15 = vld [vmem:[#allocation2 + $0x28] sm:$0xf]  ;;  %v8422_v2 = vrot.slane %v1924_v44, 9 }
 0x10c   : > { %v3407_v23 = vunpack.c.l.b16 %v1862_v29  ;;  %v9991_v48 = vrot.slane %v1907_v50, 5  ;;  %v1913_v16 = vrot.slane %v1911_v22, 4  ;;  %v1997_v32 = vrot.slane %v9097_v63, 5  ;;  %v9996_v0 = vld [vmem:[%s9290_s14 + $0x78] sm:$0xf] }
 0x10d   : > { %v1514_v43 = vld [vmem:[#allocation2 + $0xa8] sm:$0xf]  ;;  %v3462_v46 = vunpack.c.l.b16 %v1994_v37  ;;  %v2011_v1 = vrot.slane %v9098_v15, 5  ;;  %v9099_v11 = vld [vmem:[#allocation2 + $0x2c] sm:$0x1] }
 0x10e   : > { %v1472_v49 = vld [vmem:[#allocation2 + $0xb4] sm:$0xf]  ;;  %v3426_v52 = vpack.c.b16 %v3408_v39, %v3407_v23  ;;  %v1874_v40 = vshrl.u32 %v1514_v43, 16  ;;  %v1877_v55 = vshll.u32 %v1514_v43, 16  ;;  %v1914_v10 = vor.u32 %v1913_v16, %v9991_v48  ;;  %v387_v56 = vld [vmem:[#allocation2 + $0xc0] sm:$0x1] }
 0x10f   : > { %v1473_v14 = vsel %vm9530_vm1, %v1310_v34, %v1472_v49  ;;  %v1483_v41 = vld [vmem:[#allocation2 + $0xc8] sm:$0x1]  ;;  %v2014_v42 = vrot.slane %v9099_v11, 5  ;;  %v8420_v39 = vrot.slane %v1922_v57, 9  ;;  %v9100_v29 = vld [vmem:[#allocation2 + $0x14] sm:$0x1]  ;;  %v3410_v43 = vunpack.c.l.b16 %v1896_v7 }
 0x110   : > { %1474 = vst [vmem:[#allocation2 + $0xb4] sm:$0xf] %v1473_v14  ;;  %v1484_v26 = vsel %vm9443_vm13, %v1320_v54, %v1483_v41  ;;  %3455 = vrot.lane.b32.xlu1 %v3426_v52, %s9129_s15  ;;  %v1876_v58 = vrot.slane %v1874_v40, 4  ;;  %v1879_v4 = vrot.slane %v1877_v55, 5  ;;  %v10001_v5 = vld [vmem:[#allocation2 + $0xbc] sm:$0x1]  ;;  %v3493_v38 = vpack.c.b16 %v3462_v46, %v3461_v62 }
 0x111   : > { %1485 = vst [vmem:[#allocation2 + $0xc8] sm:$0x1] %v1484_v26  ;;  %v1917_v13 = vshll.u32 %v10001_v5, 16  ;;  %v2000_v50 = vrot.slane %v9100_v29, 5  ;;  %v2013_v34 = vrot.slane %v2011_v1, 4  ;;  %v739_v23 = vshrl.u32 %v9996_v0, 16 }
 0x112   : > { %v1880_v17 = vor.u32 %v1879_v4, %v1876_v58  ;;  %v1999_v47 = vrot.slane %v1997_v32, 4  ;;  %v1915_v37 = vrot.slane %v1914_v10, 4  ;;  %v750_v40 = vshll.u32 %v9933_v8, 16  ;;  %v1927_v4 = vld [vmem:[#allocation2 + $0x48] sm:$0xe] }
 0x113   : > { %v1919_v49 = vrot.slane %v1917_v13, 5  ;;  %v741_v52 = vrot.slane %v739_v23, 7  ;;  %v2012_v55 = vsel %vm9981_vm15, %v8422_v2, %v2011_v1  ;;  %v2015_v16 = vsel %vm9981_vm15, %v2013_v34, %v2014_v42  ;;  %v1925_v13 = vld [vmem:[#allocation2 + $0x30] sm:$0xe]  ;;  %v9101_v2 = vld [vmem:[#allocation2 + $0x1c] sm:$0xf] }
 0x114   : > { %v1881_v22 = vrot.slane %v1880_v17, 4  ;;  %v388_v57 = vsel %vm9281_vm5, 0, %v387_v56  ;;  %v742_v41 = vshll.u32 %v9996_v0, 16  ;;  %v752_v8 = vor.u32 %v750_v40, %v9953_v36  ;;  %v1923_v36 = vld [vmem:[#allocation2 + $0x18] sm:$0xe]  ;;  %v1318_v17 = vpop.permute.xlu1 %1317 }
 0x115   : > { %v745_v62 = vrot.slane %v741_v52, 4  ;;  %389 = vst [vmem:[#allocation2 + $0xc0] sm:$0x1] %v388_v57  ;;  %v1998_v26 = vsel %vm9981_vm15, %v8420_v39, %v1997_v32  ;;  %v2001_v58 = vsel %vm9981_vm15, %v1999_v47, %v2000_v50  ;;  %v3467_v7 = vunpack.c.l.b16 %v2012_v55  ;;  %v9102_v32 = vld [vmem:[#allocation2 + $0x34] sm:$0xf] }
 0x116   : > { %v1886_v44 = vsel %vm9568_vm3, %v1881_v22, %v9965_v60  ;;  %v3468_v10 = vunpack.c.l.b16 %v2015_v16  ;;  %v2004_v11 = vrot.slane %v9101_v2, 5  ;;  %v2018_v42 = vrot.slane %v9102_v32, 5  ;;  %v9105_v16 = vld [vmem:[#allocation2 + $0x50] sm:$0x1]  ;;  %v9107_v2 = vld [vmem:[#allocation2 + $0x40] sm:$0xf] }
 0x117   : > { %v3409_v14 = vunpack.c.l.b16 %v1886_v44  ;;  %v1516_v54 = vld [vmem:[#allocation2 + $0xb4] sm:$0xf]  ;;  %v753_v0 = vsel %vm9212_vm2, %v745_v62, %v752_v8  ;;  %v1920_v39 = vsel %vm9568_vm3, %v1915_v37, %v1919_v49  ;;  %v3463_v29 = vunpack.c.l.b16 %v1998_v26  ;;  %v9104_v44 = vld [vmem:[#allocation2 + $0x4c] sm:$0xf]  ;;  %v9106_v49 = vld [vmem:[#allocation2 + $0x20] sm:$0x1] }
 0x118   : > { %3509 = vrot.lane.b32.xlu1 %v3493_v38, %s9130_s16  ;;  %v1898_v60 = vshrl.u32 %v1516_v54, 16  ;;  %v1901_v63 = vshll.u32 %v1516_v54, 16  ;;  %917 = vst.msk [vmem:[#allocation2 + $0xc4] sm:$0xf] %vm13200_vm9, %v753_v0  ;;  %v744_v50 = vor.u32 %v742_v41, %v741_v52  ;;  %v8425_v34 = vrot.slane %v1927_v4, 9 }
 0x119   : > { %v3427_v46 = vpack.c.b16 %v3410_v43, %v3409_v14  ;;  %1482 = vst.msk [vmem:[#allocation2 + $0xc4] sm:$0xf] %vm1369_vm14, %v1318_v17  ;;  %v8423_v56 = vrot.slane %v1925_v13, 9  ;;  %v2020_v22 = vrot.slane %v2018_v42, 4  ;;  %v9103_v43 = vld [vmem:[#allocation2 + $0x38] sm:$0x1]  ;;  %v3464_v47 = vunpack.c.l.b16 %v2001_v58 }
 0x11a   : > { %v1900_v15 = vrot.slane %v1898_v60, 4  ;;  %v1903_v1 = vrot.slane %v1901_v63, 5  ;;  %v2021_v38 = vrot.slane %v9103_v43, 5  ;;  %v8421_v40 = vrot.slane %v1923_v36, 9  ;;  %v1926_v36 = vld [vmem:[#allocation2 + $0x3c] sm:$0xe] }
 0x11b   : > { %3457 = vrot.lane.b32.xlu2 %v3427_v46, %s9129_s15  ;;  %v2032_v55 = vrot.slane %v9104_v44, 5  ;;  %v2035_v57 = vrot.slane %v9105_v16, 5  ;;  %v3496_v54 = vpack.c.b16 %v3468_v10, %v3467_v7  ;;  %v2006_v37 = vrot.slane %v2004_v11, 4  ;;  %v1928_v13 = vld [vmem:[#allocation2 + $0x54] sm:$0xe] }
 0x11c   : > { %v1904_v23 = vor.u32 %v1903_v1, %v1900_v15  ;;  %v914_v62 = vld [vmem:[#allocation2 + $0xc0] sm:$0xf]  ;;  %v2007_v52 = vrot.slane %v9106_v49, 5  ;;  %v3412_v41 = vunpack.c.l.b16 %v1920_v39  ;;  %v2019_v58 = vsel %vm9981_vm15, %v8423_v56, %v2018_v42  ;;  %v10362_v6 = vld [vmem:[#allocation2 + $0xac] sm:$0xf] }
 0x11d   : > { %v915_v8 = vsel %vm9347_vm10, %v744_v50, %v914_v62  ;;  %v2033_v60 = vsel %vm9981_vm15, %v8425_v34, %v2032_v55  ;;  %v2034_v63 = vrot.slane %v2032_v55, 4  ;;  %v2022_v4 = vsel %vm9981_vm15, %v2020_v22, %v2021_v38  ;;  %v9108_v50 = vld [vmem:[#allocation2 + $0x58] sm:$0xf]  ;;  %13239 = vst [vmem:[#allocation21_spill] sm:$0xff] %v10362_v6 }
 0x11e   : > { %v1905_v14 = vrot.slane %v1904_v23, 4  ;;  %916 = vst [vmem:[#allocation2 + $0xc0] sm:$0xf] %v915_v8  ;;  %v3494_v7 = vpack.c.b16 %v3464_v47, %v3463_v29  ;;  %v2005_v10 = vsel %vm9981_vm15, %v8421_v40, %v2004_v11  ;;  %v2008_v15 = vsel %vm9981_vm15, %v2006_v37, %v2007_v52  ;;  %v9109_v23 = vld [vmem:[#allocation2 + $0x44] sm:$0x1] }
 0x11f   : > { %v2036_v0 = vsel %vm9981_vm15, %v2034_v63, %v2035_v57  ;;  %v3473_v1 = vunpack.c.l.b16 %v2033_v60  ;;  %v2025_v32 = vrot.slane %v9107_v2, 5  ;;  %v3469_v39 = vunpack.c.l.b16 %v2019_v58  ;;  %v9110_v40 = vld [vmem:[#allocation2 + $0x5c] sm:$0x1]  ;;  %v1933_v60 = vld [vmem:[#allocation2 + $0x90] sm:$0xe] }
 0x120   : > { %v1910_v26 = vsel %vm9568_vm3, %v1905_v14, %v9991_v48  ;;  %3515 = vrot.lane.b32.xlu1 %v3496_v54, %s9130_s16  ;;  %v1930_v48 = vld [vmem:[#allocation2 + $0x6c] sm:$0xe]  ;;  %v3474_v17 = vunpack.c.l.b16 %v2036_v0  ;;  %v3470_v29 = vunpack.c.l.b16 %v2022_v4  ;;  %v2039_v11 = vrot.slane %v9108_v50, 5  ;;  %v1316_v14 = vpop.permute.xlu0 %1315  ;;  %v1929_v58 = vld [vmem:[#allocation2 + $0x60] sm:$0xe] }
 0x121   : > { %v3411_v46 = vunpack.c.l.b16 %v1910_v26  ;;  %v8424_v34 = vrot.slane %v1926_v36, 9  ;;  %v2028_v56 = vrot.slane %v9109_v23, 5  ;;  %v8426_v22 = vrot.slane %v1928_v13, 9  ;;  %v9111_v4 = vld [vmem:[#allocation2 + $0x64] sm:$0xf] }
 0x122   : > { %v8428_v43 = vrot.slane %v1930_v48, 9  ;;  %v2027_v38 = vrot.slane %v2025_v32, 4  ;;  %v2041_v47 = vrot.slane %v2039_v11, 4  ;;  %v2042_v44 = vrot.slane %v9110_v40, 5  ;;  %v1931_v0 = vld [vmem:[#allocation2 + $0x78] sm:$0xe] }
 0x123   : > { %v3428_v42 = vpack.c.b16 %v3412_v41, %v3411_v46  ;;  %3511 = vrot.lane.b32.xlu2 %v3494_v7, %s9130_s16  ;;  %v2053_v55 = vrot.slane %v9802_v19, 5  ;;  %v3499_v16 = vpack.c.b16 %v3474_v17, %v3473_v1  ;;  %v2056_v57 = vrot.slane %v9809_v30, 5  ;;  %v1936_v40 = vld [vmem:[#allocation2 + $0xb4] sm:$0xe] }
 0x124   : > { %v3465_v62 = vunpack.c.l.b16 %v2005_v10  ;;  %v3466_v37 = vunpack.c.l.b16 %v2008_v15  ;;  %v3497_v8 = vpack.c.b16 %v3470_v29, %v3469_v39  ;;  %v2026_v19 = vsel %vm9981_vm15, %v8424_v34, %v2025_v32 }
 0x125   : > { %3459 = vrot.lane.b32.xlu0 %v3428_v42, %s9129_s15  ;;  %v1479_v54 = vld [vmem:[#allocation2 + $0xc0] sm:$0xf]  ;;  %v2054_v49 = vsel %vm9981_vm15, %v8428_v43, %v2053_v55  ;;  %v2055_v52 = vrot.slane %v2053_v55, 4  ;;  %v2040_v30 = vsel %vm9981_vm15, %v8426_v22, %v2039_v11  ;;  %v2029_v63 = vsel %vm9981_vm15, %v2027_v38, %v2028_v56  ;;  %v9112_v42 = vld [vmem:[#allocation2 + $0x68] sm:$0x1] }
 0x126   : > { %v1480_v41 = vsel %vm9530_vm1, %v1316_v14, %v1479_v54  ;;  %v2043_v26 = vsel %vm9981_vm15, %v2041_v47, %v2042_v44  ;;  %v2046_v46 = vrot.slane %v9111_v4, 5  ;;  %v3479_v7 = vunpack.c.l.b16 %v2054_v49  ;;  %v1932_v14 = vld [vmem:[#allocation2 + $0x84] sm:$0xe] }
 0x127   : > { %1481 = vst [vmem:[#allocation2 + $0xc0] sm:$0xf] %v1480_v41  ;;  %v2057_v21 = vsel %vm9981_vm15, %v2055_v52, %v2056_v57  ;;  %v2060_v36 = vrot.slane %v9834_v51, 5  ;;  %v3495_v13 = vpack.c.b16 %v3466_v37, %v3465_v62  ;;  %v3471_v48 = vunpack.c.l.b16 %v2026_v19  ;;  %v1934_v37 = vld [vmem:[#allocation2 + $0x9c] sm:$0xe] }
 0x128   : > { %3521 = vrot.lane.b32.xlu1 %v3499_v16, %s9130_s16  ;;  %v3480_v10 = vunpack.c.l.b16 %v2057_v21  ;;  %v3475_v15 = vunpack.c.l.b16 %v2040_v30  ;;  %v8431_v1 = vrot.slane %v1933_v60, 9  ;;  %v3472_v17 = vunpack.c.l.b16 %v2029_v63 }
 0x129   : > { %v3476_v2 = vunpack.c.l.b16 %v2043_v26  ;;  %v8427_v32 = vrot.slane %v1929_v58, 9  ;;  %v2049_v39 = vrot.slane %v9112_v42, 5  ;;  %v2048_v29 = vrot.slane %v2046_v46, 4  ;;  %v10112_v42 = vld [vmem:[#allocation2 + $0x1c] sm:$0xf] }
 0x12a   : > { %v8429_v50 = vrot.slane %v1931_v0, 9  ;;  %v2074_v11 = vrot.slane %v9910_v12, 5  ;;  %v2077_v34 = vrot.slane %v9912_v9, 5  ;;  %v3502_v51 = vpack.c.b16 %v3480_v10, %v3479_v7 }
 0x12b   : > { %3517 = vrot.lane.b32.xlu2 %v3497_v8, %s9130_s16  ;;  %v2062_v23 = vrot.slane %v2060_v36, 4  ;;  %v2063_v56 = vrot.slane %v9847_v35, 5  ;;  %v3498_v38 = vpack.c.b16 %v3472_v17, %v3471_v48  ;;  %v3500_v47 = vpack.c.b16 %v3476_v2, %v3475_v15  ;;  %v1935_v15 = vld [vmem:[#allocation2 + $0xa8] sm:$0xe]  ;;  %v2102_v17 = vld [vmem:[#allocation2 + $0x18] sm:$0xf] }
 0x12c   : > { %v2075_v22 = vsel %vm9981_vm15, %v8431_v1, %v2074_v11  ;;  %v2076_v43 = vrot.slane %v2074_v11, 4  ;;  %v2047_v44 = vsel %vm9981_vm15, %v8427_v32, %v2046_v46  ;;  %v2050_v12 = vsel %vm9981_vm15, %v2048_v29, %v2049_v39 }
 0x12d   : > { %3513 = vrot.lane.b32.xlu0 %v3495_v13, %s9130_s16  ;;  %v2061_v9 = vsel %vm9981_vm15, %v8429_v50, %v2060_v36  ;;  %v2064_v55 = vsel %vm9981_vm15, %v2062_v23, %v2063_v56  ;;  %v3485_v16 = vunpack.c.l.b16 %v2075_v22  ;;  %v2081_v54 = vrot.slane %v9941_v18, 5 }
 0x12e   : > { %v2078_v35 = vsel %vm9981_vm15, %v2076_v43, %v2077_v34  ;;  %v2067_v62 = vrot.slane %v9873_v53, 5  ;;  %v8434_v49 = vrot.slane %v1936_v40, 9  ;;  %v2095_v52 = vrot.slane %v9975_v27, 5 }
 0x12f   : > { %v3486_v57 = vunpack.c.l.b16 %v2078_v35  ;;  %v2098_v41 = vrot.slane %v10001_v5, 5  ;;  %v3477_v8 = vunpack.c.l.b16 %v2047_v44  ;;  %v3481_v19 = vunpack.c.l.b16 %v2061_v9 }
 0x130   : > { %3527 = vrot.lane.b32.xlu1 %v3502_v51, %s9130_s16  ;;  %v3478_v30 = vunpack.c.l.b16 %v2050_v12  ;;  %v3482_v60 = vunpack.c.l.b16 %v2064_v55  ;;  %v8430_v63 = vrot.slane %v1932_v14, 9  ;;  %v2097_v26 = vrot.slane %v2095_v52, 4  ;;  %v2100_v55 = vld [vmem:[#allocation2 + $0xc] sm:$0xf] }
 0x131   : > { %v3505_v21 = vpack.c.b16 %v3486_v57, %v3485_v16  ;;  %v8432_v18 = vrot.slane %v1934_v37, 9  ;;  %v2083_v58 = vrot.slane %v2081_v54, 4  ;;  %v2084_v4 = vrot.slane %v9943_v20, 5  ;;  %v10126_v16 = vld [vmem:[#allocation2 + $0x20] sm:$0x1]  ;;  %v8970_v37 = vld [vmem:[#allocation2 + $0x24] sm:$0xff] }
 0x132   : > { %v2069_v53 = vrot.slane %v2067_v62, 4  ;;  %v2070_v46 = vrot.slane %v9875_v25, 5  ;;  %v2096_v27 = vsel %vm9981_vm15, %v8434_v49, %v2095_v52  ;;  %v2099_v5 = vsel %vm9981_vm15, %v2097_v26, %v2098_v41 }
 0x133   : > { %3523 = vrot.lane.b32.xlu2 %v3500_v47, %s9130_s16  ;;  %v3503_v7 = vpack.c.b16 %v3482_v60, %v3481_v19  ;;  %v2082_v10 = vsel %vm9981_vm15, %v8432_v18, %v2081_v54  ;;  %v2085_v0 = vsel %vm9981_vm15, %v2083_v58, %v2084_v4  ;;  %v3491_v36 = vunpack.c.l.b16 %v2096_v27  ;;  %v10118_v47 = vld [vmem:[#allocation2 + $0x10] sm:$0xf] }
 0x134   : > { %v3492_v20 = vunpack.c.l.b16 %v2099_v5  ;;  %v3501_v13 = vpack.c.b16 %v3478_v30, %v3477_v8  ;;  %v2068_v25 = vsel %vm9981_vm15, %v8430_v63, %v2067_v62  ;;  %v2071_v48 = vsel %vm9981_vm15, %v2069_v53, %v2070_v46  ;;  %v10132_v30 = vld [vmem:[#allocation2 + $0x14] sm:$0x1]  ;;  %v8968_v60 = vld [vmem:[#allocation2 + $0xc] sm:$0xff] }
 0x135   : > { %3519 = vrot.lane.b32.xlu0 %v3498_v38, %s9130_s16  ;;  %v2088_v1 = vrot.slane %v9950_v31, 5  ;;  %v3487_v2 = vunpack.c.l.b16 %v2082_v10  ;;  %v3488_v32 = vunpack.c.l.b16 %v2085_v0  ;;  %v3483_v39 = vunpack.c.l.b16 %v2068_v25 }
 0x136   : > { %v3484_v29 = vunpack.c.l.b16 %v2071_v48  ;;  %v3508_v50 = vpack.c.b16 %v3492_v20, %v3491_v36  ;;  %v8433_v11 = vrot.slane %v1935_v15, 9  ;;  %v2091_v51 = vrot.slane %v9961_v59, 5  ;;  %v10140_v36 = vld [vmem:[#allocation2 + $0x28] sm:$0xf] }
 0x137   : > { %v2090_v34 = vrot.slane %v2088_v1, 4  ;;  %v2173_v23 = vshrl.u32 %v2102_v17, 16  ;;  %v2176_v56 = vshll.u32 %v2102_v17, 16  ;;  %v2182_v31 = vshll.u32 %v10112_v42, 16  ;;  %v8973_v20 = vld [vmem:[#allocation2 + $0x48] sm:$0xff] }
 0x138   : > { %3533 = vrot.lane.b32.xlu1 %v3505_v21, %s9130_s16  ;;  %v2186_v22 = vshrl.u32 %v10112_v42, 16  ;;  %v3506_v43 = vpack.c.b16 %v3488_v32, %v3487_v2  ;;  %v3504_v38 = vpack.c.b16 %v3484_v29, %v3483_v39  ;;  %v2089_v40 = vsel %vm9981_vm15, %v8433_v11, %v2088_v1  ;;  %v2104_v21 = vld [vmem:[#allocation2 + $0x24] sm:$0xf]  ;;  %v10144_v1 = vld [vmem:[#allocation2 + $0x40] sm:$0xf]  ;;  %v8971_v11 = vld [vmem:[#allocation2 + $0x30] sm:$0xff] }
 0x139   : > { %v2092_v59 = vsel %vm9981_vm15, %v2090_v34, %v2091_v51  ;;  %v2175_v44 = vrot.slane %v2173_v23, 4  ;;  %v2178_v12 = vrot.slane %v2176_v56, 5  ;;  %v2184_v9 = vrot.slane %v2182_v31, 5  ;;  %v2106_v17 = vld [vmem:[#allocation2 + $0x30] sm:$0xf] }
 0x13a   : > { %v2188_v35 = vrot.slane %v2186_v22, 4  ;;  %v2158_v57 = vshll.u32 %v10118_v47, 16  ;;  %v2162_v14 = vshrl.u32 %v10118_v47, 16  ;;  %v3489_v54 = vunpack.c.l.b16 %v2089_v40  ;;  %v8969_v40 = vld [vmem:[#allocation2 + $0x18] sm:$0xff] }
 0x13b   : > { %3529 = vrot.lane.b32.xlu2 %v3503_v7, %s9130_s16  ;;  %v3490_v62 = vunpack.c.l.b16 %v2092_v59  ;;  %v2179_v49 = vor.u32 %v2178_v12, %v2175_v44  ;;  %v2149_v52 = vshrl.u32 %v2100_v55, 16  ;;  %v2152_v41 = vshll.u32 %v2100_v55, 16  ;;  %v10160_v12 = vld [vmem:[#allocation2 + $0x2c] sm:$0x1] }
 0x13c   : > { %v2189_v8 = vor.u32 %v2188_v35, %v2184_v9  ;;  %v2192_v19 = vshll.u32 %v10126_v16, 16  ;;  %v10134_v63 = vrot.slane %v2158_v57, 5  ;;  %v2164_v26 = vrot.slane %v2162_v14, 4 }
 0x13d   : > { %3525 = vrot.lane.b32.xlu0 %v3501_v13, %s9130_s16  ;;  %v3507_v18 = vpack.c.b16 %v3490_v62, %v3489_v54  ;;  %v2180_v58 = vrot.slane %v2179_v49, 4  ;;  %v2151_v4 = vrot.slane %v2149_v52, 4  ;;  %v2154_v53 = vrot.slane %v2152_v41, 5  ;;  %v2108_v13 = vld [vmem:[#allocation2 + $0x3c] sm:$0xf]  ;;  %v8976_v49 = vld [vmem:[#allocation2 + $0x6c] sm:$0xff] }
 0x13e   : > { %v2168_v46 = vshll.u32 %v10132_v30, 16  ;;  %v2190_v27 = vrot.slane %v2189_v8, 4  ;;  %v2194_v5 = vrot.slane %v2192_v19, 5  ;;  %v2197_v7 = vshrl.u32 %v2104_v21, 16  ;;  %v2110_v62 = vld [vmem:[#allocation2 + $0x48] sm:$0xf] }
 0x13f   : > { %v2200_v10 = vshll.u32 %v2104_v21, 16  ;;  %v2165_v0 = vor.u32 %v2164_v26, %v10134_v63  ;;  %v2185_v25 = vsel %vm9568_vm3, %v2180_v58, %v2184_v9  ;;  %v2155_v48 = vor.u32 %v2154_v53, %v2151_v4  ;;  %v10176_v58 = vld [vmem:[#allocation2 + $0x4c] sm:$0xf]  ;;  %v10178_v4 = vld [vmem:[#allocation2 + $0x44] sm:$0x1] }
 0x140   : > { %3539 = vrot.lane.b32.xlu1 %v3508_v50, %s9130_s16  ;;  %v2170_v15 = vrot.slane %v2168_v46, 5  ;;  %v2195_v2 = vsel %vm9568_vm3, %v2190_v27, %v2194_v5  ;;  %v2199_v32 = vrot.slane %v2197_v7, 4  ;;  %v2206_v29 = vshll.u32 %v10140_v36, 16  ;;  %v10150_v50 = vld [vmem:[#allocation2 + $0x34] sm:$0xf] }
 0x141   : > { %v2202_v39 = vrot.slane %v2200_v10, 5  ;;  %v2166_v34 = vrot.slane %v2165_v0, 4  ;;  %v2210_v51 = vshrl.u32 %v10140_v36, 16  ;;  %v2245_v23 = vshrl.u32 %v2108_v13, 16  ;;  %v8974_v7 = vld [vmem:[#allocation2 + $0x54] sm:$0xff] }
 0x142   : > { %v2248_v56 = vshll.u32 %v2108_v13, 16  ;;  %v2254_v31 = vshll.u32 %v10144_v1, 16  ;;  %v2258_v22 = vshrl.u32 %v10144_v1, 16  ;;  %v10156_v59 = vunpack.c.l.b16 %v2185_v25  ;;  %v10192_v25 = vld [vmem:[#allocation2 + $0x38] sm:$0x1] }
 0x143   : > { %3535 = vrot.lane.b32.xlu2 %v3506_v43, %s9130_s16  ;;  %v2221_v43 = vshrl.u32 %v2106_v17, 16  ;;  %v10158_v44 = vrot.slane %v2155_v48, 4  ;;  %v2230_v9 = vshll.u32 %v10150_v50, 16  ;;  %v2234_v35 = vshrl.u32 %v10150_v50, 16  ;;  %v10215_v10 = vld [vmem:[#allocation2 + $0x50] sm:$0x1] }
 0x144   : > { %v10164_v55 = vunpack.c.l.b16 %v2195_v2  ;;  %v2203_v57 = vor.u32 %v2202_v39, %v2199_v32  ;;  %v10166_v14 = vrot.slane %v2206_v29, 5  ;;  %v2216_v54 = vshll.u32 %v10160_v12, 16  ;;  %v2114_v32 = vld [vmem:[#allocation2 + $0x60] sm:$0xf]  ;;  %v10199_v39 = vld [vmem:[#allocation2 + $0x64] sm:$0xf] }
 0x145   : > { %3531 = vrot.lane.b32.xlu0 %v3504_v38, %s9130_s16  ;;  %v2224_v38 = vshll.u32 %v2106_v17, 16  ;;  %v2171_v52 = vsel %vm9568_vm3, %v2166_v34, %v2170_v15  ;;  %v2212_v41 = vrot.slane %v2210_v51, 4  ;;  %v2247_v8 = vrot.slane %v2245_v23, 4  ;;  %v8972_v23 = vld [vmem:[#allocation2 + $0x3c] sm:$0xff] }
 0x146   : > { %v2250_v19 = vrot.slane %v2248_v56, 5  ;;  %v2260_v26 = vrot.slane %v2258_v22, 4  ;;  %v2223_v21 = vrot.slane %v2221_v43, 4  ;;  %v10180_v53 = vrot.slane %v2230_v9, 5 }
 0x147   : > { %v2236_v46 = vrot.slane %v2234_v35, 4  ;;  %v2269_v27 = vshrl.u32 %v2110_v62, 16  ;;  %v2272_v5 = vshll.u32 %v2110_v62, 16  ;;  %v2161_v0 = vsel %vm9568_vm3, %v10158_v44, %v10134_v63  ;;  %v10306_v63 = vpop.permute.xlu0 %3429 }
 0x148   : > { %3609 = vrot.lane.b32.xlu1 %v8970_v37, %s9131_s17  ;;  %v10169_v37 = vpop.permute.xlu2 %3433  ;;  %v2264_v13 = vshll.u32 %v10178_v4, 16  ;;  %v10194_v48 = vunpack.c.l.b16 %v2171_v52  ;;  %v2213_v15 = vor.u32 %v2212_v41, %v10166_v14  ;;  %v2278_v17 = vshll.u32 %v10176_v58, 16  ;;  %13231 = vst [vmem:[#allocation14_spill] sm:$0xff] %v10306_v63 }
 0x149   : > { %13226 = vst [vmem:[#allocation9_spill] sm:$0xff] %v10169_v37  ;;  %v2282_v2 = vshrl.u32 %v10176_v58, 16  ;;  %v2251_v29 = vor.u32 %v2250_v19, %v2247_v8  ;;  %v2240_v51 = vshll.u32 %v10192_v25, 16  ;;  %v2204_v56 = vrot.slane %v2203_v57, 4  ;;  %v8979_v8 = vld [vmem:[#allocation2 + $0x90] sm:$0xff] }
 0x14a   : > { %v2271_v22 = vrot.slane %v2269_v27, 4  ;;  %v2274_v43 = vrot.slane %v2272_v5, 5  ;;  %v2326_v9 = vshll.u32 %v10199_v39, 16  ;;  %v2330_v35 = vshrl.u32 %v10199_v39, 16  ;;  %v10212_v5 = vld [vmem:[#allocation2 + $0x58] sm:$0xf] }
 0x14b   : > { %3605 = vrot.lane.b32.xlu2 %v8968_v60, %s9131_s17  ;;  %v10174_v60 = vrot.slane %v2254_v31, 5  ;;  %v2237_v31 = vor.u32 %v2236_v46, %v10180_v53  ;;  %v2266_v52 = vrot.slane %v2264_v13, 5  ;;  %v10210_v41 = vrot.slane %v2278_v17, 5 }
 0x14c   : > { %v2284_v57 = vrot.slane %v2282_v2, 4  ;;  %v2252_v19 = vrot.slane %v2251_v29, 4  ;;  %v2275_v27 = vor.u32 %v2274_v43, %v2271_v22  ;;  %v10217_v17 = vrot.slane %v2326_v9, 5 }
 0x14d   : > { %3537 = vrot.lane.b32.xlu0 %v3507_v18, %s9130_s16  ;;  %v2226_v18 = vrot.slane %v2224_v38, 5  ;;  %v2317_v38 = vshrl.u32 %v2114_v32, 16  ;;  %v2238_v46 = vrot.slane %v2237_v31, 4  ;;  %v2332_v2 = vrot.slane %v2330_v35, 4  ;;  %v10227_v31 = vpop.permute.xlu1 %3431  ;;  %v10242_v35 = vld [vmem:[#allocation2 + $0x68] sm:$0x1] }
 0x14e   : > { %v2209_v29 = vsel %vm9568_vm3, %v2204_v56, %v10166_v14  ;;  %13228 = vst [vmem:[#allocation11_spill] sm:$0xff] %v10227_v31  ;;  %v2257_v22 = vsel %vm9568_vm3, %v2252_v19, %v10174_v60  ;;  %v2306_v14 = vshrl.u32 %v10212_v5, 16  ;;  %v8975_v56 = vld [vmem:[#allocation2 + $0x60] sm:$0xff]  ;;  %v2276_v9 = vrot.slane %v2275_v27, 4  ;;  %v2122_v31 = vld [vmem:[#allocation2 + $0x90] sm:$0xf] }
 0x14f   : > { %v2227_v34 = vor.u32 %v2226_v18, %v2223_v21  ;;  %v2242_v18 = vrot.slane %v2240_v51, 5  ;;  %v2288_v51 = vshll.u32 %v10215_v10, 16  ;;  %v10249_v19 = vunpack.c.l.b16 %v2209_v29  ;;  %v10364_v37 = vpop.permute.xlu0 %3435 }
 0x150   : > { %3615 = vrot.lane.b32.xlu1 %v8973_v20, %s9131_s17  ;;  %v10189_v20 = vrot.slane %v2216_v54, 5  ;;  %v2112_v54 = vld [vmem:[#allocation2 + $0x54] sm:$0xf]  ;;  %v10207_v62 = vpop.permute.xlu2 %3439  ;;  %v2281_v29 = vsel %vm9568_vm3, %v2276_v9, %v10210_v41  ;;  %13240 = vst [vmem:[#allocation22_spill] sm:$0xff] %v10364_v37  ;;  %v2470_v37 = vshll.u32 %v10362_v6, 16  ;;  %vm4135_vm13 = vcmask 195584  }
 0x151   : > { %13227 = vst [vmem:[#allocation10_spill] sm:$0xff] %v10207_v62  ;;  %v2228_v21 = vrot.slane %v2227_v34, 4  ;;  %v2285_v34 = vor.u32 %v2284_v57, %v10210_v41  ;;  %vm4102_vm14 = vcmask 130048   ;;  %vm4234_vm1 = vcmask 392192  }
 0x152   : > { %vm4369_vm9 = vcmask 588800  }
 0x153   : > { %3611 = vrot.lane.b32.xlu2 %v8971_v11, %s9131_s17  ;;  %v2261_v11 = vor.u32 %v2260_v26, %v10174_v60 }
 0x155   : > { %3607 = vrot.lane.b32.xlu0 %v8969_v40, %s9131_s17  ;;  %v2320_v40 = vshll.u32 %v2114_v32, 16  ;;  %v2262_v26 = vrot.slane %v2261_v11, 4  ;;  %v2296_v32 = vshll.u32 %v2112_v54, 16  ;;  %v10282_v41 = vpop.permute.xlu1 %3437 }
 0x156   : > { %13230 = vst [vmem:[#allocation13_spill] sm:$0xff] %v10282_v41  ;;  %v10331_v41 = vld [vmem:[#allocation2 + $0x8c] sm:$0x1] }
 0x157   : > { %v2322_v13 = vrot.slane %v2320_v40, 5  ;;  %v2267_v43 = vsel %vm9568_vm3, %v2262_v26, %v2266_v52  ;;  %v2243_v40 = vsel %vm9568_vm3, %v2238_v46, %v2242_v18  ;;  %v2336_v52 = vshll.u32 %v10242_v35, 16  ;;  %v8982_v18 = vld [vmem:[#allocation2 + $0xb4] sm:$0xff]  ;;  %13235 = vst [vmem:[#allocation17_spill] sm:$0xff] %v10331_v41 }
 0x158   : > { %3621 = vrot.lane.b32.xlu1 %v8976_v49, %s9131_s17  ;;  %v2214_v49 = vrot.slane %v2213_v15, 4  ;;  %v2319_v15 = vrot.slane %v2317_v38, 4  ;;  %v2302_v38 = vshll.u32 %v10212_v5, 16  ;;  %v2298_v57 = vrot.slane %v2296_v32, 5 }
 0x159   : > { %v2286_v26 = vrot.slane %v2285_v34, 4  ;;  %v10253_v46 = vunpack.c.l.b16 %v2257_v22  ;;  %v10255_v27 = vunpack.c.l.b16 %v2267_v43  ;;  %v10264_v32 = vunpack.c.l.b16 %v2161_v0  ;;  %v10274_v43 = vld [vmem:[#allocation2 + $0x70] sm:$0xf]  ;;  %v10280_v0 = vld [vmem:[#allocation2 + $0x5c] sm:$0x1] }
 0x15a   : > { %v2219_v11 = vsel %vm9568_vm3, %v2214_v49, %v10189_v20  ;;  %v2233_v20 = vsel %vm9568_vm3, %v2228_v21, %v10180_v53  ;;  %v2333_v49 = vor.u32 %v2332_v2, %v10217_v17  ;;  %v2290_v21 = vrot.slane %v2288_v51, 5 }
 0x15b   : > { %3617 = vrot.lane.b32.xlu2 %v8974_v7, %s9131_s17  ;;  %v2293_v7 = vshrl.u32 %v2112_v54, 16  ;;  %v2323_v54 = vor.u32 %v2322_v13, %v2319_v15  ;;  %v10251_v53 = vunpack.c.l.b16 %v2219_v11  ;;  %v2308_v15 = vrot.slane %v2306_v14, 4  ;;  %v2116_v13 = vld [vmem:[#allocation2 + $0x6c] sm:$0xf] }
 0x15c   : > { %v10266_v2 = vunpack.c.l.b16 %v2233_v20  ;;  %v2334_v34 = vrot.slane %v2333_v49, 4  ;;  %v2338_v51 = vrot.slane %v2336_v52, 5  ;;  %v2291_v44 = vsel %vm9568_vm3, %v2286_v26, %v2290_v21 }
 0x15d   : > { %3613 = vrot.lane.b32.xlu0 %v8972_v23, %s9131_s17  ;;  %v8977_v23 = vld [vmem:[#allocation2 + $0x78] sm:$0xff]  ;;  %v2295_v60 = vrot.slane %v2293_v7, 4  ;;  %v10257_v7 = vrot.slane %v2302_v38, 5  ;;  %v2324_v11 = vrot.slane %v2323_v54, 4  ;;  %v2341_v14 = vshrl.u32 %v2116_v13, 16  ;;  %v8978_v54 = vld [vmem:[#allocation2 + $0x84] sm:$0xff] }
 0x15e   : > { %v8980_v38 = vld [vmem:[#allocation2 + $0x9c] sm:$0xff]  ;;  %v10293_v52 = vunpack.c.l.b16 %v2281_v29  ;;  %v2354_v26 = vshrl.u32 %v10274_v43, 16  ;;  %v10297_v21 = vunpack.c.l.b16 %v2291_v44  ;;  %v2120_v44 = vld [vmem:[#allocation2 + $0x84] sm:$0xf] }
 0x15f   : > { %v2299_v22 = vor.u32 %v2298_v57, %v2295_v60  ;;  %v2309_v9 = vor.u32 %v2308_v15, %v10257_v7  ;;  %v2312_v60 = vshll.u32 %v10280_v0, 16  ;;  %v2350_v57 = vshll.u32 %v10274_v43, 16 }
 0x160   : > { %3627 = vrot.lane.b32.xlu1 %v8979_v8, %s9131_s17  ;;  %v10246_v8 = vpop.permute.xlu2 %3445  ;;  %v2339_v15 = vsel %vm9568_vm3, %v2334_v34, %v2338_v51  ;;  %v2343_v49 = vrot.slane %v2341_v14, 4  ;;  %v2389_v45 = vshrl.u32 %v2120_v44, 16  ;;  %v2392_v34 = vshll.u32 %v2120_v44, 16  ;;  %v2118_v51 = vld [vmem:[#allocation2 + $0x78] sm:$0xf] }
 0x161   : > { %13229 = vst [vmem:[#allocation12_spill] sm:$0xff] %v10246_v8  ;;  %v10315_v28 = vrot.slane %v2350_v57, 5  ;;  %v2356_v62 = vrot.slane %v2354_v26, 4  ;;  %v13234_v14 = vpack.c.b16 %v10164_v55, %v10156_v59  ;;  %v10327_v57 = vld [vmem:[#allocation2 + $0x7c] sm:$0xf]  ;;  %v8983_v26 = vld [vmem:[#allocation2 + $0xc0] sm:$0xff]  ;;  %v10333_v55 = vpop.permute.xlu1 %3443 }
 0x162   : > { %v2394_v44 = vrot.slane %v2392_v34, 5  ;;  %v2365_v8 = vshrl.u32 %v2118_v51, 16  ;;  %v2368_v59 = vshll.u32 %v2118_v51, 16  ;;  %13236 = vst [vmem:[#allocation18_spill] sm:$0xff] %v10333_v55  ;;  %v8981_v34 = vld [vmem:[#allocation2 + $0xa8] sm:$0xff] }
 0x163   : > { %3623 = vrot.lane.b32.xlu2 %v8977_v23, %s9131_s17  ;;  %v10268_v23 = vunpack.c.l.b16 %v2243_v40  ;;  %v2357_v51 = vor.u32 %v2356_v62, %v10315_v28  ;;  %v10350_v55 = vld [vmem:[#allocation2 + $0x94] sm:$0xf]  ;;  %v2378_v62 = vshrl.u32 %v10327_v57, 16 }
 0x164   : > { %13237 = vst [vmem:[#allocation19_spill] sm:$0xff] %v10350_v55 }
 0x165   : > { %3619 = vrot.lane.b32.xlu0 %v8975_v56, %s9131_s17  ;;  %v2344_v56 = vshll.u32 %v2116_v13, 16  ;;  %v2300_v13 = vrot.slane %v2299_v22, 4  ;;  %v10313_v22 = vld [vmem:[#allocation2 + $0x74] sm:$0x1] }
 0x166   : > { %13233 = vst [vmem:[#allocation16_spill] sm:$0xff] %v10313_v22 }
 0x167   : > { %v2346_v20 = vrot.slane %v2344_v56, 5  ;;  %v2305_v56 = vsel %vm9568_vm3, %v2300_v13, %v10257_v7  ;;  %v10337_v7 = vunpack.c.l.b16 %v2339_v15  ;;  %v2408_v13 = vshll.u32 %v10331_v41, 16 }
 0x168   : > { %3633 = vrot.lane.b32.xlu1 %v8982_v18, %s9131_s17  ;;  %v2329_v18 = vsel %vm9568_vm3, %v2324_v11, %v10217_v17  ;;  %v10308_v29 = vpop.permute.xlu2 %3451  ;;  %v2310_v17 = vrot.slane %v2309_v9, 4  ;;  %v2314_v11 = vrot.slane %v2312_v60, 5  ;;  %v2360_v9 = vshll.u32 %v10313_v22, 16 }
 0x169   : > { %13232 = vst [vmem:[#allocation15_spill] sm:$0xff] %v10308_v29  ;;  %v2391_v60 = vrot.slane %v2389_v45, 4  ;;  %v2410_v63 = vrot.slane %v2408_v13, 5  ;;  %v10378_v3 = vpop.permute.xlu1 %3449 }
 0x16a   : > { %13242 = vst [vmem:[#allocation23_spill] sm:$0xff] %v10378_v3 }
 0x16b   : > { %3629 = vrot.lane.b32.xlu2 %v8980_v38, %s9131_s17  ;;  %v10304_v38 = vld [vmem:[#allocation2 + $0x88] sm:$0xf]  ;;  %v2395_v15 = vor.u32 %v2394_v44, %v2391_v60 }
 0x16c   : > { %v2398_v40 = vshll.u32 %v10304_v38, 16  ;;  %v2402_v24 = vshrl.u32 %v10304_v38, 16 }
 0x16d   : > { %3625 = vrot.lane.b32.xlu0 %v8978_v54, %s9131_s17 }
 0x16e   : > { %v10317_v29 = vrot.slane %v2398_v40, 5  ;;  %v2404_v54 = vrot.slane %v2402_v24, 4  ;;  %v2347_v40 = vor.u32 %v2346_v20, %v2343_v49  ;;  %v2315_v20 = vsel %vm9568_vm3, %v2310_v17, %v2314_v11 }
 0x16f   : > { %v10344_v49 = vunpack.c.l.b16 %v2305_v56  ;;  %v2374_v24 = vshll.u32 %v10327_v57, 16  ;;  %v2367_v11 = vrot.slane %v2365_v8, 4  ;;  %v2370_v56 = vrot.slane %v2368_v59, 5 }
 0x170   : > { %3687 = vrot.lane.b32.xlu1 %v13234_v14, %s9132_s18  ;;  %v10335_v14 = vunpack.c.l.b16 %v2329_v18  ;;  %v2405_v45 = vor.u32 %v2404_v54, %v10317_v29  ;;  %v10348_v18 = vrot.slane %v2360_v9, 5  ;;  %v2348_v17 = vrot.slane %v2347_v40, 4  ;;  %v2126_v54 = vld [vmem:[#allocation2 + $0xa8] sm:$0xf] }
 0x171   : > { %v10360_v60 = vunpack.c.l.b16 %v2315_v20  ;;  %v2422_v8 = vshll.u32 %v10350_v55, 16  ;;  %v2426_v40 = vshrl.u32 %v10350_v55, 16  ;;  %v13241_v59 = vpack.c.b16 %v10255_v27, %v10253_v46 }
 0x172   : > { %v3676_v9 = vpack.c.b16 %v10337_v7, %v10335_v14  ;;  %v2406_v44 = vrot.slane %v2405_v45, 4  ;;  %v2396_v14 = vrot.slane %v2395_v15, 4  ;;  %v2413_v7 = vshrl.u32 %v2122_v31, 16 }
 0x173   : > { %3635 = vrot.lane.b32.xlu2 %v8983_v26, %s9131_s17  ;;  %v2416_v45 = vshll.u32 %v2122_v31, 16  ;;  %v2461_v13 = vshrl.u32 %v2126_v54, 16  ;;  %v2353_v20 = vsel %vm9568_vm3, %v2348_v17, %v10315_v28  ;;  %v2371_v22 = vor.u32 %v2370_v56, %v2367_v11 }
 0x174   : > { %v2411_v55 = vsel %vm9568_vm3, %v2406_v44, %v2410_v63  ;;  %v2474_v27 = vshrl.u32 %v10362_v6, 16  ;;  %v13243_v31 = vpack.c.b16 %v10251_v53, %v10249_v19  ;;  %v10387_v15 = vrot.slane %v2422_v8, 5  ;;  %v10394_v63 = vld [vmem:[#allocation2 + $0x80] sm:$0x1]  ;;  %v10425_v6 = vld [vmem:[#allocation2 + $0xb8] sm:$0xf] }
 0x175   : > { %3631 = vrot.lane.b32.xlu0 %v8981_v34, %s9131_s17  ;;  %v10355_v26 = vpop.permute.xlu2 %3457  ;;  %v2358_v34 = vrot.slane %v2357_v51, 4  ;;  %v2380_v51 = vrot.slane %v2378_v62, 4  ;;  %v2463_v46 = vrot.slane %v2461_v13, 4  ;;  %v2428_v28 = vrot.slane %v2426_v40, 4  ;;  %v10408_v40 = vld [vmem:[#allocation2 + $0xb0] sm:$0x1] }
 0x176   : > { %13238 = vst [vmem:[#allocation20_spill] sm:$0xff] %v10355_v26  ;;  %v10366_v26 = vrot.slane %v2374_v24, 5  ;;  %v2464_v24 = vshll.u32 %v2126_v54, 16  ;;  %v10389_v17 = vrot.slane %v2470_v37, 5  ;;  %v2401_v62 = vsel %vm9568_vm3, %v2396_v14, %v10317_v29  ;;  %v2124_v14 = vld [vmem:[#allocation2 + $0x9c] sm:$0xf] }
 0x177   : > { %v2415_v11 = vrot.slane %v2413_v7, 4  ;;  %v2418_v56 = vrot.slane %v2416_v45, 5  ;;  %v2476_v44 = vrot.slane %v2474_v27, 4  ;;  %v13244_v19 = vpack.c.b16 %v10194_v48, %v10264_v32  ;;  %13246 = vst [vmem:[#allocation25_spill] sm:$0xff] %v10408_v40  ;;  %v10413_v32 = vld [vmem:[#allocation2 + $0x98] sm:$0x1]  ;;  %v10419_v27 = vpop.permute.xlu0 %3441 }
 0x178   : > { %3693 = vrot.lane.b32.xlu1 %v13241_v59, %s9132_s18  ;;  %v2466_v54 = vrot.slane %v2464_v24, 5  ;;  %v2363_v8 = vsel %vm9568_vm3, %v2358_v34, %v10348_v18  ;;  %v2384_v29 = vshll.u32 %v10394_v63, 16  ;;  %v10410_v7 = vunpack.c.l.b16 %v2353_v20  ;;  %13247 = vst [vmem:[#allocation26_spill] sm:$0xff] %v10413_v32  ;;  %v10417_v24 = vld [vmem:[#allocation2 + $0xa0] sm:$0xf] }
 0x179   : > { %v2381_v48 = vor.u32 %v2380_v51, %v10366_v26  ;;  %v2477_v45 = vor.u32 %v2476_v44, %v10389_v17  ;;  %v2480_v13 = vshll.u32 %v10408_v40, 16  ;;  %13248 = vst [vmem:[#allocation27_spill] sm:$0xff] %v10419_v27  ;;  %v3657_v18 = vunpack.c.l.b16 %v2401_v62  ;;  %v2128_v20 = vld [vmem:[#allocation2 + $0xb4] sm:$0xf] }
 0x17a   : > { %v2467_v59 = vor.u32 %v2466_v54, %v2463_v46  ;;  %v3658_v34 = vunpack.c.l.b16 %v2411_v55  ;;  %v2432_v46 = vshll.u32 %v10413_v32, 16  ;;  %v3654_v51 = vunpack.c.l.b16 %v2363_v8 }
 0x17b   : > { %3689 = vrot.lane.b32.xlu2 %v13243_v31, %s9132_s18  ;;  %v2429_v31 = vor.u32 %v2428_v28, %v10387_v15  ;;  %v2372_v54 = vrot.slane %v2371_v22, 4  ;;  %v2437_v37 = vshrl.u32 %v2124_v14, 16  ;;  %v2386_v44 = vrot.slane %v2384_v29, 5 }
 0x17c   : > { %v2468_v3 = vrot.slane %v2467_v59, 4  ;;  %v2446_v40 = vshll.u32 %v10417_v24, 16  ;;  %v2478_v55 = vrot.slane %v2477_v45, 4  ;;  %v2482_v28 = vrot.slane %v2480_v13, 5 }
 0x17d   : > { %3685 = vrot.lane.b32.xlu0 %v13244_v19, %s9132_s18  ;;  %v10400_v53 = vpop.permute.xlu2 %3511  ;;  %v2419_v19 = vor.u32 %v2418_v56, %v2415_v11  ;;  %v2450_v27 = vshrl.u32 %v10417_v24, 16  ;;  %v2485_v32 = vshrl.u32 %v2128_v20, 16  ;;  %v13250_v22 = vpack.c.b16 %v10297_v21, %v10293_v52 }
 0x17e   : > { %13245 = vst [vmem:[#allocation24_spill] sm:$0xff] %v10400_v53  ;;  %v2440_v53 = vshll.u32 %v2124_v14, 16  ;;  %v2382_v11 = vrot.slane %v2381_v48, 4  ;;  %v2430_v56 = vrot.slane %v2429_v31, 4  ;;  %v2434_v8 = vrot.slane %v2432_v46, 5 }
 0x17f   : > { %v2420_v29 = vrot.slane %v2419_v19, 4  ;;  %v2439_v59 = vrot.slane %v2437_v37, 4  ;;  %v2488_v14 = vshll.u32 %v2128_v20, 16  ;;  %v2494_v41 = vshll.u32 %v10425_v6, 16  ;;  %v10449_v20 = vpop.permute.xlu0 %3447 }
 0x180   : > { %3699 = vrot.lane.b32.xlu1 %v3676_v9, %s9132_s18  ;;  %v3679_v9 = vpack.c.b16 %v3658_v34, %v3657_v18  ;;  %v13251_v45 = vpack.c.b16 %v10268_v23, %v10266_v2  ;;  %v2473_v52 = vsel %vm9568_vm3, %v2468_v3, %v10389_v17  ;;  %v2442_v21 = vrot.slane %v2440_v53, 5  ;;  %13253 = vst [vmem:[#allocation30_spill] sm:$0xff] %v10449_v20 }
 0x181   : > { %v10444_v48 = vrot.slane %v2446_v40, 5  ;;  %v2498_v18 = vshrl.u32 %v10425_v6, 16  ;;  %v2483_v37 = vsel %vm9568_vm3, %v2478_v55, %v2482_v28  ;;  %v2452_v34 = vrot.slane %v2450_v27, 4  ;;  %v2130_v27 = vld [vmem:[#allocation2 + $0xc0] sm:$0xf] }
 0x182   : > { %v10427_v62 = vpop.permute.xlu1 %3455  ;;  %v2487_v31 = vrot.slane %v2485_v32, 4  ;;  %v2490_v46 = vrot.slane %v2488_v14, 5  ;;  %v3677_v2 = vpack.c.b16 %v3654_v51, %v10410_v7  ;;  %v10452_v23 = vrot.slane %v2494_v41, 5  ;;  %v10467_v7 = vld [vmem:[#allocation2 + $0xa4] sm:$0x1] }
 0x183   : > { %13249 = vst [vmem:[#allocation28_spill] sm:$0xff] %v10427_v62  ;;  %3695 = vrot.lane.b32.xlu2 %v13250_v22, %s9132_s18  ;;  %v2500_v19 = vrot.slane %v2498_v18, 4  ;;  %v13254_v3 = vrot.slane %v10118_v47, 5  ;;  %v2377_v53 = vsel %vm9568_vm3, %v2372_v54, %v10366_v26  ;;  %v2387_v40 = vsel %vm9568_vm3, %v2382_v11, %v2386_v44  ;;  %v2532_v18 = vld [vmem:[#allocation2 + $0xc] sm:$0xe] }
 0x184   : > { %v2425_v32 = vsel %vm9568_vm3, %v2420_v29, %v10387_v15  ;;  %v2435_v41 = vsel %vm9568_vm3, %v2430_v56, %v2434_v8  ;;  %v3663_v51 = vunpack.c.l.b16 %v2473_v52  ;;  %v3664_v55 = vunpack.c.l.b16 %v2483_v37 }
 0x185   : > { %3691 = vrot.lane.b32.xlu0 %v13251_v45, %s9132_s18  ;;  %v10439_v13 = vpop.permute.xlu2 %3517  ;;  %v2600_v17 = vrot.slane %v13254_v3, 4  ;;  %v2443_v28 = vor.u32 %v2442_v21, %v2439_v59  ;;  %v2456_v22 = vshll.u32 %v10467_v7, 16  ;;  %v2453_v54 = vor.u32 %v2452_v34, %v10444_v48  ;;  %v10482_v59 = vld [vmem:[#allocation2 + $0xc4] sm:$0xf] }
 0x186   : > { %13252 = vst [vmem:[#allocation29_spill] sm:$0xff] %v10439_v13  ;;  %v2491_v44 = vor.u32 %v2490_v46, %v2487_v31  ;;  %v2501_v15 = vor.u32 %v2500_v19, %v10452_v23  ;;  %v3655_v56 = vunpack.c.l.b16 %v2377_v53  ;;  %v13255_v8 = vrot.slane %v10132_v30, 5 }
 0x187   : > { %v2509_v14 = vshrl.u32 %v2130_v27, 16  ;;  %v2512_v45 = vshll.u32 %v2130_v27, 16  ;;  %v3656_v52 = vunpack.c.l.b16 %v2387_v40  ;;  %v3660_v21 = vunpack.c.l.b16 %v2435_v41  ;;  %v10492_v27 = vpop.permute.xlu0 %3453 }
 0x188   : > { %3705 = vrot.lane.b32.xlu1 %v3679_v9, %s9132_s18  ;;  %v10470_v9 = vld [vmem:[#allocation2 + $0xbc] sm:$0x1]  ;;  %v2602_v29 = vsel %vm9981_vm15, %v2600_v17, %v13255_v8  ;;  %v2518_v37 = vshll.u32 %v10482_v59, 16  ;;  %v2522_v34 = vshrl.u32 %v10482_v59, 16  ;;  %v13256_v31 = vpack.c.b16 %v10360_v60, %v10344_v49  ;;  %13258 = vst [vmem:[#allocation32_spill] sm:$0xff] %v10492_v27 }
 0x189   : > { %v2504_v11 = vshll.u32 %v10470_v9, 16  ;;  %v3659_v46 = vunpack.c.l.b16 %v2425_v32  ;;  %v2444_v19 = vrot.slane %v2443_v28, 4  ;;  %v2458_v3 = vrot.slane %v2456_v22, 5 }
 0x18a   : > { %v10472_v26 = vpop.permute.xlu1 %3509  ;;  %v2454_v17 = vrot.slane %v2453_v54, 4  ;;  %v2492_v53 = vrot.slane %v2491_v44, 4  ;;  %v2502_v40 = vrot.slane %v2501_v15, 4  ;;  %v8435_v8 = vrot.slane %v2532_v18, 9  ;;  %v2533_v15 = vld [vmem:[#allocation2 + $0x18] sm:$0xe] }
 0x18b   : > { %3701 = vrot.lane.b32.xlu2 %v3677_v2, %s9132_s18  ;;  %v3682_v2 = vpack.c.b16 %v3664_v55, %v3663_v51  ;;  %v2506_v41 = vrot.slane %v2504_v11, 5  ;;  %v2511_v62 = vrot.slane %v2509_v14, 4  ;;  %v2514_v13 = vrot.slane %v2512_v45, 5  ;;  %v2535_v51 = vld [vmem:[#allocation2 + $0x30] sm:$0xe] }
 0x18c   : > { %v2619_v20 = vrot.slane %v10150_v50, 5  ;;  %v10496_v49 = vrot.slane %v2518_v37, 5  ;;  %v2524_v60 = vrot.slane %v2522_v34, 4  ;;  %v2605_v32 = vrot.slane %v10112_v42, 5 }
 0x18d   : > { %3697 = vrot.lane.b32.xlu0 %v13256_v31, %s9132_s18  ;;  %v10490_v30 = vpop.permute.xlu2 %3523  ;;  %v3678_v55 = vpack.c.b16 %v3656_v52, %v3655_v56  ;;  %v3680_v28 = vpack.c.b16 %v3660_v21, %v3659_v46  ;;  %v13259_v22 = vrot.slane %v10118_v47, 5  ;;  %v3718_v44 = vunpack.c.l.b16 %v2602_v29  ;;  %v10516_v56 = vld [vmem:[#allocation2 + $0xc8] sm:$0x1] }
 0x18e   : > { %13257 = vst [vmem:[#allocation31_spill] sm:$0xff] %v10490_v30  ;;  %v2449_v50 = vsel %vm9568_vm3, %v2444_v19, %v10444_v48  ;;  %v2459_v14 = vsel %vm9568_vm3, %v2454_v17, %v2458_v3  ;;  %v2497_v42 = vsel %vm9568_vm3, %v2492_v53, %v10452_v23  ;;  %v2507_v47 = vsel %vm9568_vm3, %v2502_v40, %v2506_v41 }
 0x18f   : > { %v2599_v54 = vsel %vm9981_vm15, %v8435_v8, %v13259_v22  ;;  %v2515_v29 = vor.u32 %v2514_v13, %v2511_v62  ;;  %v8438_v45 = vrot.slane %v2535_v51, 9  ;;  %v2621_v52 = vrot.slane %v2619_v20, 4  ;;  %v2534_v22 = vld [vmem:[#allocation2 + $0x24] sm:$0xe] }
 0x190   : > { %3711 = vrot.lane.b32.xlu1 %v3682_v2, %s9132_s18  ;;  %v2622_v21 = vrot.slane %v10192_v25, 5  ;;  %v3717_v48 = vunpack.c.l.b16 %v2599_v54  ;;  %v2525_v18 = vor.u32 %v2524_v60, %v10496_v49  ;;  %v2528_v37 = vshll.u32 %v10516_v56, 16 }
 0x191   : > { %v8436_v34 = vrot.slane %v2533_v15, 9  ;;  %v3665_v31 = vunpack.c.l.b16 %v2497_v42  ;;  %v3666_v46 = vunpack.c.l.b16 %v2507_v47  ;;  %v2607_v2 = vrot.slane %v2605_v32, 4 }
 0x192   : > { %v10503_v11 = vpop.permute.xlu1 %3515  ;;  %v2608_v19 = vrot.slane %v10126_v16, 5  ;;  %v3661_v62 = vunpack.c.l.b16 %v2449_v50  ;;  %v3662_v13 = vunpack.c.l.b16 %v2459_v14  ;;  %v3749_v3 = vpack.c.b16 %v3718_v44, %v3717_v48  ;;  %v2538_v16 = vld [vmem:[#allocation2 + $0x54] sm:$0xe]  ;;  %v2536_v50 = vld [vmem:[#allocation2 + $0x3c] sm:$0xe] }
 0x193   : > { %13260 = vst [vmem:[#allocation33_spill] sm:$0xff] %v10503_v11  ;;  %3707 = vrot.lane.b32.xlu2 %v3680_v28, %s9132_s18  ;;  %v2516_v25 = vrot.slane %v2515_v29, 4  ;;  %v2620_v53 = vsel %vm9981_vm15, %v8438_v45, %v2619_v20  ;;  %v2623_v40 = vsel %vm9981_vm15, %v2621_v52, %v2622_v21  ;;  %v2640_v41 = vrot.slane %v10212_v5, 5 }
 0x194   : > { %v2526_v8 = vrot.slane %v2525_v18, 4  ;;  %v2530_v60 = vrot.slane %v2528_v37, 5  ;;  %v3683_v51 = vpack.c.b16 %v3666_v46, %v3665_v31  ;;  %v2609_v28 = vsel %vm9981_vm15, %v2607_v2, %v2608_v19 }
 0x195   : > { %3703 = vrot.lane.b32.xlu0 %v3678_v55, %s9132_s18  ;;  %v10522_v23 = vpop.permute.xlu2 %3529  ;;  %v2606_v55 = vsel %vm9981_vm15, %v8436_v34, %v2605_v32  ;;  %v2612_v20 = vrot.slane %v10140_v36, 5  ;;  %v3681_v54 = vpack.c.b16 %v3662_v13, %v3661_v62  ;;  %v3723_v5 = vunpack.c.l.b16 %v2620_v53 }
 0x196   : > { %13261 = vst [vmem:[#allocation34_spill] sm:$0xff] %v10522_v23  ;;  %v3724_v15 = vunpack.c.l.b16 %v2623_v40  ;;  %v2626_v14 = vrot.slane %v10144_v1, 5  ;;  %v2521_v32 = vsel %vm9568_vm3, %v2516_v25, %v10496_v49  ;;  %v8441_v42 = vrot.slane %v2538_v16, 9  ;;  %v8995_v23 = vld [vmem:[#allocation2 + $0x9c] sm:$0xff] }
 0x197   : > { %v10525_v17 = vpop.permute.xlu0 %3459  ;;  %v2642_v47 = vrot.slane %v2640_v41, 4  ;;  %v2643_v29 = vrot.slane %v10280_v0, 5  ;;  %v2531_v36 = vsel %vm9568_vm3, %v2526_v8, %v2530_v60  ;;  %v3719_v45 = vunpack.c.l.b16 %v2606_v55  ;;  %v2539_v60 = vld [vmem:[#allocation2 + $0x60] sm:$0xe] }
 0x198   : > { %13262 = vst [vmem:[#allocation35_spill] sm:$0xff] %v10525_v17  ;;  %3765 = vrot.lane.b32.xlu1 %v3749_v3, %s9133_s19  ;;  %v8437_v52 = vrot.slane %v2534_v22, 9  ;;  %v3720_v1 = vunpack.c.l.b16 %v2609_v28  ;;  %v2614_v48 = vrot.slane %v2612_v20, 4  ;;  %v2615_v18 = vrot.slane %v10160_v12, 5  ;;  %v2541_v12 = vld [vmem:[#allocation2 + $0x78] sm:$0xe] }
 0x199   : > { %v8439_v37 = vrot.slane %v2536_v50, 9  ;;  %v3667_v34 = vunpack.c.l.b16 %v2521_v32  ;;  %v3752_v49 = vpack.c.b16 %v3724_v15, %v3723_v5  ;;  %v2628_v31 = vrot.slane %v2626_v14, 4 }
 0x19a   : > { %v10538_v44 = vpop.permute.xlu1 %3521  ;;  %v2629_v46 = vrot.slane %v10178_v4, 5  ;;  %v3668_v2 = vunpack.c.l.b16 %v2531_v36  ;;  %v2641_v19 = vsel %vm9981_vm15, %v8441_v42, %v2640_v41  ;;  %v2644_v62 = vsel %vm9981_vm15, %v2642_v47, %v2643_v29 }
 0x19b   : > { %13263 = vst [vmem:[#allocation36_spill] sm:$0xff] %v10538_v44  ;;  %3713 = vrot.lane.b32.xlu2 %v3683_v51, %s9132_s18  ;;  %v2661_v13 = vrot.slane %v10327_v57, 5  ;;  %v3750_v3 = vpack.c.b16 %v3720_v1, %v3719_v45  ;;  %v2613_v25 = vsel %vm9981_vm15, %v8437_v52, %v2612_v20  ;;  %v2616_v4 = vsel %vm9981_vm15, %v2614_v48, %v2615_v18  ;;  %v2544_v18 = vld [vmem:[#allocation2 + $0x9c] sm:$0xe] }
 0x19c   : > { %v2627_v53 = vsel %vm9981_vm15, %v8439_v37, %v2626_v14  ;;  %v2630_v41 = vsel %vm9981_vm15, %v2628_v31, %v2629_v46  ;;  %v3729_v8 = vunpack.c.l.b16 %v2641_v19  ;;  %v3730_v57 = vunpack.c.l.b16 %v2644_v62  ;;  %v2542_v19 = vld [vmem:[#allocation2 + $0x84] sm:$0xe] }
 0x19d   : > { %3709 = vrot.lane.b32.xlu0 %v3681_v54, %s9132_s18  ;;  %v10549_v21 = vpop.permute.xlu2 %3535  ;;  %v2647_v16 = vrot.slane %v10199_v39, 5  ;;  %v3684_v51 = vpack.c.b16 %v3668_v2, %v3667_v34  ;;  %v8444_v55 = vrot.slane %v2541_v12, 9  ;;  %v2663_v28 = vrot.slane %v2661_v13, 4  ;;  %v2537_v54 = vld [vmem:[#allocation2 + $0x48] sm:$0xe] }
 0x19e   : > { %13264 = vst [vmem:[#allocation37_spill] sm:$0xff] %v10549_v21  ;;  %v2664_v22 = vrot.slane %v10394_v63, 5  ;;  %v3721_v20 = vunpack.c.l.b16 %v2613_v25  ;;  %v2633_v5 = vrot.slane %v10176_v58, 5  ;;  %v3722_v50 = vunpack.c.l.b16 %v2616_v4 }
 0x19f   : > { %v10553_v0 = vpop.permute.xlu0 %3513  ;;  %v3725_v14 = vunpack.c.l.b16 %v2627_v53  ;;  %v3726_v32 = vunpack.c.l.b16 %v2630_v41  ;;  %v8442_v42 = vrot.slane %v2539_v60, 9  ;;  %v3755_v39 = vpack.c.b16 %v3730_v57, %v3729_v8  ;;  %v2540_v41 = vld [vmem:[#allocation2 + $0x6c] sm:$0xe] }
 0x1a0   : > { %3771 = vrot.lane.b32.xlu1 %v3752_v49, %s9133_s19  ;;  %v2649_v47 = vrot.slane %v2647_v16, 4  ;;  %v2650_v29 = vrot.slane %v10242_v35, 5  ;;  %v8440_v45 = vrot.slane %v2537_v54, 9  ;;  %v2662_v63 = vsel %vm9981_vm15, %v8444_v55, %v2661_v13 }
 0x1a1   : > { %v2665_v58 = vsel %vm9981_vm15, %v2663_v28, %v2664_v22  ;;  %v2682_v52 = vrot.slane %v10417_v24, 5  ;;  %v2635_v1 = vrot.slane %v2633_v5, 4  ;;  %v2636_v48 = vrot.slane %v10215_v10, 5 }
 0x1a2   : > { %v10567_v40 = vpop.permute.xlu1 %3527  ;;  %v3751_v37 = vpack.c.b16 %v3722_v50, %v3721_v20  ;;  %v3753_v34 = vpack.c.b16 %v3726_v32, %v3725_v14  ;;  %v2648_v35 = vsel %vm9981_vm15, %v8442_v42, %v2647_v16  ;;  %v2651_v31 = vsel %vm9981_vm15, %v2649_v47, %v2650_v29  ;;  %v13270_v50 = vld [vmem:[#allocation16_spill] sm:$0xff]  ;;  %v2547_v32 = vld [vmem:[#allocation2 + $0xc0] sm:$0xe] }
 0x1a3   : > { %13265 = vst [vmem:[#allocation38_spill] sm:$0xff] %v10567_v40  ;;  %3767 = vrot.lane.b32.xlu2 %v3750_v3, %s9133_s19  ;;  %v3735_v46 = vunpack.c.l.b16 %v2662_v63  ;;  %v3736_v2 = vunpack.c.l.b16 %v2665_v58  ;;  %v2668_v24 = vrot.slane %v10304_v38, 5  ;;  %v2634_v10 = vsel %vm9981_vm15, %v8440_v45, %v2633_v5  ;;  %v13272_v58 = vld [vmem:[#allocation21_spill] sm:$0xff] }
 0x1a4   : > { %v8447_v62 = vrot.slane %v2544_v18, 9  ;;  %v2684_v13 = vrot.slane %v2682_v52, 4  ;;  %v2685_v12 = vrot.slane %v10467_v7, 5  ;;  %v2637_v3 = vsel %vm9981_vm15, %v2635_v1, %v2636_v48  ;;  %v2545_v1 = vld [vmem:[#allocation2 + $0xa8] sm:$0xe] }
 0x1a5   : > { %3715 = vrot.lane.b32.xlu0 %v3684_v51, %s9132_s18  ;;  %v10576_v15 = vpop.permute.xlu2 %3605  ;;  %v2654_v25 = vrot.slane %v10274_v43, 5  ;;  %v3731_v53 = vunpack.c.l.b16 %v2648_v35  ;;  %v3732_v38 = vunpack.c.l.b16 %v2651_v31  ;;  %v8445_v8 = vrot.slane %v2542_v19, 9  ;;  %v13269_v51 = vld [vmem:[#allocation17_spill] sm:$0xff]  ;;  %v13273_v31 = vld [vmem:[#allocation19_spill] sm:$0xff] }
 0x1a6   : > { %v3727_v57 = vunpack.c.l.b16 %v2634_v10  ;;  %v3758_v60 = vpack.c.b16 %v3736_v2, %v3735_v46  ;;  %v2670_v16 = vrot.slane %v2668_v24, 4  ;;  %v2671_v55 = vrot.slane %v13269_v51, 5  ;;  %v2543_v10 = vld [vmem:[#allocation2 + $0x90] sm:$0xe] }
 0x1a7   : > { %v10579_v36 = vpop.permute.xlu0 %3519  ;;  %v3728_v7 = vunpack.c.l.b16 %v2637_v3  ;;  %v2683_v22 = vsel %vm9981_vm15, %v8447_v62, %v2682_v52  ;;  %v2686_v43 = vsel %vm9981_vm15, %v2684_v13, %v2685_v12  ;;  %v2703_v20 = vrot.slane %v10482_v59, 5  ;;  %v13275_v3 = vld [vmem:[#allocation25_spill] sm:$0xff] }
 0x1a8   : > { %13266 = vst [vmem:[#allocation39_spill] sm:$0xff] %v10579_v36  ;;  %3777 = vrot.lane.b32.xlu1 %v3755_v39, %s9133_s19  ;;  %v8443_v54 = vrot.slane %v2540_v41, 9  ;;  %v2656_v5 = vrot.slane %v2654_v25, 4  ;;  %v2657_v14 = vrot.slane %v13270_v50, 5  ;;  %v3756_v42 = vpack.c.b16 %v3732_v38, %v3731_v53 }
 0x1a9   : > { %v2669_v39 = vsel %vm9981_vm15, %v8445_v8, %v2668_v24  ;;  %v2672_v29 = vsel %vm9981_vm15, %v2670_v16, %v2671_v55  ;;  %v3741_v45 = vunpack.c.l.b16 %v2683_v22  ;;  %v3742_v63 = vunpack.c.l.b16 %v2686_v43  ;;  %v13277_v16 = vld [vmem:[#allocation26_spill] sm:$0xff] }
 0x1aa   : > { %v10590_v49 = vpop.permute.xlu1 %3533  ;;  %v2689_v59 = vrot.slane %v13272_v58, 5  ;;  %v3754_v52 = vpack.c.b16 %v3728_v7, %v3727_v57  ;;  %v8450_v48 = vrot.slane %v2547_v32, 9  ;;  %v2705_v18 = vrot.slane %v2703_v20, 4 }
 0x1ab   : > { %13267 = vst [vmem:[#allocation40_spill] sm:$0xff] %v10590_v49  ;;  %3773 = vrot.lane.b32.xlu2 %v3753_v34, %s9133_s19  ;;  %v2655_v34 = vsel %vm9981_vm15, %v8443_v54, %v2654_v25  ;;  %v2658_v35 = vsel %vm9981_vm15, %v2656_v5, %v2657_v14  ;;  %v2675_v46 = vrot.slane %v13273_v31, 5  ;;  %v3737_v19 = vunpack.c.l.b16 %v2669_v39  ;;  %v3144_v49 = vld [vmem:[#allocation2 + $0x3c] sm:$0xe] }
 0x1ac   : > { %v3738_v24 = vunpack.c.l.b16 %v2672_v29  ;;  %v3761_v62 = vpack.c.b16 %v3742_v63, %v3741_v45  ;;  %v8448_v13 = vrot.slane %v2545_v1, 9  ;;  %v2691_v12 = vrot.slane %v2689_v59, 4  ;;  %v2546_v45 = vld [vmem:[#allocation2 + $0xb4] sm:$0xe]  ;;  %v2709_v1 = vld [vmem:[#allocation2 + $0x18] sm:$0xf] }
 0x1ad   : > { %3769 = vrot.lane.b32.xlu0 %v3751_v37, %s9133_s19  ;;  %v10603_v4 = vpop.permute.xlu2 %3611  ;;  %v2706_v37 = vrot.slane %v10516_v56, 5  ;;  %v2692_v56 = vrot.slane %v13275_v3, 5  ;;  %v3733_v25 = vunpack.c.l.b16 %v2655_v34  ;;  %v3734_v38 = vunpack.c.l.b16 %v2658_v35 }
 0x1ae   : > { %13268 = vst [vmem:[#allocation41_spill] sm:$0xff] %v10603_v4  ;;  %v2704_v41 = vsel %vm9981_vm15, %v8450_v48, %v2703_v20  ;;  %v8446_v57 = vrot.slane %v2543_v10, 9  ;;  %v2678_v51 = vrot.slane %v13277_v16, 5  ;;  %v3759_v55 = vpack.c.b16 %v3738_v24, %v3737_v19  ;;  %v2711_v16 = vld [vmem:[#allocation2 + $0x24] sm:$0xf] }
 0x1af   : > { %v10606_v28 = vpop.permute.xlu0 %3525  ;;  %v2707_v8 = vsel %vm9981_vm15, %v2705_v18, %v2706_v37  ;;  %v2690_v22 = vsel %vm9981_vm15, %v8448_v13, %v2689_v59  ;;  %v2693_v43 = vsel %vm9981_vm15, %v2691_v12, %v2692_v56  ;;  %v3747_v54 = vunpack.c.l.b16 %v2704_v41  ;;  %v8986_v12 = vld [vmem:[#allocation2 + $0x30] sm:$0xff] }
 0x1b0   : > { %3783 = vrot.lane.b32.xlu1 %v3758_v60, %s9133_s19  ;;  %v2677_v60 = vrot.slane %v2675_v46, 4  ;;  %v3748_v20 = vunpack.c.l.b16 %v2707_v8  ;;  %v3757_v5 = vpack.c.b16 %v3734_v38, %v3733_v25  ;;  %v2676_v50 = vsel %vm9981_vm15, %v8446_v57, %v2675_v46  ;;  %v2741_v8 = vld [vmem:[#allocation2 + $0x20] sm:$0x1] }
 0x1b1   : > { %v2696_v32 = vrot.slane %v10425_v6, 5  ;;  %v3743_v39 = vunpack.c.l.b16 %v2690_v22  ;;  %v3744_v29 = vunpack.c.l.b16 %v2693_v43  ;;  %v3739_v59 = vunpack.c.l.b16 %v2676_v50  ;;  %v2710_v6 = vld [vmem:[#allocation2 + $0x1c] sm:$0xf]  ;;  %v10673_v22 = vld [vmem:[#allocation2 + $0x28] sm:$0xf] }
 0x1b2   : > { %v10617_v47 = vpop.permute.xlu1 %3539  ;;  %v2679_v14 = vsel %vm9981_vm15, %v2677_v60, %v2678_v51  ;;  %v3764_v63 = vpack.c.b16 %v3748_v20, %v3747_v54  ;;  %v8449_v48 = vrot.slane %v2546_v45, 9  ;;  %v2699_v37 = vrot.slane %v10470_v9, 5  ;;  %v8984_v51 = vld [vmem:[#allocation2 + $0x18] sm:$0xff] }
 0x1b3   : > { %13271 = vst [vmem:[#allocation17_spill] sm:$0xff] %v10617_v47  ;;  %3779 = vrot.lane.b32.xlu2 %v3756_v42, %s9133_s19  ;;  %v2698_v18 = vrot.slane %v2696_v32, 4  ;;  %v3762_v34 = vpack.c.b16 %v3744_v29, %v3743_v39  ;;  %v2758_v31 = vshrl.u32 %v2709_v1, 16  ;;  %v2761_v46 = vshll.u32 %v2709_v1, 16  ;;  %v10734_v47 = vld [vmem:[#allocation2 + $0x40] sm:$0xf] }
 0x1b4   : > { %v2767_v24 = vshll.u32 %v2710_v6, 16  ;;  %v2771_v10 = vshrl.u32 %v2710_v6, 16  ;;  %v2777_v20 = vshll.u32 %v2741_v8, 16  ;;  %v2785_v39 = vshll.u32 %v2711_v16, 16 }
 0x1b5   : > { %3775 = vrot.lane.b32.xlu0 %v3754_v52, %s9133_s19  ;;  %v10630_v2 = vpop.permute.xlu2 %3617  ;;  %v3740_v52 = vunpack.c.l.b16 %v2679_v14  ;;  %v2700_v13 = vsel %vm9981_vm15, %v2698_v18, %v2699_v37  ;;  %v2760_v3 = vrot.slane %v2758_v31, 4  ;;  %v2763_v56 = vrot.slane %v2761_v46, 5  ;;  %v2713_v37 = vld [vmem:[#allocation2 + $0x30] sm:$0xf] }
 0x1b6   : > { %13274 = vst [vmem:[#allocation16_spill] sm:$0xff] %v10630_v2  ;;  %v3746_v41 = vunpack.c.l.b16 %v2700_v13  ;;  %v2769_v57 = vrot.slane %v2767_v24, 5  ;;  %v2773_v60 = vrot.slane %v2771_v10, 4  ;;  %v2791_v45 = vshll.u32 %v10673_v22, 16  ;;  %v10685_v24 = vld [vmem:[#allocation2 + $0x34] sm:$0xf] }
 0x1b7   : > { %v10633_v53 = vpop.permute.xlu0 %3531  ;;  %v3760_v19 = vpack.c.b16 %v3740_v52, %v3739_v59  ;;  %v2764_v54 = vor.u32 %v2763_v56, %v2760_v3  ;;  %v8989_v52 = vld [vmem:[#allocation2 + $0x54] sm:$0xff]  ;;  %v3210_v18 = vrot.slane %v2741_v8, 5  ;;  %v2779_v31 = vrot.slane %v2777_v20, 5  ;;  %v3142_v3 = vld [vmem:[#allocation2 + $0x24] sm:$0xe] }
 0x1b8   : > { %13276 = vst [vmem:[#allocation21_spill] sm:$0xff] %v10633_v53  ;;  %3789 = vrot.lane.b32.xlu1 %v3761_v62, %s9133_s19  ;;  %v2697_v62 = vsel %vm9981_vm15, %v8449_v48, %v2696_v32  ;;  %v2774_v14 = vor.u32 %v2773_v60, %v2769_v57  ;;  %v2782_v32 = vshrl.u32 %v2711_v16, 16  ;;  %v2806_v56 = vshrl.u32 %v2713_v37, 16 }
 0x1b9   : > { %v3745_v38 = vunpack.c.l.b16 %v2697_v62  ;;  %v2765_v1 = vrot.slane %v2764_v54, 4  ;;  %v10692_v62 = vrot.slane %v2791_v45, 5  ;;  %v2815_v16 = vshll.u32 %v10685_v24, 16  ;;  %v10713_v45 = vld [vmem:[#allocation2 + $0x4c] sm:$0xf] }
 0x1ba   : > { %v10641_v7 = vpop.permute.xlu1 %3609  ;;  %v2784_v46 = vrot.slane %v2782_v32, 4  ;;  %v2863_v20 = vshll.u32 %v10713_v45, 16 }
 0x1bb   : > { %3785 = vrot.lane.b32.xlu2 %v3759_v55, %s9133_s19  ;;  %v3141_v55 = vld [vmem:[#allocation2 + $0x18] sm:$0xe]  ;;  %v3763_v50 = vpack.c.b16 %v3746_v41, %v3745_v38  ;;  %v2809_v38 = vshll.u32 %v2713_v37, 16  ;;  %v2770_v8 = vsel %vm9568_vm3, %v2765_v1, %v2769_v57  ;;  %v2717_v57 = vld [vmem:[#allocation2 + $0x48] sm:$0xf] }
 0x1bc   : > { %v8451_v29 = vrot.slane %v3141_v55, 9  ;;  %v8985_v55 = vld [vmem:[#allocation2 + $0x24] sm:$0xff]  ;;  %v10718_v1 = vunpack.c.l.b16 %v2770_v8  ;;  %v2867_v8 = vshrl.u32 %v10713_v45, 16 }
 0x1bd   : > { %3781 = vrot.lane.b32.xlu0 %v3757_v5, %s9133_s19  ;;  %v10654_v42 = vpop.permute.xlu2 %3623  ;;  %v3207_v5 = vrot.slane %v2710_v6, 5  ;;  %v2811_v37 = vrot.slane %v2809_v38, 5 }
 0x1be   : > { %13278 = vst [vmem:[#allocation19_spill] sm:$0xff] %v10654_v42 }
 0x1bf   : > { %v10656_v58 = vpop.permute.xlu0 %3537  ;;  %v3209_v48 = vrot.slane %v3207_v5, 4  ;;  %v10690_v10 = vsel %vm9981_vm15, %v8451_v29, %v3207_v5  ;;  %v10708_v5 = vld [vmem:[#allocation2 + $0x2c] sm:$0x1]  ;;  %v3214_v29 = vrot.slane %v10673_v22, 5 }
 0x1c0   : > { %13279 = vst [vmem:[#allocation25_spill] sm:$0xff] %v10656_v58  ;;  %3795 = vrot.lane.b32.xlu1 %v3764_v63, %s9133_s19  ;;  %v2795_v63 = vshrl.u32 %v10673_v22, 16  ;;  %v2801_v32 = vshll.u32 %v10708_v5, 16 }
 0x1c1   : > { %v10700_v60 = vsel %vm9981_vm15, %v3209_v48, %v3210_v18  ;;  %v2808_v18 = vrot.slane %v2806_v56, 4  ;;  %v8990_v48 = vld [vmem:[#allocation2 + $0x60] sm:$0xff] }
 0x1c2   : > { %v10660_v35 = vpop.permute.xlu1 %3615  ;;  %v2797_v13 = vrot.slane %v2795_v63, 4  ;;  %v2803_v38 = vrot.slane %v2801_v32, 5 }
 0x1c3   : > { %13280 = vst [vmem:[#allocation26_spill] sm:$0xff] %v10660_v35  ;;  %3791 = vrot.lane.b32.xlu2 %v3762_v34, %s9133_s19  ;;  %v2775_v34 = vrot.slane %v2774_v14, 4 }
 0x1c4   : > { %v2798_v14 = vor.u32 %v2797_v13, %v10692_v62  ;;  %v2715_v13 = vld [vmem:[#allocation2 + $0x3c] sm:$0xf] }
 0x1c5   : > { %3787 = vrot.lane.b32.xlu0 %v3760_v19, %s9133_s19  ;;  %v10668_v9 = vpop.permute.xlu2 %3629  ;;  %v2787_v19 = vrot.slane %v2785_v39, 5  ;;  %v2780_v54 = vsel %vm9568_vm3, %v2775_v34, %v2779_v31  ;;  %v8452_v39 = vrot.slane %v3142_v3, 9  ;;  %v10721_v34 = vrot.slane %v2815_v16, 5 }
 0x1c6   : > { %13281 = vst [vmem:[#allocation42_spill] sm:$0xff] %v10668_v9  ;;  %v2799_v56 = vrot.slane %v2798_v14, 4  ;;  %v2833_v17 = vshll.u32 %v2715_v13, 16  ;;  %v3221_v14 = vrot.slane %v10685_v24, 5  ;;  %v10754_v9 = vld [vmem:[#allocation2 + $0x50] sm:$0x1] }
 0x1c7   : > { %v10670_v25 = vpop.permute.xlu0 %3607  ;;  %v10732_v16 = vsel %vm9981_vm15, %v8452_v39, %v3214_v29 }
 0x1c8   : > { %3865 = vrot.lane.b32.xlu1 %v8986_v12, %s9134_s20  ;;  %v8987_v12 = vld [vmem:[#allocation2 + $0x3c] sm:$0xff]  ;;  %v3223_v30 = vrot.slane %v3221_v14, 4 }
 0x1ca   : > { %v10675_v43 = vpop.permute.xlu1 %3621 }
 0x1cb   : > { %13282 = vst [vmem:[#allocation43_spill] sm:$0xff] %v10675_v43  ;;  %3861 = vrot.lane.b32.xlu2 %v8984_v51, %s9134_s20  ;;  %v2819_v51 = vshrl.u32 %v10685_v24, 16  ;;  %v2839_v24 = vshll.u32 %v10734_v47, 16 }
 0x1cd   : > { %3793 = vrot.lane.b32.xlu0 %v3763_v50, %s9133_s19  ;;  %v10681_v59 = vpop.permute.xlu2 %3635  ;;  %v2788_v50 = vor.u32 %v2787_v19, %v2784_v46  ;;  %v2821_v31 = vrot.slane %v2819_v51, 4  ;;  %v2854_v46 = vshrl.u32 %v2717_v57, 16  ;;  %v2857_v19 = vshll.u32 %v2717_v57, 16  ;;  %v2743_v57 = vld [vmem:[#allocation2 + $0x38] sm:$0x1] }
 0x1ce   : > { %13283 = vst [vmem:[#allocation44_spill] sm:$0xff] %v10681_v59  ;;  %v3216_v51 = vrot.slane %v3214_v29, 4  ;;  %v2812_v59 = vor.u32 %v2811_v37, %v2808_v18  ;;  %v3217_v29 = vrot.slane %v10708_v5, 5  ;;  %v10745_v18 = vrot.slane %v2863_v20, 5  ;;  %v8993_v5 = vld [vmem:[#allocation2 + $0x84] sm:$0xff] }
 0x1cf   : > { %v10683_v6 = vpop.permute.xlu0 %3613  ;;  %v2789_v3 = vrot.slane %v2788_v50, 4  ;;  %v2830_v50 = vshrl.u32 %v2715_v13, 16  ;;  %v2822_v21 = vor.u32 %v2821_v31, %v10721_v34  ;;  %v2856_v32 = vrot.slane %v2854_v46, 4 }
 0x1d0   : > { %13284 = vst [vmem:[#allocation45_spill] sm:$0xff] %v10683_v6  ;;  %3871 = vrot.lane.b32.xlu1 %v8989_v52, %s9134_s20  ;;  %v8992_v52 = vld [vmem:[#allocation2 + $0x78] sm:$0xff]  ;;  %v2869_v37 = vrot.slane %v2867_v8, 4  ;;  %v2804_v13 = vsel %vm9568_vm3, %v2799_v56, %v2803_v38  ;;  %v2843_v46 = vshrl.u32 %v10734_v47, 16  ;;  %v3224_v8 = vrot.slane %v2743_v57, 5 }
 0x1d1   : > { %v2794_v39 = vsel %vm9568_vm3, %v2789_v3, %v10692_v62  ;;  %v2832_v62 = vrot.slane %v2830_v50, 4  ;;  %v2835_v3 = vrot.slane %v2833_v17, 5  ;;  %v2823_v20 = vrot.slane %v2822_v21, 4  ;;  %v2749_v6 = vld [vmem:[#allocation2 + $0x80] sm:$0x1] }
 0x1d2   : > { %v10694_v41 = vpop.permute.xlu1 %3627  ;;  %v3895_v17 = vunpack.c.l.b16 %v2794_v39  ;;  %v3896_v21 = vunpack.c.l.b16 %v2804_v13  ;;  %v10765_v50 = vrot.slane %v2839_v24, 5  ;;  %v3225_v13 = vsel %vm9981_vm15, %v3223_v30, %v3224_v8 }
 0x1d3   : > { %13285 = vst [vmem:[#allocation46_spill] sm:$0xff] %v10694_v41  ;;  %3867 = vrot.lane.b32.xlu2 %v8987_v12, %s9134_s20  ;;  %v10725_v12 = vunpack.c.l.b16 %v2780_v54  ;;  %v2825_v54 = vshll.u32 %v2743_v57, 16  ;;  %v390_v57 = vld [vmem:[#allocation2 + $0xcc] sm:$0x1] }
 0x1d5   : > { %3863 = vrot.lane.b32.xlu0 %v8985_v55, %s9134_s20  ;;  %v10716_v63 = vpop.permute.xlu2 %3689  ;;  %v3143_v55 = vld [vmem:[#allocation2 + $0x30] sm:$0xe]  ;;  %v3925_v38 = vpack.c.b16 %v10725_v12, %v10718_v1  ;;  %v391_v12 = vsel %vm9281_vm5, 0, %v390_v57  ;;  %v2719_v1 = vld [vmem:[#allocation2 + $0x54] sm:$0xf]  ;;  %vm4402_vm5 = vcmask 1043456  }
 0x1d6   : > { %v8453_v31 = vrot.slane %v3143_v55, 9  ;;  %392 = vst [vmem:[#allocation2 + $0xcc] sm:$0x1] %v391_v12 }
 0x1d7   : > { %v10723_v22 = vpop.permute.xlu0 %3619 }
 0x1d8   : > { %13286 = vst [vmem:[#allocation47_spill] sm:$0xff] %v10723_v22  ;;  %3877 = vrot.lane.b32.xlu1 %v8992_v52, %s9134_s20  ;;  %v2859_v52 = vrot.slane %v2857_v19, 5  ;;  %v8988_v22 = vld [vmem:[#allocation2 + $0x48] sm:$0xff]  ;;  %v2813_v19 = vrot.slane %v2812_v59, 4  ;;  %v2870_v59 = vor.u32 %v2869_v37, %v10745_v18  ;;  %v2836_v37 = vor.u32 %v2835_v3, %v2832_v62 }
 0x1d9   : > { %v3228_v62 = vrot.slane %v10734_v47, 5  ;;  %v13292_v47 = vunpack.c.l.b16 %v10690_v10 }
 0x1da   : > { %v10736_v58 = vpop.permute.xlu1 %3633  ;;  %v2860_v56 = vor.u32 %v2859_v52, %v2856_v32  ;;  %v2845_v32 = vrot.slane %v2843_v46, 4  ;;  %v2818_v52 = vsel %vm9568_vm3, %v2813_v19, %v10721_v34  ;;  %v8991_v46 = vld [vmem:[#allocation2 + $0x6c] sm:$0xff] }
 0x1db   : > { %13287 = vst [vmem:[#allocation48_spill] sm:$0xff] %v10736_v58  ;;  %3873 = vrot.lane.b32.xlu2 %v8990_v48, %s9134_s20  ;;  %v2827_v58 = vrot.slane %v2825_v54, 5  ;;  %v2873_v54 = vshll.u32 %v10754_v9, 16  ;;  %v10787_v8 = vunpack.c.l.b16 %v2818_v52 }
 0x1dc   : > { %v2861_v24 = vrot.slane %v2860_v56, 4 }
 0x1dd   : > { %3869 = vrot.lane.b32.xlu0 %v8988_v22, %s9134_s20  ;;  %v10752_v48 = vpop.permute.xlu2 %3695  ;;  %v3218_v22 = vsel %vm9981_vm15, %v3216_v51, %v3217_v29  ;;  %v3222_v51 = vsel %vm9981_vm15, %v8453_v31, %v3221_v14  ;;  %v2744_v29 = vld [vmem:[#allocation2 + $0x44] sm:$0x1]  ;;  %v2828_v39 = vsel %vm9568_vm3, %v2823_v20, %v2827_v58  ;;  %v3975_v14 = vunpack.c.l.b16 %v10732_v16 }
 0x1de   : > { %13288 = vst [vmem:[#allocation49_spill] sm:$0xff] %v10752_v48  ;;  %v2849_v34 = vshll.u32 %v2744_v29, 16  ;;  %v2871_v31 = vrot.slane %v2870_v59, 4  ;;  %v2875_v19 = vrot.slane %v2873_v54, 5  ;;  %v3976_v3 = vunpack.c.l.b16 %v3218_v22  ;;  %v10791_v59 = vld [vmem:[#allocation2 + $0x58] sm:$0xf] }
 0x1df   : > { %v10756_v55 = vpop.permute.xlu0 %3625  ;;  %v3977_v57 = vunpack.c.l.b16 %v3222_v51  ;;  %v2846_v58 = vor.u32 %v2845_v32, %v10765_v50  ;;  %v8454_v20 = vrot.slane %v3144_v49, 9  ;;  %v10789_v56 = vunpack.c.l.b16 %v2828_v39 }
 0x1e0   : > { %13289 = vst [vmem:[#allocation50_spill] sm:$0xff] %v10756_v55  ;;  %3879 = vrot.lane.b32.xlu1 %v8993_v5, %s9134_s20  ;;  %v2837_v16 = vrot.slane %v2836_v37, 4  ;;  %v13293_v22 = vunpack.c.l.b16 %v10700_v60  ;;  %v3926_v32 = vpack.c.b16 %v3896_v21, %v3895_v17  ;;  %v2866_v49 = vsel %vm9568_vm3, %v2861_v24, %v10745_v18  ;;  %v2725_v37 = vld [vmem:[#allocation2 + $0x78] sm:$0xf]  ;;  %v8994_v21 = vld [vmem:[#allocation2 + $0x90] sm:$0xff] }
 0x1e1   : > { %v10800_v12 = vrot.slane %v2849_v34, 5  ;;  %v2876_v51 = vsel %vm9568_vm3, %v2871_v31, %v2875_v19  ;;  %v3230_v39 = vrot.slane %v3228_v62, 4  ;;  %v10807_v10 = vrot.slane %v2846_v58, 4  ;;  %v2723_v19 = vld [vmem:[#allocation2 + $0x6c] sm:$0xf] }
 0x1e2   : > { %v10774_v5 = vpop.permute.xlu1 %3687  ;;  %v4005_v54 = vpack.c.b16 %v13293_v22, %v13292_v47  ;;  %v10811_v60 = vsel %vm9981_vm15, %v8454_v20, %v3228_v62  ;;  %v2881_v18 = vshll.u32 %v2719_v1, 16  ;;  %v2887_v17 = vshll.u32 %v10791_v59, 16  ;;  %v10825_v62 = vld [vmem:[#allocation2 + $0x7c] sm:$0xf]  ;;  %v2727_v55 = vld [vmem:[#allocation2 + $0x84] sm:$0xf] }
 0x1e3   : > { %3941 = vrot.lane.b32.xlu2 %v3925_v38, %s9135_s21  ;;  %v3978_v38 = vunpack.c.l.b16 %v3225_v13  ;;  %v3231_v13 = vrot.slane %v2744_v29, 5  ;;  %v4006_v24 = vpack.c.b16 %v3976_v3, %v3975_v14  ;;  %v2842_v29 = vsel %vm9568_vm3, %v2837_v16, %v10765_v50 }
 0x1e4   : > { %v10823_v47 = vunpack.c.l.b16 %v2866_v49  ;;  %v2950_v20 = vshrl.u32 %v2725_v37, 16  ;;  %v2891_v14 = vshrl.u32 %v10791_v59, 16  ;;  %v10829_v3 = vunpack.c.l.b16 %v2876_v51  ;;  %v10846_v51 = vld [vmem:[#allocation2 + $0x70] sm:$0xf] }
 0x1e5   : > { %3875 = vrot.lane.b32.xlu0 %v8991_v46, %s9134_s20  ;;  %v10785_v30 = vpop.permute.xlu2 %3701  ;;  %v2878_v46 = vshrl.u32 %v2719_v1, 16  ;;  %v10816_v31 = vpack.c.b16 %v3978_v38, %v3977_v57  ;;  %v2953_v1 = vshll.u32 %v2725_v37, 16  ;;  %v10833_v57 = vsel %vm9981_vm15, %v3230_v39, %v3231_v13  ;;  %v10836_v38 = vld [vmem:[#allocation2 + $0x5c] sm:$0x1] }
 0x1e6   : > { %13291 = vst [vmem:[#allocation5_spill] sm:$0xff] %v10785_v30  ;;  %v2883_v49 = vrot.slane %v2881_v18, 5  ;;  %v10844_v37 = vrot.slane %v2887_v17, 5  ;;  %v2959_v13 = vshll.u32 %v10825_v62, 16  ;;  %v2897_v50 = vshll.u32 %v10836_v38, 16  ;;  %v8997_v18 = vld [vmem:[#allocation2 + $0xb4] sm:$0xff] }
 0x1e7   : > { %v10802_v52 = vpop.permute.xlu0 %3631  ;;  %v2880_v16 = vrot.slane %v2878_v46, 4  ;;  %v2963_v46 = vshrl.u32 %v10825_v62, 16  ;;  %v2926_v22 = vshrl.u32 %v2723_v19, 16  ;;  %v2952_v17 = vrot.slane %v2950_v20, 4 }
 0x1e8   : > { %13294 = vst [vmem:[#allocation51_spill] sm:$0xff] %v10802_v52  ;;  %3943 = vrot.lane.b32.xlu1 %v3926_v32, %s9135_s21  ;;  %v10842_v32 = vunpack.c.l.b16 %v2842_v29  ;;  %v10854_v29 = vld [vmem:[#allocation2 + $0x64] sm:$0xf]  ;;  %v2955_v34 = vrot.slane %v2953_v1, 5  ;;  %v2893_v52 = vrot.slane %v2891_v14, 4  ;;  %v2929_v27 = vshll.u32 %v2723_v19, 16 }
 0x1e9   : > { %v2939_v44 = vshrl.u32 %v10846_v51, 16  ;;  %v2884_v48 = vor.u32 %v2883_v49, %v2880_v16  ;;  %v2911_v35 = vshll.u32 %v10854_v29, 16  ;;  %v2915_v20 = vshrl.u32 %v10854_v29, 16 }
 0x1ea   : > { %v10821_v58 = vpop.permute.xlu1 %3693  ;;  %v10864_v1 = vrot.slane %v2959_v13, 5  ;;  %v2965_v19 = vrot.slane %v2963_v46, 4  ;;  %v3263_v14 = vrot.slane %v10825_v62, 5  ;;  %v10867_v36 = vrot.slane %v2897_v50, 5 }
 0x1eb   : > { %13295 = vst [vmem:[#allocation52_spill] sm:$0xff] %v10821_v58  ;;  %3881 = vrot.lane.b32.xlu2 %v8994_v21, %s9134_s20  ;;  %v2721_v21 = vld [vmem:[#allocation2 + $0x60] sm:$0xf]  ;;  %v2894_v53 = vor.u32 %v2893_v52, %v10844_v37  ;;  %v2928_v16 = vrot.slane %v2926_v22, 4  ;;  %v2931_v49 = vrot.slane %v2929_v27, 5  ;;  %v2941_v46 = vrot.slane %v2939_v44, 4 }
 0x1ec   : > { %v2905_v41 = vshll.u32 %v2721_v21, 16  ;;  %v10875_v50 = vrot.slane %v2911_v35, 5  ;;  %v2917_v40 = vrot.slane %v2915_v20, 4  ;;  %v2974_v4 = vshrl.u32 %v2727_v55, 16  ;;  %v10883_v35 = vld [vmem:[#allocation2 + $0x88] sm:$0xf] }
 0x1ed   : > { %4021 = vrot.lane.b32.xlu0 %v4005_v54, %s9136_s22  ;;  %v10849_v39 = vpop.permute.xlu2 %3707  ;;  %v2935_v54 = vshll.u32 %v10846_v51, 16  ;;  %v2977_v11 = vshll.u32 %v2727_v55, 16  ;;  %v2966_v52 = vor.u32 %v2965_v19, %v10864_v1  ;;  %v2969_v27 = vshll.u32 %v2749_v6, 16 }
 0x1ee   : > { %13296 = vst [vmem:[#allocation53_spill] sm:$0xff] %v10849_v39  ;;  %v2902_v39 = vshrl.u32 %v2721_v21, 16  ;;  %v2956_v21 = vor.u32 %v2955_v34, %v2952_v17  ;;  %v2907_v62 = vrot.slane %v2905_v41, 5  ;;  %v10881_v17 = vld [vmem:[#allocation2 + $0x74] sm:$0x1]  ;;  %v3266_v44 = vrot.slane %v2749_v6, 5 }
 0x1ef   : > { %v10856_v2 = vpop.permute.xlu0 %3685  ;;  %v10873_v13 = vrot.slane %v2935_v54, 5  ;;  %v2895_v41 = vrot.slane %v2894_v53, 4  ;;  %v2932_v55 = vor.u32 %v2931_v49, %v2928_v16  ;;  %v2918_v6 = vor.u32 %v2917_v40, %v10875_v50 }
 0x1f0   : > { %3887 = vrot.lane.b32.xlu1 %v8997_v18, %s9134_s20  ;;  %v3149_v18 = vld [vmem:[#allocation2 + $0x78] sm:$0xe]  ;;  %v2904_v42 = vrot.slane %v2902_v39, 4  ;;  %v2957_v54 = vrot.slane %v2956_v21, 4  ;;  %v2885_v39 = vrot.slane %v2884_v48, 4  ;;  %v2976_v48 = vrot.slane %v2974_v4, 4 }
 0x1f1   : > { %v8459_v22 = vrot.slane %v3149_v18, 9  ;;  %v13300_v18 = vpack.c.b16 %v10789_v56, %v10787_v8  ;;  %v2979_v21 = vrot.slane %v2977_v11, 5  ;;  %v2967_v16 = vrot.slane %v2966_v52, 4  ;;  %v8996_v56 = vld [vmem:[#allocation2 + $0xa8] sm:$0xff] }
 0x1f2   : > { %v10869_v58 = vpop.permute.xlu1 %3699  ;;  %v2908_v19 = vor.u32 %v2907_v62, %v2904_v42  ;;  %v2971_v49 = vrot.slane %v2969_v27, 5  ;;  %v2987_v30 = vshrl.u32 %v10883_v35, 16  ;;  %v13302_v42 = vsel %vm9568_vm3, %v10807_v10, %v10800_v12 }
 0x1f3   : > { %13297 = vst [vmem:[#allocation54_spill] sm:$0xff] %v10869_v58  ;;  %4023 = vrot.lane.b32.xlu2 %v4006_v24, %s9136_s22  ;;  %v3265_v24 = vrot.slane %v3263_v14, 4  ;;  %v10889_v58 = vld [vmem:[#allocation2 + $0x68] sm:$0x1]  ;;  %v10906_v8 = vunpack.c.l.b16 %v13302_v42  ;;  %v3264_v40 = vsel %vm9981_vm15, %v8459_v22, %v3263_v14  ;;  %v2890_v4 = vsel %vm9568_vm3, %v2885_v39, %v10844_v37 }
 0x1f4   : > { %v2921_v53 = vshll.u32 %v10889_v58, 16  ;;  %v2933_v62 = vrot.slane %v2932_v55, 4  ;;  %v2900_v12 = vsel %vm9568_vm3, %v2895_v41, %v10867_v36  ;;  %v2919_v10 = vrot.slane %v2918_v6, 4 }
 0x1f5   : > { %3883 = vrot.lane.b32.xlu0 %v8995_v23, %s9134_s20  ;;  %v10878_v34 = vpop.permute.xlu2 %3713  ;;  %v2942_v23 = vor.u32 %v2941_v46, %v10873_v13  ;;  %v2983_v46 = vshll.u32 %v10883_v35, 16  ;;  %v3267_v11 = vsel %vm9981_vm15, %v3265_v24, %v3266_v44  ;;  %v2980_v22 = vor.u32 %v2979_v21, %v2976_v48  ;;  %v10946_v48 = vld [vmem:[#allocation2 + $0x8c] sm:$0x1] }
 0x1f6   : > { %13298 = vst [vmem:[#allocation55_spill] sm:$0xff] %v10878_v34  ;;  %v2945_v34 = vshll.u32 %v10881_v17, 16  ;;  %v2923_v14 = vrot.slane %v2921_v53, 5  ;;  %v2962_v37 = vsel %vm9568_vm3, %v2957_v54, %v10864_v1  ;;  %v2972_v24 = vsel %vm9568_vm3, %v2967_v16, %v2971_v49  ;;  %v3146_v16 = vld [vmem:[#allocation2 + $0x54] sm:$0xe] }
 0x1f7   : > { %v10885_v20 = vpop.permute.xlu0 %3691  ;;  %v2943_v52 = vrot.slane %v2942_v23, 4  ;;  %v2985_v44 = vrot.slane %v2983_v46, 5  ;;  %v2989_v39 = vrot.slane %v2987_v30, 4  ;;  %v3989_v36 = vunpack.c.l.b16 %v3264_v40 }
 0x1f8   : > { %13299 = vst [vmem:[#allocation56_spill] sm:$0xff] %v10885_v20  ;;  %3945 = vrot.lane.b32.xlu1 %v13300_v18, %s9135_s21  ;;  %v8998_v20 = vld [vmem:[#allocation2 + $0xc0] sm:$0xff]  ;;  %v2947_v27 = vrot.slane %v2945_v34, 5  ;;  %v2909_v18 = vrot.slane %v2908_v19, 4  ;;  %v3990_v41 = vunpack.c.l.b16 %v3267_v11  ;;  %v10929_v55 = vunpack.c.l.b16 %v2890_v4 }
 0x1f9   : > { %v10933_v19 = vunpack.c.l.b16 %v2900_v12  ;;  %v2938_v1 = vsel %vm9568_vm3, %v2933_v62, %v10873_v13  ;;  %v3910_v6 = vunpack.c.l.b16 %v2972_v24  ;;  %v2924_v53 = vsel %vm9568_vm3, %v2919_v10, %v2923_v14  ;;  %v8999_v13 = vld [vmem:[#allocation2 + $0xcc] sm:$0xff] }
 0x1fa   : > { %v10899_v43 = vpop.permute.xlu1 %3705  ;;  %v2948_v30 = vsel %vm9568_vm3, %v2943_v52, %v2947_v27  ;;  %v2914_v54 = vsel %vm9568_vm3, %v2909_v18, %v10875_v50  ;;  %v2981_v21 = vrot.slane %v2980_v22, 4  ;;  %v3928_v49 = vpack.c.b16 %v10906_v8, %v10842_v32  ;;  %v2729_v18 = vld [vmem:[#allocation2 + $0x90] sm:$0xf] }
 0x1fb   : > { %13301 = vst [vmem:[#allocation57_spill] sm:$0xff] %v10899_v43  ;;  %3889 = vrot.lane.b32.xlu2 %v8998_v20, %s9134_s20  ;;  %v3929_v20 = vpack.c.b16 %v10829_v3, %v10823_v47  ;;  %v3145_v47 = vld [vmem:[#allocation2 + $0x48] sm:$0xe]  ;;  %v3909_v3 = vunpack.c.l.b16 %v2962_v37  ;;  %v13304_v46 = vunpack.c.l.b16 %v10811_v60  ;;  %v13305_v50 = vunpack.c.l.b16 %v10833_v57  ;;  %v446_v43 = vld [vmem:[#allocation2 + $0xd4] sm:$0x1] }
 0x1fc   : > { %v2990_v40 = vor.u32 %v2989_v39, %v2985_v44  ;;  %v2993_v11 = vshll.u32 %v10946_v48, 16  ;;  %v10959_v62 = vunpack.c.l.b16 %v2948_v30  ;;  %v10961_v52 = vunpack.c.l.b16 %v2914_v54 }
 0x1fd   : > { %3885 = vrot.lane.b32.xlu0 %v8996_v56, %s9134_s20  ;;  %v10925_v34 = vpop.permute.xlu2 %3767  ;;  %v4008_v42 = vpack.c.b16 %v13305_v50, %v13304_v46  ;;  %v10957_v56 = vunpack.c.l.b16 %v2938_v1  ;;  %v3235_v27 = vrot.slane %v10713_v45, 5  ;;  %v10966_v60 = vunpack.c.l.b16 %v2924_v53  ;;  %v2751_v50 = vld [vmem:[#allocation2 + $0x98] sm:$0x1] }
 0x1fe   : > { %v8455_v57 = vrot.slane %v3145_v47, 9  ;;  %v8456_v32 = vrot.slane %v3146_v16, 9  ;;  %v3242_v8 = vrot.slane %v10791_v59, 5  ;;  %v3933_v12 = vpack.c.b16 %v3910_v6, %v3909_v3  ;;  %v3150_v47 = vld [vmem:[#allocation2 + $0x84] sm:$0xe] }
 0x1ff   : > { %v10931_v23 = vpop.permute.xlu0 %3697  ;;  %v10969_v10 = vpack.c.b16 %v3990_v41, %v3989_v36  ;;  %v2986_v22 = vsel %vm9568_vm3, %v2981_v21, %v2985_v44  ;;  %v2991_v45 = vrot.slane %v2990_v40, 4  ;;  %v2995_v37 = vrot.slane %v2993_v11, 5  ;;  %v10994_v6 = vld [vmem:[#allocation2 + $0x60] sm:$0xe]  ;;  %v3151_v21 = vld [vmem:[#allocation2 + $0x90] sm:$0xe] }
 0x200   : > { %13303 = vst [vmem:[#allocation58_spill] sm:$0xff] %v10931_v23  ;;  %3949 = vrot.lane.b32.xlu1 %v3929_v20, %s9135_s21  ;;  %v2998_v24 = vshrl.u32 %v2729_v18, 16  ;;  %v3001_v39 = vshll.u32 %v2729_v18, 16  ;;  %v3932_v20 = vpack.c.b16 %v10959_v62, %v10957_v56  ;;  %v3237_v59 = vrot.slane %v3235_v27, 4 }
 0x201   : > { %v3238_v36 = vrot.slane %v10754_v9, 5  ;;  %v3270_v41 = vrot.slane %v10883_v35, 5  ;;  %v10984_v30 = vunpack.c.l.b16 %v2986_v22  ;;  %v10988_v54 = vsel %vm9981_vm15, %v8455_v57, %v3235_v27 }
 0x202   : > { %v10955_v4 = vpop.permute.xlu1 %3711  ;;  %v10992_v3 = vsel %vm9981_vm15, %v8456_v32, %v3242_v8  ;;  %v2996_v46 = vsel %vm9568_vm3, %v2991_v45, %v2995_v37  ;;  %v3000_v40 = vrot.slane %v2998_v24, 4  ;;  %v3003_v11 = vrot.slane %v3001_v39, 5 }
 0x203   : > { %13306 = vst [vmem:[#allocation59_spill] sm:$0xff] %v10955_v4  ;;  %4025 = vrot.lane.b32.xlu2 %v10816_v31, %s9136_s22  ;;  %v2730_v31 = vld [vmem:[#allocation2 + $0x94] sm:$0xf]  ;;  %v3245_v56 = vrot.slane %v10836_v38, 5  ;;  %v3239_v27 = vsel %vm9981_vm15, %v3237_v59, %v3238_v36  ;;  %v8460_v18 = vrot.slane %v3150_v47, 9  ;;  %v3273_v57 = vrot.slane %v10946_v48, 5 }
 0x204   : > { %v3007_v35 = vshll.u32 %v2730_v31, 16  ;;  %v3011_v53 = vshrl.u32 %v2730_v31, 16  ;;  %v3277_v16 = vrot.slane %v2730_v31, 5  ;;  %v3981_v32 = vunpack.c.l.b16 %v10988_v54  ;;  %v2731_v36 = vld [vmem:[#allocation2 + $0x9c] sm:$0xf] }
 0x205   : > { %3891 = vrot.lane.b32.xlu0 %v8999_v13, %s9134_s20  ;;  %v10996_v9 = vpop.permute.xlu2 %3773  ;;  %v3244_v13 = vrot.slane %v3242_v8, 4  ;;  %v8461_v8 = vrot.slane %v3151_v21, 9  ;;  %v3280_v24 = vrot.slane %v2751_v50, 5  ;;  %v11014_v39 = vunpack.c.l.b16 %v2996_v46  ;;  %v2735_v54 = vld [vmem:[#allocation2 + $0xb4] sm:$0xf] }
 0x206   : > { %13307 = vst [vmem:[#allocation60_spill] sm:$0xff] %v10996_v9  ;;  %v11011_v37 = vrot.slane %v3007_v35, 5  ;;  %v3013_v38 = vrot.slane %v3011_v53, 4  ;;  %v3279_v31 = vrot.slane %v3277_v16, 4  ;;  %v3982_v59 = vunpack.c.l.b16 %v3239_v27  ;;  %v11020_v47 = vld [vmem:[#allocation2 + $0xb8] sm:$0xf] }
 0x207   : > { %v10980_v1 = vpop.permute.xlu0 %3703  ;;  %v3004_v48 = vor.u32 %v3003_v11, %v3000_v40  ;;  %v3271_v35 = vsel %vm9981_vm15, %v8460_v18, %v3270_v41  ;;  %v3070_v21 = vshrl.u32 %v2735_v54, 16  ;;  %v3017_v27 = vshll.u32 %v2751_v50, 16  ;;  %v11030_v11 = vld [vmem:[#allocation2 + $0xa0] sm:$0xf] }
 0x208   : > { %4027 = vrot.lane.b32.xlu1 %v4008_v42, %s9136_s22  ;;  %v3272_v42 = vrot.slane %v3270_v41, 4  ;;  %v3278_v40 = vsel %vm9981_vm15, %v8461_v8, %v3277_v16  ;;  %v3014_v41 = vor.u32 %v3013_v38, %v11011_v37  ;;  %v3281_v18 = vsel %vm9981_vm15, %v3279_v31, %v3280_v24 }
 0x209   : > { %v3005_v45 = vrot.slane %v3004_v48, 4  ;;  %v3031_v44 = vshll.u32 %v11030_v11, 16  ;;  %v3072_v14 = vrot.slane %v3070_v21, 4  ;;  %v13310_v31 = vpack.c.b16 %v10933_v19, %v10929_v55 }
 0x20a   : > { %v11002_v62 = vpop.permute.xlu1 %3765  ;;  %v3274_v53 = vsel %vm9981_vm15, %v3272_v42, %v3273_v57  ;;  %v3022_v42 = vshrl.u32 %v2731_v36, 16  ;;  %v3025_v57 = vshll.u32 %v2731_v36, 16  ;;  %v3993_v24 = vunpack.c.l.b16 %v3278_v40 }
 0x20b   : > { %3957 = vrot.lane.b32.xlu2 %v3933_v12, %s9135_s21  ;;  %v11018_v12 = vsel %vm9981_vm15, %v3244_v13, %v3245_v56  ;;  %v3079_v13 = vshll.u32 %v11020_v47, 16  ;;  %v3083_v56 = vshrl.u32 %v11020_v47, 16  ;;  %v3992_v50 = vunpack.c.l.b16 %v3274_v53 }
 0x20c   : > { %v3994_v36 = vunpack.c.l.b16 %v3281_v18  ;;  %v3015_v53 = vrot.slane %v3014_v41, 4  ;;  %v3019_v16 = vrot.slane %v3017_v27, 5  ;;  %v3024_v4 = vrot.slane %v3022_v42, 4  ;;  %v2737_v18 = vld [vmem:[#allocation2 + $0xc0] sm:$0xf] }
 0x20d   : > { %3947 = vrot.lane.b32.xlu0 %v3928_v49, %s9135_s21  ;;  %v3073_v49 = vshll.u32 %v2735_v54, 16  ;;  %v3991_v54 = vunpack.c.l.b16 %v3271_v35  ;;  %v11039_v8 = vpop.permute.xlu2 %3779  ;;  %v11049_v48 = vrot.slane %v3079_v13, 5  ;;  %v3085_v35 = vrot.slane %v3083_v56, 4  ;;  %v11062_v56 = vld [vmem:[#allocation2 + $0xbc] sm:$0x1] }
 0x20e   : > { %13309 = vst [vmem:[#allocation62_spill] sm:$0xff] %v11039_v8  ;;  %v3027_v8 = vrot.slane %v3025_v57, 5  ;;  %v3934_v21 = vpack.c.b16 %v11014_v39, %v10984_v30  ;;  %v3010_v55 = vsel %vm9568_vm3, %v3005_v45, %v11011_v37  ;;  %v4009_v40 = vpack.c.b16 %v3982_v59, %v3981_v32  ;;  %v11068_v39 = vld [vmem:[#allocation2 + $0xa4] sm:$0x1]  ;;  %v2733_v57 = vld [vmem:[#allocation2 + $0xa8] sm:$0xf] }
 0x20f   : > { %v11026_v46 = vpop.permute.xlu0 %3709  ;;  %v3075_v38 = vrot.slane %v3073_v49, 5  ;;  %v11060_v13 = vrot.slane %v3031_v44, 5  ;;  %v11066_v42 = vpack.c.b16 %v3992_v50, %v3991_v54  ;;  %v4015_v30 = vpack.c.b16 %v3994_v36, %v3993_v24  ;;  %v11078_v54 = vld [vmem:[#allocation2 + $0xc4] sm:$0xf]  ;;  %v11082_v36 = vld [vmem:[#allocation2 + $0x9c] sm:$0xe] }
 0x210   : > { %13308 = vst [vmem:[#allocation61_spill] sm:$0xff] %v11026_v46  ;;  %3955 = vrot.lane.b32.xlu1 %v3932_v20, %s9135_s21  ;;  %v3035_v20 = vshrl.u32 %v11030_v11, 16  ;;  %v3086_v45 = vor.u32 %v3085_v35, %v11049_v48  ;;  %v3089_v37 = vshll.u32 %v11062_v56, 16  ;;  %v3020_v44 = vsel %vm9568_vm3, %v3015_v53, %v3019_v16 }
 0x211   : > { %v3076_v41 = vor.u32 %v3075_v38, %v3072_v14  ;;  %v3913_v32 = vunpack.c.l.b16 %v3010_v55  ;;  %v3028_v14 = vor.u32 %v3027_v8, %v3024_v4  ;;  %v3041_v59 = vshll.u32 %v11068_v39, 16 }
 0x212   : > { %v11041_v22 = vpop.permute.xlu1 %3771  ;;  %v3037_v27 = vrot.slane %v3035_v20, 4  ;;  %v11076_v20 = vld [vmem:[#allocation2 + $0xac] sm:$0xf]  ;;  %v3094_v50 = vshrl.u32 %v2737_v18, 16  ;;  %v3097_v38 = vshll.u32 %v2737_v18, 16  ;;  %v3107_v24 = vshrl.u32 %v11078_v54, 16 }
 0x213   : > { %3951 = vrot.lane.b32.xlu2 %v13310_v31, %s9135_s21  ;;  %v3103_v31 = vshll.u32 %v11078_v54, 16  ;;  %v3077_v53 = vrot.slane %v3076_v41, 4  ;;  %v3046_v4 = vshrl.u32 %v2733_v57, 16  ;;  %v3049_v8 = vshll.u32 %v2733_v57, 16  ;;  %v2739_v57 = vld [vmem:[#allocation2 + $0xcc] sm:$0xf] }
 0x214   : > { %v3038_v16 = vor.u32 %v3037_v27, %v11060_v13  ;;  %v3914_v55 = vunpack.c.l.b16 %v3020_v44  ;;  %v3091_v49 = vrot.slane %v3089_v37, 5  ;;  %v3055_v18 = vshll.u32 %v11076_v20, 16 }
 0x215   : > { %4037 = vrot.lane.b32.xlu0 %v10969_v10, %s9136_s22  ;;  %v11089_v19 = vpop.permute.xlu2 %3785  ;;  %v3043_v46 = vrot.slane %v3041_v59, 5  ;;  %v3059_v23 = vshrl.u32 %v11076_v20, 16  ;;  %v13314_v27 = vpack.c.b16 %v10966_v60, %v10961_v52  ;;  %v3099_v41 = vrot.slane %v3097_v38, 5 }
 0x216   : > { %13313 = vst [vmem:[#allocation65_spill] sm:$0xff] %v11089_v19  ;;  %v3109_v37 = vrot.slane %v3107_v24, 4  ;;  %v3039_v44 = vrot.slane %v3038_v16, 4  ;;  %v3048_v59 = vrot.slane %v3046_v4, 4  ;;  %v3051_v19 = vrot.slane %v3049_v8, 5 }
 0x217   : > { %v11064_v10 = vpop.permute.xlu0 %3715  ;;  %v11106_v52 = vrot.slane %v3055_v18, 5  ;;  %v3284_v60 = vrot.slane %v11030_v11, 5  ;;  %v447_v38 = vsel %vm9295_vm6, 0, %v446_v43  ;;  %v3935_v24 = vpack.c.b16 %v3914_v55, %v3913_v32  ;;  %v11125_v18 = vld [vmem:[#allocation2 + $0xb0] sm:$0x1] }
 0x218   : > { %13311 = vst [vmem:[#allocation63_spill] sm:$0xff] %v11064_v10  ;;  %4029 = vrot.lane.b32.xlu1 %v4009_v40, %s9136_s22  ;;  %v3087_v40 = vrot.slane %v3086_v45, 4  ;;  %v3029_v10 = vrot.slane %v3028_v14, 4  ;;  %v11097_v45 = vrot.slane %v3103_v31, 5  ;;  %v3082_v14 = vsel %vm9568_vm3, %v3077_v53, %v11049_v48  ;;  %v11111_v31 = vld [vmem:[#allocation2 + $0xd0] sm:$0xf] }
 0x219   : > { %v3061_v16 = vrot.slane %v3059_v23, 4  ;;  %v11117_v53 = vld [vmem:[#allocation2 + $0xc8] sm:$0x1]  ;;  %448 = vst [vmem:[#allocation2 + $0xd4] sm:$0x1] %v447_v38  ;;  %v3121_v43 = vshll.u32 %v2739_v57, 16  ;;  %v3919_v32 = vunpack.c.l.b16 %v3082_v14 }
 0x21a   : > { %v11084_v35 = vpop.permute.xlu1 %3777  ;;  %v3092_v9 = vsel %vm9568_vm3, %v3087_v40, %v3091_v49  ;;  %v3034_v48 = vsel %vm9568_vm3, %v3029_v10, %v11060_v13  ;;  %v3118_v49 = vshrl.u32 %v2739_v57, 16  ;;  %v3110_v11 = vor.u32 %v3109_v37, %v11097_v45 }
 0x21b   : > { %13312 = vst [vmem:[#allocation64_spill] sm:$0xff] %v11084_v35  ;;  %3959 = vrot.lane.b32.xlu2 %v3934_v21, %s9135_s21  ;;  %v8462_v35 = vrot.slane %v11082_v36, 9  ;;  %v3096_v21 = vrot.slane %v3094_v50, 4  ;;  %v3113_v8 = vshll.u32 %v11117_v53, 16  ;;  %v3920_v55 = vunpack.c.l.b16 %v3092_v9 }
 0x21c   : > { %v3127_v23 = vshll.u32 %v11111_v31, 16  ;;  %v3052_v13 = vor.u32 %v3051_v19, %v3048_v59  ;;  %v3065_v10 = vshll.u32 %v11125_v18, 16  ;;  %v3120_v37 = vrot.slane %v3118_v49, 4 }
 0x21d   : > { %3953 = vrot.lane.b32.xlu0 %v13314_v27, %s9135_s21  ;;  %v3100_v4 = vor.u32 %v3099_v41, %v3096_v21  ;;  %v3286_v27 = vrot.slane %v3284_v60, 4  ;;  %v3287_v21 = vrot.slane %v11068_v39, 5  ;;  %v3062_v41 = vor.u32 %v3061_v16, %v11106_v52  ;;  %v11135_v38 = vpop.permute.xlu2 %3791 }
 0x21e   : > { %v3123_v57 = vrot.slane %v3121_v43, 5  ;;  %v3915_v9 = vunpack.c.l.b16 %v3034_v48  ;;  %v3111_v14 = vrot.slane %v3110_v11, 4  ;;  %v3115_v50 = vrot.slane %v3113_v8, 5 }
 0x21f   : > { %v11102_v36 = vpop.permute.xlu0 %3769  ;;  %v3938_v59 = vpack.c.b16 %v3920_v55, %v3919_v32  ;;  %v3053_v49 = vrot.slane %v3052_v13, 4  ;;  %v3285_v43 = vsel %vm9981_vm15, %v8462_v35, %v3284_v60  ;;  %v3063_v11 = vrot.slane %v3062_v41, 4 }
 0x220   : > { %4041 = vrot.lane.b32.xlu1 %v4015_v30, %s9136_s22  ;;  %v3044_v30 = vsel %vm9568_vm3, %v3039_v44, %v3043_v46  ;;  %v3131_v46 = vshrl.u32 %v11111_v31, 16  ;;  %v3101_v44 = vrot.slane %v3100_v4, 4  ;;  %v11145_v48 = vld [vmem:[#allocation2 + $0xd4] sm:$0x1]  ;;  %v3291_v4 = vrot.slane %v11076_v20, 5 }
 0x221   : > { %v3916_v19 = vunpack.c.l.b16 %v3044_v30  ;;  %v3067_v8 = vrot.slane %v3065_v10, 5  ;;  %v3124_v30 = vor.u32 %v3123_v57, %v3120_v37  ;;  %v13317_v32 = vrot.slane %v10854_v29, 5 }
 0x222   : > { %v11121_v40 = vpop.permute.xlu1 %3783  ;;  %v3133_v39 = vrot.slane %v3131_v46, 4  ;;  %v13319_v13 = vunpack.c.l.b16 %v11018_v12  ;;  %v3106_v60 = vsel %vm9568_vm3, %v3101_v44, %v11097_v45  ;;  %v3116_v20 = vsel %vm9568_vm3, %v3111_v14, %v3115_v50 }
 0x223   : > { %13316 = vst [vmem:[#allocation6_spill] sm:$0xff] %v11121_v40  ;;  %3961 = vrot.lane.b32.xlu2 %v3935_v24, %s9135_s21  ;;  %v11137_v24 = vrot.slane %v3127_v23, 5  ;;  %v3153_v40 = vld [vmem:[#allocation2 + $0xa8] sm:$0xe]  ;;  %v3251_v55 = vrot.slane %v13317_v32, 4  ;;  %v13318_v23 = vunpack.c.l.b16 %v10992_v3  ;;  %v3995_v10 = vunpack.c.l.b16 %v3285_v43 }
 0x224   : > { %v3137_v57 = vshll.u32 %v11145_v48, 16  ;;  %v3936_v3 = vpack.c.b16 %v3916_v19, %v3915_v9  ;;  %v3058_v12 = vsel %vm9568_vm3, %v3053_v49, %v11106_v52  ;;  %v3293_v45 = vrot.slane %v3291_v4, 4  ;;  %v3156_v52 = vld [vmem:[#allocation2 + $0xcc] sm:$0xe] }
 0x225   : > { %4039 = vrot.lane.b32.xlu0 %v11066_v42, %s9136_s22  ;;  %v3288_v42 = vsel %vm9981_vm15, %v3286_v27, %v3287_v21  ;;  %v4010_v35 = vpack.c.b16 %v13319_v13, %v13318_v23  ;;  %v8463_v27 = vrot.slane %v3153_v40, 9  ;;  %v3134_v37 = vor.u32 %v3133_v39, %v11137_v24 }
 0x226   : > { %v3996_v41 = vunpack.c.l.b16 %v3288_v42  ;;  %v3294_v46 = vrot.slane %v11125_v18, 5  ;;  %v3068_v40 = vsel %vm9568_vm3, %v3063_v11, %v3067_v8  ;;  %v3921_v44 = vunpack.c.l.b16 %v3106_v60  ;;  %v4341_v18 = vld [vmem:[%s13179_s2 + $0x20] sm:$0xf] }
 0x227   : > { %v11139_v16 = vpop.permute.xlu0 %3775  ;;  %v3922_v14 = vunpack.c.l.b16 %v3116_v20  ;;  %v3125_v50 = vrot.slane %v3124_v30, 4  ;;  %v3292_v9 = vsel %vm9981_vm15, %v8463_v27, %v3291_v4  ;;  %v3312_v19 = vrot.slane %v11111_v31, 5 }
 0x228   : > { %3967 = vrot.lane.b32.xlu1 %v3938_v59, %s9135_s21  ;;  %v4016_v59 = vpack.c.b16 %v3996_v41, %v3995_v10  ;;  %v3135_v39 = vrot.slane %v3134_v37, 4  ;;  %v3139_v43 = vrot.slane %v3137_v57, 5  ;;  %v3917_v42 = vunpack.c.l.b16 %v3058_v12 }
 0x229   : > { %v3918_v11 = vunpack.c.l.b16 %v3068_v40  ;;  %v13320_v8 = vmov %v13317_v32  ;;  %v13321_v30 = vrot.slane %v10994_v6, 9  ;;  %v3295_v31 = vsel %vm9981_vm15, %v3293_v45, %v3294_v46  ;;  %v11188_v32 = vpop.permute.xlu2 %3861  ;;  %v3148_v40 = vld [vmem:[#allocation2 + $0x6c] sm:$0xe] }
 0x22a   : > { %v11160_v21 = vpop.permute.xlu1 %3789  ;;  %v3939_v23 = vpack.c.b16 %v3922_v14, %v3921_v44  ;;  %v3130_v13 = vsel %vm9568_vm3, %v3125_v50, %v11137_v24  ;;  %v3997_v6 = vunpack.c.l.b16 %v3292_v9  ;;  %v8466_v60 = vrot.slane %v3156_v52, 9 }
 0x22b   : > { %4031 = vrot.lane.b32.xlu2 %v4010_v35, %s9136_s22  ;;  %v3250_v4 = vsel %vm9981_vm15, %v13321_v30, %v13320_v8  ;;  %v13322_v35 = vrot.slane %v10889_v58, 5  ;;  %v3314_v20 = vrot.slane %v3312_v19, 4  ;;  %v3315_v27 = vrot.slane %v11145_v48, 5  ;;  %v3154_v58 = vld [vmem:[#allocation2 + $0xb4] sm:$0xe] }
 0x22c   : > { %v4359_v10 = vunpack.c.l.b16 %v4341_v18  ;;  %v3140_v37 = vsel %vm9568_vm3, %v3135_v39, %v3139_v43  ;;  %v3998_v57 = vunpack.c.l.b16 %v3295_v31  ;;  %v3937_v24 = vpack.c.b16 %v3918_v11, %v3917_v42 }
 0x22d   : > { %3963 = vrot.lane.b32.xlu0 %v3936_v3, %s9135_s21  ;;  %v3253_v29 = vsel %vm9981_vm15, %v3251_v55, %v13322_v35  ;;  %v3298_v3 = vrot.slane %v11020_v47, 5  ;;  %v3923_v12 = vunpack.c.l.b16 %v3130_v13  ;;  %v3985_v45 = vunpack.c.l.b16 %v3250_v4  ;;  %v9002_v35 = vld [vmem:[%s13179_s2 + $0x10] sm:$0xff] }
 0x22e   : > { %v4364_v55 = vpack.c.b16 %v4359_v10, %v4359_v10  ;;  %v3986_v46 = vunpack.c.l.b16 %v3253_v29  ;;  %v3256_v48 = vrot.slane %v10846_v51, 5  ;;  %v3924_v44 = vunpack.c.l.b16 %v3140_v37  ;;  %v9003_v51 = vld [vmem:[%s13179_s2 + $0x18] sm:$0xff]  ;;  %v3155_v10 = vld [vmem:[#allocation2 + $0xc0] sm:$0xe] }
 0x22f   : > { %v11178_v49 = vpop.permute.xlu0 %3781  ;;  %v3313_v14 = vsel %vm9981_vm15, %v8466_v60, %v3312_v19  ;;  %v3316_v47 = vsel %vm9981_vm15, %v3314_v20, %v3315_v27  ;;  %v4017_v9 = vpack.c.b16 %v3998_v57, %v3997_v6  ;;  %v3300_v39 = vrot.slane %v3298_v3, 4  ;;  %v9001_v37 = vld [vmem:[%s13179_s2 + $0x8] sm:$0xff] }
 0x230   : > { %4043 = vrot.lane.b32.xlu1 %v4016_v59, %s9136_s22  ;;  %v4404_v50 = vsel %vm4402_vm5, %v4364_v55, 0  ;;  %v8464_v59 = vrot.slane %v3154_v58, 9  ;;  %v3301_v43 = vrot.slane %v11062_v56, 5  ;;  %v8458_v18 = vrot.slane %v3148_v40, 9 }
 0x231   : > { %4409 = vmatpush.bf16.msra.mxu0 %v4404_v50  ;;  %9052 = vmatpush.bf16.msra.mxu2 %v4404_v50  ;;  %v3258_v19 = vrot.slane %v3256_v48, 4  ;;  %v3259_v42 = vrot.slane %v10881_v17, 5  ;;  %v4003_v11 = vunpack.c.l.b16 %v3313_v14  ;;  %v4004_v8 = vunpack.c.l.b16 %v3316_v47  ;;  %v11219_v31 = vpop.permute.xlu2 %3867 }
 0x232   : > { %v11199_v41 = vpop.permute.xlu1 %3795  ;;  %v3940_v30 = vpack.c.b16 %v3924_v44, %v3923_v12  ;;  %v4011_v4 = vpack.c.b16 %v3986_v46, %v3985_v45  ;;  %v3302_v13 = vsel %vm9981_vm15, %v3300_v39, %v3301_v43  ;;  %v3257_v17 = vsel %vm9981_vm15, %v8458_v18, %v3256_v48  ;;  %v9000_v46 = vld [vmem:[%s13179_s2] sm:$0xff]  ;;  %v8952_v18 = vld [vmem:[#allocation2] sm:$0xff] }
 0x233   : > { %3969 = vrot.lane.b32.xlu2 %v3939_v23, %s9135_s21  ;;  %v3299_v23 = vsel %vm9981_vm15, %v8464_v59, %v3298_v3  ;;  %v3260_v29 = vsel %vm9981_vm15, %v3258_v19, %v3259_v42  ;;  %v4020_v6 = vpack.c.b16 %v4004_v8, %v4003_v11  ;;  %v3305_v60 = vrot.slane %v11078_v54, 5  ;;  %v13323_v11 = vld [vmem:[#allocation14_spill] sm:$0xff] }
 0x234   : > { %v3999_v20 = vunpack.c.l.b16 %v3299_v23  ;;  %v4000_v27 = vunpack.c.l.b16 %v3302_v13  ;;  %v3987_v3 = vunpack.c.l.b16 %v3257_v17  ;;  %v8465_v58 = vrot.slane %v3155_v10, 9  ;;  %v13325_v10 = vld [vmem:[#allocation24_spill] sm:$0xff] }
 0x235   : > { %3965 = vrot.lane.b32.xlu0 %v3937_v24, %s9135_s21  ;;  %4410 = vmatpush.bf16.msra.mxu0 %v9003_v51  ;;  %v3988_v24 = vunpack.c.l.b16 %v3260_v29  ;;  %v3307_v55 = vrot.slane %v3305_v60, 4  ;;  %v3308_v54 = vrot.slane %v11117_v53, 5  ;;  %vm4053_vm6 = vcmask 64512  }
 0x236   : > { %9053 = vmatpush.bf16.msra.mxu2 %v9003_v51  ;;  %v4018_v12 = vpack.c.b16 %v4000_v27, %v3999_v20  ;;  %v3306_v44 = vsel %vm9981_vm15, %v8465_v58, %v3305_v60  ;;  %v4056_v8 = vsel %vm4053_vm6, %v8952_v18, %v13323_v11  ;;  %vm13202_vm5 = vcmask 523264   ;;  %v8953_v60 = vld [vmem:[#allocation2 + $0xc] sm:$0xff] }
 0x237   : > { %v11215_v52 = vpop.permute.xlu0 %3787  ;;  %v4012_v40 = vpack.c.b16 %v3988_v24, %v3987_v3  ;;  %v3309_v53 = vsel %vm9981_vm15, %v3307_v55, %v3308_v54  ;;  %v4001_v47 = vunpack.c.l.b16 %v3306_v44  ;;  %v13324_v20 = vld [vmem:[#allocation11_spill] sm:$0xff] }
 0x238   : > { %4045 = vrot.lane.b32.xlu1 %v4017_v9, %s9136_s22  ;;  %v4002_v50 = vunpack.c.l.b16 %v3309_v53  ;;  %v4059_v27 = vsel %vm4053_vm6, %v8953_v60, %v13324_v20  ;;  %v13326_v53 = vld [vmem:[#allocation9_spill] sm:$0xff] }
 0x239   : > { %4411 = vmatpush.bf16.msra.mxu0 %v9002_v35  ;;  %v11250_v48 = vpop.permute.xlu2 %3873 }
 0x23a   : > { %v11221_v56 = vpop.permute.xlu1 %3865  ;;  %9054 = vmatpush.bf16.msra.mxu2 %v9002_v35  ;;  %v4019_v59 = vpack.c.b16 %v4002_v50, %v4001_v47 }
 0x23b   : > { %4033 = vrot.lane.b32.xlu2 %v4011_v4, %s9136_s22 }
 0x23d   : > { %3971 = vrot.lane.b32.xlu0 %v3940_v30, %s9135_s21  ;;  %4412 = vmatpush.bf16.msra.mxu0 %v9001_v37  ;;  %v4104_v30 = vsel %vm4102_vm14, %v4056_v8, %v10472_v26  ;;  %v8960_v8 = vld [vmem:[#allocation2 + $0x60] sm:$0xff] }
 0x23e   : > { %9055 = vmatpush.bf16.msra.mxu2 %v9001_v37  ;;  %v4137_v4 = vsel %vm4135_vm13, %v4104_v30, %v10576_v15 }
 0x23f   : > { %v11240_v57 = vpop.permute.xlu0 %3793  ;;  %v4170_v13 = vsel %vm4168_vm0, %v4137_v4, %v10856_v2 }
 0x240   : > { %4051 = vrot.lane.b32.xlu1 %v4020_v6, %s9136_s22  ;;  %v4203_v35 = vsel %vm13201_vm11, %v4170_v13, %v11002_v62  ;;  %v13328_v13 = vld [vmem:[#allocation43_spill] sm:$0xff] }
 0x241   : > { %4413 = vmatpush.bf16.msra.mxu0 %v9000_v46  ;;  %v3942_v39 = vpop.permute.xlu2 %3941  ;;  %v4236_v17 = vsel %vm4234_vm1, %v4203_v35, %v11188_v32  ;;  %v4106_v32 = vsel %vm4102_vm14, %v4059_v27, %v13325_v10  ;;  %v13331_v27 = vld [vmem:[#allocation33_spill] sm:$0xff] }
 0x242   : > { %v11244_v45 = vpop.permute.xlu1 %3871  ;;  %9056 = vmatpush.bf16.msra.mxu2 %v9000_v46  ;;  %v4269_v26 = vsel %vm4267_vm12, %v4236_v17, %v3942_v39  ;;  %v4139_v37 = vsel %vm4135_vm13, %v4106_v32, %v10670_v25  ;;  %v8954_v25 = vld [vmem:[#allocation2 + $0x18] sm:$0xff] }
 0x243   : > { %4047 = vrot.lane.b32.xlu2 %v4018_v12, %s9136_s22  ;;  %v4172_v3 = vsel %vm4168_vm0, %v4139_v37, %v10774_v5  ;;  %v4062_v5 = vsel %vm4053_vm6, %v8954_v25, %v13326_v53  ;;  %v13332_v37 = vld [vmem:[#allocation41_spill] sm:$0xff]  ;;  %v8961_v25 = vld [vmem:[#allocation2 + $0x6c] sm:$0xff] }
 0x244   : > { %v4205_v24 = vsel %vm13201_vm11, %v4172_v3, %v10925_v34  ;;  %v4108_v34 = vsel %vm4102_vm14, %v4062_v5, %v10553_v0  ;;  %v13334_v5 = vld [vmem:[#allocation30_spill] sm:$0xff] }
 0x245   : > { %4035 = vrot.lane.b32.xlu0 %v4012_v40, %s9136_s22 }
 0x247   : > { %v3864_v14 = vpop.permute.xlu0 %3863 }
 0x248   : > { %v4238_v58 = vsel %vm4234_vm1, %v4205_v24, %v3864_v14  ;;  %v4141_v14 = vsel %vm4135_vm13, %v4108_v34, %v10641_v7  ;;  %v4083_v34 = vsel %vm4053_vm6, %v8961_v25, %v13334_v5 }
 0x249   : > { %v11266_v42 = vpop.permute.xlu2 %3881 }
 0x24a   : > { %v11257_v9 = vpop.permute.xlu1 %3877 }
 0x24d   : > { %4049 = vrot.lane.b32.xlu0 %v4019_v59, %s9136_s22  ;;  %v4174_v59 = vsel %vm4168_vm0, %v4141_v14, %v10716_v63  ;;  %v13335_v14 = vld [vmem:[#allocation38_spill] sm:$0xff] }
 0x24e   : > { %v4207_v39 = vsel %vm13201_vm11, %v4174_v59, %v11102_v36  ;;  %v13336_v59 = vld [vmem:[#allocation19_spill] sm:$0xff] }
 0x24f   : > { %v11260_v43 = vpop.permute.xlu0 %3869  ;;  %v4240_v18 = vsel %vm4234_vm1, %v4207_v39, %v11221_v56  ;;  %v13329_v56 = vld [vmem:[#allocation5_spill] sm:$0xff] }
 0x251   : > { %v4024_v6 = vpop.permute.xlu2 %4023 }
 0x252   : > { %v11262_v51 = vpop.permute.xlu1 %3879 }
 0x257   : > { %v11264_v19 = vpop.permute.xlu0 %3875 }
 0x259   : > { %v11298_v55 = vpop.permute.xlu2 %3889 }
 0x25a   : > { %v3944_v23 = vpop.permute.xlu1 %3943 }
 0x25b   : > { %v4271_v54 = vsel %vm4267_vm12, %v4238_v58, %v3944_v23  ;;  %v13327_v23 = vld [vmem:[#allocation12_spill] sm:$0xff] }
 0x25c   : > { %v4304_v40 = vsel %vm13202_vm5, %v4271_v54, %v4024_v6  ;;  %v4080_v7 = vsel %vm4053_vm6, %v8960_v8, %v13327_v23  ;;  %v13330_v6 = vld [vmem:[#allocation22_spill] sm:$0xff] }
 0x25d   : > { %v4120_v63 = vsel %vm4102_vm14, %v4080_v7, %v10606_v28 }
 0x25e   : > { %v4153_v36 = vsel %vm4135_vm13, %v4120_v63, %v13328_v13  ;;  %v13338_v13 = vld [vmem:[#allocation13_spill] sm:$0xff] }
 0x25f   : > { %v4022_v29 = vpop.permute.xlu0 %4021  ;;  %v4186_v17 = vsel %vm4168_vm0, %v4153_v36, %v13329_v56  ;;  %v13340_v56 = vld [vmem:[#allocation45_spill] sm:$0xff] }
 0x260   : > { %v4302_v15 = vsel %vm13202_vm5, %v4269_v26, %v4022_v29  ;;  %v8955_v26 = vld [vmem:[#allocation2 + $0x24] sm:$0xff]  ;;  %v4219_v29 = vsel %vm13201_vm11, %v4186_v17, %v11178_v49  ;;  %v13333_v49 = vld [vmem:[#allocation56_spill] sm:$0xff] }
 0x261   : > { %8675 = vmatmul.msk.bf16.vlgmr.msra.gmra.mxu0 %vm4369_vm9, %v4302_v15  ;;  %v4026_v44 = vpop.permute.xlu2 %4025  ;;  %v4252_v15 = vsel %vm4234_vm1, %v4219_v29, %v11257_v9  ;;  %v4065_v60 = vsel %vm4053_vm6, %v8955_v26, %v13330_v6  ;;  %v13341_v26 = vld [vmem:[#allocation52_spill] sm:$0xff] }
 0x262   : > { %v11283_v2 = vpop.permute.xlu1 %3887  ;;  %v4110_v10 = vsel %vm4102_vm14, %v4065_v60, %v13331_v27  ;;  %v13342_v29 = vld [vmem:[#allocation60_spill] sm:$0xff]  ;;  %v8962_v60 = vld [vmem:[#allocation2 + $0x78] sm:$0xff] }
 0x263   : > { %v4143_v3 = vsel %vm4135_vm13, %v4110_v10, %v13332_v37  ;;  %v13343_v10 = vld [vmem:[#allocation23_spill] sm:$0xff] }
 0x264   : > { %v4176_v24 = vsel %vm4168_vm0, %v4143_v3, %v13333_v49  ;;  %v13344_v3 = vld [vmem:[#allocation34_spill] sm:$0xff] }
 0x265   : > { %v4209_v58 = vsel %vm13201_vm11, %v4176_v24, %v11041_v22  ;;  %v4122_v22 = vsel %vm4102_vm14, %v4083_v34, %v13335_v14  ;;  %v13345_v24 = vld [vmem:[#allocation50_spill] sm:$0xff] }
 0x266   : > { %v4242_v54 = vsel %vm4234_vm1, %v4209_v58, %v11219_v31  ;;  %v4155_v31 = vsel %vm4135_vm13, %v4122_v22, %v13336_v59  ;;  %v13348_v14 = vld [vmem:[#allocation10_spill] sm:$0xff] }
 0x267   : > { %v11287_v62 = vpop.permute.xlu0 %3883  ;;  %v4188_v39 = vsel %vm4168_vm0, %v4155_v31, %v10980_v1  ;;  %v13339_v1 = vld [vmem:[#allocation29_spill] sm:$0xff]  ;;  %v13349_v31 = vld [vmem:[#allocation39_spill] sm:$0xff] }
 0x269   : > { %v3958_v4 = vpop.permute.xlu2 %3957 }
 0x26a   : > { %v3946_v46 = vpop.permute.xlu1 %3945  ;;  %v4285_v20 = vsel %vm4267_vm12, %v4252_v15, %v3958_v4  ;;  %v8956_v4 = vld [vmem:[#allocation2 + $0x30] sm:$0xff] }
 0x26b   : > { %v4273_v11 = vsel %vm4267_vm12, %v4240_v18, %v3946_v46  ;;  %v4068_v36 = vsel %vm4053_vm6, %v8956_v4, %v13338_v13 }
 0x26c   : > { %v4306_v0 = vsel %vm13202_vm5, %v4273_v11, %v4026_v44  ;;  %v13337_v11 = vld [vmem:[#allocation6_spill] sm:$0xff] }
 0x26d   : > { %v4221_v8 = vsel %vm13201_vm11, %v4188_v39, %v13337_v11 }
 0x26f   : > { %v11301_v12 = vpop.permute.xlu0 %3885 }
 0x271   : > { %8676 = vmatmul.msk.bf16.gmra.mxu0 %vm4369_vm9, %v4304_v40  ;;  %v3952_v9 = vpop.permute.xlu2 %3951 }
 0x272   : > { %v3950_v50 = vpop.permute.xlu1 %3949 }
 0x277   : > { %v11307_v47 = vpop.permute.xlu0 %3891 }
 0x279   : > { %v3960_v18 = vpop.permute.xlu2 %3959 }
 0x27a   : > { %v4028_v35 = vpop.permute.xlu1 %4027 }
 0x27f   : > { %v3948_v30 = vpop.permute.xlu0 %3947 }
 0x280   : > { %v4275_v46 = vsel %vm4267_vm12, %v4242_v54, %v3948_v30  ;;  %v4254_v30 = vsel %vm4234_vm1, %v4221_v8, %v11262_v51  ;;  %v13346_v54 = vld [vmem:[#allocation57_spill] sm:$0xff] }
 0x281   : > { %8677 = vmatmul.msk.bf16.gmra.mxu0 %vm4369_vm9, %v4306_v0  ;;  %v4308_v53 = vsel %vm13202_vm5, %v4275_v46, %v4028_v35  ;;  %v4287_v0 = vsel %vm4267_vm12, %v4254_v30, %v3960_v18  ;;  %v4112_v35 = vsel %vm4102_vm14, %v4068_v36, %v13339_v1  ;;  %v13347_v46 = vld [vmem:[#allocation65_spill] sm:$0xff]  ;;  %v13350_v18 = vld [vmem:[#allocation26_spill] sm:$0xff]  ;;  %v13352_v36 = vld [vmem:[#allocation15_spill] sm:$0xff] }
 0x282   : > { %v11350_v40 = vpop.permute.xlu1 %3955  ;;  %v4145_v17 = vsel %vm4135_vm13, %v4112_v35, %v13340_v56  ;;  %v13353_v35 = vld [vmem:[#allocation21_spill] sm:$0xff] }
 0x283   : > { %v4178_v51 = vsel %vm4168_vm0, %v4145_v17, %v13341_v26  ;;  %v13354_v17 = vld [vmem:[#allocation46_spill] sm:$0xff] }
 0x284   : > { %v4211_v15 = vsel %vm13201_vm11, %v4178_v51, %v13342_v29 }
 0x285   : > { %v4244_v6 = vsel %vm4234_vm1, %v4211_v15, %v11260_v43 }
 0x287   : > { %v4038_v28 = vpop.permute.xlu0 %4037 }
 0x288   : > { %v4318_v32 = vsel %vm13202_vm5, %v4285_v20, %v4038_v28  ;;  %v4277_v20 = vsel %vm4267_vm12, %v4244_v6, %v3950_v50  ;;  %v3962_v28 = vpop.permute.xlu2 %3961  ;;  %v8958_v6 = vld [vmem:[#allocation2 + $0x48] sm:$0xff] }
 0x289   : > { %8683 = vmatmul.msk.bf16.vlgmr.msra.gmra.mxu2 %vm4369_vm9, %v4318_v32  ;;  %v4086_v32 = vsel %vm4053_vm6, %v8962_v60, %v13343_v10 }
 0x28a   : > { %v4030_v23 = vpop.permute.xlu1 %4029  ;;  %v4124_v49 = vsel %vm4102_vm14, %v4086_v32, %v13344_v3  ;;  %v13357_v32 = vld [vmem:[#allocation36_spill] sm:$0xff] }
 0x28b   : > { %v4310_v27 = vsel %vm13202_vm5, %v4277_v20, %v4030_v23  ;;  %v4157_v58 = vsel %vm4135_vm13, %v4124_v49, %v13345_v24  ;;  %v8963_v23 = vld [vmem:[#allocation2 + $0x84] sm:$0xff]  ;;  %v13358_v3 = vld [vmem:[#allocation16_spill] sm:$0xff] }
 0x28c   : > { %v4190_v43 = vsel %vm4168_vm0, %v4157_v58, %v13346_v54  ;;  %v4089_v1 = vsel %vm4053_vm6, %v8963_v23, %v13352_v36  ;;  %v13359_v49 = vld [vmem:[#allocation58_spill] sm:$0xff]  ;;  %v13360_v24 = vld [vmem:[#allocation64_spill] sm:$0xff]  ;;  %v13367_v36 = vld [vmem:[#allocation31_spill] sm:$0xff] }
 0x28d   : > { %v4223_v50 = vsel %vm13201_vm11, %v4190_v43, %v13347_v46  ;;  %v4126_v56 = vsel %vm4102_vm14, %v4089_v1, %v13353_v35  ;;  %v8964_v46 = vld [vmem:[#allocation2 + $0x90] sm:$0xff]  ;;  %v13368_v35 = vld [vmem:[#allocation47_spill] sm:$0xff] }
 0x28e   : > { %v4256_v25 = vsel %vm4234_vm1, %v4223_v50, %v11266_v42  ;;  %v13351_v42 = vld [vmem:[#allocation49_spill] sm:$0xff] }
 0x28f   : > { %v11352_v44 = vpop.permute.xlu0 %3953  ;;  %v4289_v5 = vsel %vm4267_vm12, %v4256_v25, %v3962_v28  ;;  %v13356_v28 = vld [vmem:[#allocation27_spill] sm:$0xff] }
 0x290   : > { %v4032_v59 = vpop.permute.xlu2 %4031 }
 0x291   : > { %8678 = vmatmul.msk.bf16.gmra.mxu0 %vm4369_vm9, %v4308_v53  ;;  %v8957_v53 = vld [vmem:[#allocation2 + $0x3c] sm:$0xff] }
 0x292   : > { %v4042_v37 = vpop.permute.xlu1 %4041  ;;  %v4071_v22 = vsel %vm4053_vm6, %v8957_v53, %v13348_v14  ;;  %v13361_v53 = vld [vmem:[#allocation32_spill] sm:$0xff] }
 0x293   : > { %v4322_v34 = vsel %vm13202_vm5, %v4289_v5, %v4042_v37  ;;  %v4114_v39 = vsel %vm4102_vm14, %v4071_v22, %v13349_v31  ;;  %v4092_v5 = vsel %vm4053_vm6, %v8964_v46, %v13361_v53  ;;  %v13363_v22 = vld [vmem:[#allocation42_spill] sm:$0xff]  ;;  %v4668_v46 = vld [vmem:[#allocation3 + $0x20] sm:$0x1] }
 0x294   : > { %v4147_v11 = vsel %vm4135_vm13, %v4114_v39, %v13350_v18  ;;  %v13364_v39 = vld [vmem:[#allocation61_spill] sm:$0xff] }
 0x295   : > { %v4180_v30 = vsel %vm4168_vm0, %v4147_v11, %v13351_v42 }
 0x296   : > { %v4213_v4 = vsel %vm13201_vm11, %v4180_v30, %v11139_v16  ;;  %v4159_v16 = vsel %vm4135_vm13, %v4126_v56, %v13354_v17  ;;  %v13371_v56 = vld [vmem:[#allocation54_spill] sm:$0xff] }
 0x297   : > { %v4040_v7 = vpop.permute.xlu0 %4039 }
 0x298   : > { %v4320_v63 = vsel %vm13202_vm5, %v4287_v0, %v4040_v7  ;;  %v4246_v0 = vsel %vm4234_vm1, %v4213_v4, %v11244_v45  ;;  %v11424_v26 = vpop.permute.xlu2 %3969  ;;  %v13355_v45 = vld [vmem:[#allocation53_spill] sm:$0xff] }
 0x299   : > { %8684 = vmatmul.msk.bf16.gmra.mxu2 %vm4369_vm9, %v4320_v63  ;;  %v4279_v7 = vsel %vm4267_vm12, %v4246_v0, %v3952_v9  ;;  %v4192_v51 = vsel %vm4168_vm0, %v4159_v16, %v13355_v45  ;;  %v8959_v0 = vld [vmem:[#allocation2 + $0x54] sm:$0xff]  ;;  %v8965_v16 = vld [vmem:[#allocation2 + $0x9c] sm:$0xff] }
 0x29a   : > { %v11407_v8 = vpop.permute.xlu1 %3967  ;;  %v4312_v13 = vsel %vm13202_vm5, %v4279_v7, %v4032_v59  ;;  %v4225_v9 = vsel %vm13201_vm11, %v4192_v51, %v11215_v52  ;;  %v13372_v45 = vld [vmem:[#allocation62_spill] sm:$0xff] }
 0x29b   : > { %v4258_v15 = vsel %vm4234_vm1, %v4225_v9, %v11287_v62 }
 0x29f   : > { %v3964_v63 = vpop.permute.xlu0 %3963 }
 0x2a0   : > { %v4291_v60 = vsel %vm4267_vm12, %v4258_v15, %v3964_v63  ;;  %v4034_v54 = vpop.permute.xlu2 %4033  ;;  %v13366_v63 = vld [vmem:[#allocation18_spill] sm:$0xff]  ;;  %v4665_v15 = vld [vmem:[#allocation3 + $0x14] sm:$0x1] }
 0x2a1   : > { %8679 = vmatmul.msk.bf16.gmra.mxu0 %vm4369_vm9, %v4310_v27  ;;  %v4074_v27 = vsel %vm4053_vm6, %v8958_v6, %v13356_v28  ;;  %v13374_v6 = vld [vmem:[#allocation28_spill] sm:$0xff] }
 0x2a2   : > { %v4044_v29 = vpop.permute.xlu1 %4043  ;;  %v4116_v37 = vsel %vm4102_vm14, %v4074_v27, %v13357_v32  ;;  %v13375_v27 = vld [vmem:[#allocation37_spill] sm:$0xff] }
 0x2a3   : > { %v4324_v20 = vsel %vm13202_vm5, %v4291_v60, %v4044_v29  ;;  %v4149_v52 = vsel %vm4135_vm13, %v4116_v37, %v13358_v3  ;;  %v4095_v60 = vsel %vm4053_vm6, %v8965_v16, %v13374_v6  ;;  %v13377_v37 = vld [vmem:[#allocation51_spill] sm:$0xff]  ;;  %v4671_v6 = vld [vmem:[#allocation3 + $0x2c] sm:$0x1] }
 0x2a4   : > { %v4182_v62 = vsel %vm4168_vm0, %v4149_v52, %v13359_v49 }
 0x2a5   : > { %v4215_v58 = vsel %vm13201_vm11, %v4182_v62, %v13360_v24 }
 0x2a6   : > { %v4248_v43 = vsel %vm4234_vm1, %v4215_v58, %v11250_v48  ;;  %v4610_v48 = vld [vmem:[#allocation3 + $0xc] sm:$0x1]  ;;  %v4613_v58 = vld [vmem:[#allocation3 + $0x18] sm:$0x1] }
 0x2a7   : > { %v3966_v10 = vpop.permute.xlu0 %3965  ;;  %v4281_v50 = vsel %vm4267_vm12, %v4248_v43, %v11352_v44  ;;  %v4611_v11 = vsel %vm9325_vm8, 0, %v4610_v48  ;;  %v4614_v43 = vsel %vm9325_vm8, 0, %v4613_v58  ;;  %v13383_v48 = vld [vmem:[#allocation48_spill] sm:$0xff] }
 0x2a8   : > { %v4314_v25 = vsel %vm13202_vm5, %v4281_v50, %v4034_v54  ;;  %4612 = vst [vmem:[#allocation3 + $0xc] sm:$0x1] %v4611_v11  ;;  %v4048_v62 = vpop.permute.xlu2 %4047  ;;  %v8966_v50 = vld [vmem:[#allocation2 + $0xa8] sm:$0xff] }
 0x2a9   : > { %8685 = vmatmul.msk.bf16.gmra.mxu2 %vm4369_vm9, %v4322_v34  ;;  %v13362_v34 = vld [vmem:[#allocation40_spill] sm:$0xff]  ;;  %4615 = vst [vmem:[#allocation3 + $0x18] sm:$0x1] %v4614_v43  ;;  %v13384_v11 = vld [vmem:[#allocation55_spill] sm:$0xff] }
 0x2aa   : > { %v4128_v14 = vsel %vm4102_vm14, %v4092_v5, %v13362_v34  ;;  %v4046_v30 = vpop.permute.xlu1 %4045  ;;  %v13381_v5 = vld [vmem:[#allocation20_spill] sm:$0xff] }
 0x2ab   : > { %v4161_v59 = vsel %vm4135_vm13, %v4128_v14, %v13363_v22  ;;  %v4098_v34 = vsel %vm4053_vm6, %v8966_v50, %v13381_v5  ;;  %v13382_v22 = vld [vmem:[#allocation25_spill] sm:$0xff] }
 0x2ac   : > { %v4194_v18 = vsel %vm4168_vm0, %v4161_v59, %v13364_v39  ;;  %v4132_v59 = vsel %vm4102_vm14, %v4098_v34, %v13382_v22 }
 0x2ad   : > { %v4227_v42 = vsel %vm13201_vm11, %v4194_v18, %v11160_v21  ;;  %vm11478_vm11 = vmand %vm811_vm7, %vm393_vm4  ;;  %vm13376_vm4 = vcmask 523264   ;;  %v4165_v39 = vsel %vm4135_vm13, %v4132_v59, %v13383_v48 }
 0x2ae   : > { %v4260_v4 = vsel %vm4234_vm1, %v4227_v42, %v11301_v12  ;;  %v4666_v28 = vsel %vm11478_vm11, 0, %v4665_v15  ;;  %v4669_v53 = vsel %vm11478_vm11, 0, %v4668_v46  ;;  %v4198_v42 = vsel %vm4168_vm0, %v4165_v39, %v13384_v11 }
 0x2af   : > { %v11457_v31 = vpop.permute.xlu0 %3971  ;;  %v4293_v23 = vsel %vm4267_vm12, %v4260_v4, %v3966_v10  ;;  %v4130_v10 = vsel %vm4102_vm14, %v4095_v60, %v13375_v27  ;;  %4667 = vst [vmem:[#allocation3 + $0x14] sm:$0x1] %v4666_v28  ;;  %v4672_v28 = vsel %vm11478_vm11, 0, %v4671_v6  ;;  %v13388_v27 = vld [vmem:[#allocation35_spill] sm:$0xff] }
 0x2b0   : > { %v4326_v7 = vsel %vm13202_vm5, %v4293_v23, %v4046_v30  ;;  %vm13373_vm5 = vcmask 326656   ;;  %v4163_v3 = vsel %vm4135_vm13, %v4130_v10, %v13377_v37  ;;  %4670 = vst [vmem:[#allocation3 + $0x20] sm:$0x1] %v4669_v53 }
 0x2b1   : > { %8680 = vmatmul.msk.bf16.gmra.mxu0 %vm4369_vm9, %v4312_v13  ;;  %v4077_v13 = vsel %vm4053_vm6, %v8959_v0, %v13366_v63  ;;  %vm13379_vm7 = vmmov %vm13373_vm5  ;;  %4673 = vst [vmem:[#allocation3 + $0x2c] sm:$0x1] %v4672_v28  ;;  %v4689_v28 = vld [vmem:[#allocation3 + $0x74] sm:$0x1] }
 0x2b2   : > { %v4118_v1 = vsel %vm4102_vm14, %v4077_v13, %v13367_v36 }
 0x2b3   : > { %v4151_v21 = vsel %vm4135_vm13, %v4118_v1, %v13368_v35  ;;  %v4616_v1 = vld [vmem:[#allocation3 + $0x24] sm:$0x1] }
 0x2b4   : > { %v4184_v17 = vsel %vm4168_vm0, %v4151_v21, %v13371_v56  ;;  %v4617_v21 = vsel %vm9325_vm8, 0, %v4616_v1 }
 0x2b5   : > { %v4217_v51 = vsel %vm13373_vm5, %v4184_v17, %v13372_v45  ;;  %vm13380_vm5 = vmmov %vm13376_vm4  ;;  %4618 = vst [vmem:[#allocation3 + $0x24] sm:$0x1] %v4617_v21 }
 0x2b6   : > { %v4250_v29 = vsel %vm4234_vm1, %v4217_v51, %v11264_v19  ;;  %v13378_v19 = vld [vmem:[#allocation59_spill] sm:$0xff] }
 0x2b7   : > { %v4036_v9 = vpop.permute.xlu0 %4035  ;;  %v4196_v52 = vsel %vm4168_vm0, %v4163_v3, %v13378_v19 }
 0x2b9   : > { %8686 = vmatmul.msk.bf16.gmra.mxu2 %vm4369_vm9, %v4324_v20  ;;  %v4283_v20 = vsel %vm4267_vm12, %v4250_v29, %v11350_v40  ;;  %v4229_v40 = vsel %vm13379_vm7, %v4196_v52, %v11135_v38  ;;  %v11515_v38 = vld [vmem:[%s13180_s3] ss:$0 sm:$0xff] }
 0x2ba   : > { %v4316_v32 = vsel %vm13376_vm4, %v4283_v20, %v4036_v9  ;;  %v4262_v49 = vsel %vm4234_vm1, %v4229_v40, %v11283_v2  ;;  %v11520_v2 = vld [vmem:[%s13181_s4] ss:$0 sm:$0xff]  ;;  %vm13385_vm4 = vmmov %vm13379_vm7  ;;  %v13390_v40 = vld [vmem:[#allocation44_spill] sm:$0xff] }
 0x2bb   : > { %v4295_v24 = vsel %vm4267_vm12, %v4262_v49, %v11407_v8  ;;  %v4231_v30 = vsel %vm13385_vm4, %v4198_v42, %v11240_v57  ;;  %vm13386_vm7 = vmmov %vm13380_vm5  ;;  %v8967_v29 = vld [vmem:[#allocation2 + $0xb4] sm:$0xff] }
 0x2bc   : > { %v4328_v54 = vsel %vm13380_vm5, %v4295_v24, %v4048_v62  ;;  %v4264_v23 = vsel %vm4234_vm1, %v4231_v30, %v11298_v55  ;;  %v5069_v55 = vld [vmem:[#allocation3 + $0xc] sm:$0xf]  ;;  %v4101_v10 = vsel %vm4053_vm6, %v8967_v29, %v13388_v27  ;;  %v5073_v62 = vld [vmem:[#allocation3 + $0x14] sm:$0x1]  ;;  %vm13392_vm5 = vmmov %vm13385_vm4  ;;  %vm13394_vm4 = vcmask 27648  }
 0x2bd   : > { %v4297_v63 = vsel %vm4267_vm12, %v4264_v23, %v11424_v26  ;;  %v4634_v30 = vld [vmem:[#allocation3 + $0x6c] sm:$0x1] }
 0x2bf   : > { %v4050_v4 = vpop.permute.xlu0 %4049 }
 0x2c0   : > { %v4330_v35 = vsel %vm13386_vm7, %v4297_v63, %v4050_v4 }
 0x2c1   : > { %8681 = vmatmul.msk.bf16.gmra.mxu0 %vm4369_vm9, %v4314_v25 }
 0x2c9   : > { %8687 = vmatmul.msk.bf16.gmra.mxu2 %vm4369_vm9, %v4326_v7 }
 0x2d1   : > { %8682 = vmatmul.msk.bf16.gmra.mxu0 %vm4369_vm9, %v4316_v32  ;;  %v13389_v32 = vld [vmem:[#allocation17_spill] sm:$0xff] }
 0x2d2   : > { %v4134_v37 = vsel %vm4102_vm14, %v4101_v10, %v13389_v32 }
 0x2d3   : > { %v4167_v49 = vsel %vm4135_vm13, %v4134_v37, %v13390_v40  ;;  %v4690_v37 = vsel %vm11478_vm11, 0, %v4689_v28 }
 0x2d4   : > { %4691 = vst [vmem:[#allocation3 + $0x74] sm:$0x1] %v4690_v37 }
 0x2d9   : > { %8688 = vmatmul.msk.bf16.gmra.mxu2 %vm4369_vm9, %v4328_v54 }
 0x2de   : > { %v4415_v8 = vpop.f32.mrf.mxu0 }
 0x2df   : > { %v4499_v25 = vmul.f32 %v11515_v38, %v4415_v8  ;;  %v13391_v8 = vld [vmem:[#allocation63_spill] sm:$0xff] }
 0x2e0   : > { %v4200_v46 = vsel %vm4168_vm0, %v4167_v49, %v13391_v8 }
 0x2e1   : > { %v4535_v14 = vadd.f32 %v11520_v2, %v4499_v25  ;;  %v4233_v50 = vsel %vm13392_vm5, %v4200_v46, %v11199_v41  ;;  %v4052_v25 = vpop.permute.xlu1 %4051 }
 0x2e2   : > { %v4266_v22 = vsel %vm4234_vm1, %v4233_v50, %v11307_v47  ;;  %vm13396_vm1 = vmmov %vm13394_vm4 }
 0x2e3   : > { %v4567_v18 = vmax.f32 %v4535_v14, 0.0  ;;  %v4299_v48 = vsel %vm4267_vm12, %v4266_v22, %v11457_v31  ;;  %v4635_v31 = vsel %vm9325_vm8, 0, %v4634_v30  ;;  %vm13397_vm12 = vmmov %vm13396_vm1 }
 0x2e4   : > { %v4332_v11 = vsel %vm13386_vm7, %v4299_v48, %v4052_v25  ;;  %4636 = vst [vmem:[#allocation3 + $0x6c] sm:$0x1] %v4635_v31  ;;  %vm13398_vm5 = vmmov %vm13396_vm1 }
 0x2e5   : > { %v4716_v0 = vpack.c.bf16 %v4567_v18, %v4567_v18  ;;  %vm13400_vm7 = vmmov %vm13396_vm1 }
 0x2e6   : > { %v4417_v7 = vpop.f32.mrf.mxu0 }
 0x2e7   : > { %v4749_v13 = vshrl.u32 %v4716_v0, 16  ;;  %v4500_v36 = vmul.f32 %v11515_v38, %v4417_v7  ;;  %v4752_v57 = vshll.u32 %v4716_v0, 16  ;;  %v5076_v7 = vld [vmem:[#allocation3 + $0x18] sm:$0xf] }
 0x2e9   : > { %v4751_v56 = vrot.slane %v4749_v13, 7  ;;  %v4536_v17 = vadd.f32 %v11520_v2, %v4500_v36  ;;  %8689 = vmatmul.msk.bf16.gmra.mxu2 %vm4369_vm9, %v4330_v35  ;;  %v4619_v35 = vld [vmem:[#allocation3 + $0x30] sm:$0x1] }
 0x2eb   : > { %v4754_v16 = vor.u32 %v4752_v57, %v4751_v56  ;;  %v4568_v45 = vmax.f32 %v4536_v17, 0.0  ;;  %v4755_v24 = vrot.slane %v4751_v56, 4  ;;  %v4620_v17 = vsel %vm9325_vm8, 0, %v4619_v35 }
 0x2ec   : > { %4621 = vst [vmem:[#allocation3 + $0x30] sm:$0x1] %v4620_v17 }
 0x2ed   : > { %v5070_v51 = vsel %vm9347_vm10, %v4754_v16, %v5069_v55  ;;  %v4717_v9 = vpack.c.bf16 %v4568_v45, %v4568_v45 }
 0x2ee   : > { %5071 = vst [vmem:[#allocation3 + $0xc] sm:$0xf] %v5070_v51  ;;  %v4420_v15 = vpop.f32.mrf.mxu0 }
 0x2ef   : > { %v4757_v60 = vshrl.u32 %v4717_v9, 16  ;;  %v4501_v20 = vmul.f32 %v11515_v38, %v4420_v15  ;;  %v4760_v19 = vshll.u32 %v4717_v9, 16 }
 0x2f1   : > { %v4759_v3 = vrot.slane %v4757_v60, 7  ;;  %v4537_v52 = vadd.f32 %v11520_v2, %v4501_v20 }
 0x2f3   : > { %v4762_v58 = vor.u32 %v4760_v19, %v4759_v3  ;;  %v4764_v54 = vrot.slane %v4759_v3, 4  ;;  %v4569_v43 = vmax.f32 %v4537_v52, 0.0  ;;  %v5080_v3 = vld [vmem:[#allocation3 + $0x20] sm:$0x1] }
 0x2f5   : > { %v4763_v5 = vsel %vm9212_vm2, %v4755_v24, %v4762_v58  ;;  %v5074_v34 = vsel %vm9325_vm8, %v4764_v54, %v5073_v62  ;;  %v4718_v14 = vpack.c.bf16 %v4569_v43, %v4569_v43  ;;  %v5183_v42 = vld [vmem:[#allocation3 + $0xc] sm:$0xf] }
 0x2f6   : > { %5072 = vst.msk [vmem:[#allocation3 + $0x10] sm:$0xf] %vm13394_vm4, %v4763_v5  ;;  %v4422_v59 = vpop.f32.mrf.mxu0  ;;  %v5254_v47 = vshrl.u32 %v5183_v42, 16  ;;  %v5257_v23 = vshll.u32 %v5183_v42, 16 }
 0x2f7   : > { %5075 = vst [vmem:[#allocation3 + $0x14] sm:$0x1] %v5074_v34  ;;  %v4766_v39 = vshrl.u32 %v4718_v14, 16  ;;  %v4502_v41 = vmul.f32 %v11515_v38, %v4422_v59  ;;  %v4769_v18 = vshll.u32 %v4718_v14, 16  ;;  %v4674_v34 = vld [vmem:[#allocation3 + $0x38] sm:$0x1] }
 0x2f8   : > { %v5256_v36 = vrot.slane %v5254_v47, 4  ;;  %v5259_v1 = vrot.slane %v5257_v23, 5  ;;  %v5083_v47 = vld [vmem:[#allocation3 + $0x24] sm:$0xf] }
 0x2f9   : > { %v4768_v4 = vrot.slane %v4766_v39, 7  ;;  %v4538_v0 = vadd.f32 %v11520_v2, %v4502_v41  ;;  %8690 = vmatmul.msk.bf16.gmra.mxu2 %vm4369_vm9, %v4332_v11  ;;  %vm13395_vm9 = vmmov %vm13394_vm4  ;;  %v4675_v41 = vsel %vm11478_vm11, 0, %v4674_v34  ;;  %v4637_v11 = vld [vmem:[#allocation3 + $0x78] sm:$0x1]  ;;  %v11622_v34 = vld [vmem:[#allocation3 + $0x4] sm:$0xf] }
 0x2fa   : > { %v5260_v45 = vor.u32 %v5259_v1, %v5256_v36  ;;  %4676 = vst [vmem:[#allocation3 + $0x38] sm:$0x1] %v4675_v41  ;;  %vm13399_vm4 = vmmov %vm13396_vm1 }
 0x2fb   : > { %v4771_v63 = vor.u32 %v4769_v18, %v4768_v4  ;;  %v4570_v13 = vmax.f32 %v4538_v0, 0.0  ;;  %v4772_v40 = vrot.slane %v4768_v4, 4 }
 0x2fc   : > { %v5261_v19 = vrot.slane %v5260_v45, 4 }
 0x2fd   : > { %v5077_v21 = vsel %vm9347_vm10, %v4771_v63, %v5076_v7  ;;  %v4719_v56 = vpack.c.bf16 %v4570_v13, %v4570_v13  ;;  %v5184_v57 = vld [vmem:[#allocation3 + $0x10] sm:$0xf]  ;;  %v4638_v7 = vsel %vm9325_vm8, 0, %v4637_v11 }
 0x2fe   : > { %5078 = vst [vmem:[#allocation3 + $0x18] sm:$0xf] %v5077_v21  ;;  %v4425_v55 = vpop.f32.mrf.mxu0  ;;  %v5214_v16 = vld [vmem:[#allocation3 + $0x14] sm:$0x1]  ;;  %v5263_v51 = vshll.u32 %v5184_v57, 16  ;;  %v5267_v9 = vshrl.u32 %v5184_v57, 16 }
 0x2ff   : > { %v4774_v29 = vshrl.u32 %v4719_v56, 16  ;;  %v4503_v15 = vmul.f32 %v11515_v38, %v4425_v55  ;;  %v5273_v20 = vshll.u32 %v5214_v16, 16  ;;  %v4777_v10 = vshll.u32 %v4719_v56, 16  ;;  %4639 = vst [vmem:[#allocation3 + $0x78] sm:$0x1] %v4638_v7 }
 0x300   : > { %v5265_v6 = vrot.slane %v5263_v51, 5  ;;  %v5269_v60 = vrot.slane %v5267_v9, 4  ;;  %v4622_v21 = vld [vmem:[#allocation3 + $0x3c] sm:$0x1] }
 0x301   : > { %v4776_v27 = vrot.slane %v4774_v29, 7  ;;  %v4539_v32 = vadd.f32 %v11520_v2, %v4503_v15  ;;  %v5275_v43 = vrot.slane %v5273_v20, 5  ;;  %v4623_v16 = vsel %vm9325_vm8, 0, %v4622_v21 }
 0x302   : > { %v5270_v52 = vor.u32 %v5269_v60, %v5265_v6  ;;  %v5266_v58 = vsel %vm9568_vm3, %v5261_v19, %v5265_v6  ;;  %4624 = vst [vmem:[#allocation3 + $0x3c] sm:$0x1] %v4623_v16 }
 0x303   : > { %v4779_v49 = vor.u32 %v4777_v10, %v4776_v27  ;;  %v4781_v62 = vrot.slane %v4776_v27, 4  ;;  %v4571_v24 = vmax.f32 %v4539_v32, 0.0  ;;  %v7072_v59 = vunpack.c.l.b16 %v5266_v58  ;;  %v4607_v27 = vld [vmem:[#allocation3] sm:$0x1] }
 0x304   : > { %v5271_v54 = vrot.slane %v5270_v52, 4 }
 0x305   : > { %v4780_v8 = vsel %vm9212_vm2, %v4772_v40, %v4779_v49  ;;  %v5081_v46 = vsel %vm9325_vm8, %v4781_v62, %v5080_v3  ;;  %v4720_v50 = vpack.c.bf16 %v4571_v24, %v4571_v24  ;;  %v5185_v18 = vld [vmem:[#allocation3 + $0x18] sm:$0xf]  ;;  %v4608_v49 = vsel %vm9325_vm8, 0, %v4607_v27  ;;  %v4662_v62 = vld [vmem:[#allocation3 + $0x8] sm:$0x1] }
 0x306   : > { %5079 = vst.msk [vmem:[#allocation3 + $0x1c] sm:$0xf] %vm13395_vm9, %v4780_v8  ;;  %v4427_v25 = vpop.f32.mrf.mxu0  ;;  %v5276_v5 = vsel %vm9568_vm3, %v5271_v54, %v5275_v43  ;;  %v5278_v0 = vshrl.u32 %v5185_v18, 16  ;;  %v5281_v23 = vshll.u32 %v5185_v18, 16  ;;  %v5087_v24 = vld [vmem:[#allocation3 + $0x2c] sm:$0x1]  ;;  %vm13401_vm9 = vmmov %vm13396_vm1 }
 0x307   : > { %5082 = vst [vmem:[#allocation3 + $0x20] sm:$0x1] %v5081_v46  ;;  %v4783_v14 = vshrl.u32 %v4720_v50, 16  ;;  %v4504_v22 = vmul.f32 %v11515_v38, %v4427_v25  ;;  %v7073_v48 = vunpack.c.l.b16 %v5276_v5  ;;  %v4786_v39 = vshll.u32 %v4720_v50, 16 }
 0x308   : > { %v5280_v13 = vrot.slane %v5278_v0, 4  ;;  %v5283_v35 = vrot.slane %v5281_v23, 5  ;;  %4609 = vst [vmem:[#allocation3] sm:$0x1] %v4608_v49  ;;  %v4663_v8 = vsel %vm11478_vm11, 0, %v4662_v62 }
 0x309   : > { %v4785_v42 = vrot.slane %v4783_v14, 7  ;;  %v4540_v30 = vadd.f32 %v11520_v2, %v4504_v22  ;;  %v7103_v4 = vpack.c.b16 %v7073_v48, %v7072_v59  ;;  %4664 = vst [vmem:[#allocation3 + $0x8] sm:$0x1] %v4663_v8  ;;  %v5239_v48 = vshll.u32 %v11622_v34, 16  ;;  %v4677_v8 = vld [vmem:[#allocation3 + $0x44] sm:$0x1] }
 0x30a   : > { %v5284_v9 = vor.u32 %v5283_v35, %v5280_v13 }
 0x30b   : > { %v4788_v31 = vor.u32 %v4786_v39, %v4785_v42  ;;  %v4572_v63 = vmax.f32 %v4540_v30, 0.0  ;;  %7120 = vrot.lane.b32.xlu0 %v7103_v4, %s9127_s11  ;;  %v4789_v36 = vrot.slane %v4785_v42, 4  ;;  %v5243_v39 = vshrl.u32 %v11622_v34, 16  ;;  %v4692_v30 = vld [vmem:[#allocation3 + $0x80] sm:$0x1] }
 0x30c   : > { %v4455_v1 = vpop.f32.mrf.mxu2  ;;  %v5285_v10 = vrot.slane %v5284_v9, 4  ;;  %v11634_v7 = vrot.slane %v5239_v48, 5 }
 0x30d   : > { %v5084_v56 = vsel %vm9347_vm10, %v4788_v31, %v5083_v47  ;;  %v4721_v57 = vpack.c.bf16 %v4572_v63, %v4572_v63  ;;  %v4515_v17 = vmul.f32 %v11515_v38, %v4455_v1  ;;  %v11604_v55 = vld [vmem:[#allocation3 + $0x1c] sm:$0xf]  ;;  %v5125_v1 = vld [vmem:[#allocation3 + $0x6c] sm:$0xf] }
 0x30e   : > { %5085 = vst [vmem:[#allocation3 + $0x24] sm:$0xf] %v5084_v56  ;;  %v4430_v45 = vpop.f32.mrf.mxu0  ;;  %v11608_v51 = vld [vmem:[#allocation3 + $0x20] sm:$0x1]  ;;  %v5287_v29 = vshll.u32 %v11604_v55, 16  ;;  %v5291_v15 = vshrl.u32 %v11604_v55, 16 }
 0x30f   : > { %v4791_v6 = vshrl.u32 %v4721_v57, 16  ;;  %v4794_v60 = vshll.u32 %v4721_v57, 16  ;;  %v4551_v20 = vadd.f32 %v11520_v2, %v4515_v17  ;;  %v4505_v28 = vmul.f32 %v11515_v38, %v4430_v45 }
 0x310   : > { %v5289_v32 = vrot.slane %v5287_v29, 5  ;;  %v5293_v37 = vrot.slane %v5291_v15, 4  ;;  %v5297_v3 = vshll.u32 %v11608_v51, 16  ;;  %v4693_v57 = vsel %vm11478_vm11, 0, %v4692_v30  ;;  %v5181_v29 = vld [vmem:[#allocation3] sm:$0xf] }
 0x311   : > { %v4793_v19 = vrot.slane %v4791_v6, 7  ;;  %v4583_v52 = vmax.f32 %v4551_v20, 0.0  ;;  %v4541_v40 = vadd.f32 %v11520_v2, %v4505_v28  ;;  %4694 = vst [vmem:[#allocation3 + $0x80] sm:$0x1] %v4693_v57  ;;  %v5230_v20 = vshrl.u32 %v5181_v29, 16 }
 0x312   : > { %v5290_v58 = vsel %vm9568_vm3, %v5285_v10, %v5289_v32  ;;  %v5294_v54 = vor.u32 %v5293_v37, %v5289_v32  ;;  %v5299_v43 = vrot.slane %v5297_v3, 5  ;;  %v5233_v28 = vshll.u32 %v5181_v29, 16  ;;  %v5090_v10 = vld [vmem:[#allocation3 + $0x30] sm:$0xf] }
 0x313   : > { %v4796_v46 = vor.u32 %v4794_v60, %v4793_v19  ;;  %v4798_v50 = vrot.slane %v4793_v19, 4  ;;  %v4732_v25 = vpack.c.bf16 %v4583_v52, %v4583_v52  ;;  %v4573_v5 = vmax.f32 %v4541_v40, 0.0  ;;  %v11645_v60 = vld [vmem:[#allocation3 + $0x8] sm:$0x1] }
 0x314   : > { %v4457_v14 = vpop.f32.mrf.mxu2  ;;  %v5295_v22 = vrot.slane %v5294_v54, 4  ;;  %v7074_v59 = vunpack.c.l.b16 %v5290_v58  ;;  %v5249_v3 = vshll.u32 %v11645_v60, 16  ;;  %v5232_v62 = vrot.slane %v5230_v20, 4 }
 0x315   : > { %v4797_v41 = vsel %vm9212_vm2, %v4789_v36, %v4796_v46  ;;  %v5088_v18 = vsel %vm9325_vm8, %v4798_v50, %v5087_v24  ;;  %v4885_v11 = vshrl.u32 %v4732_v25, 16  ;;  %v4888_v42 = vshll.u32 %v4732_v25, 16 }
 0x316   : > { %5086 = vst.msk [vmem:[#allocation3 + $0x28] sm:$0xf] %vm13396_vm1, %v4797_v41  ;;  %v4722_v4 = vpack.c.bf16 %v4573_v5, %v4573_v5  ;;  %v4516_v0 = vmul.f32 %v11515_v38, %v4457_v14  ;;  %v4432_v47 = vpop.f32.mrf.mxu0  ;;  %v5300_v23 = vsel %vm9568_vm3, %v5295_v22, %v5299_v43  ;;  %v5245_v36 = vrot.slane %v5243_v39, 4  ;;  %v5187_v41 = vld [vmem:[#allocation3 + $0x24] sm:$0xf] }
 0x317   : > { %5089 = vst [vmem:[#allocation3 + $0x2c] sm:$0x1] %v5088_v18  ;;  %v11636_v31 = vrot.slane %v4885_v11, 7  ;;  %v4506_v63 = vmul.f32 %v11515_v38, %v4432_v47  ;;  %v7075_v13 = vunpack.c.l.b16 %v5300_v23  ;;  %v5235_v54 = vrot.slane %v5233_v28, 5 }
 0x318   : > { %v4800_v35 = vshrl.u32 %v4722_v4, 16  ;;  %v4803_v21 = vshll.u32 %v4722_v4, 16  ;;  %v4552_v56 = vadd.f32 %v11520_v2, %v4516_v0  ;;  %v5246_v37 = vor.u32 %v5245_v36, %v11634_v7  ;;  %v5129_v4 = vld [vmem:[#allocation3 + $0x74] sm:$0x1]  ;;  %v5094_v36 = vld [vmem:[#allocation3 + $0x38] sm:$0x1] }
 0x319   : > { %v4890_v17 = vor.u32 %v4888_v42, %v11636_v31  ;;  %v4891_v16 = vrot.slane %v11636_v31, 4  ;;  %v4542_v45 = vadd.f32 %v11520_v2, %v4506_v63  ;;  %v7104_v9 = vpack.c.b16 %v7075_v13, %v7074_v59 }
 0x31a   : > { %v4802_v15 = vrot.slane %v4800_v35, 7  ;;  %v4584_v6 = vmax.f32 %v4552_v56, 0.0  ;;  %v5247_v43 = vrot.slane %v5246_v37, 4  ;;  %v5251_v14 = vrot.slane %v5249_v3, 5 }
 0x31b   : > { %v5126_v27 = vsel %vm9347_vm10, %v4890_v17, %v5125_v1  ;;  %v4574_v32 = vmax.f32 %v4542_v45, 0.0  ;;  %7122 = vrot.lane.b32.xlu1 %v7104_v9, %s9127_s11  ;;  %v5236_v11 = vor.u32 %v5235_v54, %v5232_v62  ;;  %v4678_v30 = vsel %vm11478_vm11, 0, %v4677_v8 }
 0x31c   : > { %5127 = vst [vmem:[#allocation3 + $0x6c] sm:$0xf] %v5126_v27  ;;  %v4805_v19 = vor.u32 %v4803_v21, %v4802_v15  ;;  %v4806_v52 = vrot.slane %v4802_v15, 4  ;;  %v4733_v40 = vpack.c.bf16 %v4584_v6, %v4584_v6  ;;  %v4460_v49 = vpop.f32.mrf.mxu2  ;;  %v5252_v42 = vsel %vm9568_vm3, %v5247_v43, %v5251_v14 }
 0x31d   : > { %v4723_v24 = vpack.c.bf16 %v4574_v32, %v4574_v32  ;;  %v4517_v58 = vmul.f32 %v11515_v38, %v4460_v49  ;;  %v7071_v31 = vunpack.c.l.b16 %v5252_v42  ;;  %4679 = vst [vmem:[#allocation3 + $0x44] sm:$0x1] %v4678_v30  ;;  %v5237_v1 = vrot.slane %v5236_v11, 4  ;;  %v11669_v6 = vld [vmem:[#allocation3 + $0x28] sm:$0xf] }
 0x31e   : > { %v5091_v46 = vsel %vm9347_vm10, %v4805_v19, %v5090_v10  ;;  %v4893_v50 = vshrl.u32 %v4733_v40, 16  ;;  %v4896_v25 = vshll.u32 %v4733_v40, 16  ;;  %v4435_v5 = vpop.f32.mrf.mxu0  ;;  %v5302_v35 = vshrl.u32 %v5187_v41, 16  ;;  %v5132_v32 = vld [vmem:[#allocation3 + $0x78] sm:$0xf] }
 0x31f   : > { %5092 = vst [vmem:[#allocation3 + $0x30] sm:$0xf] %v5091_v46  ;;  %v4808_v22 = vshrl.u32 %v4723_v24, 16  ;;  %v4811_v59 = vshll.u32 %v4723_v24, 16  ;;  %v4553_v48 = vadd.f32 %v11520_v2, %v4517_v58  ;;  %v4507_v39 = vmul.f32 %v11515_v38, %v4435_v5  ;;  %v11684_v46 = vld [vmem:[#allocation3 + $0x2c] sm:$0x1] }
 0x320   : > { %v4895_v18 = vrot.slane %v4893_v50, 7  ;;  %v5242_v29 = vsel %vm9568_vm3, %v5237_v1, %v11634_v7  ;;  %v5304_v20 = vrot.slane %v5302_v35, 4  ;;  %v5305_v40 = vshll.u32 %v5187_v41, 16  ;;  %v4640_v35 = vld [vmem:[#allocation3 + $0x84] sm:$0x1] }
 0x321   : > { %v4810_v0 = vrot.slane %v4808_v22, 7  ;;  %v4585_v47 = vmax.f32 %v4553_v48, 0.0  ;;  %v4543_v23 = vadd.f32 %v11520_v2, %v4507_v39  ;;  %v7070_v3 = vunpack.c.l.b16 %v5242_v29 }
 0x322   : > { %v4898_v63 = vor.u32 %v4896_v25, %v4895_v18  ;;  %v4900_v13 = vrot.slane %v4895_v18, 4  ;;  %v5315_v24 = vshrl.u32 %v11669_v6, 16  ;;  %v5307_v14 = vrot.slane %v5305_v40, 5  ;;  %v5097_v18 = vld [vmem:[#allocation3 + $0x3c] sm:$0xf] }
 0x323   : > { %v4813_v21 = vor.u32 %v4811_v59, %v4810_v0  ;;  %v4815_v56 = vrot.slane %v4810_v0, 4  ;;  %v4734_v57 = vpack.c.bf16 %v4585_v47, %v4585_v47  ;;  %v4575_v17 = vmax.f32 %v4543_v23, 0.0 }
 0x324   : > { %v4899_v45 = vsel %vm9212_vm2, %v4891_v16, %v4898_v63  ;;  %v5130_v9 = vsel %vm9325_vm8, %v4900_v13, %v5129_v4  ;;  %v4462_v15 = vpop.f32.mrf.mxu2  ;;  %v7102_v43 = vpack.c.b16 %v7071_v31, %v7070_v3  ;;  %v5317_v39 = vrot.slane %v5315_v24, 4 }
 0x325   : > { %5128 = vst.msk [vmem:[#allocation3 + $0x70] sm:$0xf] %vm13397_vm12, %v4899_v45  ;;  %v4814_v28 = vsel %vm9212_vm2, %v4806_v52, %v4813_v21  ;;  %v5095_v27 = vsel %vm9325_vm8, %v4815_v56, %v5094_v36  ;;  %v4902_v16 = vshrl.u32 %v4734_v57, 16  ;;  %v4905_v10 = vshll.u32 %v4734_v57, 16  ;;  %vm13402_vm12 = vmmov %vm13396_vm1 }
 0x326   : > { %5131 = vst [vmem:[#allocation3 + $0x74] sm:$0x1] %v5130_v9  ;;  %v4724_v37 = vpack.c.bf16 %v4575_v17, %v4575_v17  ;;  %v4518_v7 = vmul.f32 %v11515_v38, %v4462_v15  ;;  %v4437_v19 = vpop.f32.mrf.mxu0  ;;  %v5311_v52 = vshll.u32 %v11669_v6, 16  ;;  %7118 = vrot.lane.b32.xlu2 %v7102_v43, %s9127_s11  ;;  %v5308_v42 = vor.u32 %v5307_v14, %v5304_v20  ;;  %v4625_v9 = vld [vmem:[#allocation3 + $0x48] sm:$0x1] }
 0x327   : > { %5093 = vst.msk [vmem:[#allocation3 + $0x34] sm:$0xf] %vm13398_vm5, %v4814_v28  ;;  %v11678_v49 = vrot.slane %v4902_v16, 7  ;;  %v4508_v62 = vmul.f32 %v11515_v38, %v4437_v19  ;;  %v5321_v30 = vshll.u32 %v11684_v46, 16  ;;  %v4641_v3 = vsel %vm9325_vm8, 0, %v4640_v35  ;;  %vm13403_vm5 = vmmov %vm13396_vm1 }
 0x328   : > { %5096 = vst [vmem:[#allocation3 + $0x38] sm:$0x1] %v5095_v27  ;;  %v4817_v58 = vshrl.u32 %v4724_v37, 16  ;;  %v4820_v54 = vshll.u32 %v4724_v37, 16  ;;  %v4554_v8 = vadd.f32 %v11520_v2, %v4518_v7  ;;  %v5313_v48 = vrot.slane %v5311_v52, 5 }
 0x329   : > { %v4907_v50 = vor.u32 %v4905_v10, %v11678_v49  ;;  %v4908_v25 = vrot.slane %v11678_v49, 4  ;;  %v4544_v5 = vadd.f32 %v11520_v2, %v4508_v62  ;;  %v5309_v13 = vrot.slane %v5308_v42, 4  ;;  %v4695_v27 = vld [vmem:[#allocation3 + $0x8c] sm:$0x1]  ;;  %v5136_v10 = vld [vmem:[#allocation3 + $0x80] sm:$0x1] }
 0x32a   : > { %v11689_v22 = vrot.slane %v4817_v58, 7  ;;  %v4586_v59 = vmax.f32 %v4554_v8, 0.0  ;;  %v5318_v23 = vor.u32 %v5317_v39, %v5313_v48  ;;  %v5323_v36 = vrot.slane %v5321_v30, 5  ;;  %4642 = vst [vmem:[#allocation3 + $0x84] sm:$0x1] %v4641_v3 }
 0x32b   : > { %v5133_v41 = vsel %vm9347_vm10, %v4907_v50, %v5132_v32  ;;  %v4576_v11 = vmax.f32 %v4544_v5, 0.0  ;;  %v5314_v20 = vsel %vm9568_vm3, %v5309_v13, %v5313_v48  ;;  %v4680_v62 = vld [vmem:[#allocation3 + $0x50] sm:$0x1]  ;;  %v5101_v58 = vld [vmem:[#allocation3 + $0x44] sm:$0x1]  ;;  %v4696_v43 = vsel %vm11478_vm11, 0, %v4695_v27 }
 0x32c   : > { %5134 = vst [vmem:[#allocation3 + $0x78] sm:$0xf] %v5133_v41  ;;  %v4822_v4 = vor.u32 %v4820_v54, %v11689_v22  ;;  %v4823_v0 = vrot.slane %v11689_v22, 4  ;;  %v4735_v47 = vpack.c.bf16 %v4586_v59, %v4586_v59  ;;  %v4465_v31 = vpop.f32.mrf.mxu2  ;;  %v5319_v17 = vrot.slane %v5318_v23, 4  ;;  %v5199_v22 = vld [vmem:[#allocation3 + $0x6c] sm:$0xf] }
 0x32d   : > { %v4725_v63 = vpack.c.bf16 %v4576_v11, %v4576_v11  ;;  %v4519_v1 = vmul.f32 %v11515_v38, %v4465_v31  ;;  %v7076_v37 = vunpack.c.l.b16 %v5314_v20  ;;  %v4626_v54 = vsel %vm9325_vm8, 0, %v4625_v9  ;;  %4697 = vst [vmem:[#allocation3 + $0x8c] sm:$0x1] %v4696_v43  ;;  %v5200_v11 = vld [vmem:[#allocation3 + $0x70] sm:$0xf] }
 0x32e   : > { %v5098_v21 = vsel %vm9347_vm10, %v4822_v4, %v5097_v18  ;;  %v4910_v56 = vshrl.u32 %v4735_v47, 16  ;;  %v4913_v57 = vshll.u32 %v4735_v47, 16  ;;  %v4440_v45 = vpop.f32.mrf.mxu0  ;;  %v5324_v32 = vsel %vm9568_vm3, %v5319_v17, %v5323_v36  ;;  %4627 = vst [vmem:[#allocation3 + $0x48] sm:$0x1] %v4626_v54  ;;  %v4643_v27 = vld [vmem:[#allocation3 + $0x90] sm:$0x1] }
 0x32f   : > { %5099 = vst [vmem:[#allocation3 + $0x3c] sm:$0xf] %v5098_v21  ;;  %v4825_v29 = vshrl.u32 %v4725_v63, 16  ;;  %v4828_v15 = vshll.u32 %v4725_v63, 16  ;;  %v4555_v28 = vadd.f32 %v11520_v2, %v4519_v1  ;;  %v7077_v19 = vunpack.c.l.b16 %v5324_v32  ;;  %v5222_v63 = vld [vmem:[#allocation3 + $0x74] sm:$0x1] }
 0x330   : > { %v4912_v16 = vrot.slane %v4910_v56, 7  ;;  %v4509_v49 = vmul.f32 %v11515_v38, %v4440_v45  ;;  %v4681_v18 = vsel %vm11478_vm11, 0, %v4680_v62  ;;  %v5446_v13 = vshrl.u32 %v5199_v22, 16 }
 0x331   : > { %v4827_v7 = vrot.slane %v4825_v29, 7  ;;  %v4587_v40 = vmax.f32 %v4555_v28, 0.0  ;;  %v7105_v5 = vpack.c.b16 %v7077_v19, %v7076_v37  ;;  %v5449_v36 = vshll.u32 %v5199_v22, 16  ;;  %v5139_v56 = vld [vmem:[#allocation3 + $0x84] sm:$0xf] }
 0x332   : > { %v4915_v52 = vor.u32 %v4913_v57, %v4912_v16  ;;  %v4917_v24 = vrot.slane %v4912_v16, 4  ;;  %v4545_v39 = vadd.f32 %v11520_v2, %v4509_v49  ;;  %v5455_v35 = vshll.u32 %v5200_v11, 16  ;;  %4682 = vst [vmem:[#allocation3 + $0x50] sm:$0x1] %v4681_v18 }
 0x333   : > { %v4830_v8 = vor.u32 %v4828_v15, %v4827_v7  ;;  %v4832_v50 = vrot.slane %v4827_v7, 4  ;;  %v4736_v14 = vpack.c.bf16 %v4587_v40, %v4587_v40  ;;  %7124 = vrot.lane.b32.xlu2 %v7105_v5, %s9127_s11  ;;  %v5459_v21 = vshrl.u32 %v5200_v11, 16 }
 0x334   : > { %v4916_v59 = vsel %vm9212_vm2, %v4908_v25, %v4915_v52  ;;  %v5137_v48 = vsel %vm9325_vm8, %v4917_v24, %v5136_v10  ;;  %v4467_v41 = vpop.f32.mrf.mxu2  ;;  %v4577_v47 = vmax.f32 %v4545_v39, 0.0  ;;  %v5448_v45 = vrot.slane %v5446_v13, 4 }
 0x335   : > { %5135 = vst.msk [vmem:[#allocation3 + $0x7c] sm:$0xf] %vm13399_vm4, %v4916_v59  ;;  %v4831_v42 = vsel %vm9212_vm2, %v4823_v0, %v4830_v8  ;;  %v5102_v30 = vsel %vm9325_vm8, %v4832_v50, %v5101_v58  ;;  %v4919_v25 = vshrl.u32 %v4736_v14, 16  ;;  %v4922_v4 = vshll.u32 %v4736_v14, 16  ;;  %v5104_v54 = vld [vmem:[#allocation3 + $0x48] sm:$0xf]  ;;  %vm13404_vm4 = vmmov %vm13396_vm1 }
 0x336   : > { %5138 = vst [vmem:[#allocation3 + $0x80] sm:$0x1] %v5137_v48  ;;  %v4520_v23 = vmul.f32 %v11515_v38, %v4467_v41  ;;  %v4442_v31 = vpop.f32.mrf.mxu0  ;;  %v4726_v57 = vpack.c.bf16 %v4577_v47, %v4577_v47  ;;  %v5451_v9 = vrot.slane %v5449_v36, 5  ;;  %v5457_v28 = vrot.slane %v5455_v35, 5  ;;  %v4628_v41 = vld [vmem:[#allocation3 + $0x54] sm:$0x1] }
 0x337   : > { %5100 = vst.msk [vmem:[#allocation3 + $0x40] sm:$0xf] %vm13400_vm7, %v4831_v42  ;;  %v11727_v1 = vrot.slane %v4919_v25, 7  ;;  %v4510_v0 = vmul.f32 %v11515_v38, %v4442_v31  ;;  %v5461_v19 = vrot.slane %v5459_v21, 4  ;;  %v5465_v40 = vshll.u32 %v5222_v63, 16  ;;  %vm13405_vm7 = vmmov %vm13396_vm1 }
 0x338   : > { %5103 = vst [vmem:[#allocation3 + $0x44] sm:$0x1] %v5102_v30  ;;  %v4556_v17 = vadd.f32 %v11520_v2, %v4520_v23  ;;  %v4834_v16 = vshrl.u32 %v4726_v57, 16  ;;  %v4837_v10 = vshll.u32 %v4726_v57, 16  ;;  %v5452_v37 = vor.u32 %v5451_v9, %v5448_v45  ;;  %v5615_v31 = vld [vmem:[#allocation3 + $0x18] sm:$0xe] }
 0x339   : > { %v4924_v29 = vor.u32 %v4922_v4, %v11727_v1  ;;  %v4925_v15 = vrot.slane %v11727_v1, 4  ;;  %v4546_v20 = vadd.f32 %v11520_v2, %v4510_v0  ;;  %v4644_v58 = vsel %vm9325_vm8, 0, %v4643_v27  ;;  %v5143_v63 = vld [vmem:[#allocation3 + $0x8c] sm:$0x1] }
 0x33a   : > { %v4588_v32 = vmax.f32 %v4556_v17, 0.0  ;;  %v4836_v49 = vrot.slane %v4834_v16, 7  ;;  %v5453_v52 = vrot.slane %v5452_v37, 4  ;;  %v5462_v8 = vor.u32 %v5461_v19, %v5457_v28  ;;  %4645 = vst [vmem:[#allocation3 + $0x90] sm:$0x1] %v4644_v58 }
 0x33b   : > { %v5140_v3 = vsel %vm9347_vm10, %v4924_v29, %v5139_v56  ;;  %v4578_v7 = vmax.f32 %v4546_v20, 0.0  ;;  %v5467_v50 = vrot.slane %v5465_v40, 5  ;;  %v4629_v0 = vsel %vm9325_vm8, 0, %v4628_v41  ;;  %v5108_v56 = vld [vmem:[#allocation3 + $0x50] sm:$0x1] }
 0x33c   : > { %5141 = vst [vmem:[#allocation3 + $0x84] sm:$0xf] %v5140_v3  ;;  %v4737_v62 = vpack.c.bf16 %v4588_v32, %v4588_v32  ;;  %v4470_v24 = vpop.f32.mrf.mxu2  ;;  %v4839_v14 = vor.u32 %v4837_v10, %v4836_v49  ;;  %v4840_v22 = vrot.slane %v4836_v49, 4  ;;  %v5458_v42 = vsel %vm9568_vm3, %v5453_v52, %v5457_v28  ;;  %v4698_v37 = vld [vmem:[#allocation3 + $0x98] sm:$0x1] }
 0x33d   : > { %v4727_v43 = vpack.c.bf16 %v4578_v7, %v4578_v7  ;;  %v4521_v5 = vmul.f32 %v11515_v38, %v4470_v24  ;;  %v5463_v30 = vrot.slane %v5462_v8, 4  ;;  %v7088_v47 = vunpack.c.l.b16 %v5458_v42  ;;  %4630 = vst [vmem:[#allocation3 + $0x54] sm:$0x1] %v4629_v0 }
 0x33e   : > { %v4927_v59 = vshrl.u32 %v4737_v62, 16  ;;  %v4930_v48 = vshll.u32 %v4737_v62, 16  ;;  %v4445_v39 = vpop.f32.mrf.mxu0  ;;  %v5105_v25 = vsel %vm9347_vm10, %v4839_v14, %v5104_v54  ;;  %v8693_v20 = vrot.slane %v5615_v31, 9  ;;  %v5201_v14 = vld [vmem:[#allocation3 + $0x78] sm:$0xf] }
 0x33f   : > { %v4842_v18 = vshrl.u32 %v4727_v43, 16  ;;  %v4845_v11 = vshll.u32 %v4727_v43, 16  ;;  %v4557_v23 = vadd.f32 %v11520_v2, %v4521_v5  ;;  %5106 = vst [vmem:[#allocation3 + $0x48] sm:$0xf] %v5105_v25  ;;  %v5468_v36 = vsel %vm9568_vm3, %v5463_v30, %v5467_v50  ;;  %v11776_v25 = vld [vmem:[#allocation3 + $0x7c] sm:$0xf] }
 0x340   : > { %v4929_v4 = vrot.slane %v4927_v59, 7  ;;  %v4511_v1 = vmul.f32 %v11515_v38, %v4445_v39  ;;  %v7089_v57 = vunpack.c.l.b16 %v5468_v36  ;;  %v5693_v40 = vrot.slane %v11604_v55, 5  ;;  %v4683_v55 = vld [vmem:[#allocation3 + $0x5c] sm:$0x1] }
 0x341   : > { %v4844_v13 = vrot.slane %v4842_v18, 7  ;;  %v4589_v17 = vmax.f32 %v4557_v23, 0.0  ;;  %v5696_v49 = vrot.slane %v11608_v51, 5  ;;  %v4699_v43 = vsel %vm11478_vm11, 0, %v4698_v37  ;;  %v11783_v23 = vld [vmem:[#allocation3 + $0x80] sm:$0x1] }
 0x342   : > { %v4932_v35 = vor.u32 %v4930_v48, %v4929_v4  ;;  %v4934_v21 = vrot.slane %v4929_v4, 4  ;;  %v4547_v29 = vadd.f32 %v11520_v2, %v4511_v1  ;;  %v7111_v16 = vpack.c.b16 %v7089_v57, %v7088_v47  ;;  %4700 = vst [vmem:[#allocation3 + $0x98] sm:$0x1] %v4699_v43 }
 0x343   : > { %v4847_v45 = vor.u32 %v4845_v11, %v4844_v13  ;;  %v4849_v9 = vrot.slane %v4844_v13, 4  ;;  %v4738_v10 = vpack.c.bf16 %v4589_v17, %v4589_v17  ;;  %v5694_v58 = vsel %vm9981_vm15, %v8693_v20, %v5693_v40 }
 0x344   : > { %v4933_v28 = vsel %vm9212_vm2, %v4925_v15, %v4932_v35  ;;  %v5144_v27 = vsel %vm9325_vm8, %v4934_v21, %v5143_v63  ;;  %v4472_v32 = vpop.f32.mrf.mxu2  ;;  %v4579_v19 = vmax.f32 %v4547_v29, 0.0  ;;  %7136 = vrot.lane.b32.xlu2 %v7111_v16, %s9127_s11  ;;  %v5695_v54 = vrot.slane %v5693_v40, 4  ;;  %v5111_v13 = vld [vmem:[#allocation3 + $0x54] sm:$0xf] }
 0x345   : > { %5142 = vst.msk [vmem:[#allocation3 + $0x88] sm:$0xf] %vm13401_vm9, %v4933_v28  ;;  %v4848_v3 = vsel %vm9212_vm2, %v4840_v22, %v4847_v45  ;;  %v5109_v7 = vsel %vm9325_vm8, %v4849_v9, %v5108_v56  ;;  %v4936_v15 = vshrl.u32 %v4738_v10, 16  ;;  %v4522_v62 = vmul.f32 %v11515_v38, %v4472_v32  ;;  %v5146_v22 = vld [vmem:[#allocation3 + $0x90] sm:$0xf]  ;;  %vm13406_vm9 = vmmov %vm13396_vm1 }
 0x346   : > { %5145 = vst [vmem:[#allocation3 + $0x8c] sm:$0x1] %v5144_v27  ;;  %v4447_v52 = vpop.f32.mrf.mxu0  ;;  %v4728_v24 = vpack.c.bf16 %v4579_v19, %v4579_v19  ;;  %v4939_v50 = vshll.u32 %v4738_v10, 16  ;;  %v5697_v39 = vsel %vm9981_vm15, %v5695_v54, %v5696_v49  ;;  %v7154_v41 = vunpack.c.l.b16 %v5694_v58  ;;  %v4646_v19 = vld [vmem:[#allocation3 + $0x9c] sm:$0x1] }
 0x347   : > { %5107 = vst.msk [vmem:[#allocation3 + $0x4c] sm:$0xf] %vm13396_vm1, %v4848_v3  ;;  %v11768_v8 = vrot.slane %v4936_v15, 7  ;;  %v4558_v51 = vadd.f32 %v11520_v2, %v4522_v62  ;;  %v4512_v5 = vmul.f32 %v11515_v38, %v4447_v52  ;;  %v7155_v42 = vunpack.c.l.b16 %v5697_v39  ;;  %v11798_v3 = vld [vmem:[%s13180_s3] ss:$0 sm:$0xff] }
 0x348   : > { %5110 = vst [vmem:[#allocation3 + $0x50] sm:$0x1] %v5109_v7  ;;  %v4851_v59 = vshrl.u32 %v4728_v24, 16  ;;  %v4854_v48 = vshll.u32 %v4728_v24, 16  ;;  %v4684_v47 = vsel %vm11478_vm11, 0, %v4683_v55  ;;  %v5470_v31 = vshrl.u32 %v5201_v14, 16 }
 0x349   : > { %v4941_v18 = vor.u32 %v4939_v50, %v11768_v8  ;;  %v4942_v11 = vrot.slane %v11768_v8, 4  ;;  %v4590_v30 = vmax.f32 %v4558_v51, 0.0  ;;  %v4548_v38 = vadd.f32 %v11520_v2, %v4512_v5  ;;  %4685 = vst [vmem:[#allocation3 + $0x5c] sm:$0x1] %v4684_v47  ;;  %v5150_v15 = vld [vmem:[#allocation3 + $0x98] sm:$0x1] }
 0x34a   : > { %v11778_v4 = vrot.slane %v4851_v59, 7  ;;  %v7184_v36 = vpack.c.b16 %v7155_v42, %v7154_v41  ;;  %v5473_v0 = vshll.u32 %v5201_v14, 16  ;;  %v5472_v56 = vrot.slane %v5470_v31, 4  ;;  %v11804_v55 = vld [vmem:[%s13181_s4] ss:$0 sm:$0xff] }
 0x34b   : > { %v5147_v63 = vsel %vm9347_vm10, %v4941_v18, %v5146_v22  ;;  %v4739_v1 = vpack.c.bf16 %v4590_v30, %v4590_v30  ;;  %v4580_v2 = vmax.f32 %v4548_v38, 0.0  ;;  %v5479_v29 = vshll.u32 %v11776_v25, 16  ;;  %v4631_v22 = vld [vmem:[#allocation3 + $0x60] sm:$0x1]  ;;  %v5189_v59 = vld [vmem:[#allocation3 + $0x30] sm:$0xf] }
 0x34c   : > { %5148 = vst [vmem:[#allocation3 + $0x90] sm:$0xf] %v5147_v63  ;;  %v4856_v35 = vor.u32 %v4854_v48, %v11778_v4  ;;  %v4857_v21 = vrot.slane %v11778_v4, 4  ;;  %v4475_v57 = vpop.f32.mrf.mxu2  ;;  %7202 = vrot.lane.b32.xlu2 %v7184_v36, %s9129_s15  ;;  %v5475_v9 = vrot.slane %v5473_v0, 5  ;;  %v5483_v27 = vshrl.u32 %v11776_v25, 16 }
 0x34d   : > { %v4944_v17 = vshrl.u32 %v4739_v1, 16  ;;  %v4947_v45 = vshll.u32 %v4739_v1, 16  ;;  %v4729_v28 = vpack.c.bf16 %v4580_v2, %v4580_v2  ;;  %v5489_v16 = vshll.u32 %v11783_v23, 16  ;;  %v11828_v2 = vld [vmem:[#allocation3 + $0x38] sm:$0x1] }
 0x34e   : > { %v5112_v20 = vsel %vm9347_vm10, %v4856_v35, %v5111_v13  ;;  %v5476_v32 = vor.u32 %v5475_v9, %v5472_v56  ;;  %v5481_v37 = vrot.slane %v5479_v29, 5  ;;  %v4523_v7 = vmul.f32 %v11798_v3, %v4475_v57  ;;  %v4450_v40 = vpop.f32.mrf.mxu0  ;;  %v11820_v13 = vld [vmem:[#allocation3 + $0x34] sm:$0xf] }
 0x34f   : > { %5113 = vst [vmem:[#allocation3 + $0x54] sm:$0xf] %v5112_v20  ;;  %v4946_v10 = vrot.slane %v4944_v17, 7  ;;  %v4859_v49 = vshrl.u32 %v4729_v28, 16  ;;  %v4862_v62 = vshll.u32 %v4729_v28, 16  ;;  %v5485_v52 = vrot.slane %v5483_v27, 4 }
 0x350   : > { %v5491_v24 = vrot.slane %v5489_v16, 5  ;;  %v5477_v43 = vrot.slane %v5476_v32, 4  ;;  %v4559_v8 = vadd.f32 %v11804_v55, %v4523_v7  ;;  %v4647_v5 = vsel %vm9325_vm8, 0, %v4646_v19  ;;  %v5115_v41 = vld [vmem:[#allocation3 + $0x5c] sm:$0x1] }
 0x351   : > { %v4949_v58 = vor.u32 %v4947_v45, %v4946_v10  ;;  %v4951_v54 = vrot.slane %v4946_v10, 4  ;;  %v4861_v50 = vrot.slane %v4859_v49, 7  ;;  %v5486_v51 = vor.u32 %v5485_v52, %v5481_v37  ;;  %4648 = vst [vmem:[#allocation3 + $0x9c] sm:$0x1] %v4647_v5 }
 0x352   : > { %v4513_v14 = vmul.f32 %v11798_v3, %v4450_v40  ;;  %v5482_v18 = vsel %vm9568_vm3, %v5477_v43, %v5481_v37  ;;  %v4591_v42 = vmax.f32 %v4559_v8, 0.0  ;;  %v5326_v36 = vshrl.u32 %v5189_v59, 16  ;;  %v4686_v43 = vld [vmem:[#allocation3 + $0x68] sm:$0x1] }
 0x353   : > { %v4950_v48 = vsel %vm9212_vm2, %v4942_v11, %v4949_v58  ;;  %v5151_v39 = vsel %vm9325_vm8, %v4951_v54, %v5150_v15  ;;  %v4864_v30 = vor.u32 %v4862_v62, %v4861_v50  ;;  %v4866_v4 = vrot.slane %v4861_v50, 4  ;;  %v4701_v62 = vld [vmem:[#allocation3 + $0xa4] sm:$0x1] }
 0x354   : > { %5149 = vst.msk [vmem:[#allocation3 + $0x94] sm:$0xf] %vm13402_vm12, %v4950_v48  ;;  %v5487_v38 = vrot.slane %v5486_v51, 4  ;;  %v7090_v47 = vunpack.c.l.b16 %v5482_v18  ;;  %v4740_v31 = vpack.c.bf16 %v4591_v42, %v4591_v42  ;;  %v4549_v63 = vadd.f32 %v11804_v55, %v4513_v14  ;;  %v4477_v57 = vpop.f32.mrf.mxu2 }
 0x355   : > { %5152 = vst [vmem:[#allocation3 + $0x98] sm:$0x1] %v5151_v39  ;;  %v4632_v11 = vsel %vm9325_vm8, 0, %v4631_v22  ;;  %v4865_v1 = vsel %vm9212_vm2, %v4857_v21, %v4864_v30  ;;  %v5116_v0 = vsel %vm9325_vm8, %v4866_v4, %v5115_v41  ;;  %v5329_v56 = vshll.u32 %v5189_v59, 16  ;;  %v5613_v41 = vld [vmem:[#allocation3] sm:$0xe] }
 0x356   : > { %v5492_v35 = vsel %vm9568_vm3, %v5487_v38, %v5491_v24  ;;  %4633 = vst [vmem:[#allocation3 + $0x60] sm:$0x1] %v4632_v11  ;;  %v4953_v45 = vshrl.u32 %v4740_v31, 16  ;;  %v4956_v9 = vshll.u32 %v4740_v31, 16  ;;  %v4581_v29 = vmax.f32 %v4549_v63, 0.0  ;;  %v4452_v52 = vpop.f32.mrf.mxu0 }
 0x357   : > { %5114 = vst.msk [vmem:[#allocation3 + $0x58] sm:$0xf] %vm13403_vm5, %v4865_v1  ;;  %v7091_v17 = vunpack.c.l.b16 %v5492_v35  ;;  %v5328_v20 = vrot.slane %v5326_v36, 4  ;;  %v5331_v21 = vrot.slane %v5329_v56, 5  ;;  %v5335_v28 = vshll.u32 %v11820_v13, 16 }
 0x358   : > { %5117 = vst [vmem:[#allocation3 + $0x5c] sm:$0x1] %v5116_v0  ;;  %v5339_v27 = vshrl.u32 %v11820_v13, 16  ;;  %v11833_v10 = vrot.slane %v4953_v45, 7  ;;  %v4730_v32 = vpack.c.bf16 %v4581_v29, %v4581_v29  ;;  %v5345_v37 = vshll.u32 %v11828_v2, 16 }
 0x359   : > { %v7112_v16 = vpack.c.b16 %v7091_v17, %v7090_v47  ;;  %v5153_v7 = vld [vmem:[#allocation3 + $0x9c] sm:$0xf]  ;;  %v5332_v19 = vor.u32 %v5331_v21, %v5328_v20  ;;  %v5337_v40 = vrot.slane %v5335_v28, 5  ;;  %v4524_v49 = vmul.f32 %v11798_v3, %v4477_v57  ;;  %v5203_v35 = vld [vmem:[#allocation3 + $0x84] sm:$0xf] }
 0x35a   : > { %v5341_v15 = vrot.slane %v5339_v27, 4  ;;  %v4958_v24 = vor.u32 %v4956_v9, %v11833_v10  ;;  %v4868_v58 = vshrl.u32 %v4730_v32, 16  ;;  %v4871_v54 = vshll.u32 %v4730_v32, 16  ;;  %v11860_v29 = vld [vmem:[#allocation3 + $0x88] sm:$0xf] }
 0x35b   : > { %7138 = vrot.lane.b32.xlu0 %v7112_v16, %s9127_s11  ;;  %v5333_v8 = vrot.slane %v5332_v19, 4  ;;  %v5347_v51 = vrot.slane %v5345_v37, 5  ;;  %v4560_v5 = vadd.f32 %v11804_v55, %v4524_v49  ;;  %v4702_v48 = vsel %vm11478_vm11, 0, %v4701_v62  ;;  %v11867_v19 = vld [vmem:[#allocation3 + $0x8c] sm:$0x1] }
 0x35c   : > { %v5342_v50 = vor.u32 %v5341_v15, %v5337_v40  ;;  %v5154_v14 = vsel %vm9347_vm10, %v4958_v24, %v5153_v7  ;;  %v11842_v22 = vrot.slane %v4868_v58, 7  ;;  %v4514_v39 = vmul.f32 %v11798_v3, %v4452_v52  ;;  %4703 = vst [vmem:[#allocation3 + $0xa4] sm:$0x1] %v4702_v48  ;;  %v4480_v56 = vpop.f32.mrf.mxu2  ;;  %v4649_v24 = vld [vmem:[#allocation3 + $0xa8] sm:$0x1] }
 0x35d   : > { %v5118_v59 = vld [vmem:[#allocation3 + $0x60] sm:$0xf]  ;;  %5155 = vst [vmem:[#allocation3 + $0x9c] sm:$0xf] %v5154_v14  ;;  %v5338_v18 = vsel %vm9568_vm3, %v5333_v8, %v5337_v40  ;;  %v4592_v30 = vmax.f32 %v4560_v5, 0.0  ;;  %v4687_v4 = vsel %vm11478_vm11, 0, %v4686_v43 }
 0x35e   : > { %v5343_v42 = vrot.slane %v5342_v50, 4  ;;  %v4959_v38 = vrot.slane %v11833_v10, 4  ;;  %v4873_v47 = vor.u32 %v4871_v54, %v11842_v22  ;;  %v7078_v31 = vunpack.c.l.b16 %v5338_v18  ;;  %4688 = vst [vmem:[#allocation3 + $0x68] sm:$0x1] %v4687_v4 }
 0x35f   : > { %v4550_v63 = vadd.f32 %v11804_v55, %v4514_v39  ;;  %v4741_v36 = vpack.c.bf16 %v4592_v30, %v4592_v30  ;;  %v8691_v1 = vrot.slane %v5613_v41, 9  ;;  %v5679_v0 = vrot.slane %v11622_v34, 5 }
 0x360   : > { %v5348_v11 = vsel %vm9568_vm3, %v5343_v42, %v5347_v51  ;;  %v5119_v57 = vsel %vm9347_vm10, %v4873_v47, %v5118_v59  ;;  %v5682_v9 = vrot.slane %v11645_v60, 5  ;;  %v4874_v20 = vrot.slane %v11842_v22, 4  ;;  %v5616_v59 = vld [vmem:[#allocation3 + $0x24] sm:$0xe] }
 0x361   : > { %v7079_v17 = vunpack.c.l.b16 %v5348_v11  ;;  %v4582_v45 = vmax.f32 %v4550_v63, 0.0  ;;  %5120 = vst [vmem:[#allocation3 + $0x60] sm:$0xf] %v5119_v57  ;;  %v4961_v21 = vshrl.u32 %v4741_v36, 16  ;;  %v5680_v28 = vsel %vm9981_vm15, %v8691_v1, %v5679_v0 }
 0x362   : > { %v5681_v27 = vrot.slane %v5679_v0, 4  ;;  %v4964_v16 = vshll.u32 %v4741_v36, 16  ;;  %v5494_v32 = vshrl.u32 %v5203_v35, 16  ;;  %v5497_v60 = vshll.u32 %v5203_v35, 16 }
 0x363   : > { %v7106_v34 = vpack.c.b16 %v7079_v17, %v7078_v31  ;;  %v4731_v10 = vpack.c.bf16 %v4582_v45, %v4582_v45  ;;  %v4963_v37 = vrot.slane %v4961_v21, 7  ;;  %v5503_v40 = vshll.u32 %v11860_v29, 16  ;;  %v5157_v43 = vld [vmem:[#allocation3 + $0xa4] sm:$0x1]  ;;  %v5614_v17 = vld [vmem:[#allocation3 + $0xc] sm:$0xe] }
 0x364   : > { %v5683_v7 = vsel %vm9981_vm15, %v5681_v27, %v5682_v9  ;;  %v7150_v49 = vunpack.c.l.b16 %v5680_v28  ;;  %v5496_v52 = vrot.slane %v5494_v32, 4  ;;  %v5499_v50 = vrot.slane %v5497_v60, 5  ;;  %v4482_v1 = vpop.f32.mrf.mxu2  ;;  %v4704_v28 = vld [vmem:[#allocation3 + $0xb0] sm:$0x1] }
 0x365   : > { %7126 = vrot.lane.b32.xlu0 %v7106_v34, %s9127_s11  ;;  %v4876_v15 = vshrl.u32 %v4731_v10, 16  ;;  %v7151_v62 = vunpack.c.l.b16 %v5683_v7  ;;  %v4966_v58 = vor.u32 %v4964_v16, %v4963_v37  ;;  %v4968_v54 = vrot.slane %v4963_v37, 4  ;;  %v5122_v41 = vld [vmem:[#allocation3 + $0x68] sm:$0x1]  ;;  %v9115_v37 = vld [vmem:[#allocation3 + $0x10] sm:$0xf] }
 0x366   : > { %v4879_v8 = vshll.u32 %v4731_v10, 16  ;;  %v5505_v5 = vrot.slane %v5503_v40, 5  ;;  %v5507_v14 = vshrl.u32 %v11860_v29, 16  ;;  %v5513_v22 = vshll.u32 %v11867_v19, 16 }
 0x367   : > { %v4878_v51 = vrot.slane %v4876_v15, 7  ;;  %v4967_v48 = vsel %vm9212_vm2, %v4959_v38, %v4966_v58  ;;  %v5158_v39 = vsel %vm9325_vm8, %v4968_v54, %v5157_v43  ;;  %v5500_v18 = vor.u32 %v5499_v50, %v5496_v52 }
 0x368   : > { %v4525_v42 = vmul.f32 %v11798_v3, %v4480_v56  ;;  %5156 = vst.msk [vmem:[#allocation3 + $0xa0] sm:$0xf] %vm13404_vm4, %v4967_v48  ;;  %v7182_v47 = vpack.c.b16 %v7151_v62, %v7150_v49  ;;  %v5509_v31 = vrot.slane %v5507_v14, 4  ;;  %v4650_v38 = vsel %vm9325_vm8, 0, %v4649_v24  ;;  %v5617_v62 = vld [vmem:[#allocation3 + $0x30] sm:$0xe] }
 0x369   : > { %v4881_v30 = vor.u32 %v4879_v8, %v4878_v51  ;;  %v4883_v4 = vrot.slane %v4878_v51, 4  ;;  %5159 = vst [vmem:[#allocation3 + $0xa4] sm:$0x1] %v5158_v39  ;;  %v5501_v63 = vrot.slane %v5500_v18, 4  ;;  %v8694_v36 = vrot.slane %v5616_v59, 9 }
 0x36a   : > { %v4561_v11 = vadd.f32 %v11804_v55, %v4525_v42  ;;  %v5510_v56 = vor.u32 %v5509_v31, %v5505_v5  ;;  %4651 = vst [vmem:[#allocation3 + $0xa8] sm:$0x1] %v4650_v38  ;;  %v5700_v57 = vrot.slane %v11669_v6, 5  ;;  %v5515_v9 = vrot.slane %v5513_v22, 5  ;;  %v9116_v8 = vld [vmem:[#allocation3 + $0x14] sm:$0x1] }
 0x36b   : > { %v4882_v0 = vsel %vm9212_vm2, %v4874_v20, %v4881_v30  ;;  %v5123_v35 = vsel %vm9325_vm8, %v4883_v4, %v5122_v41  ;;  %v5506_v45 = vsel %vm9568_vm3, %v5501_v63, %v5505_v5  ;;  %v5703_v16 = vrot.slane %v11684_v46, 5  ;;  %v5205_v5 = vld [vmem:[#allocation3 + $0x90] sm:$0xf] }
 0x36c   : > { %5121 = vst.msk [vmem:[#allocation3 + $0x64] sm:$0xf] %vm13405_vm7, %v4882_v0  ;;  %v4593_v21 = vmax.f32 %v4561_v11, 0.0  ;;  %v5511_v20 = vrot.slane %v5510_v56, 4  ;;  %v5701_v27 = vsel %vm9981_vm15, %v8694_v36, %v5700_v57  ;;  %v5702_v34 = vrot.slane %v5700_v57, 4  ;;  %v4485_v11 = vpop.f32.mrf.mxu2 }
 0x36d   : > { %5124 = vst [vmem:[#allocation3 + $0x68] sm:$0x1] %v5123_v35  ;;  %7198 = vrot.lane.b32.xlu0 %v7182_v47, %s9129_s15  ;;  %v7092_v6 = vunpack.c.l.b16 %v5506_v45  ;;  %v8692_v32 = vrot.slane %v5614_v17, 9  ;;  %v5686_v7 = vrot.slane %v9115_v37, 5  ;;  %v4526_v15 = vmul.f32 %v11798_v3, %v4482_v1  ;;  %v11910_v0 = vld [vmem:[#allocation3 + $0x94] sm:$0xf] }
 0x36e   : > { %v4742_v10 = vpack.c.bf16 %v4593_v21, %v4593_v21  ;;  %v5516_v60 = vsel %vm9568_vm3, %v5511_v20, %v5515_v9  ;;  %v5704_v40 = vsel %vm9981_vm15, %v5702_v34, %v5703_v16  ;;  %v4705_v49 = vsel %vm11478_vm11, 0, %v4704_v28  ;;  %v11916_v17 = vld [vmem:[#allocation3 + $0x98] sm:$0x1]  ;;  %v4652_v9 = vld [vmem:[#allocation3 + $0xb4] sm:$0x1] }
 0x36f   : > { %v7093_v52 = vunpack.c.l.b16 %v5516_v60  ;;  %v7156_v46 = vunpack.c.l.b16 %v5701_v27  ;;  %v7157_v58 = vunpack.c.l.b16 %v5704_v40  ;;  %4706 = vst [vmem:[#allocation3 + $0xb0] sm:$0x1] %v4705_v49  ;;  %v5687_v54 = vsel %vm9981_vm15, %v8692_v32, %v5686_v7  ;;  %v5192_v40 = vld [vmem:[#allocation3 + $0x40] sm:$0xf] }
 0x370   : > { %v4970_v24 = vshrl.u32 %v4742_v10, 16  ;;  %v5688_v43 = vrot.slane %v5686_v7, 4  ;;  %v5689_v50 = vrot.slane %v9116_v8, 5  ;;  %v4562_v51 = vadd.f32 %v11804_v55, %v4526_v15 }
 0x371   : > { %v7113_v14 = vpack.c.b16 %v7093_v52, %v7092_v6  ;;  %v4973_v59 = vshll.u32 %v4742_v10, 16  ;;  %v8695_v48 = vrot.slane %v5617_v62, 9  ;;  %v5160_v39 = vld [vmem:[#allocation3 + $0xa8] sm:$0xf]  ;;  %v7185_v41 = vpack.c.b16 %v7157_v58, %v7156_v46  ;;  %v5191_v10 = vld [vmem:[#allocation3 + $0x3c] sm:$0xf] }
 0x372   : > { %v4972_v22 = vrot.slane %v4970_v24, 7  ;;  %v5690_v18 = vsel %vm9981_vm15, %v5688_v43, %v5689_v50  ;;  %v4594_v42 = vmax.f32 %v4562_v51, 0.0  ;;  %v5707_v30 = vrot.slane %v11820_v13, 5 }
 0x373   : > { %7140 = vrot.lane.b32.xlu1 %v7113_v14, %s9127_s11  ;;  %v7152_v47 = vunpack.c.l.b16 %v5687_v54  ;;  %v7153_v31 = vunpack.c.l.b16 %v5690_v18  ;;  %v5518_v63 = vshrl.u32 %v5205_v5, 16  ;;  %v5710_v1 = vrot.slane %v11828_v2, 5 }
 0x374   : > { %v4975_v4 = vor.u32 %v4973_v59, %v4972_v22  ;;  %v4743_v38 = vpack.c.bf16 %v4594_v42, %v4594_v42  ;;  %v5709_v36 = vrot.slane %v5707_v30, 4  ;;  %v5521_v35 = vshll.u32 %v5205_v5, 16 }
 0x375   : > { %7204 = vrot.lane.b32.xlu0 %v7185_v41, %s9129_s15  ;;  %v4976_v56 = vrot.slane %v4972_v22, 4  ;;  %v5708_v57 = vsel %vm9981_vm15, %v8695_v48, %v5707_v30  ;;  %v5520_v45 = vrot.slane %v5518_v63, 4  ;;  %v7183_v21 = vpack.c.b16 %v7153_v31, %v7152_v47  ;;  %v5218_v48 = vld [vmem:[#allocation3 + $0x44] sm:$0x1] }
 0x376   : > { %v5161_v13 = vsel %vm9347_vm10, %v4975_v4, %v5160_v39  ;;  %v4978_v28 = vshrl.u32 %v4743_v38, 16  ;;  %v5711_v2 = vsel %vm9981_vm15, %v5709_v36, %v5710_v1  ;;  %v4527_v20 = vmul.f32 %v11798_v3, %v4485_v11  ;;  %v5164_v15 = vld [vmem:[#allocation3 + $0xb0] sm:$0x1]  ;;  %v5618_v11 = vld [vmem:[#allocation3 + $0x3c] sm:$0xe] }
 0x377   : > { %5162 = vst [vmem:[#allocation3 + $0xa8] sm:$0xf] %v5161_v13  ;;  %v4981_v27 = vshll.u32 %v4743_v38, 16  ;;  %v5523_v34 = vrot.slane %v5521_v35, 5  ;;  %v5527_v16 = vshll.u32 %v11910_v0, 16  ;;  %v5531_v6 = vshrl.u32 %v11910_v0, 16 }
 0x378   : > { %v4980_v32 = vrot.slane %v4978_v28, 7  ;;  %v5537_v37 = vshll.u32 %v11916_v17, 16  ;;  %v4563_v7 = vadd.f32 %v11804_v55, %v4527_v20  ;;  %v4653_v60 = vsel %vm9325_vm8, 0, %v4652_v9 }
 0x379   : > { %v7159_v49 = vunpack.c.l.b16 %v5711_v2  ;;  %v5524_v62 = vor.u32 %v5523_v34, %v5520_v45  ;;  %v5529_v52 = vrot.slane %v5527_v16, 5  ;;  %v5533_v24 = vrot.slane %v5531_v6, 4  ;;  %4654 = vst [vmem:[#allocation3 + $0xb4] sm:$0x1] %v4653_v60 }
 0x37a   : > { %v4983_v46 = vor.u32 %v4981_v27, %v4980_v32  ;;  %v4985_v58 = vrot.slane %v4980_v32, 4  ;;  %v5539_v54 = vrot.slane %v5537_v37, 5  ;;  %v4595_v43 = vmax.f32 %v4563_v7, 0.0  ;;  %v4707_v27 = vld [vmem:[#allocation3 + $0xbc] sm:$0x1] }
 0x37b   : > { %7200 = vrot.lane.b32.xlu1 %v7183_v21, %s9129_s15  ;;  %v5525_v8 = vrot.slane %v5524_v62, 4  ;;  %v5534_v50 = vor.u32 %v5533_v24, %v5529_v52  ;;  %v5350_v51 = vshrl.u32 %v5191_v10, 16  ;;  %v5353_v5 = vshll.u32 %v5191_v10, 16  ;;  %v5623_v32 = vld [vmem:[#allocation3 + $0x78] sm:$0xe] }
 0x37c   : > { %v4984_v14 = vsel %vm9212_vm2, %v4976_v56, %v4983_v46  ;;  %v5165_v22 = vsel %vm9325_vm8, %v4985_v58, %v5164_v15  ;;  %v4744_v59 = vpack.c.bf16 %v4595_v43, %v4595_v43  ;;  %v5359_v39 = vshll.u32 %v5192_v40, 16 }
 0x37d   : > { %5163 = vst.msk [vmem:[#allocation3 + $0xac] sm:$0xf] %vm13406_vm9, %v4984_v14  ;;  %v5530_v41 = vsel %vm9568_vm3, %v5525_v8, %v5529_v52  ;;  %v5535_v18 = vrot.slane %v5534_v50, 4  ;;  %v5352_v42 = vrot.slane %v5350_v51, 4  ;;  %v5355_v30 = vrot.slane %v5353_v5, 5 }
 0x37e   : > { %5166 = vst [vmem:[#allocation3 + $0xb0] sm:$0x1] %v5165_v22  ;;  %v7158_v4 = vunpack.c.l.b16 %v5708_v57  ;;  %v7094_v47 = vunpack.c.l.b16 %v5530_v41  ;;  %v4987_v31 = vshrl.u32 %v4744_v59, 16  ;;  %v5361_v63 = vrot.slane %v5359_v39, 5  ;;  %v4487_v57 = vpop.f32.mrf.mxu2  ;;  %v5624_v5 = vld [vmem:[#allocation3 + $0x84] sm:$0xe] }
 0x37f   : > { %v5540_v38 = vsel %vm9568_vm3, %v5535_v18, %v5539_v54  ;;  %v5356_v36 = vor.u32 %v5355_v30, %v5352_v42  ;;  %v5363_v1 = vshrl.u32 %v5192_v40, 16  ;;  %v5369_v35 = vshll.u32 %v5218_v48, 16  ;;  %v5207_v42 = vld [vmem:[#allocation3 + $0x9c] sm:$0xf]  ;;  %v11962_v30 = vld [vmem:[#allocation3 + $0xa0] sm:$0xf] }
 0x380   : > { %v7095_v56 = vunpack.c.l.b16 %v5540_v38  ;;  %v11937_v13 = vrot.slane %v4987_v31, 7  ;;  %v4990_v45 = vshll.u32 %v4744_v59, 16  ;;  %v5714_v9 = vrot.slane %v5192_v40, 5  ;;  %v5167_v28 = vld [vmem:[#allocation3 + $0xb4] sm:$0xf] }
 0x381   : > { %v7186_v21 = vpack.c.b16 %v7159_v49, %v7158_v4  ;;  %v5365_v2 = vrot.slane %v5363_v1, 4  ;;  %v8696_v20 = vrot.slane %v5618_v11, 9  ;;  %v5357_v6 = vrot.slane %v5356_v36, 4  ;;  %v11969_v1 = vld [vmem:[#allocation3 + $0xa4] sm:$0x1] }
 0x382   : > { %v7114_v34 = vpack.c.b16 %v7095_v56, %v7094_v47  ;;  %v4992_v16 = vor.u32 %v4990_v45, %v11937_v13  ;;  %v5371_v10 = vrot.slane %v5369_v35, 5  ;;  %v5716_v60 = vrot.slane %v5714_v9, 4 }
 0x383   : > { %7206 = vrot.lane.b32.xlu1 %v7186_v21, %s9129_s15  ;;  %v5366_v37 = vor.u32 %v5365_v2, %v5361_v63  ;;  %v5715_v7 = vsel %vm9981_vm15, %v8696_v20, %v5714_v9  ;;  %v5717_v40 = vrot.slane %v5218_v48, 5  ;;  %v5362_v49 = vsel %vm9568_vm3, %v5357_v6, %v5361_v63  ;;  %v4655_v2 = vld [vmem:[#allocation3 + $0xc0] sm:$0x1] }
 0x384   : > { %7142 = vrot.lane.b32.xlu2 %v7114_v34, %s9127_s11  ;;  %v5168_v15 = vsel %vm9347_vm10, %v4992_v16, %v5167_v28  ;;  %v4528_v62 = vmul.f32 %v11798_v3, %v4487_v57  ;;  %v4708_v52 = vsel %vm11478_vm11, 0, %v4707_v27  ;;  %v8701_v58 = vrot.slane %v5623_v32, 9 }
 0x385   : > { %5169 = vst [vmem:[#allocation3 + $0xb4] sm:$0xf] %v5168_v15  ;;  %v5367_v24 = vrot.slane %v5366_v37, 4  ;;  %v5718_v46 = vsel %vm9981_vm15, %v5716_v60, %v5717_v40  ;;  %v5749_v54 = vrot.slane %v11776_v25, 5  ;;  %v4993_v43 = vrot.slane %v11937_v13, 4 }
 0x386   : > { %v7161_v8 = vunpack.c.l.b16 %v5718_v46  ;;  %v4564_v50 = vadd.f32 %v11804_v55, %v4528_v62  ;;  %4709 = vst [vmem:[#allocation3 + $0xbc] sm:$0x1] %v4708_v52  ;;  %v5752_v51 = vrot.slane %v11783_v23, 5  ;;  %v5756_v48 = vrot.slane %v11860_v29, 5  ;;  %v4490_v45 = vpop.f32.mrf.mxu2 }
 0x387   : > { %v5372_v14 = vsel %vm9568_vm3, %v5367_v24, %v5371_v10  ;;  %v5750_v22 = vsel %vm9981_vm15, %v8701_v58, %v5749_v54  ;;  %v5751_v59 = vrot.slane %v5749_v54, 4  ;;  %v7080_v39 = vunpack.c.l.b16 %v5362_v49  ;;  %v5193_v49 = vld [vmem:[#allocation3 + $0x48] sm:$0xf]  ;;  %v5194_v58 = vld [vmem:[#allocation3 + $0x4c] sm:$0xf] }
 0x388   : > { %v7081_v25 = vunpack.c.l.b16 %v5372_v14  ;;  %v7160_v41 = vunpack.c.l.b16 %v5715_v7  ;;  %v4596_v18 = vmax.f32 %v4564_v50, 0.0  ;;  %v8702_v4 = vrot.slane %v5624_v5, 9 }
 0x389   : > { %v5753_v23 = vsel %vm9981_vm15, %v5751_v59, %v5752_v51  ;;  %v5758_v47 = vrot.slane %v5756_v48, 4  ;;  %v5759_v31 = vrot.slane %v11867_v19, 5  ;;  %v7170_v36 = vunpack.c.l.b16 %v5750_v22  ;;  %v5219_v59 = vld [vmem:[#allocation3 + $0x50] sm:$0x1] }
 0x38a   : > { %v7107_v63 = vpack.c.b16 %v7081_v25, %v7080_v39  ;;  %v7187_v11 = vpack.c.b16 %v7161_v8, %v7160_v41  ;;  %v4745_v38 = vpack.c.bf16 %v4596_v18, %v4596_v18  ;;  %v5542_v35 = vshrl.u32 %v5207_v42, 16 }
 0x38b   : > { %v5760_v29 = vsel %vm9981_vm15, %v5758_v47, %v5759_v31  ;;  %v5545_v56 = vshll.u32 %v5207_v42, 16  ;;  %v5551_v13 = vshll.u32 %v11962_v30, 16  ;;  %v7171_v19 = vunpack.c.l.b16 %v5753_v23 }
 0x38c   : > { %7128 = vrot.lane.b32.xlu1 %v7107_v63, %s9127_s11  ;;  %7208 = vrot.lane.b32.xlu2 %v7187_v11, %s9129_s15  ;;  %v4995_v9 = vshrl.u32 %v4745_v38, 16  ;;  %v5757_v21 = vsel %vm9981_vm15, %v8702_v4, %v5756_v48  ;;  %v7173_v28 = vunpack.c.l.b16 %v5760_v29  ;;  %v5544_v20 = vrot.slane %v5542_v35, 4  ;;  %v5619_v4 = vld [vmem:[#allocation3 + $0x48] sm:$0xe] }
 0x38d   : > { %v5547_v57 = vrot.slane %v5545_v56, 5  ;;  %v5553_v27 = vrot.slane %v5551_v13, 5  ;;  %v5555_v34 = vshrl.u32 %v11962_v30, 16  ;;  %v4998_v6 = vshll.u32 %v4745_v38, 16  ;;  %v5171_v37 = vld [vmem:[#allocation3 + $0xbc] sm:$0x1] }
 0x38e   : > { %v4997_v16 = vrot.slane %v4995_v9, 7  ;;  %v5561_v10 = vshll.u32 %v11969_v1, 16  ;;  %v4529_v32 = vmul.f32 %v11798_v3, %v4490_v45  ;;  %v7172_v7 = vunpack.c.l.b16 %v5757_v21  ;;  %v4492_v56 = vpop.f32.mrf.mxu2 }
 0x38f   : > { %v5548_v60 = vor.u32 %v5547_v57, %v5544_v20  ;;  %v5557_v40 = vrot.slane %v5555_v34, 4  ;;  %v4656_v15 = vsel %vm9325_vm8, 0, %v4655_v2  ;;  %v7192_v24 = vpack.c.b16 %v7171_v19, %v7170_v36  ;;  %v4710_v57 = vld [vmem:[#allocation3 + $0xc8] sm:$0x1] }
 0x390   : > { %v5000_v62 = vor.u32 %v4998_v6, %v4997_v16  ;;  %v5002_v52 = vrot.slane %v4997_v16, 4  ;;  %v4565_v46 = vadd.f32 %v11804_v55, %v4529_v32  ;;  %4657 = vst [vmem:[#allocation3 + $0xc0] sm:$0x1] %v4656_v15  ;;  %v7193_v54 = vpack.c.b16 %v7173_v28, %v7172_v7 }
 0x391   : > { %v5549_v8 = vrot.slane %v5548_v60, 4  ;;  %v5558_v50 = vor.u32 %v5557_v40, %v5553_v27  ;;  %v5563_v51 = vrot.slane %v5561_v10, 5  ;;  %v5374_v48 = vshrl.u32 %v5193_v49, 16 }
 0x392   : > { %v5001_v5 = vsel %vm9212_vm2, %v4993_v43, %v5000_v62  ;;  %v5172_v14 = vsel %vm9325_vm8, %v5002_v52, %v5171_v37  ;;  %v4597_v22 = vmax.f32 %v4565_v46, 0.0  ;;  %v5377_v41 = vshll.u32 %v5193_v49, 16  ;;  %v5622_v62 = vld [vmem:[#allocation3 + $0x6c] sm:$0xe] }
 0x393   : > { %5170 = vst.msk [vmem:[#allocation3 + $0xb8] sm:$0xf] %vm13396_vm1, %v5001_v5  ;;  %v5554_v39 = vsel %vm9568_vm3, %v5549_v8, %v5553_v27  ;;  %v5559_v25 = vrot.slane %v5558_v50, 4  ;;  %v5383_v18 = vshll.u32 %v5194_v58, 16  ;;  %v5376_v42 = vrot.slane %v5374_v48, 4 }
 0x394   : > { %5173 = vst [vmem:[#allocation3 + $0xbc] sm:$0x1] %v5172_v14  ;;  %7218 = vrot.lane.b32.xlu1 %v7192_v24, %s9129_s15  ;;  %7220 = vrot.lane.b32.xlu2 %v7193_v54, %s9129_s15  ;;  %v4746_v43 = vpack.c.bf16 %v4597_v22, %v4597_v22  ;;  %v5387_v23 = vshrl.u32 %v5194_v58, 16  ;;  %v7096_v31 = vunpack.c.l.b16 %v5554_v39  ;;  %v5379_v63 = vrot.slane %v5377_v41, 5  ;;  %v5627_v54 = vld [vmem:[#allocation3 + $0xa8] sm:$0xe] }
 0x395   : > { %v5564_v47 = vsel %vm9568_vm3, %v5559_v25, %v5563_v51  ;;  %v5385_v11 = vrot.slane %v5383_v18, 5  ;;  %v5393_v35 = vshll.u32 %v5219_v59, 16  ;;  %v8697_v9 = vrot.slane %v5619_v4, 9  ;;  %v5227_v48 = vld [vmem:[#allocation3 + $0xb0] sm:$0x1] }
 0x396   : > { %v7097_v38 = vunpack.c.l.b16 %v5564_v47  ;;  %v5004_v36 = vshrl.u32 %v4746_v43, 16  ;;  %v5389_v29 = vrot.slane %v5387_v23, 4  ;;  %v5007_v13 = vshll.u32 %v4746_v43, 16 }
 0x397   : > { %v5380_v45 = vor.u32 %v5379_v63, %v5376_v42  ;;  %v5721_v19 = vrot.slane %v5194_v58, 5  ;;  %v5724_v20 = vrot.slane %v5219_v59, 5  ;;  %v5174_v27 = vld [vmem:[#allocation3 + $0xc0] sm:$0xf]  ;;  %v4530_v10 = vmul.f32 %v11798_v3, %v4492_v56  ;;  %v5210_v58 = vld [vmem:[#allocation3 + $0xac] sm:$0xf] }
 0x398   : > { %v7115_v21 = vpack.c.b16 %v7097_v38, %v7096_v31  ;;  %v11993_v28 = vrot.slane %v5004_v36, 7  ;;  %v5390_v2 = vor.u32 %v5389_v29, %v5385_v11  ;;  %v5395_v7 = vrot.slane %v5393_v35, 5  ;;  %v9117_v59 = vld [vmem:[#allocation3 + $0x70] sm:$0xf]  ;;  %v9118_v42 = vld [vmem:[#allocation3 + $0x74] sm:$0x1] }
 0x399   : > { %v5381_v34 = vrot.slane %v5380_v45, 4  ;;  %v5722_v16 = vsel %vm9981_vm15, %v8697_v9, %v5721_v19  ;;  %v5723_v6 = vrot.slane %v5721_v19, 4  ;;  %v4566_v15 = vadd.f32 %v11804_v55, %v4530_v10  ;;  %v5209_v55 = vld [vmem:[#allocation3 + $0xa8] sm:$0xf] }
 0x39a   : > { %7144 = vrot.lane.b32.xlu0 %v7115_v21, %s9127_s11  ;;  %v5009_v32 = vor.u32 %v5007_v13, %v11993_v28  ;;  %v5391_v37 = vrot.slane %v5390_v2, 4  ;;  %v4711_v49 = vsel %vm11478_vm11, 0, %v4710_v57  ;;  %v7162_v24 = vunpack.c.l.b16 %v5722_v16 }
 0x39b   : > { %v5386_v60 = vsel %vm9568_vm3, %v5381_v34, %v5385_v11  ;;  %v5725_v40 = vsel %vm9981_vm15, %v5723_v6, %v5724_v20  ;;  %4712 = vst [vmem:[#allocation3 + $0xc8] sm:$0x1] %v4711_v49  ;;  %v4598_v51 = vmax.f32 %v4566_v15, 0.0  ;;  %v5010_v5 = vrot.slane %v11993_v28, 4 }
 0x39c   : > { %v5175_v3 = vsel %vm9347_vm10, %v5009_v32, %v5174_v27  ;;  %v5396_v52 = vsel %vm9568_vm3, %v5391_v37, %v5395_v7  ;;  %v7163_v46 = vunpack.c.l.b16 %v5725_v40  ;;  %v7082_v8 = vunpack.c.l.b16 %v5386_v60  ;;  %v5195_v27 = vld [vmem:[#allocation3 + $0x54] sm:$0xf]  ;;  %v5196_v32 = vld [vmem:[#allocation3 + $0x58] sm:$0xf]  ;;  %vm13407_vm10 = vmmov %vm13396_vm1 }
 0x39d   : > { %5176 = vst [vmem:[#allocation3 + $0xc0] sm:$0xf] %v5175_v3  ;;  %v7083_v50 = vunpack.c.l.b16 %v5396_v52  ;;  %v8700_v22 = vrot.slane %v5622_v62, 9  ;;  %v5742_v26 = vrot.slane %v9117_v59, 5  ;;  %v4747_v25 = vpack.c.bf16 %v4598_v51, %v4598_v51  ;;  %v5220_v3 = vld [vmem:[#allocation3 + $0x5c] sm:$0x1] }
 0x39e   : > { %v7188_v14 = vpack.c.b16 %v7163_v46, %v7162_v24  ;;  %v8705_v41 = vrot.slane %v5627_v54, 9  ;;  %v5777_v18 = vrot.slane %v5210_v58, 5  ;;  %v5745_v23 = vrot.slane %v9118_v42, 5  ;;  %v5620_v24 = vld [vmem:[#allocation3 + $0x54] sm:$0xe] }
 0x39f   : > { %v7108_v39 = vpack.c.b16 %v7083_v50, %v7082_v8  ;;  %v5744_v43 = vrot.slane %v5742_v26, 4  ;;  %v5566_v4 = vshrl.u32 %v5209_v55, 16  ;;  %v5569_v47 = vshll.u32 %v5209_v55, 16 }
 0x3a0   : > { %v5012_v31 = vshrl.u32 %v4747_v25, 16  ;;  %v5743_v63 = vsel %vm9981_vm15, %v8700_v22, %v5742_v26  ;;  %v5778_v11 = vsel %vm9981_vm15, %v8705_v41, %v5777_v18  ;;  %v5780_v38 = vrot.slane %v5227_v48, 5 }
 0x3a1   : > { %7130 = vrot.lane.b32.xlu2 %v7108_v39, %s9127_s11  ;;  %v5015_v36 = vshll.u32 %v4747_v25, 16  ;;  %v5746_v29 = vsel %vm9981_vm15, %v5744_v43, %v5745_v23  ;;  %v5779_v35 = vrot.slane %v5777_v18, 4  ;;  %v5568_v56 = vrot.slane %v5566_v4, 4 }
 0x3a2   : > { %7210 = vrot.lane.b32.xlu0 %v7188_v14, %s9129_s15  ;;  %v5014_v13 = vrot.slane %v5012_v31, 7  ;;  %v7169_v45 = vunpack.c.l.b16 %v5746_v29  ;;  %v5571_v9 = vrot.slane %v5569_v47, 5  ;;  %v5575_v19 = vshll.u32 %v5210_v58, 16  ;;  %v5178_v21 = vld [vmem:[#allocation3 + $0xc8] sm:$0x1] }
 0x3a3   : > { %v7168_v28 = vunpack.c.l.b16 %v5743_v63  ;;  %v5781_v2 = vsel %vm9981_vm15, %v5779_v35, %v5780_v38  ;;  %v7178_v20 = vunpack.c.l.b16 %v5778_v11  ;;  %v5579_v57 = vshrl.u32 %v5210_v58, 16  ;;  %v5625_v63 = vld [vmem:[#allocation3 + $0x90] sm:$0xe] }
 0x3a4   : > { %v5017_v34 = vor.u32 %v5015_v36, %v5014_v13  ;;  %v5019_v16 = vrot.slane %v5014_v13, 4  ;;  %v7179_v6 = vunpack.c.l.b16 %v5781_v2  ;;  %v5585_v10 = vshll.u32 %v5227_v48, 16 }
 0x3a5   : > { %v7191_v37 = vpack.c.b16 %v7169_v45, %v7168_v28  ;;  %v5572_v7 = vor.u32 %v5571_v9, %v5568_v56  ;;  %v5577_v60 = vrot.slane %v5575_v19, 5  ;;  %v5581_v40 = vrot.slane %v5579_v57, 4  ;;  %v5626_v9 = vld [vmem:[#allocation3 + $0x9c] sm:$0xe]  ;;  %v5211_v19 = vld [vmem:[#allocation3 + $0xb4] sm:$0xf] }
 0x3a6   : > { %v5018_v15 = vsel %vm9212_vm2, %v5010_v5, %v5017_v34  ;;  %v5179_v49 = vsel %vm9325_vm8, %v5019_v16, %v5178_v21  ;;  %v7196_v62 = vpack.c.b16 %v7179_v6, %v7178_v20  ;;  %v5398_v52 = vshrl.u32 %v5195_v27, 16  ;;  %v5212_v20 = vld [vmem:[#allocation3 + $0xb8] sm:$0xf] }
 0x3a7   : > { %5177 = vst.msk [vmem:[#allocation3 + $0xc4] sm:$0xf] %vm13407_vm10, %v5018_v15  ;;  %v5573_v46 = vrot.slane %v5572_v7, 4  ;;  %v5582_v58 = vor.u32 %v5581_v40, %v5577_v60  ;;  %v5401_v54 = vshll.u32 %v5195_v27, 16  ;;  %v5407_v8 = vshll.u32 %v5196_v32, 16 }
 0x3a8   : > { %5180 = vst [vmem:[#allocation3 + $0xc8] sm:$0x1] %v5179_v49  ;;  %v5587_v50 = vrot.slane %v5585_v10, 5  ;;  %v5400_v51 = vrot.slane %v5398_v52, 4  ;;  %v5411_v53 = vshrl.u32 %v5196_v32, 16  ;;  %v5417_v26 = vshll.u32 %v5220_v3, 16 }
 0x3a9   : > { %7226 = vrot.lane.b32.xlu2 %v7196_v62, %s9129_s15  ;;  %v5578_v55 = vsel %vm9568_vm3, %v5573_v46, %v5577_v60  ;;  %v5583_v5 = vrot.slane %v5582_v58, 4  ;;  %v5403_v14 = vrot.slane %v5401_v54, 5  ;;  %v5409_v22 = vrot.slane %v5407_v8, 5  ;;  %v5228_v10 = vld [vmem:[#allocation3 + $0xbc] sm:$0x1] }
 0x3aa   : > { %7216 = vrot.lane.b32.xlu0 %v7191_v37, %s9129_s15  ;;  %v5413_v59 = vrot.slane %v5411_v53, 4  ;;  %v5728_v48 = vrot.slane %v5196_v32, 5  ;;  %v7098_v25 = vunpack.c.l.b16 %v5578_v55  ;;  %v8698_v18 = vrot.slane %v5620_v24, 9  ;;  %v5198_v54 = vld [vmem:[#allocation3 + $0x64] sm:$0xf] }
 0x3ab   : > { %v5588_v39 = vsel %vm9568_vm3, %v5583_v5, %v5587_v50  ;;  %v5404_v41 = vor.u32 %v5403_v14, %v5400_v51  ;;  %v5731_v4 = vrot.slane %v5220_v3, 5  ;;  %v5763_v11 = vrot.slane %v11910_v0, 5  ;;  %v5621_v14 = vld [vmem:[#allocation3 + $0x60] sm:$0xe] }
 0x3ac   : > { %v7099_v43 = vunpack.c.l.b16 %v5588_v39  ;;  %v5414_v42 = vor.u32 %v5413_v59, %v5409_v22  ;;  %v5730_v23 = vrot.slane %v5728_v48, 4  ;;  %v5729_v31 = vsel %vm9981_vm15, %v8698_v18, %v5728_v48  ;;  %v5221_v48 = vld [vmem:[#allocation3 + $0x68] sm:$0x1] }
 0x3ad   : > { %v5405_v47 = vrot.slane %v5404_v41, 4  ;;  %v5419_v29 = vrot.slane %v5417_v26, 5  ;;  %v5765_v13 = vrot.slane %v5763_v11, 4  ;;  %v5766_v45 = vrot.slane %v11916_v17, 5 }
 0x3ae   : > { %v7116_v38 = vpack.c.b16 %v7099_v43, %v7098_v25  ;;  %v5415_v36 = vrot.slane %v5414_v42, 4  ;;  %v5732_v35 = vsel %vm9981_vm15, %v5730_v23, %v5731_v4  ;;  %v7164_v0 = vunpack.c.l.b16 %v5729_v31  ;;  %v12056_v25 = vpop.permute.xlu2 %7118  ;;  %v5197_v23 = vld [vmem:[#allocation3 + $0x60] sm:$0xf] }
 0x3af   : > { %v5410_v56 = vsel %vm9568_vm3, %v5405_v47, %v5409_v22  ;;  %v7165_v28 = vunpack.c.l.b16 %v5732_v35  ;;  %v8703_v2 = vrot.slane %v5625_v63, 9  ;;  %v5767_v34 = vsel %vm9981_vm15, %v5765_v13, %v5766_v45  ;;  %v9035_v33 = vld [vmem:[#allocation3 + $0xc0] sm:$0xff] }
 0x3b0   : > { %7146 = vrot.lane.b32.xlu1 %v7116_v38, %s9127_s11  ;;  %v5420_v21 = vsel %vm9568_vm3, %v5415_v36, %v5419_v29  ;;  %v7084_v57 = vunpack.c.l.b16 %v5410_v56  ;;  %v5770_v16 = vrot.slane %v11962_v30, 5  ;;  %v8704_v6 = vrot.slane %v5626_v9, 9 }
 0x3b1   : > { %v7085_v27 = vunpack.c.l.b16 %v5420_v21  ;;  %v5764_v17 = vsel %vm9981_vm15, %v8703_v2, %v5763_v11  ;;  %v5590_v32 = vshrl.u32 %v5211_v19, 16  ;;  %v5593_v37 = vshll.u32 %v5211_v19, 16 }
 0x3b2   : > { %v5772_v60 = vrot.slane %v5770_v16, 4  ;;  %v5773_v40 = vrot.slane %v11969_v1, 5  ;;  %v5599_v15 = vshll.u32 %v5212_v20, 16  ;;  %v7175_v49 = vunpack.c.l.b16 %v5767_v34  ;;  %v5628_v1 = vld [vmem:[#allocation3 + $0xb4] sm:$0xe] }
 0x3b3   : > { %v7109_v7 = vpack.c.b16 %v7085_v27, %v7084_v57  ;;  %v5771_v62 = vsel %vm9981_vm15, %v8704_v6, %v5770_v16  ;;  %v5592_v3 = vrot.slane %v5590_v32, 4  ;;  %v5595_v52 = vrot.slane %v5593_v37, 5  ;;  %v12071_v34 = vld [vmem:[#allocation3 + $0x14] sm:$0x1]  ;;  %v5789_v16 = vld [vmem:[#allocation3 + $0xc] sm:$0xf] }
 0x3b4   : > { %v5774_v30 = vsel %vm9981_vm15, %v5772_v60, %v5773_v40  ;;  %v5601_v24 = vrot.slane %v5599_v15, 5  ;;  %v5603_v46 = vshrl.u32 %v5212_v20, 16  ;;  %v5609_v58 = vshll.u32 %v5228_v10, 16  ;;  %v6221_v37 = vld [vmem:[#allocation3 + $0xc] sm:$0xe] }
 0x3b5   : > { %7132 = vrot.lane.b32.xlu0 %v7109_v7, %s9127_s11  ;;  %v7189_v8 = vpack.c.b16 %v7165_v28, %v7164_v0  ;;  %v7174_v50 = vunpack.c.l.b16 %v5764_v17  ;;  %v5596_v51 = vor.u32 %v5595_v52, %v5592_v3  ;;  %v7177_v53 = vunpack.c.l.b16 %v5774_v30  ;;  %v5790_v28 = vld [vmem:[#allocation3 + $0x10] sm:$0xf]  ;;  %v9004_v30 = vld [vmem:[#allocation3] sm:$0xff] }
 0x3b6   : > { %v5605_v55 = vrot.slane %v5603_v46, 4  ;;  %v5784_v5 = vrot.slane %v5212_v20, 5  ;;  %v7176_v59 = vunpack.c.l.b16 %v5771_v62  ;;  %v5735_v39 = vrot.slane %v5198_v54, 5 }
 0x3b7   : > { %v7194_v22 = vpack.c.b16 %v7175_v49, %v7174_v50  ;;  %v5597_v26 = vrot.slane %v5596_v51, 4  ;;  %v5611_v18 = vrot.slane %v5609_v58, 5  ;;  %v8706_v43 = vrot.slane %v5628_v1, 9  ;;  %v12076_v50 = vpop.permute.xlu2 %7124 }
 0x3b8   : > { %7212 = vrot.lane.b32.xlu1 %v7189_v8, %s9129_s15  ;;  %v5606_v41 = vor.u32 %v5605_v55, %v5601_v24  ;;  %v5786_v42 = vrot.slane %v5784_v5, 4  ;;  %v5787_v47 = vrot.slane %v5228_v10, 5  ;;  %v8699_v31 = vrot.slane %v5621_v14, 9  ;;  %v7121_v8 = vpop.permute.xlu0 %7120 }
 0x3b9   : > { %v5602_v4 = vsel %vm9568_vm3, %v5597_v26, %v5601_v24  ;;  %v5737_v63 = vrot.slane %v5735_v39, 4  ;;  %v7195_v11 = vpack.c.b16 %v7177_v53, %v7176_v59  ;;  %v5785_v36 = vsel %vm9981_vm15, %v8706_v43, %v5784_v5  ;;  %v6399_v26 = vld [vmem:[#allocation3 + $0x1c] sm:$0xf] }
 0x3ba   : > { %v5607_v38 = vrot.slane %v5606_v41, 4  ;;  %v5738_v29 = vrot.slane %v5221_v48, 5  ;;  %v5788_v35 = vsel %vm9981_vm15, %v5786_v42, %v5787_v47  ;;  %v5736_v56 = vsel %vm9981_vm15, %v8699_v31, %v5735_v39  ;;  %v9020_v42 = vld [vmem:[#allocation3 + $0xc] sm:$0xff] }
 0x3bb   : > { %v5422_v13 = vshrl.u32 %v5197_v23, 16  ;;  %v5425_v45 = vshll.u32 %v5197_v23, 16  ;;  %vm7742_vm2 = vcmask 31744   ;;  %v7100_v19 = vunpack.c.l.b16 %v5602_v4  ;;  %v6398_v4 = vld [vmem:[#allocation3 + $0x18] sm:$0xf] }
 0x3bc   : > { %v5612_v9 = vsel %vm9568_vm3, %v5607_v38, %v5611_v18  ;;  %v5431_v21 = vshll.u32 %v5198_v54, 16  ;;  %v5435_v0 = vshrl.u32 %v5198_v54, 16  ;;  %v5739_v20 = vsel %vm9981_vm15, %v5737_v63, %v5738_v29  ;;  %v9005_v38 = vld [vmem:[#allocation3 + $0xc] sm:$0xff] }
 0x3bd   : > { %7222 = vrot.lane.b32.xlu0 %v7194_v22, %s9129_s15  ;;  %v7101_v2 = vunpack.c.l.b16 %v5612_v9  ;;  %v5424_v57 = vrot.slane %v5422_v13, 4  ;;  %v5427_v27 = vrot.slane %v5425_v45, 5  ;;  %v7181_v17 = vunpack.c.l.b16 %v5788_v35  ;;  %v6830_v45 = vld [vmem:[#allocation3 + $0x18] sm:$0xe] }
 0x3be   : > { %v5433_v6 = vrot.slane %v5431_v21, 5  ;;  %v5437_v10 = vrot.slane %v5435_v0, 4  ;;  %v5441_v32 = vshll.u32 %v5221_v48, 16  ;;  %v7180_v60 = vunpack.c.l.b16 %v5785_v36 }
 0x3bf   : > { %v7117_v7 = vpack.c.b16 %v7101_v2, %v7100_v19  ;;  %v5428_v40 = vor.u32 %v5427_v27, %v5424_v57  ;;  %v6287_v15 = vrot.slane %v5790_v28, 5  ;;  %v7166_v49 = vunpack.c.l.b16 %v5736_v56  ;;  %v6430_v56 = vld [vmem:[#allocation3 + $0x20] sm:$0x1]  ;;  %v12100_v57 = vpop.permute.xlu2 %7136  ;;  %v9022_v27 = vld [vmem:[#allocation3 + $0x24] sm:$0xff] }
 0x3c0   : > { %7224 = vrot.lane.b32.xlu1 %v7195_v11, %s9129_s15  ;;  %v7167_v62 = vunpack.c.l.b16 %v5739_v20  ;;  %v5438_v3 = vor.u32 %v5437_v10, %v5433_v6  ;;  %v5838_v52 = vshrl.u32 %v5789_v16, 16  ;;  %v8707_v24 = vrot.slane %v6221_v37, 9 }
 0x3c1   : > { %7148 = vrot.lane.b32.xlu2 %v7117_v7, %s9127_s11  ;;  %v6289_v46 = vrot.slane %v6287_v15, 4  ;;  %v6290_v58 = vrot.slane %v12071_v34, 5  ;;  %v5841_v54 = vshll.u32 %v5789_v16, 16  ;;  %v7197_v51 = vpack.c.b16 %v7181_v17, %v7180_v60 }
 0x3c2   : > { %v5439_v1 = vrot.slane %v5438_v3, 4  ;;  %v5443_v53 = vrot.slane %v5441_v32, 5  ;;  %v5847_v55 = vshll.u32 %v5790_v28, 16  ;;  %v5429_v5 = vrot.slane %v5428_v40, 4  ;;  %v5791_v32 = vld [vmem:[#allocation3 + $0x18] sm:$0xf] }
 0x3c3   : > { %v6288_v14 = vsel %vm9981_vm15, %v8707_v24, %v6287_v15  ;;  %v6291_v22 = vsel %vm9981_vm15, %v6289_v46, %v6290_v58  ;;  %v5851_v59 = vshrl.u32 %v5790_v28, 16  ;;  %v5840_v39 = vrot.slane %v5838_v52, 4  ;;  %v12104_v15 = vld [vmem:[#allocation3 + $0x1c] sm:$0xf] }
 0x3c4   : > { %v5444_v48 = vsel %vm9568_vm3, %v5439_v1, %v5443_v53  ;;  %v5843_v41 = vrot.slane %v5841_v54, 5  ;;  %v12085_v18 = vrot.slane %v5847_v55, 5  ;;  %v12089_v43 = vsel %vm7742_vm2, %v9004_v30, %v12056_v25  ;;  %v9021_v53 = vld [vmem:[#allocation3 + $0x18] sm:$0xff] }
 0x3c5   : > { %7228 = vrot.lane.b32.xlu0 %v7197_v51, %s9129_s15  ;;  %v5853_v23 = vrot.slane %v5851_v59, 4  ;;  %v7190_v47 = vpack.c.b16 %v7167_v62, %v7166_v49  ;;  %v5434_v31 = vsel %vm9568_vm3, %v5429_v5, %v5433_v6  ;;  %v7407_v63 = vunpack.c.l.b16 %v6291_v22  ;;  %v6400_v59 = vld [vmem:[#allocation3 + $0x24] sm:$0xf] }
 0x3c6   : > { %v6896_v11 = vrot.slane %v6399_v26, 5  ;;  %v7087_v36 = vunpack.c.l.b16 %v5444_v48  ;;  %v7406_v29 = vunpack.c.l.b16 %v6288_v14  ;;  %v5857_v25 = vshll.u32 %v12071_v34, 16 }
 0x3c7   : > { %v5854_v35 = vor.u32 %v5853_v23, %v12085_v18  ;;  %v5844_v13 = vor.u32 %v5843_v41, %v5840_v39  ;;  %v6447_v19 = vshrl.u32 %v6398_v4, 16  ;;  %v6450_v21 = vshll.u32 %v6398_v4, 16  ;;  %v5822_v41 = vld [vmem:[#allocation3 + $0x20] sm:$0x1] }
 0x3c8   : > { %7294 = vrot.lane.b32.xlu1 %v9020_v42, %s9137_s26  ;;  %v6898_v9 = vrot.slane %v6896_v11, 4  ;;  %v12097_v0 = vsel %vm7742_vm2, %v9005_v38, %v7121_v8  ;;  %v7086_v28 = vunpack.c.l.b16 %v5434_v31  ;;  %v6456_v20 = vshll.u32 %v6399_v26, 16  ;;  %v9007_v31 = vld [vmem:[#allocation3 + $0x24] sm:$0xff]  ;;  %v6222_v38 = vld [vmem:[#allocation3 + $0x18] sm:$0xe] }
 0x3c9   : > { %7214 = vrot.lane.b32.xlu2 %v7190_v47, %s9129_s15  ;;  %v5855_v2 = vrot.slane %v5854_v35, 4  ;;  %v7438_v16 = vpack.c.b16 %v7407_v63, %v7406_v29  ;;  %v6899_v17 = vrot.slane %v6430_v56, 5  ;;  %v6449_v34 = vrot.slane %v6447_v19, 4  ;;  %s9139_s15 = smov 28  }
 0x3ca   : > { %v6452_v6 = vrot.slane %v6450_v21, 5  ;;  %v5859_v37 = vrot.slane %v5857_v25, 5  ;;  %v8723_v7 = vrot.slane %v6830_v45, 9  ;;  %v6458_v60 = vrot.slane %v6456_v20, 5  ;;  %v12135_v20 = vld [vmem:[#allocation3 + $0x28] sm:$0xf] }
 0x3cb   : > { %v6460_v40 = vshrl.u32 %v6399_v26, 16  ;;  %v7110_v49 = vpack.c.b16 %v7087_v36, %v7086_v28  ;;  %v5845_v62 = vrot.slane %v5844_v13, 4  ;;  %v6900_v3 = vsel %vm9981_vm15, %v6898_v9, %v6899_v17  ;;  %v12130_v9 = vpop.permute.xlu2 %7202 }
 0x3cc   : > { %v6453_v52 = vor.u32 %v6452_v6, %v6449_v34  ;;  %v5860_v30 = vsel %vm9568_vm3, %v5855_v2, %v5859_v37  ;;  %v5862_v46 = vshrl.u32 %v5791_v32, 16  ;;  %v5865_v58 = vshll.u32 %v5791_v32, 16  ;;  %v5793_v32 = vld [vmem:[#allocation3 + $0x24] sm:$0xf] }
 0x3cd   : > { %v12102_v10 = vpop.permute.xlu0 %7138  ;;  %7298 = vrot.lane.b32.xlu0 %v9022_v27, %s9137_s26  ;;  %v6462_v24 = vrot.slane %v6460_v40, 4  ;;  %v5850_v54 = vsel %vm9568_vm3, %v5845_v62, %v12085_v18  ;;  %v6897_v8 = vsel %vm9981_vm15, %v8723_v7, %v6896_v11  ;;  %v6466_v51 = vshll.u32 %v6430_v56, 16  ;;  %v9023_v27 = vld [vmem:[#allocation3 + $0x30] sm:$0xff] }
 0x3ce   : > { %v5871_v1 = vshll.u32 %v12104_v15, 16  ;;  %v5864_v5 = vrot.slane %v5862_v46, 4  ;;  %v5867_v14 = vrot.slane %v5865_v58, 5  ;;  %v5875_v22 = vshrl.u32 %v12104_v15, 16  ;;  %v12149_v46 = vld [vmem:[#allocation3 + $0x28] sm:$0xf] }
 0x3cf   : > { %v6463_v55 = vor.u32 %v6462_v24, %v6458_v60  ;;  %v7327_v26 = vunpack.c.l.b16 %v5860_v30  ;;  %v7663_v48 = vunpack.c.l.b16 %v6900_v3  ;;  %v6454_v39 = vrot.slane %v6453_v52, 4 }
 0x3d0   : > { %7134 = vrot.lane.b32.xlu1 %v7110_v49, %s9127_s11  ;;  %v12119_v18 = vrot.slane %v5871_v1, 5  ;;  %v7326_v42 = vunpack.c.l.b16 %v5850_v54  ;;  %v7662_v23 = vunpack.c.l.b16 %v6897_v8  ;;  %v5877_v47 = vrot.slane %v5875_v22, 4  ;;  %s9138_s11 = smov 20   ;;  %v12154_v22 = vpop.permute.xlu1 %7122 }
 0x3d1   : > { %7296 = vrot.lane.b32.xlu2 %v9021_v53, %s9137_s26  ;;  %v6464_v4 = vrot.slane %v6463_v55, 4  ;;  %v6459_v63 = vsel %vm9568_vm3, %v6454_v39, %v6458_v60  ;;  %v5868_v11 = vor.u32 %v5867_v14, %v5864_v5  ;;  %v6294_v36 = vrot.slane %v12104_v15, 5  ;;  %v6431_v60 = vld [vmem:[#allocation3 + $0x2c] sm:$0x1] }
 0x3d2   : > { %v6471_v29 = vshrl.u32 %v6400_v59, 16  ;;  %v6468_v35 = vrot.slane %v6466_v51, 5  ;;  %v5878_v25 = vor.u32 %v5877_v47, %v12119_v18  ;;  %v5881_v56 = vshll.u32 %v5822_v41, 16  ;;  %v6831_v47 = vld [vmem:[#allocation3 + $0x24] sm:$0xe] }
 0x3d3   : > { %v6474_v13 = vshll.u32 %v6400_v59, 16  ;;  %v12128_v45 = vsel %vm7742_vm2, %v9007_v31, %v12076_v50  ;;  %v7358_v19 = vpack.c.b16 %v7327_v26, %v7326_v42  ;;  %v7694_v21 = vpack.c.b16 %v7663_v48, %v7662_v23  ;;  %v12156_v26 = vld [vmem:[#allocation3 + $0x2c] sm:$0x1] }
 0x3d4   : > { %v6296_v28 = vrot.slane %v6294_v36, 4  ;;  %v6469_v17 = vsel %vm9568_vm3, %v6464_v4, %v6468_v35  ;;  %v7582_v34 = vunpack.c.l.b16 %v6459_v63  ;;  %v8708_v6 = vrot.slane %v6222_v38, 9 }
 0x3d5   : > { %7454 = vrot.lane.b32.xlu0 %v7438_v16, %s9138_s11  ;;  %v6297_v50 = vrot.slane %v5822_v41, 5  ;;  %v5869_v37 = vrot.slane %v5868_v11, 4  ;;  %v5879_v7 = vrot.slane %v5878_v25, 4  ;;  %v6473_v40 = vrot.slane %v6471_v29, 4  ;;  %v9036_v11 = vld [vmem:[#allocation3 + $0x18] sm:$0xff] }
 0x3d6   : > { %v6476_v16 = vrot.slane %v6474_v13, 5  ;;  %v5883_v15 = vrot.slane %v5881_v56, 5  ;;  %v6295_v49 = vsel %vm9981_vm15, %v8708_v6, %v6294_v36  ;;  %v6480_v62 = vshll.u32 %v12135_v20, 16 }
 0x3d7   : > { %v12133_v2 = vpop.permute.xlu0 %7126  ;;  %v6484_v3 = vshrl.u32 %v12135_v20, 16  ;;  %v7583_v52 = vunpack.c.l.b16 %v6469_v17  ;;  %v5874_v30 = vsel %vm9568_vm3, %v5869_v37, %v12119_v18  ;;  %v6298_v24 = vsel %vm9981_vm15, %v6296_v28, %v6297_v50 }
 0x3d8   : > { %7300 = vrot.lane.b32.xlu1 %v9023_v27, %s9137_s26  ;;  %v5886_v58 = vshrl.u32 %v5793_v32, 16  ;;  %v6482_v54 = vrot.slane %v6480_v62, 5  ;;  %v6490_v51 = vshll.u32 %v6431_v60, 16  ;;  %v5889_v1 = vshll.u32 %v5793_v32, 16  ;;  %v6402_v32 = vld [vmem:[#allocation3 + $0x30] sm:$0xf] }
 0x3d9   : > { %7374 = vrot.lane.b32.xlu2 %v7358_v19, %s9130_s16  ;;  %v6486_v8 = vrot.slane %v6484_v3, 4  ;;  %v5884_v53 = vsel %vm9568_vm3, %v5879_v7, %v5883_v15  ;;  %v7408_v55 = vunpack.c.l.b16 %v6295_v49  ;;  %v6477_v5 = vor.u32 %v6476_v16, %v6473_v40  ;;  %v6223_v40 = vld [vmem:[#allocation3 + $0x24] sm:$0xe] }
 0x3da   : > { %v5888_v14 = vrot.slane %v5886_v58, 4  ;;  %v5891_v48 = vrot.slane %v5889_v1, 5  ;;  %v5895_v39 = vshll.u32 %v12149_v46, 16  ;;  %v5899_v41 = vshrl.u32 %v12149_v46, 16  ;;  %v9037_v15 = vld [vmem:[#allocation3 + $0x24] sm:$0xff] }
 0x3db   : > { %v6487_v59 = vor.u32 %v6486_v8, %v6482_v54  ;;  %v7614_v18 = vpack.c.b16 %v7583_v52, %v7582_v34  ;;  %v7328_v42 = vunpack.c.l.b16 %v5874_v30  ;;  %v7409_v23 = vunpack.c.l.b16 %v6298_v24 }
 0x3dc   : > { %v6903_v31 = vrot.slane %v12135_v20, 5  ;;  %v7329_v38 = vunpack.c.l.b16 %v5884_v53  ;;  %v6492_v29 = vrot.slane %v6490_v51, 5  ;;  %v5892_v35 = vor.u32 %v5891_v48, %v5888_v14  ;;  %v12195_v48 = vld [vmem:[#allocation3 + $0x38] sm:$0x1] }
 0x3dd   : > { %7710 = vrot.lane.b32.xlu0 %v7694_v21, %s9132_s18  ;;  %v6488_v36 = vrot.slane %v6487_v59, 4  ;;  %v6478_v25 = vrot.slane %v6477_v5, 4  ;;  %v5897_v56 = vrot.slane %v5895_v39, 5  ;;  %v5901_v13 = vrot.slane %v5899_v41, 4 }
 0x3de   : > { %v12161_v4 = vpop.permute.xlu2 %7142  ;;  %v5905_v19 = vshll.u32 %v12156_v26, 16  ;;  %v8724_v28 = vrot.slane %v6831_v47, 9  ;;  %v6905_v27 = vrot.slane %v6903_v31, 4  ;;  %v6906_v17 = vrot.slane %v6431_v60, 5 }
 0x3df   : > { %v7199_v63 = vpop.permute.xlu0 %7198  ;;  %v6493_v21 = vsel %vm9568_vm3, %v6488_v36, %v6492_v29  ;;  %v6483_v20 = vsel %vm9568_vm3, %v6478_v25, %v6482_v54  ;;  %v5893_v34 = vrot.slane %v5892_v35, 4  ;;  %v5902_v6 = vor.u32 %v5901_v13, %v5897_v56  ;;  %v12186_v54 = vld [vmem:[#allocation3 + $0x34] sm:$0xf] }
 0x3e0   : > { %7550 = vrot.lane.b32.xlu1 %v9036_v11, %s9131_s17  ;;  %v12172_v50 = vsel %vm4053_vm6, %v12089_v43, %v7199_v63  ;;  %v12175_v37 = vunpack.c.l.b16 %v6493_v21  ;;  %v6904_v7 = vsel %vm9981_vm15, %v8724_v28, %v6903_v31  ;;  %v6907_v60 = vsel %vm9981_vm15, %v6905_v27, %v6906_v17  ;;  %v5795_v31 = vld [vmem:[#allocation3 + $0x30] sm:$0xf]  ;;  %v9015_v11 = vld [vmem:[#allocation3 + $0x84] sm:$0xff]  ;;  %v12207_v35 = vld [vmem:[#allocation3 + $0x34] sm:$0xf] }
 0x3e1   : > { %7630 = vrot.lane.b32.xlu2 %v7614_v18, %s9139_s15  ;;  %v6301_v16 = vrot.slane %v12149_v46, 5  ;;  %v7439_v49 = vpack.c.b16 %v7409_v23, %v7408_v55  ;;  %v5898_v43 = vsel %vm9568_vm3, %v5893_v34, %v5897_v56  ;;  %v5903_v62 = vrot.slane %v5902_v6, 4 }
 0x3e2   : > { %v5907_v3 = vrot.slane %v5905_v19, 5  ;;  %v7359_v52 = vpack.c.b16 %v7329_v38, %v7328_v42  ;;  %v12184_v30 = vunpack.c.l.b16 %v6483_v20  ;;  %v7665_v24 = vunpack.c.l.b16 %v6907_v60 }
 0x3e3   : > { %v6495_v8 = vshrl.u32 %v6402_v32, 16  ;;  %v7664_v51 = vunpack.c.l.b16 %v6904_v7  ;;  %v8709_v53 = vrot.slane %v6223_v40, 9  ;;  %v6303_v55 = vrot.slane %v6301_v16, 4  ;;  %v6832_v7 = vld [vmem:[#allocation3 + $0x30] sm:$0xe] }
 0x3e4   : > { %v5908_v46 = vsel %vm9568_vm3, %v5903_v62, %v5907_v3  ;;  %v7615_v14 = vpack.c.b16 %v12175_v37, %v12184_v30  ;;  %v7330_v59 = vunpack.c.l.b16 %v5898_v43  ;;  %v6498_v41 = vshll.u32 %v6402_v32, 16  ;;  %v5824_v62 = vld [vmem:[#allocation3 + $0x38] sm:$0x1] }
 0x3e5   : > { %v7141_v58 = vpop.permute.xlu1 %7140  ;;  %7552 = vrot.lane.b32.xlu0 %v9037_v15, %s9131_s17  ;;  %v6497_v39 = vrot.slane %v6495_v8, 4  ;;  %v7331_v18 = vunpack.c.l.b16 %v5908_v46  ;;  %v6304_v42 = vrot.slane %v12156_v26, 5  ;;  %v6504_v23 = vshll.u32 %v12186_v54, 16 }
 0x3e6   : > { %v12191_v1 = vpop.permute.xlu2 %7208  ;;  %v6508_v47 = vshrl.u32 %v12186_v54, 16  ;;  %v7695_v63 = vpack.c.b16 %v7665_v24, %v7664_v51  ;;  %v6302_v38 = vsel %vm9981_vm15, %v8709_v53, %v6301_v16  ;;  %v6500_v36 = vrot.slane %v6498_v41, 5 }
 0x3e7   : > { %v7205_v5 = vpop.permute.xlu0 %7204  ;;  %v6305_v26 = vsel %vm9981_vm15, %v6303_v55, %v6304_v42  ;;  %v6506_v25 = vrot.slane %v6504_v23, 5  ;;  %v6514_v13 = vshll.u32 %v12195_v48, 16  ;;  %v7778_v19 = vsel %vm7742_vm2, %v9015_v11, %v7141_v58  ;;  %v6404_v55 = vld [vmem:[#allocation3 + $0x3c] sm:$0xf]  ;;  %v6224_v11 = vld [vmem:[#allocation3 + $0x30] sm:$0xe] }
 0x3e8   : > { %7376 = vrot.lane.b32.xlu1 %v7359_v52, %s9130_s16  ;;  %v12205_v29 = vsel %vm4053_vm6, %v12128_v45, %v7205_v5  ;;  %v6510_v56 = vrot.slane %v6508_v47, 4  ;;  %v6501_v21 = vor.u32 %v6500_v36, %v6497_v39  ;;  %v6910_v28 = vrot.slane %v12186_v54, 5  ;;  %v9008_v54 = vld [vmem:[#allocation3 + $0x30] sm:$0xff] }
 0x3e9   : > { %7456 = vrot.lane.b32.xlu2 %v7439_v49, %s9138_s11  ;;  %v5910_v27 = vshrl.u32 %v5795_v31, 16  ;;  %v7360_v17 = vpack.c.b16 %v7331_v18, %v7330_v59  ;;  %v5913_v20 = vshll.u32 %v5795_v31, 16  ;;  %v5919_v34 = vshll.u32 %v12207_v35, 16 }
 0x3ea   : > { %v6511_v45 = vor.u32 %v6510_v56, %v6506_v25  ;;  %v7411_v6 = vunpack.c.l.b16 %v6305_v26  ;;  %v6502_v32 = vrot.slane %v6501_v21, 4  ;;  %v5923_v40 = vshrl.u32 %v12207_v35, 16 }
 0x3eb   : > { %v5912_v60 = vrot.slane %v5910_v27, 4  ;;  %v6516_v15 = vrot.slane %v6514_v13, 5  ;;  %v5915_v3 = vrot.slane %v5913_v20, 5  ;;  %v6912_v24 = vrot.slane %v6910_v28, 4  ;;  %v12245_v27 = vld [vmem:[#allocation3 + $0x44] sm:$0x1] }
 0x3ec   : > { %v6512_v16 = vrot.slane %v6511_v45, 4  ;;  %v6507_v52 = vsel %vm9568_vm3, %v6502_v32, %v6506_v25  ;;  %v5921_v58 = vrot.slane %v5919_v34, 5  ;;  %v7410_v8 = vunpack.c.l.b16 %v6302_v38 }
 0x3ed   : > { %v7201_v37 = vpop.permute.xlu1 %7200  ;;  %7378 = vrot.lane.b32.xlu0 %v7360_v17, %s9130_s16  ;;  %v8725_v51 = vrot.slane %v6832_v7, 9  ;;  %v5916_v53 = vor.u32 %v5915_v3, %v5912_v60  ;;  %v6913_v5 = vrot.slane %v12195_v48, 5  ;;  %v5925_v59 = vrot.slane %v5923_v40, 4  ;;  %v12239_v48 = vld [vmem:[#allocation3 + $0x40] sm:$0xf] }
 0x3ee   : > { %v7221_v49 = vpop.permute.xlu2 %7220  ;;  %v12220_v43 = vsel %vm4053_vm6, %v12097_v0, %v7201_v37  ;;  %v6517_v46 = vsel %vm9568_vm3, %v6512_v16, %v6516_v15  ;;  %v5929_v39 = vshll.u32 %v5824_v62, 16  ;;  %v7757_v41 = vsel %vm7742_vm2, %v9008_v54, %v12133_v2  ;;  %v9014_v16 = vld [vmem:[#allocation3 + $0x78] sm:$0xff]  ;;  %v9038_v15 = vld [vmem:[#allocation3 + $0x30] sm:$0xff] }
 0x3ef   : > { %v12225_v30 = vsel %vm4053_vm6, %v7778_v19, %v7221_v49  ;;  %v7587_v0 = vunpack.c.l.b16 %v6517_v46  ;;  %v7440_v18 = vpack.c.b16 %v7411_v6, %v7410_v8  ;;  %v7586_v42 = vunpack.c.l.b16 %v6507_v52  ;;  %v5798_v52 = vld [vmem:[#allocation3 + $0x40] sm:$0xf]  ;;  %v6833_v8 = vld [vmem:[#allocation3 + $0x3c] sm:$0xe] }
 0x3f0   : > { %7632 = vrot.lane.b32.xlu1 %v7615_v14, %s9139_s15  ;;  %v6308_v23 = vrot.slane %v12207_v35, 5  ;;  %v6911_v47 = vsel %vm9981_vm15, %v8725_v51, %v6910_v28  ;;  %v6914_v14 = vsel %vm9981_vm15, %v6912_v24, %v6913_v5  ;;  %v5926_v31 = vor.u32 %v5925_v59, %v5921_v58  ;;  %v5797_v5 = vld [vmem:[#allocation3 + $0x3c] sm:$0xf] }
 0x3f1   : > { %7712 = vrot.lane.b32.xlu2 %v7695_v63, %s9132_s18  ;;  %v6519_v38 = vshrl.u32 %v6404_v55, 16  ;;  %v7616_v36 = vpack.c.b16 %v7587_v0, %v7586_v42  ;;  %v5917_v26 = vrot.slane %v5916_v53, 4  ;;  %v6522_v25 = vshll.u32 %v6404_v55, 16  ;;  %v6225_v0 = vld [vmem:[#allocation3 + $0x3c] sm:$0xe] }
 0x3f2   : > { %v6310_v2 = vrot.slane %v6308_v23, 4  ;;  %v5927_v56 = vrot.slane %v5926_v31, 4  ;;  %v5931_v13 = vrot.slane %v5929_v39, 5  ;;  %v6311_v19 = vrot.slane %v5824_v62, 5 }
 0x3f3   : > { %v6521_v63 = vrot.slane %v6519_v38, 4  ;;  %v8710_v28 = vrot.slane %v6224_v11, 9  ;;  %v6524_v17 = vrot.slane %v6522_v25, 5  ;;  %v6528_v45 = vshll.u32 %v12239_v48, 16 }
 0x3f4   : > { %v5922_v20 = vsel %vm9568_vm3, %v5917_v26, %v5921_v58  ;;  %v5932_v34 = vsel %vm9568_vm3, %v5927_v56, %v5931_v13  ;;  %v6312_v6 = vsel %vm9981_vm15, %v6310_v2, %v6311_v19  ;;  %v6532_v32 = vshrl.u32 %v12239_v48, 16  ;;  %v5825_v2 = vld [vmem:[#allocation3 + $0x44] sm:$0x1]  ;;  %v6406_v13 = vld [vmem:[#allocation3 + $0x48] sm:$0xf] }
 0x3f5   : > { %v7207_v35 = vpop.permute.xlu1 %7206  ;;  %7634 = vrot.lane.b32.xlu0 %v7616_v36, %s9139_s15  ;;  %v7667_v37 = vunpack.c.l.b16 %v6914_v14  ;;  %v7333_v7 = vunpack.c.l.b16 %v5932_v34  ;;  %v6525_v60 = vor.u32 %v6524_v17, %v6521_v63  ;;  %v6530_v40 = vrot.slane %v6528_v45, 5  ;;  %v12277_v17 = vld [vmem:[#allocation3 + $0x4c] sm:$0xf] }
 0x3f6   : > { %v12243_v21 = vsel %vm4053_vm6, %v7757_v41, %v7207_v35  ;;  %v6309_v49 = vsel %vm9981_vm15, %v8710_v28, %v6308_v23  ;;  %v6534_v62 = vrot.slane %v6532_v32, 4  ;;  %v6538_v3 = vshll.u32 %v12245_v27, 16 }
 0x3f7   : > { %v7666_v24 = vunpack.c.l.b16 %v6911_v47  ;;  %v7332_v58 = vunpack.c.l.b16 %v5922_v20  ;;  %v7413_v54 = vunpack.c.l.b16 %v6312_v6  ;;  %v12261_v46 = vsel %vm7742_vm2, %v9014_v16, %v12102_v10 }
 0x3f8   : > { %7458 = vrot.lane.b32.xlu1 %v7440_v18, %s9138_s11  ;;  %v6526_v51 = vrot.slane %v6525_v60, 4  ;;  %v6535_v53 = vor.u32 %v6534_v62, %v6530_v40  ;;  %v6917_v55 = vrot.slane %v12239_v48, 5  ;;  %v7412_v41 = vunpack.c.l.b16 %v6309_v49  ;;  %v5807_v62 = vld [vmem:[#allocation3 + $0x78] sm:$0xf] }
 0x3f9   : > { %7554 = vrot.lane.b32.xlu2 %v9038_v15, %s9131_s17  ;;  %v7696_v59 = vpack.c.b16 %v7667_v37, %v7666_v24  ;;  %v7361_v39 = vpack.c.b16 %v7333_v7, %v7332_v58  ;;  %v6315_v18 = vrot.slane %v5798_v52, 5  ;;  %v6540_v47 = vrot.slane %v6538_v3, 5  ;;  %v12287_v24 = vld [vmem:[#allocation3 + $0x50] sm:$0x1] }
 0x3fa   : > { %v6531_v42 = vsel %vm9568_vm3, %v6526_v51, %v6530_v40  ;;  %v6536_v23 = vrot.slane %v6535_v53, 4  ;;  %v8726_v14 = vrot.slane %v6833_v8, 9  ;;  %v7441_v10 = vpack.c.b16 %v7413_v54, %v7412_v41 }
 0x3fb   : > { %v6920_v11 = vrot.slane %v12245_v27, 5  ;;  %v8711_v48 = vrot.slane %v6225_v0, 9  ;;  %v5934_v38 = vshrl.u32 %v5797_v5, 16  ;;  %v5937_v25 = vshll.u32 %v5797_v5, 16  ;;  %v9024_v27 = vld [vmem:[#allocation3 + $0x3c] sm:$0xff] }
 0x3fc   : > { %v6541_v36 = vsel %vm9568_vm3, %v6536_v23, %v6540_v47  ;;  %v12275_v26 = vsel %vm9981_vm15, %v8726_v14, %v6917_v55  ;;  %v5943_v56 = vshll.u32 %v5798_v52, 16  ;;  %v7588_v35 = vunpack.c.l.b16 %v6531_v42 }
 0x3fd   : > { %7380 = vrot.lane.b32.xlu0 %v7361_v39, %s9130_s16  ;;  %v7589_v19 = vunpack.c.l.b16 %v6541_v36  ;;  %v6919_v63 = vrot.slane %v6917_v55, 4  ;;  %v6317_v28 = vrot.slane %v6315_v18, 4  ;;  %v5936_v45 = vrot.slane %v5934_v38, 4  ;;  %v12294_v39 = vld [vmem:[#allocation3 + $0x7c] sm:$0xf] }
 0x3fe   : > { %v12268_v31 = vpop.permute.xlu1 %7128  ;;  %v5939_v20 = vrot.slane %v5937_v25, 5  ;;  %v12280_v34 = vrot.slane %v5943_v56, 5  ;;  %v5947_v6 = vshrl.u32 %v5798_v52, 16  ;;  %v7668_v32 = vunpack.c.l.b16 %v12275_v26  ;;  %v5830_v56 = vld [vmem:[#allocation3 + $0x80] sm:$0x1] }
 0x3ff   : > { %v6318_v37 = vrot.slane %v5825_v2, 5  ;;  %v6543_v7 = vshrl.u32 %v6406_v13, 16  ;;  %v6546_v60 = vshll.u32 %v6406_v13, 16  ;;  %v7617_v40 = vpack.c.b16 %v7589_v19, %v7588_v35 }
 0x400   : > { %7714 = vrot.lane.b32.xlu1 %v7696_v59, %s9132_s18  ;;  %v6316_v16 = vsel %vm9981_vm15, %v8711_v48, %v6315_v18  ;;  %v5949_v15 = vrot.slane %v5947_v6, 4  ;;  %v6552_v49 = vshll.u32 %v12277_v17, 16  ;;  %v5953_v3 = vshll.u32 %v5825_v2, 16  ;;  %v9039_v48 = vld [vmem:[#allocation3 + $0x3c] sm:$0xff] }
 0x401   : > { %7302 = vrot.lane.b32.xlu2 %v9024_v27, %s9137_s26  ;;  %v6545_v58 = vrot.slane %v6543_v7, 4  ;;  %v6548_v52 = vrot.slane %v6546_v60, 5  ;;  %v6556_v54 = vshrl.u32 %v12277_v17, 16  ;;  %v6319_v8 = vsel %vm9981_vm15, %v6317_v28, %v6318_v37 }
 0x402   : > { %v5940_v51 = vor.u32 %v5939_v20, %v5936_v45  ;;  %v5950_v53 = vor.u32 %v5949_v15, %v12280_v34  ;;  %v6554_v55 = vrot.slane %v6552_v49, 5  ;;  %v6054_v41 = vshrl.u32 %v5807_v62, 16  ;;  %v7131_v45 = vpop.permute.xlu2 %7130 }
 0x403   : > { %v6549_v5 = vor.u32 %v6548_v52, %v6545_v58  ;;  %v6558_v59 = vrot.slane %v6556_v54, 4  ;;  %v6057_v18 = vshll.u32 %v5807_v62, 16  ;;  %v6921_v42 = vsel %vm9981_vm15, %v6919_v63, %v6920_v11  ;;  %v6230_v52 = vld [vmem:[#allocation3 + $0x78] sm:$0xe] }
 0x404   : > { %v5951_v23 = vrot.slane %v5950_v53, 4  ;;  %v6562_v14 = vshll.u32 %v12287_v24, 16  ;;  %v7414_v38 = vunpack.c.l.b16 %v6316_v16  ;;  %v7415_v36 = vunpack.c.l.b16 %v6319_v8 }
 0x405   : > { %7636 = vrot.lane.b32.xlu0 %v7617_v40, %s9139_s15  ;;  %v5955_v2 = vrot.slane %v5953_v3, 5  ;;  %v6559_v25 = vor.u32 %v6558_v59, %v6554_v55  ;;  %v6056_v13 = vrot.slane %v6054_v41, 4  ;;  %v6059_v35 = vrot.slane %v6057_v18, 5 }
 0x406   : > { %v7219_v0 = vpop.permute.xlu1 %7218  ;;  %v6063_v19 = vshll.u32 %v12294_v39, 16  ;;  %v6067_v11 = vshrl.u32 %v12294_v39, 16  ;;  %v5941_v63 = vrot.slane %v5940_v51, 4  ;;  %v6550_v28 = vrot.slane %v6549_v5, 4  ;;  %v6417_v5 = vld [vmem:[#allocation3 + $0x88] sm:$0xf] }
 0x407   : > { %v12300_v47 = vsel %vm4053_vm6, %v12261_v46, %v7219_v0  ;;  %v5956_v46 = vsel %vm9568_vm3, %v5951_v23, %v5955_v2  ;;  %v6560_v27 = vrot.slane %v6559_v25, 4  ;;  %v7669_v20 = vunpack.c.l.b16 %v6921_v42  ;;  %v6834_v0 = vld [vmem:[#allocation3 + $0x48] sm:$0xe]  ;;  %v9013_v23 = vld [vmem:[#allocation3 + $0x6c] sm:$0xff] }
 0x408   : > { %7460 = vrot.lane.b32.xlu1 %v7441_v10, %s9138_s11  ;;  %v6564_v6 = vrot.slane %v6562_v14, 5  ;;  %v6065_v37 = vrot.slane %v6063_v19, 5  ;;  %v6069_v10 = vrot.slane %v6067_v11, 4  ;;  %v7442_v7 = vpack.c.b16 %v7415_v36, %v7414_v38  ;;  %v9010_v14 = vld [vmem:[#allocation3 + $0x48] sm:$0xff] }
 0x409   : > { %7556 = vrot.lane.b32.xlu2 %v9039_v48, %s9131_s17  ;;  %v5946_v60 = vsel %vm9568_vm3, %v5941_v63, %v12280_v34  ;;  %v6555_v16 = vsel %vm9568_vm3, %v6550_v28, %v6554_v55  ;;  %v6073_v15 = vshll.u32 %v5830_v56, 16  ;;  %v7335_v49 = vunpack.c.l.b16 %v5956_v46 }
 0x40a   : > { %v6565_v62 = vsel %vm9568_vm3, %v6560_v27, %v6564_v6  ;;  %v6060_v3 = vor.u32 %v6059_v35, %v6056_v13  ;;  %v6070_v58 = vor.u32 %v6069_v10, %v6065_v37  ;;  %v6350_v54 = vrot.slane %v12294_v39, 5  ;;  %v6416_v35 = vld [vmem:[#allocation3 + $0x84] sm:$0xf]  ;;  %v6439_v10 = vld [vmem:[#allocation3 + $0x8c] sm:$0x1] }
 0x40b   : > { %v6924_v8 = vrot.slane %v12277_v17, 5  ;;  %v7697_v34 = vpack.c.b16 %v7669_v20, %v7668_v32  ;;  %v7334_v51 = vunpack.c.l.b16 %v5946_v60  ;;  %v7590_v53 = vunpack.c.l.b16 %v6555_v16  ;;  %v6839_v27 = vld [vmem:[#allocation3 + $0x84] sm:$0xe] }
 0x40c   : > { %v12312_v40 = vpop.permute.xlu0 %7144  ;;  %v6071_v55 = vrot.slane %v6070_v58, 4  ;;  %v7591_v59 = vunpack.c.l.b16 %v6565_v62  ;;  %v6075_v41 = vrot.slane %v6073_v15, 5  ;;  %v6352_v18 = vrot.slane %v6350_v54, 4 }
 0x40d   : > { %7462 = vrot.lane.b32.xlu0 %v7442_v7, %s9138_s11  ;;  %v6353_v42 = vrot.slane %v5830_v56, 5  ;;  %v7362_v48 = vpack.c.b16 %v7335_v49, %v7334_v51  ;;  %v6061_v39 = vrot.slane %v6060_v3, 4  ;;  %v8716_v38 = vrot.slane %v6230_v52, 9  ;;  %v5800_v7 = vld [vmem:[#allocation3 + $0x4c] sm:$0xf] }
 0x40e   : > { %v6926_v17 = vrot.slane %v6924_v8, 4  ;;  %v6076_v26 = vsel %vm9568_vm3, %v6071_v55, %v6075_v41  ;;  %v8727_v36 = vrot.slane %v6834_v0, 9  ;;  %v6959_v2 = vrot.slane %v6417_v5, 5  ;;  %v9040_v49 = vld [vmem:[#allocation3 + $0x48] sm:$0xff] }
 0x40f   : > { %v6354_v32 = vsel %vm9981_vm15, %v6352_v18, %v6353_v42  ;;  %v7772_v25 = vsel %vm7742_vm2, %v9013_v23, %v12100_v57  ;;  %v7763_v56 = vsel %vm7742_vm2, %v9010_v14, %v7131_v45  ;;  %v6927_v13 = vrot.slane %v12287_v24, 5  ;;  %v12339_v57 = vpop.permute.xlu2 %7226  ;;  %v5799_v18 = vld [vmem:[#allocation3 + $0x48] sm:$0xf] }
 0x410   : > { %7716 = vrot.lane.b32.xlu1 %v7697_v34, %s9132_s18  ;;  %v7618_v19 = vpack.c.b16 %v7591_v59, %v7590_v53  ;;  %v6066_v63 = vsel %vm9568_vm3, %v6061_v39, %v6065_v37  ;;  %v6351_v46 = vsel %vm9981_vm15, %v8716_v38, %v6350_v54  ;;  %v6925_v28 = vsel %vm9981_vm15, %v8727_v36, %v6924_v8  ;;  %v9029_v53 = vld [vmem:[#allocation3 + $0x78] sm:$0xff]  ;;  %v6226_v39 = vld [vmem:[#allocation3 + $0x48] sm:$0xe] }
 0x411   : > { %7382 = vrot.lane.b32.xlu2 %v7362_v48, %s9130_s16  ;;  %v7345_v20 = vunpack.c.l.b16 %v6076_v26  ;;  %v7425_v24 = vunpack.c.l.b16 %v6354_v32  ;;  %v6928_v6 = vsel %vm9981_vm15, %v6926_v17, %v6927_v13  ;;  %v6961_v37 = vrot.slane %v6959_v2, 4  ;;  %v5826_v48 = vld [vmem:[#allocation3 + $0x50] sm:$0x1] }
 0x412   : > { %v6663_v60 = vshrl.u32 %v6416_v35, 16  ;;  %v6666_v16 = vshll.u32 %v6416_v35, 16  ;;  %v6672_v15 = vshll.u32 %v6417_v5, 16  ;;  %v7344_v62 = vunpack.c.l.b16 %v6066_v63 }
 0x413   : > { %v7424_v3 = vunpack.c.l.b16 %v6351_v46  ;;  %v8732_v58 = vrot.slane %v6839_v27, 9  ;;  %v6676_v52 = vshrl.u32 %v6417_v5, 16  ;;  %v7670_v54 = vunpack.c.l.b16 %v6925_v28  ;;  %v6408_v27 = vld [vmem:[#allocation3 + $0x54] sm:$0xf] }
 0x414   : > { %v7211_v11 = vpop.permute.xlu0 %7210  ;;  %v6962_v8 = vrot.slane %v6439_v10, 5  ;;  %v12347_v34 = vrot.slane %v6672_v15, 5  ;;  %v6322_v51 = vrot.slane %v5800_v7, 5  ;;  %v7367_v55 = vpack.c.b16 %v7345_v20, %v7344_v62 }
 0x415   : > { %v12342_v45 = vsel %vm4053_vm6, %v7763_v56, %v7211_v11  ;;  %7638 = vrot.lane.b32.xlu0 %v7618_v19, %s9139_s15  ;;  %v7671_v0 = vunpack.c.l.b16 %v6928_v6  ;;  %v6960_v59 = vsel %vm9981_vm15, %v8732_v58, %v6959_v2  ;;  %v6678_v41 = vrot.slane %v6676_v52, 4 }
 0x416   : > { %v7447_v42 = vpack.c.b16 %v7425_v24, %v7424_v3  ;;  %v6963_v23 = vsel %vm9981_vm15, %v6961_v37, %v6962_v8  ;;  %v6665_v5 = vrot.slane %v6663_v60, 4  ;;  %v6668_v14 = vrot.slane %v6666_v16, 5  ;;  %v12364_v37 = vld [vmem:[#allocation3 + $0x58] sm:$0xf] }
 0x417   : > { %v6679_v38 = vor.u32 %v6678_v41, %v12347_v34  ;;  %v6682_v17 = vshll.u32 %v6439_v10, 16  ;;  %v6324_v26 = vrot.slane %v6322_v51, 4  ;;  %v5967_v32 = vshll.u32 %v5800_v7, 16  ;;  %v12376_v41 = vld [vmem:[#allocation3 + $0x5c] sm:$0x1] }
 0x418   : > { %7558 = vrot.lane.b32.xlu1 %v9040_v49, %s9131_s17  ;;  %v7680_v56 = vunpack.c.l.b16 %v6960_v59  ;;  %v5958_v2 = vshrl.u32 %v5799_v18, 16  ;;  %v5961_v13 = vshll.u32 %v5799_v18, 16  ;;  %v5971_v35 = vshrl.u32 %v5800_v7, 16  ;;  %v5809_v18 = vld [vmem:[#allocation3 + $0x84] sm:$0xf] }
 0x419   : > { %7312 = vrot.lane.b32.xlu2 %v9029_v53, %s9137_s26  ;;  %v7681_v63 = vunpack.c.l.b16 %v6963_v23  ;;  %v8712_v46 = vrot.slane %v6226_v39, 9  ;;  %v6325_v28 = vrot.slane %v5826_v48, 5  ;;  %v6669_v20 = vor.u32 %v6668_v14, %v6665_v5 }
 0x41a   : > { %v6680_v24 = vrot.slane %v6679_v38, 4  ;;  %v12362_v6 = vrot.slane %v5967_v32, 5  ;;  %v5973_v10 = vrot.slane %v5971_v35, 4  ;;  %v7698_v60 = vpack.c.b16 %v7671_v0, %v7670_v54 }
 0x41b   : > { %v12356_v19 = vpop.permute.xlu2 %7148  ;;  %v6684_v7 = vrot.slane %v6682_v17, 5  ;;  %v6323_v16 = vsel %vm9981_vm15, %v8712_v46, %v6322_v51  ;;  %v5960_v15 = vrot.slane %v5958_v2, 4  ;;  %v5963_v49 = vrot.slane %v5961_v13, 5 }
 0x41c   : > { %v7217_v36 = vpop.permute.xlu0 %7216  ;;  %v5974_v62 = vor.u32 %v5973_v10, %v12362_v6  ;;  %v6567_v3 = vshrl.u32 %v6408_v27, 16  ;;  %v5977_v58 = vshll.u32 %v5826_v48, 16  ;;  %v6570_v52 = vshll.u32 %v6408_v27, 16  ;;  %v12383_v48 = vld [vmem:[#allocation3 + $0x88] sm:$0xf] }
 0x41d   : > { %v12359_v11 = vsel %vm4053_vm6, %v7772_v25, %v7217_v36  ;;  %7472 = vrot.lane.b32.xlu0 %v7447_v42, %s9138_s11  ;;  %v6326_v25 = vsel %vm9981_vm15, %v6324_v26, %v6325_v28  ;;  %v6576_v8 = vshll.u32 %v12364_v37, 16  ;;  %v6580_v54 = vshrl.u32 %v12364_v37, 16 }
 0x41e   : > { %v7703_v53 = vpack.c.b16 %v7681_v63, %v7680_v56  ;;  %v6670_v0 = vrot.slane %v6669_v20, 4  ;;  %v6685_v51 = vsel %vm9568_vm3, %v6680_v24, %v6684_v7  ;;  %v5975_v59 = vrot.slane %v5974_v62, 4  ;;  %v9011_v20 = vld [vmem:[#allocation3 + $0x54] sm:$0xff]  ;;  %v12397_v7 = vld [vmem:[#allocation3 + $0x8c] sm:$0x1] }
 0x41f   : > { %v6572_v23 = vrot.slane %v6570_v52, 5  ;;  %v12381_v5 = vrot.slane %v6576_v8, 5  ;;  %v6582_v14 = vrot.slane %v6580_v54, 4  ;;  %v7416_v38 = vunpack.c.l.b16 %v6323_v16 }
 0x420   : > { %7392 = vrot.lane.b32.xlu1 %v7367_v55, %s9130_s16  ;;  %v6569_v55 = vrot.slane %v6567_v3, 4  ;;  %v6675_v39 = vsel %vm9568_vm3, %v6670_v0, %v12347_v34  ;;  %v7417_v17 = vunpack.c.l.b16 %v6326_v25  ;;  %v5964_v26 = vor.u32 %v5963_v49, %v5960_v15  ;;  %v9045_v34 = vld [vmem:[#allocation3 + $0x84] sm:$0xff] }
 0x421   : > { %7718 = vrot.lane.b32.xlu2 %v7698_v60, %s9132_s18  ;;  %v7601_v36 = vunpack.c.l.b16 %v6685_v51  ;;  %v5979_v56 = vrot.slane %v5977_v58, 5  ;;  %v6583_v2 = vor.u32 %v6582_v14, %v12381_v5  ;;  %v6078_v13 = vshrl.u32 %v5809_v18, 16  ;;  %v12404_v0 = vld [vmem:[#allocation3 + $0x84] sm:$0xe]  ;;  %v9016_v14 = vld [vmem:[#allocation3 + $0x90] sm:$0xff] }
 0x422   : > { %v12379_v42 = vpop.permute.xlu1 %7146  ;;  %v6586_v35 = vshll.u32 %v12376_v41, 16  ;;  %v6081_v63 = vshll.u32 %v5809_v18, 16  ;;  %v6087_v46 = vshll.u32 %v12383_v48, 16  ;;  %v6091_v28 = vshrl.u32 %v12383_v48, 16 }
 0x423   : > { %v12388_v32 = vpop.permute.xlu2 %7214  ;;  %v7600_v27 = vunpack.c.l.b16 %v6675_v39  ;;  %v5980_v24 = vsel %vm9568_vm3, %v5975_v59, %v5979_v56  ;;  %v6573_v10 = vor.u32 %v6572_v23, %v6569_v55  ;;  %v6584_v60 = vrot.slane %v6583_v2, 4  ;;  %v12419_v56 = vld [vmem:[#allocation3 + $0x94] sm:$0xf] }
 0x424   : > { %v6080_v25 = vrot.slane %v6078_v13, 4  ;;  %v6083_v15 = vrot.slane %v6081_v63, 5  ;;  %v12399_v49 = vrot.slane %v6087_v46, 5  ;;  %v6093_v62 = vrot.slane %v6091_v28, 4  ;;  %v6418_v63 = vld [vmem:[#allocation3 + $0x90] sm:$0xf] }
 0x425   : > { %7728 = vrot.lane.b32.xlu0 %v7703_v53, %s9132_s18  ;;  %v7623_v3 = vpack.c.b16 %v7601_v36, %v7600_v27  ;;  %v5965_v52 = vrot.slane %v5964_v26, 4  ;;  %v7443_v8 = vpack.c.b16 %v7417_v17, %v7416_v38  ;;  %v6588_v54 = vrot.slane %v6586_v35, 5  ;;  %v12417_v36 = vld [vmem:[#allocation3 + $0x54] sm:$0xe]  ;;  %v8018_v46 = vld [vmem:[%s13182_s5] sm:$0x3] }
 0x426   : > { %v6097_v53 = vshll.u32 %v12397_v7, 16  ;;  %v7337_v18 = vunpack.c.l.b16 %v5980_v24  ;;  %v6574_v55 = vrot.slane %v6573_v10, 4  ;;  %v6094_v23 = vor.u32 %v6093_v62, %v12399_v49  ;;  %v9017_v28 = vld [vmem:[#allocation3 + $0x9c] sm:$0xff]  ;;  %v8020_v10 = vld [vmem:[%s13182_s5 + $0x4] sm:$0x3] }
 0x427   : > { %v7133_v16 = vpop.permute.xlu0 %7132  ;;  %v5970_v59 = vsel %vm9568_vm3, %v5965_v52, %v12362_v6  ;;  %v6589_v38 = vsel %vm9568_vm3, %v6584_v60, %v6588_v54  ;;  %v6084_v17 = vor.u32 %v6083_v15, %v6080_v25  ;;  %v6357_v26 = vrot.slane %v12383_v48, 5  ;;  %v9025_v6 = vld [vmem:[#allocation3 + $0x48] sm:$0xff]  ;;  %v8019_v24 = vld [vmem:[%s13182_s5 + $0x2] sm:$0x3]  ;;  %v8021_v15 = vld [vmem:[%s13182_s5 + $0x6] sm:$0x3] }
 0x428   : > { %7568 = vrot.lane.b32.xlu1 %v9045_v34, %s9131_s17  ;;  %v7766_v58 = vsel %vm7742_vm2, %v9011_v20, %v7133_v16  ;;  %v8717_v13 = vrot.slane %v12404_v0, 9  ;;  %v6931_v35 = vrot.slane %v12364_v37, 5  ;;  %v7336_v48 = vunpack.c.l.b16 %v5970_v59  ;;  %8028 = vst [vmem:[#allocation1] ss:$4 sm:$0xff] %v8018_v46  ;;  %v12445_v52 = vld [vmem:[#allocation3 + $0x98] sm:$0x1] }
 0x429   : > { %7648 = vrot.lane.b32.xlu2 %v7623_v3, %s9139_s15  ;;  %v6579_v34 = vsel %vm9568_vm3, %v6574_v55, %v12381_v5  ;;  %v6099_v27 = vrot.slane %v6097_v53, 5  ;;  %v6360_v20 = vrot.slane %v12397_v7, 5  ;;  %v7593_v60 = vunpack.c.l.b16 %v6589_v38  ;;  %8031 = vst [vmem:[#allocation1 + $0x1] ss:$4 sm:$0xff] %v8019_v24  ;;  %v9030_v37 = vld [vmem:[#allocation3 + $0x84] sm:$0xff] }
 0x42a   : > { %v7213_v51 = vpop.permute.xlu1 %7212  ;;  %v6095_v16 = vrot.slane %v6094_v23, 4  ;;  %v8728_v25 = vrot.slane %v12417_v36, 9  ;;  %v7781_v5 = vsel %vm7742_vm2, %v9016_v14, %v12161_v4  ;;  %v7363_v7 = vpack.c.b16 %v7337_v18, %v7336_v48  ;;  %8034 = vst [vmem:[#allocation1 + $0x2] ss:$4 sm:$0xff] %v8020_v10  ;;  %v8024_v23 = vld [vmem:[%s13182_s5 + $0xc] sm:$0x3] }
 0x42b   : > { %v12412_v39 = vsel %vm4053_vm6, %v7766_v58, %v7213_v51  ;;  %v12421_v2 = vpop.permute.xlu2 %7296  ;;  %v6085_v3 = vrot.slane %v6084_v17, 4  ;;  %v6359_v58 = vrot.slane %v6357_v26, 4  ;;  %v7592_v53 = vunpack.c.l.b16 %v6579_v34  ;;  %v8023_v51 = vld [vmem:[%s13182_s5 + $0xa] sm:$0x3]  ;;  %8037 = vst [vmem:[#allocation1 + $0x3] ss:$4 sm:$0xff] %v8021_v15 }
 0x42c   : > { %v6933_v4 = vrot.slane %v6931_v35, 4  ;;  %v6966_v0 = vrot.slane %v12419_v56, 5  ;;  %v7784_v59 = vsel %vm7742_vm2, %v9017_v28, %v12312_v40  ;;  %v6687_v18 = vshrl.u32 %v6418_v63, 16  ;;  %v8025_v40 = vld [vmem:[%s13182_s5 + $0xe] sm:$0x3] }
 0x42d   : > { %7464 = vrot.lane.b32.xlu0 %v7443_v8, %s9138_s11  ;;  %v8022_v8 = vld [vmem:[%s13182_s5 + $0x8] sm:$0x3]  ;;  %v6690_v55 = vshll.u32 %v6418_v63, 16  ;;  %v7619_v38 = vpack.c.b16 %v7593_v60, %v7592_v53  ;;  %v6100_v17 = vsel %vm9568_vm3, %v6095_v16, %v6099_v27  ;;  %v6090_v46 = vsel %vm9568_vm3, %v6085_v3, %v12399_v49  ;;  %v6840_v34 = vld [vmem:[#allocation3 + $0x90] sm:$0xe]  ;;  %v9019_v49 = vld [vmem:[#allocation3 + $0xb4] sm:$0xff] }
 0x42e   : > { %v6968_v36 = vrot.slane %v6966_v0, 4  ;;  %8040 = vst [vmem:[#allocation1 + $0x20] ss:$4 sm:$0xff] %v8022_v8  ;;  %v6358_v28 = vsel %vm9981_vm15, %v8717_v13, %v6357_v26  ;;  %v6934_v48 = vrot.slane %v12376_v41, 5  ;;  %v6361_v24 = vsel %vm9981_vm15, %v6359_v58, %v6360_v20  ;;  %v8026_v3 = vld [vmem:[%s13182_s5 + $0x10] sm:$0x3] }
 0x42f   : > { %v7223_v62 = vpop.permute.xlu0 %7222  ;;  %8043 = vst [vmem:[#allocation1 + $0x21] ss:$4 sm:$0xff] %v8023_v51  ;;  %v6969_v10 = vrot.slane %v12445_v52, 5  ;;  %v6700_v16 = vshrl.u32 %v12419_v56, 16  ;;  %v12490_v26 = vunpack.c.l.b16 %v6100_v17  ;;  %v6689_v13 = vrot.slane %v6687_v18, 4 }
 0x430   : > { %7304 = vrot.lane.b32.xlu1 %v9025_v6, %s9137_s26  ;;  %v12452_v54 = vsel %vm4053_vm6, %v7781_v5, %v7223_v62  ;;  %v6696_v6 = vshll.u32 %v12419_v56, 16  ;;  %8046 = vst [vmem:[#allocation1 + $0x22] ss:$4 sm:$0xff] %v8024_v23  ;;  %v6935_v41 = vsel %vm9981_vm15, %v6933_v4, %v6934_v48  ;;  %v6692_v15 = vrot.slane %v6690_v55, 5  ;;  %v9041_v5 = vld [vmem:[#allocation3 + $0x54] sm:$0xff] }
 0x431   : > { %7384 = vrot.lane.b32.xlu2 %v7363_v7, %s9130_s16  ;;  %8049 = vst [vmem:[#allocation1 + $0x23] ss:$4 sm:$0xff] %v8025_v40  ;;  %v6932_v20 = vsel %vm9981_vm15, %v8728_v25, %v6931_v35  ;;  %v8733_v7 = vrot.slane %v6840_v34, 9  ;;  %v6970_v56 = vsel %vm9981_vm15, %v6968_v36, %v6969_v10  ;;  %v6702_v62 = vrot.slane %v6700_v16, 4  ;;  %v5802_v51 = vld [vmem:[#allocation3 + $0x58] sm:$0xf] }
 0x432   : > { %v7225_v14 = vpop.permute.xlu1 %7224  ;;  %v12486_v60 = vrot.slane %v6696_v6, 5  ;;  %v7790_v58 = vsel %vm7742_vm2, %v9019_v49, %v12356_v19  ;;  %v7346_v53 = vunpack.c.l.b16 %v6090_v46  ;;  %v7427_v4 = vunpack.c.l.b16 %v6361_v24  ;;  %v12512_v55 = vld.sshfl [vmem:[#allocation1] sm:$0xff pattern:$0x73625140]  ;;  %v5801_v23 = vld [vmem:[#allocation3 + $0x54] sm:$0xf] }
 0x433   : > { %v12473_v63 = vsel %vm4053_vm6, %v7784_v59, %v7225_v14  ;;  %v12481_v27 = vpop.permute.xlu2 %7374  ;;  %v7673_v25 = vunpack.c.l.b16 %v6935_v41  ;;  %v6967_v59 = vsel %vm9981_vm15, %v8733_v7, %v6966_v0  ;;  %v7426_v19 = vunpack.c.l.b16 %v6358_v28  ;;  %8053 = vst [vmem:[#allocation1] ss:$4 sm:$0xff] %v8026_v3  ;;  %v6227_v46 = vld [vmem:[#allocation3 + $0x54] sm:$0xe]  ;;  %v6410_v28 = vld [vmem:[#allocation3 + $0x60] sm:$0xf] }
 0x434   : > { %v6703_v18 = vor.u32 %v6702_v62, %v12486_v60  ;;  %v7672_v14 = vunpack.c.l.b16 %v6932_v20  ;;  %v6693_v17 = vor.u32 %v6692_v15, %v6689_v13  ;;  %v7368_v6 = vpack.c.b16 %v12490_v26, %v7346_v53  ;;  %v5827_v15 = vld [vmem:[#allocation3 + $0x5c] sm:$0x1] }
 0x435   : > { %7640 = vrot.lane.b32.xlu0 %v7619_v38, %s9139_s15  ;;  %v7683_v38 = vunpack.c.l.b16 %v6970_v56  ;;  %v6706_v40 = vshll.u32 %v12445_v52, 16  ;;  %v6329_v0 = vrot.slane %v5802_v51, 5  ;;  %v5991_v48 = vshll.u32 %v5802_v51, 16  ;;  %v12524_v56 = vld [vmem:[#allocation3 + $0x64] sm:$0xf] }
 0x436   : > { %v7448_v34 = vpack.c.b16 %v7427_v4, %v7426_v19  ;;  %v7682_v24 = vunpack.c.l.b16 %v6967_v59  ;;  %v5982_v10 = vshrl.u32 %v5801_v23, 16  ;;  %v5985_v16 = vshll.u32 %v5801_v23, 16  ;;  %v12528_v59 = vld [vmem:[#allocation3 + $0x68] sm:$0x1] }
 0x437   : > { %v7229_v8 = vpop.permute.xlu0 %7228  ;;  %vm7823_vm12 = vcmask 97280   ;;  %v7699_v41 = vpack.c.b16 %v7673_v25, %v7672_v14  ;;  %v6704_v13 = vrot.slane %v6703_v18, 4  ;;  %v5995_v20 = vshrl.u32 %v5802_v51, 16 }
 0x438   : > { %7560 = vrot.lane.b32.xlu1 %v9041_v5, %s9131_s17  ;;  %v12507_v35 = vsel %vm4053_vm6, %v7790_v58, %v7229_v8  ;;  %v12521_v5 = vrot.slane %v5991_v48, 5  ;;  %v7704_v52 = vpack.c.b16 %v7683_v38, %v7682_v24  ;;  %v6694_v26 = vrot.slane %v6693_v17, 4  ;;  %v5811_v48 = vld [vmem:[#allocation3 + $0x90] sm:$0xf] }
 0x439   : > { %13408 = vst [vmem:[#allocation14_spill] sm:$0xff] %v12507_v35  ;;  %7314 = vrot.lane.b32.xlu2 %v9030_v37, %s9137_s26  ;;  %vm8090_vm5 = vcmask 1041408   ;;  %v8713_v7 = vrot.slane %v6227_v46, 9  ;;  %v6708_v62 = vrot.slane %v6706_v40, 5  ;;  %v6331_v3 = vrot.slane %v6329_v0, 4 }
 0x43a   : > { %v12515_v36 = vpop.permute.xlu1 %7294  ;;  %v5997_v58 = vrot.slane %v5995_v20, 4  ;;  %v6591_v8 = vshrl.u32 %v6410_v28, 16  ;;  %v6332_v4 = vrot.slane %v5827_v15, 5  ;;  %v5984_v37 = vrot.slane %v5982_v10, 4 }
 0x43b   : > { %v12519_v49 = vpop.permute.xlu2 %7630  ;;  %v5987_v25 = vrot.slane %v5985_v16, 5  ;;  %v6594_v51 = vshll.u32 %v6410_v28, 16  ;;  %v6709_v18 = vsel %vm9568_vm3, %v6704_v13, %v6708_v62  ;;  %v8054_v23 = vld.sshfl [vmem:[#allocation1] sm:$0xff pattern:$0x73625140]  ;;  %v6001_v14 = vshll.u32 %v5827_v15, 16 }
 0x43c   : > { %v5998_v19 = vor.u32 %v5997_v58, %v12521_v5  ;;  %v6600_v38 = vshll.u32 %v12524_v56, 16  ;;  %v6699_v17 = vsel %vm9568_vm3, %v6694_v26, %v12486_v60  ;;  %v8091_v40 = vsel %vm8090_vm5, %v8054_v23, 0  ;;  %v8051_v15 = vld.sshfl [vmem:[#allocation1 + $0x20] sm:$0xff pattern:$0x73625140] }
 0x43d   : > { %7474 = vrot.lane.b32.xlu0 %v7448_v34, %s9138_s11  ;;  %v6330_v46 = vsel %vm9981_vm15, %v8713_v7, %v6329_v0  ;;  %v12542_v34 = vld [vmem:[#allocation3 + $0x94] sm:$0xf]  ;;  %8098 = vmatpush.bf16.msra.mxu1 %v8091_v40  ;;  %v6333_v10 = vsel %vm9981_vm15, %v6331_v3, %v6332_v4  ;;  %v6593_v16 = vrot.slane %v6591_v8, 4  ;;  %v6596_v60 = vrot.slane %v6594_v51, 5 }
 0x43e   : > { %v12549_v28 = vrot.slane %v6600_v38, 5  ;;  %v7603_v13 = vunpack.c.l.b16 %v6709_v18  ;;  %v5988_v0 = vor.u32 %v5987_v25, %v5984_v37  ;;  %v5999_v20 = vrot.slane %v5998_v19, 4  ;;  %9057 = vmatpush.bf16.msra.mxu3 %v8091_v40  ;;  %v9046_v25 = vld [vmem:[#allocation3 + $0x90] sm:$0xff] }
 0x43f   : > { %v12526_v53 = vpop.permute.xlu0 %7298  ;;  %v6102_v62 = vshrl.u32 %v5811_v48, 16  ;;  %v6105_v58 = vshll.u32 %v5811_v48, 16  ;;  %v6111_v23 = vshll.u32 %v12542_v34, 16  ;;  %v7825_v3 = vsel %vm7823_vm12, %v12172_v50, %v12515_v36 }
 0x440   : > { %7394 = vrot.lane.b32.xlu1 %v7368_v6, %s9130_s16  ;;  %v6604_v6 = vshrl.u32 %v12524_v56, 16  ;;  %v7602_v8 = vunpack.c.l.b16 %v6699_v17  ;;  %v6003_v4 = vrot.slane %v6001_v14, 5  ;;  %v7419_v51 = vunpack.c.l.b16 %v6333_v10  ;;  %v5832_v14 = vld [vmem:[#allocation3 + $0x98] sm:$0x1] }
 0x441   : > { %7720 = vrot.lane.b32.xlu2 %v7699_v41, %s9132_s18  ;;  %v6610_v41 = vshll.u32 %v12528_v59, 16  ;;  %8099 = vmatpush.bf16.msra.mxu1 %v8051_v15  ;;  %v6597_v18 = vor.u32 %v6596_v60, %v6593_v16  ;;  %v12560_v19 = vrot.slane %v6111_v23, 5  ;;  %v6115_v38 = vshrl.u32 %v12542_v34, 16 }
 0x442   : > { %v12545_v24 = vpop.permute.xlu1 %7134  ;;  %v6606_v26 = vrot.slane %v6604_v6, 4  ;;  %v7624_v40 = vpack.c.b16 %v7603_v13, %v7602_v8  ;;  %v5989_v48 = vrot.slane %v5988_v0, 4  ;;  %v6004_v50 = vsel %vm9568_vm3, %v5999_v20, %v6003_v4  ;;  %9058 = vmatpush.bf16.msra.mxu3 %v8051_v15 }
 0x443   : > { %v12551_v7 = vpop.permute.xlu2 %7456  ;;  %v6104_v17 = vrot.slane %v6102_v62, 4  ;;  %v6117_v10 = vrot.slane %v6115_v38, 4  ;;  %v7418_v16 = vunpack.c.l.b16 %v6330_v46  ;;  %v6364_v13 = vrot.slane %v12542_v34, 5  ;;  %v6232_v34 = vld [vmem:[#allocation3 + $0x90] sm:$0xe]  ;;  %v9026_v38 = vld [vmem:[#allocation3 + $0x54] sm:$0xff] }
 0x444   : > { %v6607_v37 = vor.u32 %v6606_v26, %v12549_v28  ;;  %v6107_v26 = vrot.slane %v6105_v58, 5  ;;  %v5994_v60 = vsel %vm9568_vm3, %v5989_v48, %v12521_v5  ;;  %v7339_v20 = vunpack.c.l.b16 %v6004_v50 }
 0x445   : > { %7730 = vrot.lane.b32.xlu0 %v7704_v52, %s9132_s18  ;;  %v6612_v52 = vrot.slane %v6610_v41, 5  ;;  %8100 = vmatpush.bf16.msra.mxu1 %v12512_v55  ;;  %v6598_v15 = vrot.slane %v6597_v18, 4  ;;  %v6118_v62 = vor.u32 %v6117_v10, %v12560_v19  ;;  %vm7888_vm4 = vcmask 162816   ;;  %v12586_v18 = vld [vmem:[#allocation3 + $0xa0] sm:$0xf] }
 0x446   : > { %v6608_v36 = vrot.slane %v6607_v37, 4  ;;  %v7857_v46 = vsel %vm4102_vm14, %v7825_v3, %v12481_v27  ;;  %v7444_v5 = vpack.c.b16 %v7419_v51, %v7418_v16  ;;  %v6121_v58 = vshll.u32 %v5832_v14, 16  ;;  %9059 = vmatpush.bf16.msra.mxu3 %v12512_v55  ;;  %v6420_v51 = vld [vmem:[#allocation3 + $0x9c] sm:$0xf] }
 0x447   : > { %v7455_v6 = vpop.permute.xlu0 %7454  ;;  %v7338_v8 = vunpack.c.l.b16 %v5994_v60  ;;  %v6603_v4 = vsel %vm9568_vm3, %v6598_v15, %v12549_v28  ;;  %v6108_v37 = vor.u32 %v6107_v26, %v6104_v17  ;;  %vm7953_vm7 = vcmask 228352  }
 0x448   : > { %7570 = vrot.lane.b32.xlu1 %v9046_v25, %s9131_s17  ;;  %v6613_v41 = vsel %vm9568_vm3, %v6608_v36, %v6612_v52  ;;  %v6938_v25 = vrot.slane %v12524_v56, 5  ;;  %vm8057_vm9 = vcmask 293888   ;;  %v6366_v3 = vrot.slane %v6364_v13, 4  ;;  %v6836_v36 = vld [vmem:[#allocation3 + $0x60] sm:$0xe] }
 0x449   : > { %7650 = vrot.lane.b32.xlu2 %v7624_v40, %s9139_s15  ;;  %v7595_v27 = vunpack.c.l.b16 %v6613_v41  ;;  %v7890_v55 = vsel %vm7888_vm4, %v7857_v46, %v7455_v6  ;;  %v7364_v40 = vpack.c.b16 %v7339_v20, %v7338_v8  ;;  %v6119_v48 = vrot.slane %v6118_v62, 4  ;;  %v12596_v46 = vld [vmem:[#allocation3 + $0xa4] sm:$0x1] }
 0x44a   : > { %v12571_v0 = vpop.permute.xlu1 %7300  ;;  %v8718_v50 = vrot.slane %v6232_v34, 9  ;;  %v7594_v52 = vunpack.c.l.b16 %v6603_v4  ;;  %v6123_v17 = vrot.slane %v6121_v58, 5  ;;  %v6367_v56 = vrot.slane %v5832_v14, 5 }
 0x44b   : > { %v12580_v23 = vpop.permute.xlu2 %7712  ;;  %v6973_v26 = vrot.slane %v12586_v18, 5  ;;  %v6109_v10 = vrot.slane %v6108_v37, 4  ;;  %v6940_v16 = vrot.slane %v6938_v25, 4  ;;  %v6711_v60 = vshrl.u32 %v6420_v51, 16 }
 0x44c   : > { %v6714_v15 = vshll.u32 %v6420_v51, 16  ;;  %v7620_v41 = vpack.c.b16 %v7595_v27, %v7594_v52  ;;  %v6365_v6 = vsel %vm9981_vm15, %v8718_v50, %v6364_v13  ;;  %v6368_v20 = vsel %vm9981_vm15, %v6366_v3, %v6367_v56  ;;  %v6841_v13 = vld [vmem:[#allocation3 + $0x9c] sm:$0xe]  ;;  %v9042_v52 = vld [vmem:[#allocation3 + $0x60] sm:$0xff] }
 0x44d   : > { %7466 = vrot.lane.b32.xlu0 %v7444_v5, %s9138_s11  ;;  %v8729_v62 = vrot.slane %v6836_v36, 9  ;;  %v6124_v5 = vsel %vm9568_vm3, %v6119_v48, %v6123_v17  ;;  %v6941_v58 = vrot.slane %v12528_v59, 5  ;;  %v6975_v34 = vrot.slane %v6973_v26, 4 }
 0x44e   : > { %v6720_v8 = vshll.u32 %v12586_v18, 16  ;;  %v6713_v37 = vrot.slane %v6711_v60, 4  ;;  %v6716_v27 = vrot.slane %v6714_v15, 5  ;;  %v6724_v3 = vshrl.u32 %v12586_v18, 16  ;;  %v9031_v15 = vld [vmem:[#allocation3 + $0x90] sm:$0xff] }
 0x44f   : > { %v7711_v28 = vpop.permute.xlu0 %7710  ;;  %v6942_v59 = vsel %vm9981_vm15, %v6940_v16, %v6941_v58  ;;  %v6976_v48 = vrot.slane %v12596_v46, 5  ;;  %v6939_v18 = vsel %vm9981_vm15, %v8729_v62, %v6938_v25  ;;  %v7429_v17 = vunpack.c.l.b16 %v6368_v20  ;;  %v6228_v20 = vld [vmem:[#allocation3 + $0x60] sm:$0xe] }
 0x450   : > { %7306 = vrot.lane.b32.xlu1 %v9026_v38, %s9137_s26  ;;  %v12619_v50 = vrot.slane %v6720_v8, 5  ;;  %v6726_v36 = vrot.slane %v6724_v3, 4  ;;  %v8734_v56 = vrot.slane %v6841_v13, 9  ;;  %v7675_v60 = vunpack.c.l.b16 %v6942_v59 }
 0x451   : > { %7386 = vrot.lane.b32.xlu2 %v7364_v40, %s9130_s16  ;;  %v6114_v40 = vsel %vm9568_vm3, %v6109_v10, %v12560_v19  ;;  %v7349_v19 = vunpack.c.l.b16 %v6124_v5  ;;  %v6977_v10 = vsel %vm9981_vm15, %v6975_v34, %v6976_v48  ;;  %v6717_v25 = vor.u32 %v6716_v27, %v6713_v37  ;;  %v6412_v48 = vld [vmem:[#allocation3 + $0x6c] sm:$0xf] }
 0x452   : > { %v7551_v14 = vpop.permute.xlu1 %7550  ;;  %v7428_v62 = vunpack.c.l.b16 %v6365_v6  ;;  %v7674_v58 = vunpack.c.l.b16 %v6939_v18  ;;  %v7685_v8 = vunpack.c.l.b16 %v6977_v10  ;;  %v6727_v34 = vor.u32 %v6726_v36, %v12619_v50  ;;  %v12636_v10 = vld [vmem:[#allocation3 + $0x70] sm:$0xf] }
 0x453   : > { %v7922_v4 = vsel %vm4135_vm13, %v7890_v55, %v7551_v14  ;;  %v12605_v51 = vpop.permute.xlu2 %7554  ;;  %v6974_v14 = vsel %vm9981_vm15, %v8734_v56, %v6973_v26  ;;  %v6730_v27 = vshll.u32 %v12596_v46, 16  ;;  %v5828_v26 = vld [vmem:[#allocation3 + $0x68] sm:$0x1]  ;;  %v8714_v59 = vrot.slane %v6228_v20, 9 }
 0x454   : > { %v7955_v38 = vsel %vm7953_vm7, %v7922_v4, %v12519_v49  ;;  %v5804_v49 = vld [vmem:[#allocation3 + $0x64] sm:$0xf]  ;;  %v5803_v4 = vld [vmem:[#allocation3 + $0x60] sm:$0xf]  ;;  %v7449_v37 = vpack.c.b16 %v7429_v17, %v7428_v62  ;;  %v7700_v6 = vpack.c.b16 %v7675_v60, %v7674_v58  ;;  %v6728_v46 = vrot.slane %v6727_v34, 4 }
 0x455   : > { %v7987_v55 = vsel %vm4168_vm0, %v7955_v38, %v7711_v28  ;;  %7642 = vrot.lane.b32.xlu0 %v7620_v41, %s9139_s15  ;;  %v7827_v28 = vsel %vm7823_vm12, %v12220_v43, %v12421_v2  ;;  %v7348_v41 = vunpack.c.l.b16 %v6114_v40  ;;  %v6336_v5 = vrot.slane %v5804_v49, 5 }
 0x456   : > { %8931 = vmatmul.msk.bf16.vlgmr.msra.gmra.mxu1 %vm8057_vm9, %v7987_v55  ;;  %v6015_v13 = vshll.u32 %v5804_v49, 16  ;;  %v6019_v3 = vshrl.u32 %v5804_v49, 16  ;;  %v7684_v38 = vunpack.c.l.b16 %v6974_v14  ;;  %v6718_v40 = vrot.slane %v6717_v25, 4 }
 0x457   : > { %v7553_v16 = vpop.permute.xlu0 %7552  ;;  %v7369_v2 = vpack.c.b16 %v7349_v19, %v7348_v41  ;;  %v6338_v36 = vrot.slane %v6336_v5, 4  ;;  %v6009_v56 = vshll.u32 %v5803_v4, 16  ;;  %v6732_v25 = vrot.slane %v6730_v27, 5 }
 0x458   : > { %7562 = vrot.lane.b32.xlu1 %v9042_v52, %s9131_s17  ;;  %v6006_v52 = vshrl.u32 %v5803_v4, 16  ;;  %v7705_v19 = vpack.c.b16 %v7685_v8, %v7684_v38  ;;  %v12639_v49 = vrot.slane %v6015_v13, 5  ;;  %v6021_v17 = vrot.slane %v6019_v3, 4  ;;  %v5813_v13 = vld [vmem:[#allocation3 + $0x9c] sm:$0xf] }
 0x459   : > { %7316 = vrot.lane.b32.xlu2 %v9031_v15, %s9137_s26  ;;  %v6723_v60 = vsel %vm9568_vm3, %v6718_v40, %v12619_v50  ;;  %v6339_v15 = vrot.slane %v5828_v26, 5  ;;  %v6615_v41 = vshrl.u32 %v6412_v48, 16  ;;  %v6618_v14 = vshll.u32 %v6412_v48, 16 }
 0x45a   : > { %v7377_v43 = vpop.permute.xlu1 %7376  ;;  %v6624_v20 = vshll.u32 %v12636_v10, 16  ;;  %v6628_v58 = vshrl.u32 %v12636_v10, 16  ;;  %v6337_v8 = vsel %vm9981_vm15, %v8714_v59, %v6336_v5  ;;  %v6008_v34 = vrot.slane %v6006_v52, 4 }
 0x45b   : > { %v12633_v55 = vpop.permute.xlu2 %7302  ;;  %v7859_v18 = vsel %vm4102_vm14, %v7827_v28, %v7377_v43  ;;  %v6340_v50 = vsel %vm9981_vm15, %v6338_v36, %v6339_v15  ;;  %v6011_v4 = vrot.slane %v6009_v56, 5  ;;  %v6022_v43 = vor.u32 %v6021_v17, %v12639_v49 }
 0x45c   : > { %v7892_v28 = vsel %vm7888_vm4, %v7859_v18, %v12551_v7  ;;  %v6733_v7 = vsel %vm9568_vm3, %v6728_v46, %v6732_v25  ;;  %v12660_v27 = vrot.slane %v6624_v20, 5  ;;  %v6630_v3 = vrot.slane %v6628_v58, 4  ;;  %v9047_v20 = vld [vmem:[#allocation3 + $0x9c] sm:$0xff] }
 0x45d   : > { %7476 = vrot.lane.b32.xlu0 %v7449_v37, %s9138_s11  ;;  %v12658_v37 = vld [vmem:[#allocation3 + $0x74] sm:$0x1]  ;;  %v7924_v5 = vsel %vm4135_vm13, %v7892_v28, %v7553_v16  ;;  %v6025_v40 = vshll.u32 %v5828_v26, 16  ;;  %v6617_v59 = vrot.slane %v6615_v41, 4  ;;  %v6620_v48 = vrot.slane %v6618_v14, 5  ;;  %v9006_v14 = vld [vmem:[#allocation3 + $0x18] sm:$0xff] }
 0x45e   : > { %v6631_v36 = vor.u32 %v6630_v3, %v12660_v27  ;;  %v6126_v52 = vshrl.u32 %v5813_v13, 16  ;;  %v6129_v56 = vshll.u32 %v5813_v13, 16  ;;  %v7605_v25 = vunpack.c.l.b16 %v6733_v7 }
 0x45f   : > { %v12646_v62 = vpop.permute.xlu0 %7378  ;;  %v7604_v26 = vunpack.c.l.b16 %v6723_v60  ;;  %v6012_v15 = vor.u32 %v6011_v4, %v6008_v34  ;;  %v6023_v41 = vrot.slane %v6022_v43, 4  ;;  %v7421_v58 = vunpack.c.l.b16 %v6340_v50 }
 0x460   : > { %7396 = vrot.lane.b32.xlu1 %v7369_v2, %s9130_s16  ;;  %v12662_v2 = vld [vmem:[#allocation3 + $0xa0] sm:$0xf]  ;;  %v6027_v13 = vrot.slane %v6025_v40, 5  ;;  %v6621_v3 = vor.u32 %v6620_v48, %v6617_v59  ;;  %v7420_v43 = vunpack.c.l.b16 %v6337_v8 }
 0x461   : > { %7722 = vrot.lane.b32.xlu2 %v7700_v6, %s9132_s18  ;;  %v6634_v6 = vshll.u32 %v12658_v37, 16  ;;  %v6135_v16 = vshll.u32 %v12662_v2, 16  ;;  %v6139_v28 = vshrl.u32 %v12662_v2, 16  ;;  %v7625_v60 = vpack.c.b16 %v7605_v25, %v7604_v26  ;;  %v6233_v26 = vld [vmem:[#allocation3 + $0x9c] sm:$0xe] }
 0x462   : > { %v7633_v38 = vpop.permute.xlu1 %7632  ;;  %v6371_v4 = vrot.slane %v12662_v2, 5  ;;  %v6013_v40 = vrot.slane %v6012_v15, 4  ;;  %v6028_v59 = vsel %vm9568_vm3, %v6023_v41, %v6027_v13  ;;  %v7445_v2 = vpack.c.b16 %v7421_v58, %v7420_v43 }
 0x463   : > { %v7957_v18 = vsel %vm7953_vm7, %v7924_v5, %v7633_v38  ;;  %v12668_v46 = vpop.permute.xlu2 %7556  ;;  %v6128_v5 = vrot.slane %v6126_v52, 4  ;;  %v6131_v38 = vrot.slane %v6129_v56, 5  ;;  %v6141_v35 = vrot.slane %v6139_v28, 4  ;;  %v5833_v56 = vld [vmem:[#allocation3 + $0xa4] sm:$0x1] }
 0x464   : > { %v7989_v17 = vsel %vm4168_vm0, %v7957_v18, %v12580_v23  ;;  %v6632_v23 = vrot.slane %v6631_v36, 4  ;;  %v12677_v18 = vrot.slane %v6135_v16, 5  ;;  %v6636_v34 = vrot.slane %v6634_v6, 5 }
 0x465   : > { %7732 = vrot.lane.b32.xlu0 %v7705_v19, %s9132_s18  ;;  %v7751_v19 = vsel %vm7742_vm2, %v9006_v14, %v12154_v22  ;;  %v6622_v36 = vrot.slane %v6621_v3, 4  ;;  %v6132_v8 = vor.u32 %v6131_v38, %v6128_v5  ;;  %v7341_v6 = vunpack.c.l.b16 %v6028_v59  ;;  %v9027_v14 = vld [vmem:[#allocation3 + $0x60] sm:$0xff] }
 0x466   : > { %8932 = vmatmul.msk.bf16.gmra.mxu1 %vm8057_vm9, %v7989_v17  ;;  %v7796_v50 = vsel %vm4053_vm6, %v7751_v19, %v12130_v9  ;;  %v6637_v52 = vsel %vm9568_vm3, %v6632_v23, %v6636_v34  ;;  %v6018_v9 = vsel %vm9568_vm3, %v6013_v40, %v12639_v49  ;;  %v6142_v17 = vor.u32 %v6141_v35, %v12677_v18  ;;  %v6422_v40 = vld [vmem:[#allocation3 + $0xa8] sm:$0xf] }
 0x467   : > { %v7635_v7 = vpop.permute.xlu0 %7634  ;;  %v7829_v48 = vsel %vm7823_vm12, %v7796_v50, %v12526_v53  ;;  %v6627_v16 = vsel %vm9568_vm3, %v6622_v36, %v12660_v27  ;;  %v6373_v15 = vrot.slane %v6371_v4, 4  ;;  %v7597_v49 = vunpack.c.l.b16 %v6637_v52  ;;  %v6423_v27 = vld [vmem:[#allocation3 + $0xac] sm:$0xf] }
 0x468   : > { %7572 = vrot.lane.b32.xlu1 %v9047_v20, %s9131_s17  ;;  %v7861_v25 = vsel %vm4102_vm14, %v7829_v48, %v12646_v62  ;;  %v6145_v28 = vshll.u32 %v5833_v56, 16  ;;  %v7340_v35 = vunpack.c.l.b16 %v6018_v9  ;;  %v6374_v20 = vrot.slane %v5833_v56, 5 }
 0x469   : > { %7652 = vrot.lane.b32.xlu2 %v7625_v60, %s9139_s15  ;;  %v6945_v62 = vrot.slane %v12636_v10, 5  ;;  %v7596_v13 = vunpack.c.l.b16 %v6627_v16  ;;  %v6133_v3 = vrot.slane %v6132_v8, 4  ;;  %v6143_v23 = vrot.slane %v6142_v17, 4  ;;  %v6842_v8 = vld [vmem:[#allocation3 + $0xa8] sm:$0xe] }
 0x46a   : > { %v7459_v22 = vpop.permute.xlu1 %7458  ;;  %v8719_v5 = vrot.slane %v6233_v26, 9  ;;  %v7365_v19 = vpack.c.b16 %v7341_v6, %v7340_v35  ;;  %v6375_v60 = vsel %vm9981_vm15, %v6373_v15, %v6374_v20  ;;  %v6147_v50 = vrot.slane %v6145_v28, 5  ;;  %v9043_v28 = vld [vmem:[#allocation3 + $0x6c] sm:$0xff] }
 0x46b   : > { %v12698_v53 = vpop.permute.xlu2 %7382  ;;  %v7894_v41 = vsel %vm7888_vm4, %v7861_v25, %v7459_v22  ;;  %v7621_v34 = vpack.c.b16 %v7597_v49, %v7596_v13  ;;  %v6138_v10 = vsel %vm9568_vm3, %v6133_v3, %v12677_v18  ;;  %v6947_v48 = vrot.slane %v6945_v62, 4  ;;  %v6442_v49 = vld [vmem:[#allocation3 + $0xb0] sm:$0x1] }
 0x46c   : > { %v7926_v38 = vsel %vm4135_vm13, %v7894_v41, %v12605_v51  ;;  %v6372_v43 = vsel %vm9981_vm15, %v8719_v5, %v6371_v4  ;;  %v6837_v51 = vld [vmem:[#allocation3 + $0x6c] sm:$0xe]  ;;  %v6980_v22 = vrot.slane %v6423_v27, 5  ;;  %v6744_v36 = vshll.u32 %v6423_v27, 16 }
 0x46d   : > { %7468 = vrot.lane.b32.xlu0 %v7445_v2, %s9138_s11  ;;  %v6748_v52 = vshrl.u32 %v6423_v27, 16  ;;  %v7959_v56 = vsel %vm7953_vm7, %v7926_v38, %v7635_v7  ;;  %v6148_v2 = vsel %vm9568_vm3, %v6143_v23, %v6147_v50  ;;  %v7431_v9 = vunpack.c.l.b16 %v6375_v60  ;;  %v5805_v27 = vld [vmem:[#allocation3 + $0x6c] sm:$0xf]  ;;  %v9032_v38 = vld [vmem:[#allocation3 + $0x9c] sm:$0xff] }
 0x46e   : > { %v6948_v18 = vrot.slane %v12658_v37, 5  ;;  %v6735_v4 = vshrl.u32 %v6422_v40, 16  ;;  %v6738_v25 = vshll.u32 %v6422_v40, 16  ;;  %v12725_v6 = vrot.slane %v6744_v36, 5  ;;  %v12732_v37 = vld [vmem:[#allocation3 + $0x70] sm:$0xf] }
 0x46f   : > { %v12706_v58 = vpop.permute.xlu0 %7380  ;;  %v6750_v16 = vrot.slane %v6748_v52, 4  ;;  %v7831_v26 = vsel %vm7823_vm12, %v12205_v29, %v12571_v0  ;;  %v7430_v15 = vunpack.c.l.b16 %v6372_v43  ;;  %v8730_v41 = vrot.slane %v6837_v51, 9 }
 0x470   : > { %7308 = vrot.lane.b32.xlu1 %v9027_v14, %s9137_s26  ;;  %v7350_v14 = vunpack.c.l.b16 %v6138_v10  ;;  %v6949_v35 = vsel %vm9981_vm15, %v6947_v48, %v6948_v18  ;;  %v8735_v20 = vrot.slane %v6842_v8, 9  ;;  %v6982_v13 = vrot.slane %v6980_v22, 4 }
 0x471   : > { %7388 = vrot.lane.b32.xlu2 %v7365_v19, %s9130_s16  ;;  %v7351_v29 = vunpack.c.l.b16 %v6148_v2  ;;  %v7450_v0 = vpack.c.b16 %v7431_v9, %v7430_v15  ;;  %v6946_v23 = vsel %vm9981_vm15, %v8730_v41, %v6945_v62  ;;  %v6751_v5 = vor.u32 %v6750_v16, %v12725_v6  ;;  %v6414_v15 = vld [vmem:[#allocation3 + $0x78] sm:$0xf] }
 0x472   : > { %v7715_v59 = vpop.permute.xlu1 %7714  ;;  %v6983_v19 = vrot.slane %v6442_v49, 5  ;;  %v6737_v60 = vrot.slane %v6735_v4, 4  ;;  %v6039_v10 = vshll.u32 %v12732_v37, 16  ;;  %v7677_v50 = vunpack.c.l.b16 %v6949_v35  ;;  %v5829_v35 = vld [vmem:[#allocation3 + $0x74] sm:$0x1] }
 0x473   : > { %v12723_v17 = vpop.permute.xlu2 %7312  ;;  %v7991_v7 = vsel %vm4168_vm0, %v7959_v56, %v7715_v59  ;;  %v6981_v43 = vsel %vm9981_vm15, %v8735_v20, %v6980_v22  ;;  %v6754_v40 = vshll.u32 %v6442_v49, 16  ;;  %v6343_v59 = vrot.slane %v12732_v37, 5  ;;  %v12753_v22 = vld [vmem:[#allocation3 + $0x7c] sm:$0xf] }
 0x474   : > { %v6984_v51 = vsel %vm9981_vm15, %v6982_v13, %v6983_v19  ;;  %v6030_v48 = vshrl.u32 %v5805_v27, 16  ;;  %v6033_v36 = vshll.u32 %v5805_v27, 16  ;;  %v6043_v52 = vshrl.u32 %v12732_v37, 16 }
 0x475   : > { %7644 = vrot.lane.b32.xlu0 %v7621_v34, %s9139_s15  ;;  %v6740_v34 = vrot.slane %v6738_v25, 5  ;;  %v7863_v56 = vsel %vm4102_vm14, %v7831_v26, %v12706_v58  ;;  %v7370_v2 = vpack.c.b16 %v7351_v29, %v7350_v14  ;;  %v7676_v9 = vunpack.c.l.b16 %v6946_v23  ;;  %v6229_v58 = vld [vmem:[#allocation3 + $0x6c] sm:$0xe] }
 0x476   : > { %8933 = vmatmul.msk.bf16.gmra.mxu1 %vm8057_vm9, %v7991_v7  ;;  %v6752_v18 = vrot.slane %v6751_v5, 4  ;;  %v7686_v4 = vunpack.c.l.b16 %v6981_v43  ;;  %v12757_v16 = vrot.slane %v6039_v10, 5  ;;  %v6045_v7 = vrot.slane %v6043_v52, 4 }
 0x477   : > { %v12737_v3 = vpop.permute.xlu0 %7636  ;;  %v6741_v25 = vor.u32 %v6740_v34, %v6737_v60  ;;  %v7701_v41 = vpack.c.b16 %v7677_v50, %v7676_v9  ;;  %v7687_v49 = vunpack.c.l.b16 %v6984_v51  ;;  %v6345_v26 = vrot.slane %v6343_v59, 4  ;;  %v12771_v50 = vld [vmem:[#allocation3 + $0xac] sm:$0xf]  ;;  %v5815_v9 = vld [vmem:[#allocation3 + $0xa8] sm:$0xf] }
 0x478   : > { %7564 = vrot.lane.b32.xlu1 %v9043_v28, %s9131_s17  ;;  %v6756_v28 = vrot.slane %v6754_v40, 5  ;;  %v6032_v20 = vrot.slane %v6030_v48, 4  ;;  %v6035_v13 = vrot.slane %v6033_v36, 5  ;;  %v6648_v29 = vshll.u32 %v12753_v22, 16 }
 0x479   : > { %7318 = vrot.lane.b32.xlu2 %v9032_v38, %s9137_s26  ;;  %v6642_v27 = vshll.u32 %v6414_v15, 16  ;;  %v6652_v38 = vshrl.u32 %v12753_v22, 16  ;;  %v6742_v19 = vrot.slane %v6741_v25, 4  ;;  %v8715_v60 = vrot.slane %v6229_v58, 9  ;;  %v12783_v25 = vld [vmem:[#allocation3 + $0x80] sm:$0x1] }
 0x47a   : > { %v7461_v62 = vpop.permute.xlu1 %7460  ;;  %v6757_v5 = vsel %vm9568_vm3, %v6752_v18, %v6756_v28  ;;  %v6346_v34 = vrot.slane %v5829_v35, 5  ;;  %v6046_v10 = vor.u32 %v6045_v7, %v12757_v16  ;;  %v7706_v40 = vpack.c.b16 %v7687_v49, %v7686_v4 }
 0x47b   : > { %v12755_v8 = vpop.permute.xlu2 %7718  ;;  %v7896_v14 = vsel %vm7888_vm4, %v7863_v56, %v7461_v62  ;;  %v12775_v62 = vrot.slane %v6648_v29, 5  ;;  %v6654_v51 = vrot.slane %v6652_v38, 4  ;;  %v6747_v36 = vsel %vm9568_vm3, %v6742_v19, %v12725_v6 }
 0x47c   : > { %v7928_v43 = vsel %vm4135_vm13, %v7896_v14, %v12668_v46  ;;  %v7607_v52 = vunpack.c.l.b16 %v6757_v5  ;;  %v6347_v56 = vsel %vm9981_vm15, %v6345_v26, %v6346_v34  ;;  %v6036_v18 = vor.u32 %v6035_v13, %v6032_v20  ;;  %v9048_v14 = vld [vmem:[#allocation3 + $0xa8] sm:$0xff] }
 0x47d   : > { %7478 = vrot.lane.b32.xlu0 %v7450_v0, %s9138_s11  ;;  %v6639_v0 = vshrl.u32 %v6414_v15, 16  ;;  %v6644_v4 = vrot.slane %v6642_v27, 5  ;;  %v6159_v7 = vshll.u32 %v12771_v50, 16  ;;  %v6047_v49 = vrot.slane %v6046_v10, 4 }
 0x47e   : > { %v6655_v6 = vor.u32 %v6654_v51, %v12775_v62  ;;  %v6163_v28 = vshrl.u32 %v12771_v50, 16  ;;  %v6150_v58 = vshrl.u32 %v5815_v9, 16  ;;  %v6153_v26 = vshll.u32 %v5815_v9, 16  ;;  %v5834_v51 = vld [vmem:[#allocation3 + $0xb0] sm:$0x1] }
 0x47f   : > { %v12764_v23 = vpop.permute.xlu0 %7462  ;;  %v6641_v46 = vrot.slane %v6639_v0, 4  ;;  %v7606_v20 = vunpack.c.l.b16 %v6747_v36  ;;  %v6658_v29 = vshll.u32 %v12783_v25, 16  ;;  %v7423_v0 = vunpack.c.l.b16 %v6347_v56 }
 0x480   : > { %7398 = vrot.lane.b32.xlu1 %v7370_v2, %s9130_s16  ;;  %v6049_v2 = vshll.u32 %v5829_v35, 16  ;;  %v12800_v38 = vrot.slane %v6159_v7, 5  ;;  %v6165_v19 = vrot.slane %v6163_v28, 4  ;;  %v6037_v10 = vrot.slane %v6036_v18, 4 }
 0x481   : > { %7724 = vrot.lane.b32.xlu2 %v7701_v41, %s9132_s18  ;;  %v7961_v41 = vsel %vm7953_vm7, %v7928_v43, %v12737_v3  ;;  %v6344_v3 = vsel %vm9981_vm15, %v8715_v60, %v6343_v59  ;;  %v6645_v27 = vor.u32 %v6644_v4, %v6641_v46  ;;  %v7626_v34 = vpack.c.b16 %v7607_v52, %v7606_v20 }
 0x482   : > { %v7717_v48 = vpop.permute.xlu1 %7716  ;;  %v6051_v13 = vrot.slane %v6049_v2, 5  ;;  %v6656_v37 = vrot.slane %v6655_v6, 4  ;;  %v6152_v59 = vrot.slane %v6150_v58, 4  ;;  %v6155_v60 = vrot.slane %v6153_v26, 5  ;;  %v6838_v58 = vld [vmem:[#allocation3 + $0x78] sm:$0xe] }
 0x483   : > { %v12786_v15 = vpop.permute.xlu2 %7648  ;;  %v7993_v35 = vsel %vm4168_vm0, %v7961_v41, %v7717_v48  ;;  %v9009_v48 = vld [vmem:[#allocation3 + $0x3c] sm:$0xff]  ;;  %v7833_v36 = vsel %vm7823_vm12, %v12243_v21, %v12633_v55  ;;  %v6042_v52 = vsel %vm9568_vm3, %v6037_v10, %v12757_v16  ;;  %v6660_v2 = vrot.slane %v6658_v29, 5  ;;  %v6234_v41 = vld [vmem:[#allocation3 + $0xa8] sm:$0xe]  ;;  %v9028_v26 = vld [vmem:[#allocation3 + $0x6c] sm:$0xff] }
 0x484   : > { %v6052_v43 = vsel %vm9568_vm3, %v6047_v49, %v6051_v13  ;;  %v6378_v9 = vrot.slane %v12771_v50, 5  ;;  %v6646_v4 = vrot.slane %v6645_v27, 4  ;;  %v6166_v7 = vor.u32 %v6165_v19, %v12800_v38  ;;  %v12834_v13 = vld [vmem:[#allocation3 + $0xb8] sm:$0xf] }
 0x485   : > { %7734 = vrot.lane.b32.xlu0 %v7706_v40, %s9132_s18  ;;  %v7422_v40 = vunpack.c.l.b16 %v6344_v3  ;;  %v7343_v46 = vunpack.c.l.b16 %v6052_v43  ;;  %v12816_v49 = vsel %vm7742_vm2, %v9009_v48, %v12268_v31  ;;  %v7865_v21 = vsel %vm4102_vm14, %v7833_v36, %v12698_v53 }
 0x486   : > { %8934 = vmatmul.msk.bf16.gmra.mxu1 %vm8057_vm9, %v7993_v35  ;;  %v6661_v16 = vsel %vm9568_vm3, %v6656_v37, %v6660_v2  ;;  %v6169_v6 = vshll.u32 %v5834_v51, 16  ;;  %v7843_v50 = vsel %vm7823_vm12, %v12359_v11, %v12723_v17  ;;  %v7342_v28 = vunpack.c.l.b16 %v6042_v52  ;;  %v6424_v37 = vld [vmem:[#allocation3 + $0xb4] sm:$0xf] }
 0x487   : > { %v7639_v5 = vpop.permute.xlu0 %7638  ;;  %v7446_v18 = vpack.c.b16 %v7423_v0, %v7422_v40  ;;  %v6651_v31 = vsel %vm9568_vm3, %v6646_v4, %v12775_v62  ;;  %v6156_v35 = vor.u32 %v6155_v60, %v6152_v59  ;;  %v7898_v53 = vsel %vm7888_vm4, %v7865_v21, %v12764_v23  ;;  %v12859_v21 = vld [vmem:[#allocation3 + $0xb8] sm:$0xf] }
 0x488   : > { %7574 = vrot.lane.b32.xlu1 %v9048_v14, %s9131_s17  ;;  %v8720_v14 = vrot.slane %v6234_v41, 9  ;;  %v6380_v20 = vrot.slane %v6378_v9, 4  ;;  %v6952_v3 = vrot.slane %v12753_v22, 5  ;;  %v7366_v17 = vpack.c.b16 %v7343_v46, %v7342_v28 }
 0x489   : > { %7654 = vrot.lane.b32.xlu2 %v7626_v34, %s9139_s15  ;;  %v7599_v0 = vunpack.c.l.b16 %v6661_v16  ;;  %v6167_v27 = vrot.slane %v6166_v7, 4  ;;  %v7598_v62 = vunpack.c.l.b16 %v6651_v31  ;;  %v6171_v19 = vrot.slane %v6169_v6, 5  ;;  %v9044_v31 = vld [vmem:[#allocation3 + $0x78] sm:$0xff] }
 0x48a   : > { %v7559_v56 = vpop.permute.xlu1 %7558  ;;  %v6379_v23 = vsel %vm9981_vm15, %v8720_v14, %v6378_v9  ;;  %v6381_v34 = vrot.slane %v5834_v51, 5  ;;  %v6157_v10 = vrot.slane %v6156_v35, 4  ;;  %v8731_v43 = vrot.slane %v6838_v58, 9 }
 0x48b   : > { %v12820_v55 = vpop.permute.xlu2 %7384  ;;  %v7930_v11 = vsel %vm4135_vm13, %v7898_v53, %v7559_v56  ;;  %v6768_v22 = vshll.u32 %v12834_v13, 16  ;;  %v6772_v40 = vshrl.u32 %v12834_v13, 16  ;;  %v6954_v36 = vrot.slane %v6952_v3, 4  ;;  %v6843_v53 = vld [vmem:[#allocation3 + $0xb4] sm:$0xe] }
 0x48c   : > { %v7963_v60 = vsel %vm7953_vm7, %v7930_v11, %v7639_v5  ;;  %v6382_v48 = vsel %vm9981_vm15, %v6380_v20, %v6381_v34  ;;  %v6987_v56 = vrot.slane %v12834_v13, 5  ;;  %v7622_v52 = vpack.c.b16 %v7599_v0, %v7598_v62  ;;  %v5817_v13 = vld [vmem:[#allocation3 + $0xb4] sm:$0xf] }
 0x48d   : > { %7470 = vrot.lane.b32.xlu0 %v7446_v18, %s9138_s11  ;;  %v6162_v51 = vsel %vm9568_vm3, %v6157_v10, %v12800_v38  ;;  %v6172_v2 = vsel %vm9568_vm3, %v6167_v27, %v6171_v19  ;;  %v7432_v9 = vunpack.c.l.b16 %v6379_v23  ;;  %v12852_v18 = vld [vmem:[#allocation3 + $0xbc] sm:$0x1]  ;;  %v6953_v5 = vsel %vm9981_vm15, %v8731_v43, %v6952_v3 }
 0x48e   : > { %v6955_v4 = vrot.slane %v12783_v25, 5  ;;  %v6759_v7 = vshrl.u32 %v6424_v37, 16  ;;  %v6762_v41 = vshll.u32 %v6424_v37, 16  ;;  %v7995_v38 = vsel %vm4168_vm0, %v7963_v60, %v12755_v8 }
 0x48f   : > { %v7473_v29 = vpop.permute.xlu0 %7472  ;;  %v7433_v16 = vunpack.c.l.b16 %v6382_v48  ;;  %v12864_v6 = vrot.slane %v6768_v22, 5  ;;  %v6774_v28 = vrot.slane %v6772_v40, 4  ;;  %v7352_v35 = vunpack.c.l.b16 %v6162_v51 }
 0x490   : > { %7310 = vrot.lane.b32.xlu1 %v9028_v26, %s9137_s26  ;;  %v7353_v58 = vunpack.c.l.b16 %v6172_v2  ;;  %v6956_v25 = vsel %vm9981_vm15, %v6954_v36, %v6955_v4  ;;  %v6989_v26 = vrot.slane %v6987_v56, 4  ;;  %v7678_v8 = vunpack.c.l.b16 %v6953_v5  ;;  %v5835_v36 = vld [vmem:[#allocation3 + $0xbc] sm:$0x1]  ;;  %v6235_v4 = vld [vmem:[#allocation3 + $0xb4] sm:$0xe] }
 0x491   : > { %7390 = vrot.lane.b32.xlu2 %v7366_v17, %s9130_s16  ;;  %v6990_v3 = vrot.slane %v12852_v18, 5  ;;  %v6183_v11 = vshll.u32 %v12859_v21, 16  ;;  %v9033_v17 = vld [vmem:[#allocation3 + $0xa8] sm:$0xff]  ;;  %v6761_v0 = vrot.slane %v6759_v7, 4  ;;  %v6764_v27 = vrot.slane %v6762_v41, 5 }
 0x492   : > { %v7393_v59 = vpop.permute.xlu1 %7392  ;;  %v6385_v62 = vrot.slane %v12859_v21, 5  ;;  %v6187_v19 = vshrl.u32 %v12859_v21, 16  ;;  %v7451_v23 = vpack.c.b16 %v7433_v16, %v7432_v9  ;;  %v7679_v34 = vunpack.c.l.b16 %v6956_v25  ;;  %v6427_v16 = vld [vmem:[#allocation3 + $0xc4] sm:$0xf] }
 0x493   : > { %v12854_v46 = vpop.permute.xlu2 %7314  ;;  %v7875_v14 = vsel %vm4102_vm14, %v7843_v50, %v7393_v59  ;;  %v8736_v10 = vrot.slane %v6843_v53, 9  ;;  %v6775_v50 = vor.u32 %v6774_v28, %v12864_v6  ;;  %v6991_v22 = vsel %vm9981_vm15, %v6989_v26, %v6990_v3 }
 0x494   : > { %v7908_v43 = vsel %vm7888_vm4, %v7875_v14, %v7473_v29  ;;  %v6174_v40 = vshrl.u32 %v5817_v13, 16  ;;  %v6177_v59 = vshll.u32 %v5817_v13, 16  ;;  %v6778_v48 = vshll.u32 %v12852_v18, 16 }
 0x495   : > { %7646 = vrot.lane.b32.xlu0 %v7622_v52, %s9139_s15  ;;  %v12882_v52 = vrot.slane %v6183_v11, 5  ;;  %v6189_v51 = vrot.slane %v6187_v19, 4  ;;  %v6988_v29 = vsel %vm9981_vm15, %v8736_v10, %v6987_v56  ;;  %v6765_v5 = vor.u32 %v6764_v27, %v6761_v0 }
 0x496   : > { %8935 = vmatmul.msk.bf16.gmra.mxu1 %vm8057_vm9, %v7995_v38  ;;  %v6387_v7 = vrot.slane %v6385_v62, 4  ;;  %v7371_v21 = vpack.c.b16 %v7353_v58, %v7352_v35  ;;  %v7689_v18 = vunpack.c.l.b16 %v6991_v22  ;;  %v6776_v38 = vrot.slane %v6775_v50, 4 }
 0x497   : > { %v7729_v20 = vpop.permute.xlu0 %7728  ;;  %v7702_v28 = vpack.c.b16 %v7679_v34, %v7678_v8  ;;  %v6176_v25 = vrot.slane %v6174_v40, 4  ;;  %v7688_v26 = vunpack.c.l.b16 %v6988_v29  ;;  %v6780_v56 = vrot.slane %v6778_v48, 5 }
 0x498   : > { %7566 = vrot.lane.b32.xlu1 %v9044_v31, %s9131_s17  ;;  %v6388_v31 = vrot.slane %v5835_v36, 5  ;;  %v8721_v14 = vrot.slane %v6235_v4, 9  ;;  %v6190_v3 = vor.u32 %v6189_v51, %v12882_v52  ;;  %v6766_v35 = vrot.slane %v6765_v5, 4 }
 0x499   : > { %7320 = vrot.lane.b32.xlu2 %v9033_v17, %s9137_s26  ;;  %v6792_v13 = vshll.u32 %v6427_v16, 16  ;;  %v6796_v11 = vshrl.u32 %v6427_v16, 16  ;;  %v7802_v8 = vsel %vm4053_vm6, %v12816_v49, %v12191_v1  ;;  %v7707_v17 = vpack.c.b16 %v7689_v18, %v7688_v26  ;;  %v6844_v1 = vld [vmem:[#allocation3 + $0xc0] sm:$0xe] }
 0x49a   : > { %v7569_v37 = vpop.permute.xlu1 %7568  ;;  %v6389_v58 = vsel %vm9981_vm15, %v6387_v7, %v6388_v31  ;;  %v6781_v0 = vsel %vm9568_vm3, %v6776_v38, %v6780_v56  ;;  %v6193_v27 = vshll.u32 %v5835_v36, 16  ;;  %v6386_v34 = vsel %vm9981_vm15, %v8721_v14, %v6385_v62  ;;  %v6444_v62 = vld [vmem:[#allocation3 + $0xc8] sm:$0x1]  ;;  %v4658_v31 = vld [vmem:[#allocation3 + $0xcc] sm:$0x1] }
 0x49b   : > { %v7940_v60 = vsel %vm4135_vm13, %v7908_v43, %v7569_v37  ;;  %v12884_v2 = vpop.permute.xlu2 %7720  ;;  %v6994_v50 = vrot.slane %v6427_v16, 5  ;;  %v7435_v43 = vunpack.c.l.b16 %v6389_v58  ;;  %v6191_v37 = vrot.slane %v6190_v3, 4  ;;  %v5819_v3 = vld [vmem:[#allocation3 + $0xc0] sm:$0xf] }
 0x49c   : > { %v7973_v9 = vsel %vm7953_vm7, %v7940_v60, %v12786_v15  ;;  %v6179_v15 = vrot.slane %v6177_v59, 5  ;;  %v7609_v60 = vunpack.c.l.b16 %v6781_v0  ;;  %v12911_v48 = vrot.slane %v6792_v13, 5 }
 0x49d   : > { %v8005_v41 = vsel %vm4168_vm0, %v7973_v9, %v7729_v20  ;;  %7480 = vrot.lane.b32.xlu0 %v7451_v23, %s9138_s11  ;;  %v6426_v20 = vld [vmem:[#allocation3 + $0xc0] sm:$0xf]  ;;  %v6771_v23 = vsel %vm9568_vm3, %v6766_v35, %v12864_v6  ;;  %v6798_v36 = vrot.slane %v6796_v11, 4  ;;  %v7434_v6 = vunpack.c.l.b16 %v6386_v34  ;;  %v9049_v9 = vld [vmem:[#allocation3 + $0xb4] sm:$0xff] }
 0x49e   : > { %8940 = vmatmul.msk.bf16.vlgmr.msra.gmra.mxu3 %vm8057_vm9, %v8005_v41  ;;  %v6180_v10 = vor.u32 %v6179_v15, %v6176_v25  ;;  %v6783_v49 = vshrl.u32 %v6426_v20, 16  ;;  %v6786_v22 = vshll.u32 %v6426_v20, 16  ;;  %v6195_v51 = vrot.slane %v6193_v27, 5  ;;  %v12914_v41 = vld [vmem:[#allocation3 + $0xc4] sm:$0xf] }
 0x49f   : > { %v7465_v53 = vpop.permute.xlu0 %7464  ;;  %v7608_v29 = vunpack.c.l.b16 %v6771_v23  ;;  %v8737_v4 = vrot.slane %v6844_v1, 9  ;;  %v6996_v7 = vrot.slane %v6994_v50, 4  ;;  %v7452_v15 = vpack.c.b16 %v7435_v43, %v7434_v6  ;;  %v4713_v43 = vld [vmem:[#allocation3 + $0xd4] sm:$0x1] }
 0x4a0   : > { %7400 = vrot.lane.b32.xlu1 %v7371_v21, %s9130_s16  ;;  %v6181_v5 = vrot.slane %v6180_v10, 4  ;;  %v6196_v38 = vsel %vm9568_vm3, %v6191_v37, %v6195_v51  ;;  %v6785_v16 = vrot.slane %v6783_v49, 4  ;;  %v6997_v26 = vrot.slane %v6444_v62, 5  ;;  %v5836_v51 = vld [vmem:[#allocation3 + $0xc8] sm:$0x1] }
 0x4a1   : > { %7726 = vrot.lane.b32.xlu2 %v7702_v28, %s9132_s18  ;;  %v6788_v28 = vrot.slane %v6786_v22, 5  ;;  %v7627_v25 = vpack.c.b16 %v7609_v60, %v7608_v29  ;;  %v6799_v56 = vor.u32 %v6798_v36, %v12911_v48  ;;  %v6207_v35 = vshll.u32 %v12914_v41, 16  ;;  %v9034_v22 = vld [vmem:[#allocation3 + $0xb4] sm:$0xff] }
 0x4a2   : > { %v7305_v19 = vpop.permute.xlu1 %7304  ;;  %v6186_v14 = vsel %vm9568_vm3, %v6181_v5, %v12882_v52  ;;  %v6211_v58 = vshrl.u32 %v12914_v41, 16  ;;  %v7355_v11 = vunpack.c.l.b16 %v6196_v38  ;;  %v4659_v52 = vsel %vm9325_vm8, 0, %v4658_v31  ;;  %v6236_v5 = vld [vmem:[#allocation3 + $0xc0] sm:$0xe] }
 0x4a3   : > { %v12908_v40 = vpop.permute.xlu2 %7650  ;;  %v7835_v59 = vsel %vm7823_vm12, %v7802_v8, %v7305_v19  ;;  %v6998_v8 = vsel %vm9981_vm15, %v6996_v7, %v6997_v26  ;;  %v6789_v0 = vor.u32 %v6788_v28, %v6785_v16  ;;  %v6802_v27 = vshll.u32 %v6444_v62, 16  ;;  %4660 = vst [vmem:[#allocation3 + $0xcc] sm:$0x1] %v4659_v52  ;;  %v12948_v62 = vld [vmem:[#allocation3 + $0xd0] sm:$0xf] }
 0x4a4   : > { %v7867_v21 = vsel %vm4102_vm14, %v7835_v59, %v12820_v55  ;;  %v6995_v55 = vsel %vm9981_vm15, %v8737_v4, %v6994_v50  ;;  %v6392_v19 = vrot.slane %v12914_v41, 5  ;;  %v6198_v10 = vshrl.u32 %v5819_v3, 16  ;;  %v6845_v26 = vld [vmem:[#allocation3 + $0xcc] sm:$0xe] }
 0x4a5   : > { %7736 = vrot.lane.b32.xlu0 %v7707_v17, %s9132_s18  ;;  %v7900_v20 = vsel %vm7888_vm4, %v7867_v21, %v7465_v53  ;;  %v6800_v53 = vrot.slane %v6799_v56, 4  ;;  %v6201_v50 = vshll.u32 %v5819_v3, 16  ;;  %v12943_v44 = vrot.slane %v6207_v35, 5 }
 0x4a6   : > { %v6213_v1 = vrot.slane %v6211_v58, 4  ;;  %v4714_v49 = vsel %vm11478_vm11, 0, %v4713_v43  ;;  %v7354_v59 = vunpack.c.l.b16 %v6186_v14  ;;  %v7691_v36 = vunpack.c.l.b16 %v6998_v8 }
 0x4a7   : > { %v7641_v18 = vpop.permute.xlu0 %7640  ;;  %4715 = vst [vmem:[#allocation3 + $0xd4] sm:$0x1] %v4714_v49  ;;  %v6804_v6 = vrot.slane %v6802_v27, 5  ;;  %v6790_v29 = vrot.slane %v6789_v0, 4  ;;  %v6394_v4 = vrot.slane %v6392_v19, 4  ;;  %v6200_v7 = vrot.slane %v6198_v10, 4 }
 0x4a8   : > { %7576 = vrot.lane.b32.xlu1 %v9049_v9, %s9131_s17  ;;  %v7690_v9 = vunpack.c.l.b16 %v6995_v55  ;;  %v6203_v41 = vrot.slane %v6201_v50, 5  ;;  %v6214_v21 = vor.u32 %v6213_v1, %v12943_v44  ;;  %v6395_v38 = vrot.slane %v5836_v51, 5 }
 0x4a9   : > { %7656 = vrot.lane.b32.xlu2 %v7627_v25, %s9139_s15  ;;  %v6805_v12 = vsel %vm9568_vm3, %v6800_v53, %v6804_v6  ;;  %v7001_v16 = vrot.slane %v12948_v62, 5  ;;  %v6795_v31 = vsel %vm9568_vm3, %v6790_v29, %v12911_v48  ;;  %v8722_v25 = vrot.slane %v6236_v5, 9 }
 0x4aa   : > { %v7561_v13 = vpop.permute.xlu1 %7560  ;;  %v7708_v28 = vpack.c.b16 %v7691_v36, %v7690_v9  ;;  %v7611_v14 = vunpack.c.l.b16 %v6805_v12  ;;  %v6396_v55 = vsel %vm9981_vm15, %v6394_v4, %v6395_v38  ;;  %v7845_v3 = vsel %vm7823_vm12, %v12300_v47, %v12854_v46 }
 0x4ab   : > { %v7932_v17 = vsel %vm4135_vm13, %v7900_v20, %v7561_v13  ;;  %v12937_v23 = vpop.permute.xlu2 %7386  ;;  %v6393_v35 = vsel %vm9981_vm15, %v8722_v25, %v6392_v19  ;;  %v6204_v58 = vor.u32 %v6203_v41, %v6200_v7  ;;  %v6215_v48 = vrot.slane %v6214_v21, 4  ;;  %v9050_v13 = vld [vmem:[#allocation3 + $0xc0] sm:$0xff] }
 0x4ac   : > { %v7965_v34 = vsel %vm7953_vm7, %v7932_v17, %v7641_v18  ;;  %v8738_v8 = vrot.slane %v6845_v26, 9  ;;  %v7003_v52 = vrot.slane %v7001_v16, 4  ;;  %v7436_v46 = vunpack.c.l.b16 %v6393_v35 }
 0x4ad   : > { %v7997_v37 = vsel %vm4168_vm0, %v7965_v34, %v12884_v2  ;;  %7482 = vrot.lane.b32.xlu0 %v7452_v15, %s9138_s11  ;;  %v7372_v2 = vpack.c.b16 %v7355_v11, %v7354_v59  ;;  %v6217_v15 = vshll.u32 %v5836_v51, 16  ;;  %v7610_v11 = vunpack.c.l.b16 %v6795_v31  ;;  %v9051_v31 = vld [vmem:[#allocation3 + $0xcc] sm:$0xff] }
 0x4ae   : > { %8936 = vmatmul.msk.bf16.gmra.mxu1 %vm8057_vm9, %v7997_v37  ;;  %v6445_v20 = vld [vmem:[#allocation3 + $0xd4] sm:$0x1]  ;;  %v7437_v34 = vunpack.c.l.b16 %v6396_v55  ;;  %v6205_v10 = vrot.slane %v6204_v58, 4  ;;  %v7002_v37 = vsel %vm9981_vm15, %v8738_v8, %v7001_v16  ;;  %v6816_v7 = vshll.u32 %v12948_v62, 16 }
 0x4af   : > { %v7475_v60 = vpop.permute.xlu0 %7474  ;;  %v7004_v17 = vrot.slane %v6445_v20, 5  ;;  %v6219_v53 = vrot.slane %v6217_v15, 5  ;;  %v7628_v47 = vpack.c.b16 %v7611_v14, %v7610_v11  ;;  %v6820_v41 = vshrl.u32 %v12948_v62, 16 }
 0x4b0   : > { %7322 = vrot.lane.b32.xlu1 %v9034_v22, %s9137_s26  ;;  %v7453_v22 = vpack.c.b16 %v7437_v34, %v7436_v46  ;;  %v6210_v59 = vsel %vm9568_vm3, %v6205_v10, %v12943_v44  ;;  %v6826_v21 = vshll.u32 %v6445_v20, 16  ;;  %v6818_v25 = vrot.slane %v6816_v7, 5 }
 0x4b1   : > { %7402 = vrot.lane.b32.xlu2 %v7372_v2, %s9130_s16  ;;  %v6220_v19 = vsel %vm9568_vm3, %v6215_v48, %v6219_v53  ;;  %v7005_v1 = vsel %vm9981_vm15, %v7003_v52, %v7004_v17  ;;  %v7692_v2 = vunpack.c.l.b16 %v7002_v37  ;;  %v7356_v29 = vunpack.c.l.b16 %v6210_v59 }
 0x4b2   : > { %v7395_v18 = vpop.permute.xlu1 %7394  ;;  %v7357_v51 = vunpack.c.l.b16 %v6220_v19  ;;  %v7693_v9 = vunpack.c.l.b16 %v7005_v1  ;;  %v6822_v15 = vrot.slane %v6820_v41, 4 }
 0x4b3   : > { %v12959_v56 = vpop.permute.xlu2 %7316  ;;  %v7877_v0 = vsel %vm4102_vm14, %v7845_v3, %v7395_v18  ;;  %v6828_v3 = vrot.slane %v6826_v21, 5 }
 0x4b4   : > { %v7910_v50 = vsel %vm7888_vm4, %v7877_v0, %v7475_v60  ;;  %v7373_v4 = vpack.c.b16 %v7357_v51, %v7356_v29  ;;  %v7709_v44 = vpack.c.b16 %v7693_v9, %v7692_v2  ;;  %v6823_v55 = vor.u32 %v6822_v15, %v6818_v25 }
 0x4b5   : > { %7738 = vrot.lane.b32.xlu0 %v7708_v28, %s9132_s18  ;;  %v7847_v19 = vsel %vm7823_vm12, %v12225_v30, %v12959_v56 }
 0x4b6   : > { %v6824_v48 = vrot.slane %v6823_v55, 4 }
 0x4b7   : > { %v7731_v27 = vpop.permute.xlu0 %7730 }
 0x4b8   : > { %7578 = vrot.lane.b32.xlu1 %v9050_v13, %s9131_s17  ;;  %v6829_v11 = vsel %vm9568_vm3, %v6824_v48, %v6828_v3 }
 0x4b9   : > { %7658 = vrot.lane.b32.xlu2 %v7628_v47, %s9139_s15  ;;  %v7613_v17 = vunpack.c.l.b16 %v6829_v11 }
 0x4ba   : > { %v7571_v43 = vpop.permute.xlu1 %7570 }
 0x4bb   : > { %v7942_v49 = vsel %vm4135_vm13, %v7910_v50, %v7571_v43  ;;  %v7723_v36 = vpop.permute.xlu2 %7722 }
 0x4bc   : > { %v7975_v6 = vsel %vm7953_vm7, %v7942_v49, %v12908_v40  ;;  %v6428_v40 = vld [vmem:[#allocation3 + $0xcc] sm:$0xf]  ;;  %v13021_v49 = vld [vmem:[%s13184_s7] ss:$0 sm:$0xff] }
 0x4bd   : > { %v8007_v60 = vsel %vm4168_vm0, %v7975_v6, %v7731_v27  ;;  %7484 = vrot.lane.b32.xlu0 %v7453_v22, %s9138_s11  ;;  %v6807_v18 = vshrl.u32 %v6428_v40, 16  ;;  %v6810_v38 = vshll.u32 %v6428_v40, 16  ;;  %s8951_s11 = sshll.u32 %s13411_s28, 2 }
 0x4be   : > { %8941 = vmatmul.msk.bf16.gmra.mxu3 %vm8057_vm9, %v8007_v60  ;;  %s325_s13 = scalar_lea.vmem %s13185_s8, %s8951_s11 }
 0x4bf   : > { %v7467_v5 = vpop.permute.xlu0 %7466  ;;  %v6809_v26 = vrot.slane %v6807_v18, 4  ;;  %v6812_v14 = vrot.slane %v6810_v38, 5 }
 0x4c0   : > { %7324 = vrot.lane.b32.xlu1 %v9035_v33, %s9137_s26 }
 0x4c1   : > { %7404 = vrot.lane.b32.xlu2 %v7373_v4, %s9130_s16  ;;  %v6813_v58 = vor.u32 %v6812_v14, %v6809_v26 }
 0x4c2   : > { %v7307_v12 = vpop.permute.xlu1 %7306 }
 0x4c3   : > { %v7653_v16 = vpop.permute.xlu2 %7652  ;;  %v7837_v28 = vsel %vm7823_vm12, %v12342_v45, %v7307_v12  ;;  %v6814_v20 = vrot.slane %v6813_v58, 4 }
 0x4c4   : > { %v7869_v35 = vsel %vm4102_vm14, %v7837_v28, %v12937_v23 }
 0x4c5   : > { %7740 = vrot.lane.b32.xlu0 %v7709_v44, %s9132_s18  ;;  %v7902_v45 = vsel %vm7888_vm4, %v7869_v35, %v7467_v5  ;;  %v6819_v52 = vsel %vm9568_vm3, %v6814_v20, %v6818_v25 }
 0x4c6   : > { %v7612_v0 = vunpack.c.l.b16 %v6819_v52 }
 0x4c7   : > { %v7643_v62 = vpop.permute.xlu0 %7642 }
 0x4c8   : > { %7580 = vrot.lane.b32.xlu1 %v9051_v31, %s9131_s17  ;;  %v7629_v53 = vpack.c.b16 %v7613_v17, %v7612_v0 }
 0x4ca   : > { %v7563_v13 = vpop.permute.xlu1 %7562  ;;  %7660 = vrot.lane.b32.xlu2 %v7629_v53, %s9139_s15 }
 0x4cb   : > { %v7934_v8 = vsel %vm4135_vm13, %v7902_v45, %v7563_v13  ;;  %v7389_v27 = vpop.permute.xlu2 %7388 }
 0x4cc   : > { %v7967_v23 = vsel %vm7953_vm7, %v7934_v8, %v7643_v62 }
 0x4cd   : > { %v7999_v34 = vsel %vm4168_vm0, %v7967_v23, %v7723_v36 }
 0x4ce   : > { %8937 = vmatmul.msk.bf16.gmra.mxu1 %vm8057_vm9, %v7999_v34 }
 0x4cf   : > { %v7477_v47 = vpop.permute.xlu0 %7476 }
 0x4d2   : > { %v7397_v46 = vpop.permute.xlu1 %7396 }
 0x4d3   : > { %v8102_v10 = vpop.f32.mrf.mxu1  ;;  %v7319_v50 = vpop.permute.xlu2 %7318  ;;  %v7879_v43 = vsel %vm4102_vm14, %v7847_v19, %v7397_v46 }
 0x4d4   : > { %v8186_v1 = vmul.f32 %v13011_v61, %v8102_v10  ;;  %v7912_v22 = vsel %vm7888_vm4, %v7879_v43, %v7477_v47  ;;  %v7849_v45 = vsel %vm7823_vm12, %v12452_v54, %v7319_v50  ;;  %v9012_v54 = vld [vmem:[#allocation3 + $0x60] sm:$0xff] }
 0x4d5   : > { %v7769_v50 = vsel %vm7742_vm2, %v9012_v54, %v12545_v24 }
 0x4d6   : > { %v8222_v51 = vadd.f32 %v13021_v49, %v8186_v1 }
 0x4d7   : > { %v7733_v37 = vpop.permute.xlu0 %7732 }
 0x4d8   : > { %v8254_v33 = vmax.f32 %v8222_v51, 0.0 }
 0x4da   : > { %v7573_v59 = vpop.permute.xlu1 %7572 }
 0x4db   : > { %v7944_v36 = vsel %vm4135_vm13, %v7912_v22, %v7573_v59  ;;  %v8104_v6 = vpop.f32.mrf.mxu1  ;;  %v7725_v5 = vpop.permute.xlu2 %7724  ;;  %v7808_v59 = vsel %vm4053_vm6, %v7769_v50, %v12388_v32 }
 0x4dc   : > { %v8187_v30 = vmul.f32 %v13011_v61, %v8104_v6  ;;  %v7977_v56 = vsel %vm7953_vm7, %v7944_v36, %v7653_v16 }
 0x4dd   : > { %v8009_v60 = vsel %vm4168_vm0, %v7977_v56, %v7733_v37 }
 0x4de   : > { %v8223_v2 = vadd.f32 %v13021_v49, %v8187_v30  ;;  %8942 = vmatmul.msk.bf16.gmra.mxu3 %vm8057_vm9, %v8009_v60 }
 0x4df   : > { %v7469_v9 = vpop.permute.xlu0 %7468 }
 0x4e0   : > { %v8255_v29 = vmax.f32 %v8223_v2, 0.0 }
 0x4e2   : > { %v13031_v4 = vpack.c.bf16 %v8255_v29, %v8254_v33  ;;  %v7309_v44 = vpop.permute.xlu1 %7308 }
 0x4e3   : > { %v8107_v12 = vpop.f32.mrf.mxu1  ;;  %v7839_v40 = vsel %vm7823_vm12, %v12412_v39, %v7309_v44  ;;  %v7655_v16 = vpop.permute.xlu2 %7654 }
 0x4e4   : > { %v7871_v7 = vsel %vm4102_vm14, %v7839_v40, %v7389_v27  ;;  %v8188_v21 = vmul.f32 %v13011_v61, %v8107_v12 }
 0x4e5   : > { %v7904_v18 = vsel %vm7888_vm4, %v7871_v7, %v7469_v9 }
 0x4e6   : > { %v8224_v25 = vadd.f32 %v13021_v49, %v8188_v21 }
 0x4e7   : > { %v7645_v41 = vpop.permute.xlu0 %7644 }
 0x4e8   : > { %v8256_v3 = vmax.f32 %v8224_v25, 0.0 }
 0x4ea   : > { %v7565_v38 = vpop.permute.xlu1 %7564 }
 0x4eb   : > { %v7936_v28 = vsel %vm4135_vm13, %v7904_v18, %v7565_v38  ;;  %v8109_v31 = vpop.f32.mrf.mxu1  ;;  %v7391_v20 = vpop.permute.xlu2 %7390 }
 0x4ec   : > { %v8189_v15 = vmul.f32 %v13011_v61, %v8109_v31  ;;  %v7969_v26 = vsel %vm7953_vm7, %v7936_v28, %v7645_v41 }
 0x4ed   : > { %v8001_v39 = vsel %vm4168_vm0, %v7969_v26, %v7725_v5 }
 0x4ee   : > { %v8225_v14 = vadd.f32 %v13021_v49, %v8189_v15  ;;  %8938 = vmatmul.msk.bf16.gmra.mxu1 %vm8057_vm9, %v8001_v39 }
 0x4ef   : > { %v7479_v55 = vpop.permute.xlu0 %7478 }
 0x4f0   : > { %v8257_v35 = vmax.f32 %v8225_v14, 0.0 }
 0x4f2   : > { %v13045_v62 = vpack.c.bf16 %v8257_v35, %v8256_v3  ;;  %v7399_v58 = vpop.permute.xlu1 %7398 }
 0x4f3   : > { %v8112_v48 = vpop.f32.mrf.mxu1  ;;  %v7881_v13 = vsel %vm4102_vm14, %v7849_v45, %v7399_v58  ;;  %v7321_v10 = vpop.permute.xlu2 %7320 }
 0x4f4   : > { %v8190_v8 = vmul.f32 %v13011_v61, %v8112_v48  ;;  %v7914_v52 = vsel %vm7888_vm4, %v7881_v13, %v7479_v55  ;;  %v7851_v28 = vsel %vm7823_vm12, %v12473_v63, %v7321_v10 }
 0x4f6   : > { %v8226_v27 = vadd.f32 %v13021_v49, %v8190_v8 }
 0x4f7   : > { %v7735_v11 = vpop.permute.xlu0 %7734 }
 0x4f8   : > { %v8258_v43 = vmax.f32 %v8226_v27, 0.0 }
 0x4fa   : > { %v7575_v17 = vpop.permute.xlu1 %7574 }
 0x4fb   : > { %v7946_v23 = vsel %vm4135_vm13, %v7914_v52, %v7575_v17  ;;  %v8114_v0 = vpop.f32.mrf.mxu1  ;;  %v7727_v60 = vpop.permute.xlu2 %7726 }
 0x4fc   : > { %v8191_v34 = vmul.f32 %v13011_v61, %v8114_v0  ;;  %v7979_v53 = vsel %vm7953_vm7, %v7946_v23, %v7655_v16 }
 0x4fd   : > { %v8011_v47 = vsel %vm4168_vm0, %v7979_v53, %v7735_v11 }
 0x4fe   : > { %v8227_v46 = vadd.f32 %v13021_v49, %v8191_v34  ;;  %8943 = vmatmul.msk.bf16.gmra.mxu3 %vm8057_vm9, %v8011_v47 }
 0x4ff   : > { %v7471_v19 = vpop.permute.xlu0 %7470 }
 0x500   : > { %v8259_v37 = vmax.f32 %v8227_v46, 0.0 }
 0x502   : > { %v13061_v1 = vpack.c.bf16 %v8259_v37, %v8258_v43  ;;  %v7311_v22 = vpop.permute.xlu1 %7310 }
 0x503   : > { %v8117_v36 = vpop.f32.mrf.mxu1  ;;  %v7841_v6 = vsel %vm7823_vm12, %v7808_v59, %v7311_v22  ;;  %v7657_v38 = vpop.permute.xlu2 %7656 }
 0x504   : > { %v7873_v51 = vsel %vm4102_vm14, %v7841_v6, %v7391_v20  ;;  %v8192_v56 = vmul.f32 %v13011_v61, %v8117_v36  ;;  %v9018_v20 = vld [vmem:[#allocation3 + $0xa8] sm:$0xff] }
 0x505   : > { %v7906_v2 = vsel %vm7888_vm4, %v7873_v51, %v7471_v19  ;;  %v7787_v11 = vsel %vm7742_vm2, %v9018_v20, %v12379_v42  ;;  %v13409_v6 = vld [vmem:[#allocation14_spill] sm:$0xff] }
 0x506   : > { %v8228_v29 = vadd.f32 %v13021_v49, %v8192_v56  ;;  %v7820_v0 = vsel %vm4053_vm6, %v7787_v11, %v12339_v57 }
 0x507   : > { %v7647_v30 = vpop.permute.xlu0 %7646 }
 0x508   : > { %v8260_v7 = vmax.f32 %v8228_v29, 0.0 }
 0x50a   : > { %v7567_v24 = vpop.permute.xlu1 %7566 }
 0x50b   : > { %v7938_v9 = vsel %vm4135_vm13, %v7906_v2, %v7567_v24  ;;  %v8119_v33 = vpop.f32.mrf.mxu1  ;;  %v7403_v48 = vpop.permute.xlu2 %7402 }
 0x50c   : > { %v8193_v5 = vmul.f32 %v13011_v61, %v8119_v33  ;;  %v7971_v32 = vsel %vm7953_vm7, %v7938_v9, %v7647_v30 }
 0x50d   : > { %v8003_v44 = vsel %vm4168_vm0, %v7971_v32, %v7727_v60 }
 0x50e   : > { %v8229_v12 = vadd.f32 %v13021_v49, %v8193_v5  ;;  %8939 = vmatmul.msk.bf16.gmra.mxu1 %vm8057_vm9, %v8003_v44 }
 0x50f   : > { %v7481_v40 = vpop.permute.xlu0 %7480 }
 0x510   : > { %v8261_v41 = vmax.f32 %v8229_v12, 0.0 }
 0x512   : > { %v13076_v21 = vpack.c.bf16 %v8261_v41, %v8260_v7  ;;  %v7401_v18 = vpop.permute.xlu1 %7400 }
 0x513   : > { %v8122_v16 = vpop.f32.mrf.mxu1  ;;  %v7883_v31 = vsel %vm4102_vm14, %v7851_v28, %v7401_v18  ;;  %v7659_v34 = vpop.permute.xlu2 %7658 }
 0x514   : > { %v8194_v15 = vmul.f32 %v13011_v61, %v8122_v16  ;;  %v7916_v26 = vsel %vm7888_vm4, %v7883_v31, %v7481_v40 }
 0x516   : > { %v8230_v3 = vadd.f32 %v13021_v49, %v8194_v15 }
 0x517   : > { %v7737_v25 = vpop.permute.xlu0 %7736 }
 0x518   : > { %v8262_v8 = vmax.f32 %v8230_v3, 0.0 }
 0x51a   : > { %v7577_v39 = vpop.permute.xlu1 %7576 }
 0x51b   : > { %v7948_v14 = vsel %vm4135_vm13, %v7916_v26, %v7577_v39  ;;  %v8124_v55 = vpop.f32.mrf.mxu1  ;;  %v7405_v43 = vpop.permute.xlu2 %7404 }
 0x51c   : > { %v8195_v35 = vmul.f32 %v13011_v61, %v8124_v55  ;;  %v7981_v58 = vsel %vm7953_vm7, %v7948_v14, %v7657_v38 }
 0x51d   : > { %v8013_v63 = vsel %vm4168_vm0, %v7981_v58, %v7737_v25 }
 0x51e   : > { %v8231_v45 = vadd.f32 %v13021_v49, %v8195_v35  ;;  %8944 = vmatmul.msk.bf16.gmra.mxu3 %vm8057_vm9, %v8013_v63 }
 0x51f   : > { %v7483_v13 = vpop.permute.xlu0 %7482 }
 0x520   : > { %v8263_v52 = vmax.f32 %v8231_v45, 0.0 }
 0x521   : > { %v8147_v20 = vpop.f32.mrf.mxu3 }
 0x522   : > { %v13092_v17 = vpack.c.bf16 %v8263_v52, %v8262_v8  ;;  %v7323_v23 = vpop.permute.xlu1 %7322 }
 0x523   : > { %v7853_v27 = vsel %vm7823_vm12, %v7820_v0, %v7323_v23 }
 0x524   : > { %v7885_v53 = vsel %vm4102_vm14, %v7853_v27, %v7403_v48  ;;  %v7661_v9 = vpop.permute.xlu2 %7660 }
 0x525   : > { %v7918_v54 = vsel %vm7888_vm4, %v7885_v53, %v7483_v13 }
 0x527   : > { %v7739_v47 = vpop.permute.xlu0 %7738 }
 0x529   : > { %v8149_v45 = vpop.f32.mrf.mxu3 }
 0x52a   : > { %v7579_v46 = vpop.permute.xlu1 %7578 }
 0x52b   : > { %v7950_v10 = vsel %vm4135_vm13, %v7918_v54, %v7579_v46  ;;  %v8127_v42 = vpop.f32.mrf.mxu1  ;;  %v8205_v46 = vmul.f32 %v13011_v61, %v8149_v45 }
 0x52c   : > { %v7983_v19 = vsel %vm7953_vm7, %v7950_v10, %v7659_v34  ;;  %v8196_v57 = vmul.f32 %v13011_v61, %v8127_v42  ;;  %v8204_v10 = vmul.f32 %v13011_v61, %v8147_v20 }
 0x52d   : > { %v8015_v50 = vsel %vm4168_vm0, %v7983_v19, %v7739_v47  ;;  %v8241_v42 = vadd.f32 %v13021_v49, %v8205_v46 }
 0x52e   : > { %8945 = vmatmul.msk.bf16.gmra.mxu3 %vm8057_vm9, %v8015_v50  ;;  %v8232_v36 = vadd.f32 %v13021_v49, %v8196_v57  ;;  %v8240_v19 = vadd.f32 %v13021_v49, %v8204_v10 }
 0x52f   : > { %v7485_v37 = vpop.permute.xlu0 %7484  ;;  %v8273_v57 = vmax.f32 %v8241_v42, 0.0 }
 0x530   : > { %v8264_v2 = vmax.f32 %v8232_v36, 0.0 }
 0x532   : > { %v7325_v22 = vpop.permute.xlu1 %7324 }
 0x533   : > { %v8129_v59 = vpop.f32.mrf.mxu1  ;;  %v7855_v51 = vsel %vm7823_vm12, %v13409_v6, %v7325_v22 }
 0x534   : > { %v8197_v30 = vmul.f32 %v13011_v61, %v8129_v59  ;;  %v7887_v60 = vsel %vm4102_vm14, %v7855_v51, %v7405_v43  ;;  %v8272_v43 = vmax.f32 %v8240_v19, 0.0 }
 0x535   : > { %v7920_v29 = vsel %vm7888_vm4, %v7887_v60, %v7485_v37 }
 0x536   : > { %v8233_v56 = vadd.f32 %v13021_v49, %v8197_v30  ;;  %v8295_v37 = vpack.c.bf16 %v8273_v57, %v8272_v43 }
 0x537   : > { %v7741_v32 = vpop.permute.xlu0 %7740 }
 0x538   : > { %v8265_v24 = vmax.f32 %v8233_v56, 0.0 }
 0x53a   : > { %v13110_v33 = vpack.c.bf16 %v8265_v24, %v8264_v2  ;;  %v7581_v5 = vpop.permute.xlu1 %7580 }
 0x53b   : > { %v7952_v44 = vsel %vm4135_vm13, %v7920_v29, %v7581_v5 }
 0x53c   : > { %v7985_v12 = vsel %vm7953_vm7, %v7952_v44, %v7661_v9 }
 0x53d   : > { %v8017_v40 = vsel %vm4168_vm0, %v7985_v12, %v7741_v32 }
 0x53e   : > { %8946 = vmatmul.msk.bf16.gmra.mxu3 %vm8057_vm9, %v8017_v40 }
 0x541   : > { %v8152_v8 = vpop.f32.mrf.mxu3 }
 0x549   : > { %v8154_v54 = vpop.f32.mrf.mxu3 }
 0x54a   : > { %v8207_v22 = vmul.f32 %v13011_v61, %v8154_v54 }
 0x54b   : > { %v8132_v7 = vpop.f32.mrf.mxu1 }
 0x54c   : > { %v8198_v41 = vmul.f32 %v13011_v61, %v8132_v7  ;;  %v8243_v36 = vadd.f32 %v13021_v49, %v8207_v22 }
 0x54e   : > { %v8234_v38 = vadd.f32 %v13021_v49, %v8198_v41  ;;  %v8275_v51 = vmax.f32 %v8243_v36, 0.0 }
 0x550   : > { %v8266_v31 = vmax.f32 %v8234_v38, 0.0 }
 0x553   : > { %v8134_v18 = vpop.f32.mrf.mxu1 }
 0x554   : > { %v8199_v16 = vmul.f32 %v13011_v61, %v8134_v18 }
 0x556   : > { %v8235_v28 = vadd.f32 %v13021_v49, %v8199_v16 }
 0x558   : > { %v8267_v25 = vmax.f32 %v8235_v28, 0.0 }
 0x55a   : > { %v13121_v15 = vpack.c.bf16 %v8267_v25, %v8266_v31 }
 0x561   : > { %v8157_v50 = vpop.f32.mrf.mxu3 }
 0x562   : > { %v8208_v24 = vmul.f32 %v13011_v61, %v8157_v50 }
 0x564   : > { %v8244_v29 = vadd.f32 %v13021_v49, %v8208_v24 }
 0x566   : > { %v8276_v32 = vmax.f32 %v8244_v29, 0.0 }
 0x569   : > { %v8159_v59 = vpop.f32.mrf.mxu3 }
 0x56a   : > { %v8209_v2 = vmul.f32 %v13011_v61, %v8159_v59 }
 0x56b   : > { %v8137_v26 = vpop.f32.mrf.mxu1 }
 0x56c   : > { %v8200_v39 = vmul.f32 %v13011_v61, %v8137_v26  ;;  %v8245_v9 = vadd.f32 %v13021_v49, %v8209_v2 }
 0x56e   : > { %v8236_v55 = vadd.f32 %v13021_v49, %v8200_v39  ;;  %v8277_v5 = vmax.f32 %v8245_v9, 0.0 }
 0x570   : > { %v8268_v58 = vmax.f32 %v8236_v55, 0.0  ;;  %v8297_v12 = vpack.c.bf16 %v8277_v5, %v8276_v32 }
 0x573   : > { %v8139_v14 = vpop.f32.mrf.mxu1 }
 0x574   : > { %v8201_v3 = vmul.f32 %v13011_v61, %v8139_v14 }
 0x576   : > { %v8237_v35 = vadd.f32 %v13021_v49, %v8201_v3 }
 0x578   : > { %v8269_v48 = vmax.f32 %v8237_v35, 0.0 }
 0x57a   : > { %v13127_v63 = vpack.c.bf16 %v8269_v48, %v8268_v58 }
 0x581   : > { %v8162_v30 = vpop.f32.mrf.mxu3 }
 0x582   : > { %v8210_v7 = vmul.f32 %v13011_v61, %v8162_v30 }
 0x584   : > { %v8246_v18 = vadd.f32 %v13021_v49, %v8210_v7 }
 0x586   : > { %v8278_v16 = vmax.f32 %v8246_v18, 0.0 }
 0x58b   : > { %v8142_v13 = vpop.f32.mrf.mxu1 }
 0x58c   : > { %v8202_v11 = vmul.f32 %v13011_v61, %v8142_v13 }
 0x58e   : > { %v8238_v23 = vadd.f32 %v13021_v49, %v8202_v11 }
 0x590   : > { %v8270_v34 = vmax.f32 %v8238_v23, 0.0 }
 0x593   : > { %v8144_v52 = vpop.f32.mrf.mxu1 }
 0x594   : > { %v8203_v0 = vmul.f32 %v13011_v61, %v8144_v52 }
 0x596   : > { %v8239_v27 = vadd.f32 %v13021_v49, %v8203_v0 }
 0x598   : > { %v8271_v53 = vmax.f32 %v8239_v27, 0.0 }
 0x59a   : > { %v8294_v47 = vpack.c.bf16 %v8271_v53, %v8270_v34 }
 0x59c   : > { %9081 = vxpose.binary.xlu1.c.b16.start [1/16] (narrow) %v8294_v47, %v13031_v4, 16  ;;  %v8206_v4 = vmul.f32 %v13011_v61, %v8152_v8 }
 0x59e   : > { %v8242_v6 = vadd.f32 %v13021_v49, %v8206_v4 }
 0x5a0   : > { %v8274_v56 = vmax.f32 %v8242_v6, 0.0 }
 0x5a2   : > { %v8296_v60 = vpack.c.bf16 %v8275_v51, %v8274_v56 }
 0x5ac   : > { %9082 = vxpose.binary.xlu1.c.b16.cont [2/16] (narrow) %v8295_v37, %v13045_v62, 16  ;;  %v8164_v62 = vpop.f32.mrf.mxu3 }
 0x5ad   : > { %v8211_v40 = vmul.f32 %v13011_v61, %v8164_v62 }
 0x5b4   : > { %v8167_v44 = vpop.f32.mrf.mxu3 }
 0x5b5   : > { %v8212_v26 = vmul.f32 %v13011_v61, %v8167_v44 }
 0x5b7   : > { %v8248_v39 = vadd.f32 %v13021_v49, %v8212_v26 }
 0x5b9   : > { %v8280_v3 = vmax.f32 %v8248_v39, 0.0 }
 0x5bc   : > { %9083 = vxpose.binary.xlu1.c.b16.cont [3/16] (narrow) %v8296_v60, %v13061_v1, 16  ;;  %v8247_v1 = vadd.f32 %v13021_v49, %v8211_v40  ;;  %v8169_v41 = vpop.f32.mrf.mxu3 }
 0x5bd   : > { %v8213_v25 = vmul.f32 %v13011_v61, %v8169_v41 }
 0x5be   : > { %v8279_v38 = vmax.f32 %v8247_v1, 0.0 }
 0x5c0   : > { %v8298_v28 = vpack.c.bf16 %v8279_v38, %v8278_v16 }
 0x5c4   : > { %v8172_v31 = vpop.f32.mrf.mxu3 }
 0x5c5   : > { %v8214_v48 = vmul.f32 %v13011_v61, %v8172_v31 }
 0x5c7   : > { %v8250_v45 = vadd.f32 %v13021_v49, %v8214_v48 }
 0x5c9   : > { %v8282_v11 = vmax.f32 %v8250_v45, 0.0 }
 0x5cc   : > { %9084 = vxpose.binary.xlu1.c.b16.cont [4/16] (narrow) %v8297_v12, %v13076_v21, 16  ;;  %v8249_v21 = vadd.f32 %v13021_v49, %v8213_v25  ;;  %v8174_v55 = vpop.f32.mrf.mxu3 }
 0x5cd   : > { %v8215_v58 = vmul.f32 %v13011_v61, %v8174_v55 }
 0x5ce   : > { %v8281_v14 = vmax.f32 %v8249_v21, 0.0 }
 0x5cf   : > { %v8251_v20 = vadd.f32 %v13021_v49, %v8215_v58 }
 0x5d0   : > { %v8299_v35 = vpack.c.bf16 %v8281_v14, %v8280_v3 }
 0x5d1   : > { %v8283_v13 = vmax.f32 %v8251_v20, 0.0 }
 0x5d3   : > { %v8300_v8 = vpack.c.bf16 %v8283_v13, %v8282_v11 }
 0x5dc   : > { %9085 = vxpose.binary.xlu1.c.b16.cont [5/16] (narrow) %v8298_v28, %v13092_v17, 16  ;;  %v8177_v17 = vpop.f32.mrf.mxu3 }
 0x5e4   : > { %v8179_v52 = vpop.f32.mrf.mxu3 }
 0x5e5   : > { %v8217_v23 = vmul.f32 %v13011_v61, %v8179_v52 }
 0x5e7   : > { %v8253_v0 = vadd.f32 %v13021_v49, %v8217_v23 }
 0x5e9   : > { %v8285_v34 = vmax.f32 %v8253_v0, 0.0 }
 0x5ec   : > { %9086 = vxpose.binary.xlu1.c.b16.cont [6/16] (narrow) %v8299_v35, %v13110_v33, 16  ;;  %v8216_v33 = vmul.f32 %v13011_v61, %v8177_v17 }
 0x5ee   : > { %v8252_v27 = vadd.f32 %v13021_v49, %v8216_v33 }
 0x5f0   : > { %v8284_v53 = vmax.f32 %v8252_v27, 0.0 }
 0x5f2   : > { %v8301_v47 = vpack.c.bf16 %v8285_v34, %v8284_v53 }
 0x5fc   : > { %9087 = vxpose.binary.xlu1.c.b16.cont [7/16] (narrow) %v8300_v8, %v13121_v15, 16 }
 0x60c   : > { %9088 = vxpose.binary.xlu1.c.b16.end [8/16] (narrow) %v8301_v47, %v13127_v63, 16 }
 0x648   : > { %v9089_v54 = vpop.trf.xlu1 }
 0x650   : > { %v9090_v46 = vpop.trf.xlu1 }
 0x651   : > { %v8335_v15 = vrot.slane %v9090_v46, 6 }
 0x653   : > { %v8338_v10 = vsel %vm8090_vm5, %v9089_v54, %v8335_v15 }
 0x654   : > { %8340 = vst [vmem:[%s325_s13] sm:$0xf] %v8338_v10 }
 0x655 PF: > { %s18_s27 = sadd.s32 1, %s9125_s27  }
 0x656   : > { %p15_p4 = scmp.ge.s32.totalorder %s18_s27, 4  }
 0x658   :  { %17 = sbr.rel (!%p15_p4) target bundleno = 1 (0x1), region = 98 }

</bundles_post_ra>
